<compile_context>
chip_gen: v6e
topology: v6e:2x2x1
jax: 0.10.0
libtpu: 0.0.40
codegen_flags: <defaults>
</compile_context>

<pallas_src>
import math
from functools import partial

import jax
import jax.numpy as jnp
from jax import lax
from jax.experimental import pallas as pl
from jax.experimental.pallas import tpu as pltpu

NODE_TYPES = ('paper', 'author', 'term', 'conference')
EDGE_TYPES = (('author', 'to', 'paper'),
              ('paper', 'to', 'author'),
              ('paper', 'to', 'term'),
              ('term', 'to', 'paper'),
              ('conference', 'to', 'paper'),
              ('paper', 'to', 'conference'))

NEG_INF = -1e30
LANE = 128


def _round_up(x, m):
    return ((x + m - 1) // m) * m


def _rel_plan():
    # For each destination node type: list of (edge_type_index, src_type_index).
    plan = [[] for _ in NODE_TYPES]
    for ei, (src_t, _, dst_t) in enumerate(EDGE_TYPES):
        plan[NODE_TYPES.index(dst_t)].append((ei, NODE_TYPES.index(src_t)))
    return plan


REL_PLAN = _rel_plan()


# ----------------------------- in-kernel math helpers --------------------------------

def _erf(x):
    # Abramowitz & Stegun 7.1.26 (abs err < 1.5e-7); the divide goes to the EUP slot.
    a1, a2, a3, a4, a5 = 0.254829592, -0.284496736, 1.421413741, -1.453152027, 1.061405429
    p = 0.3275911
    ax = jnp.abs(x)
    t = pl.reciprocal(1.0 + p * ax, approx=True)
    poly = ((((a5 * t + a4) * t + a3) * t + a2) * t + a1) * t
    r = 1.0 - poly * jnp.exp(-ax * ax)
    return jnp.where(x >= 0.0, r, -r)


def _gelu(x):
    return 0.5 * x * (1.0 + _erf(x * 0.7071067811865476))


# ----------------------------- Pallas kernel ------------------------------------------

def make_layer_kernel(H, D, HDp, use_skip):
    """One kernel per layer: fused KQV projection for all node types, then for every dst
    node type loop (unrolled) over incoming edge types / heads, masked attention, edge-type
    sum aggregation, GELU + batched output projection (+ gated skip)."""
    HD = H * D
    n_t, n_e = len(NODE_TYPES), len(EDGE_TYPES)

    def kernel(*refs):
        i = 0
        x_refs = refs[i:i + n_t]; i += n_t        # [N_t, in_p]   bf16 (padded input)
        kqvw = refs[i:i + n_t]; i += n_t          # [in_p, 3*HD]  bf16 (K | Q | V)
        kqvb = refs[i:i + n_t]; i += n_t          # [1, 3*HD]     f32
        wout = refs[i:i + n_t]; i += n_t          # [HD, HDp]     bf16 (lane-padded cols)
        bout = refs[i:i + n_t]; i += n_t          # [1, HDp]      f32
        arel = refs[i:i + n_e]; i += n_e          # [HD, HD]      bf16 block-diag, prescaled
        mrel = refs[i:i + n_e]; i += n_e          # [HD, HD]      bf16 block-diag
        bias = refs[i:i + n_e]; i += n_e          # [Nd, Ns]      bf16 additive 0 / -1e30
        rowv = refs[i:i + n_e]; i += n_e          # [Nd, 1]       f32, 1 iff dst has an edge
        if use_skip:
            gates = refs[i]; i += 1               # SMEM [n_t]    f32 sigmoid(skip)
        outs = refs[i:i + n_t]                    # [N_t, HDp]    bf16

        # TODO(synk): at real sizes keep only the current dst/src tiles VMEM-resident
        # (grid / emit_pipeline) instead of all four node-type slabs.
        xv = [x_refs[t][...] for t in range(n_t)]

        # Fused K|Q|V projection: one [in_p, 3*HD] bf16 matmul per node type.
        ys = []
        for t in range(n_t):
            y = jnp.dot(xv[t], kqvw[t][...], preferred_element_type=jnp.float32)
            ys.append((y + kqvb[t][...]).astype(jnp.bfloat16))

        for ti in range(n_t):
            q_all = ys[ti][:, HD:2 * HD]                       # [Nd, HD] bf16
            accs = [None] * H
            for (ei, si) in REL_PLAN[ti]:
                # Head-batched relation projections (block-diagonal matrices): one matmul
                # per tensor per edge type instead of H shallow D-contraction matmuls.
                k_rel = jnp.dot(ys[si][:, :HD], arel[ei][...],
                                preferred_element_type=jnp.float32).astype(jnp.bfloat16)
                v_rel = jnp.dot(ys[si][:, 2 * HD:3 * HD], mrel[ei][...],
                                preferred_element_type=jnp.float32).astype(jnp.bfloat16)
                b32 = bias[ei][...].astype(jnp.float32)        # [Nd, Ns]
                rv = rowv[ei][...]                             # [Nd, 1]
                for h in range(H):
                    q_h = q_all[:, h * D:(h + 1) * D]
                    # q @ k^T without explicit transpose (contract last dims).
                    scores = lax.dot_general(
                        q_h, k_rel[:, h * D:(h + 1) * D],
                        (((1,), (1,)), ((), ())),
                        preferred_element_type=jnp.float32) + b32
                    m = jnp.max(scores, axis=-1, keepdims=True)
                    e = jnp.exp(scores - m)
                    s = jnp.sum(e, axis=-1, keepdims=True)     # >= 1 for every valid row
                    alpha = (e * pl.reciprocal(s, approx=True)).astype(jnp.bfloat16)
                    contrib = rv * jnp.dot(alpha, v_rel[:, h * D:(h + 1) * D],
                                           preferred_element_type=jnp.float32)
                    accs[h] = contrib if accs[h] is None else accs[h] + contrib
            # Head-batched output projection: concat per-head aggregates on the lane axis,
            # GELU, then a single [Nd, HD] x [HD, HDp] matmul (lane-dense output columns).
            agg = jnp.concatenate(accs, axis=-1)               # [Nd, HD] f32
            o = jnp.dot(_gelu(agg).astype(jnp.bfloat16), wout[ti][...],
                        preferred_element_type=jnp.float32) + bout[ti][...]
            if use_skip:
                a = gates[ti]                                  # SMEM scalar
                o = a * o + (1.0 - a) * xv[ti].astype(jnp.float32)
            outs[ti][...] = o.astype(outs[ti].dtype)           # full-vreg (128-lane) store

    return kernel


# ----------------------------- kernel wrapper -------------------------------------------

def pallas_layer(xs, p, bias_list, rowv_list, H, D, HDp, use_skip):
    n_t = len(NODE_TYPES)
    args = list(xs)
    args += [p['kqv_w'][t] for t in NODE_TYPES]
    args += [p['kqv_b'][t] for t in NODE_TYPES]
    args += [p['out_w'][t] for t in NODE_TYPES]
    args += [p['out_b'][t] for t in NODE_TYPES]
    args += [p['a_rel_bd'][et] for et in EDGE_TYPES]
    args += [p['m_rel_bd'][et] for et in EDGE_TYPES]
    args += bias_list
    args += rowv_list
    in_specs = [pl.BlockSpec(memory_space=pltpu.MemorySpace.VMEM) for _ in args]
    if use_skip:
        gates = jax.nn.sigmoid(jnp.stack([p['skip'][t] for t in NODE_TYPES]))
        args.append(gates)
        in_specs.append(pl.BlockSpec(memory_space=pltpu.MemorySpace.SMEM))

    kernel = make_layer_kernel(H, D, HDp, use_skip)
    out_shape = tuple(jax.ShapeDtypeStruct((x.shape[0], HDp), jnp.bfloat16) for x in xs)

    # Advisory cost estimate so XLA schedules the surrounding ops around the custom call.
    HD = H * D
    flops, transcendentals = 0, 0
    for ti in range(n_t):
        nd = xs[ti].shape[0]
        flops += 2 * nd * xs[ti].shape[1] * 3 * HD + 2 * nd * HD * HDp
        transcendentals += nd * HD
        for (ei, si) in REL_PLAN[ti]:
            ns = xs[si].shape[0]
            flops += 2 * 2 * ns * HD * HD + 2 * 2 * H * nd * ns * D
            transcendentals += H * nd * ns
    bytes_accessed = sum(int(a.size) * a.dtype.itemsize for a in args)
    bytes_accessed += sum(int(x.shape[0]) * HDp * 2 for x in xs)

    return pl.pallas_call(
        kernel,
        out_shape=out_shape,
        in_specs=in_specs,
        cost_estimate=pl.CostEstimate(flops=flops, transcendentals=transcendentals,
                                      bytes_accessed=bytes_accessed),
        compiler_params=pltpu.CompilerParams(vmem_limit_bytes=32 * 1024 * 1024),
    )(*args)


# ----------------------------- parameters / model glue ----------------------------------

def _block_diag(mats):
    # [H, D, D] -> [H*D, H*D] block diagonal (heads batched into one matmul operand).
    H, D, _ = mats.shape
    out = jnp.zeros((H * D, H * D), mats.dtype)
    for h in range(H):
        out = out.at[h * D:(h + 1) * D, h * D:(h + 1) * D].set(mats[h])
    return out


def init_hgt_conv_params(key, in_dim, in_dim_padded, out_dim, heads):
    H = heads
    D = out_dim // H
    HD = out_dim
    HDp = _round_up(HD, LANE)
    params = {'kqv_w': {}, 'kqv_b': {}, 'out_w': {}, 'out_b': {}, 'skip': {},
              'a_rel_bd': {}, 'm_rel_bd': {}}

    def nxt():
        nonlocal key
        key, sub = jax.random.split(key)
        return sub

    for t in NODE_TYPES:
        wk = 0.1 * jax.random.normal(nxt(), (in_dim, HD), jnp.float32)
        wq = 0.1 * jax.random.normal(nxt(), (in_dim, HD), jnp.float32)
        wv = 0.1 * jax.random.normal(nxt(), (in_dim, HD), jnp.float32)
        w = jnp.concatenate([wk, wq, wv], axis=1)                    # [in, 3*HD]  (K|Q|V)
        if in_dim_padded > in_dim:                                   # zero rows for padded x
            w = jnp.concatenate(
                [w, jnp.zeros((in_dim_padded - in_dim, 3 * HD), jnp.float32)], axis=0)
        params['kqv_w'][t] = w.astype(jnp.bfloat16)
        params['kqv_b'][t] = jnp.zeros((1, 3 * HD), jnp.float32)
        wo = 0.1 * jax.random.normal(nxt(), (HD, HD), jnp.float32)
        wo = jnp.concatenate([wo, jnp.zeros((HD, HDp - HD), jnp.float32)], axis=1)
        params['out_w'][t] = wo.astype(jnp.bfloat16)                 # lane-padded columns
        params['out_b'][t] = jnp.zeros((1, HDp), jnp.float32)
        params['skip'][t] = jnp.ones((), jnp.float32)                # PyG inits skip = 1
    for et in EDGE_TYPES:
        a_rel = 0.1 * jax.random.normal(nxt(), (H, D, D), jnp.float32)
        p_rel = jnp.ones((H,), jnp.float32)                          # PyG inits p_rel = 1
        # Fold relation prior and 1/sqrt(D) into a_rel once (removes per-score multiply).
        a_rel = a_rel * (p_rel / math.sqrt(D))[:, None, None]
        m_rel = 0.1 * jax.random.normal(nxt(), (H, D, D), jnp.float32)
        params['a_rel_bd'][et] = _block_diag(a_rel).astype(jnp.bfloat16)
        params['m_rel_bd'][et] = _block_diag(m_rel).astype(jnp.bfloat16)
    return params


def hgt_conv_apply(p, x_dict, bias_dict, rowv_dict, heads, out_dim, in_dim_logical):
    H = heads
    D = out_dim // H
    HDp = _round_up(out_dim, LANE)
    xs = [x_dict[t] for t in NODE_TYPES]
    use_skip = in_dim_logical == out_dim      # PyG applies gated skip only when dims match
    outs = pallas_layer(xs, p,
                        [bias_dict[et] for et in EDGE_TYPES],
                        [rowv_dict[et] for et in EDGE_TYPES],
                        H, D, HDp, use_skip)
    return dict(zip(NODE_TYPES, outs))


def hgt_apply(params, x_dict, edge_index_dict, idx, heads, out_dim, input_dim):
    # Attention masks depend only on the graph -> built once, reused by every layer.
    bias_dict, rowv_dict = {}, {}
    for et, ei in edge_index_dict.items():
        src_t, _, dst_t = et
        ns = x_dict[src_t].shape[0]
        nd = x_dict[dst_t].shape[0]
        bias_dict[et] = (jnp.full((nd, ns), NEG_INF, jnp.float32)
                         .at[ei[1], ei[0]].set(0.0).astype(jnp.bfloat16))
        rowv_dict[et] = jnp.zeros((nd,), jnp.float32).at[ei[1]].set(1.0).reshape(nd, 1)

    x_dict = {t: x.astype(jnp.bfloat16) for t, x in x_dict.items()}
    in_dim_logical = input_dim
    for lp in params:
        x_dict = hgt_conv_apply(lp, x_dict, bias_dict, rowv_dict,
                                heads, out_dim, in_dim_logical)
        in_dim_logical = out_dim
    # Outputs are lane-padded to 128; truncate back to the logical out_dim at the end.
    return x_dict['author'][idx][:, :out_dim].astype(jnp.float32)


# ----------------------------- main ------------------------------------------------------

if __name__ == "__main__":
    input_dim, hidden_dim, output_dim = 12, 32, 16   # hidden_dim (self.proj/self.norm) unused
    heads, n_layer = 2, 2
    n_nodes = {'paper': 12, 'author': 10, 'term': 8, 'conference': 6}

    key = jax.random.PRNGKey(0)
    HDp = _round_up(output_dim, LANE)

    # deterministic parameters (layer 1 sees raw input_dim; later layers see padded HDp)
    params = []
    in_dims = [(input_dim, input_dim)] + [(output_dim, HDp)] * (n_layer - 1)
    for layer in range(n_layer):
        key, sub = jax.random.split(key)
        d_log, d_pad = in_dims[layer]
        params.append(init_hgt_conv_params(sub, d_log, d_pad, output_dim, heads))

    # node features
    x_dict = {}
    for t in NODE_TYPES:
        key, sub = jax.random.split(key)
        x_dict[t] = jax.random.normal(sub, (n_nodes[t], input_dim), jnp.float32)

    # edge indices (unique src/dst pairs per relation; edge_index[0]=src, [1]=dst)
    edge_index_dict = {}
    for et in EDGE_TYPES:
        src_t, _, dst_t = et
        ns, nd = n_nodes[src_t], n_nodes[dst_t]
        e = min(20, ns * nd)
        key, sub = jax.random.split(key)
        flat = jax.random.choice(sub, ns * nd, (e,), replace=False)
        src = (flat % ns).astype(jnp.int32)
        dst = (flat // ns).astype(jnp.int32)
        edge_index_dict[et] = jnp.stack([src, dst])

    idx = jnp.array([0, 3, 7], dtype=jnp.int32)

    fwd = jax.jit(partial(hgt_apply, heads=heads, out_dim=output_dim, input_dim=input_dim))
    out = fwd(params, x_dict, edge_index_dict, idx)
    jax.block_until_ready(out)

    assert out.shape == (idx.shape[0], output_dim)
    assert bool(jnp.all(jnp.isfinite(out)))
    # TODO(synk): duplicate edges in edge_index would be double-counted by PyG's segment
    # softmax but collapse in the dense-mask formulation; inputs here are duplicate-free.
    print("KERNEL_OK")
</pallas_src>

<mosaic_0001>
module attributes {stable_mosaic.version = 11 : i64} {
  func.func @kernel(%arg0: memref<12x128xbf16, #tpu.memory_space<vmem>>, %arg1: memref<10x128xbf16, #tpu.memory_space<vmem>>, %arg2: memref<8x128xbf16, #tpu.memory_space<vmem>>, %arg3: memref<6x128xbf16, #tpu.memory_space<vmem>>, %arg4: memref<128x48xbf16, #tpu.memory_space<vmem>>, %arg5: memref<128x48xbf16, #tpu.memory_space<vmem>>, %arg6: memref<128x48xbf16, #tpu.memory_space<vmem>>, %arg7: memref<128x48xbf16, #tpu.memory_space<vmem>>, %arg8: memref<1x48xf32, #tpu.memory_space<vmem>>, %arg9: memref<1x48xf32, #tpu.memory_space<vmem>>, %arg10: memref<1x48xf32, #tpu.memory_space<vmem>>, %arg11: memref<1x48xf32, #tpu.memory_space<vmem>>, %arg12: memref<16x128xbf16, #tpu.memory_space<vmem>>, %arg13: memref<16x128xbf16, #tpu.memory_space<vmem>>, %arg14: memref<16x128xbf16, #tpu.memory_space<vmem>>, %arg15: memref<16x128xbf16, #tpu.memory_space<vmem>>, %arg16: memref<1x128xf32, #tpu.memory_space<vmem>>, %arg17: memref<1x128xf32, #tpu.memory_space<vmem>>, %arg18: memref<1x128xf32, #tpu.memory_space<vmem>>, %arg19: memref<1x128xf32, #tpu.memory_space<vmem>>, %arg20: memref<16x16xbf16, #tpu.memory_space<vmem>>, %arg21: memref<16x16xbf16, #tpu.memory_space<vmem>>, %arg22: memref<16x16xbf16, #tpu.memory_space<vmem>>, %arg23: memref<16x16xbf16, #tpu.memory_space<vmem>>, %arg24: memref<16x16xbf16, #tpu.memory_space<vmem>>, %arg25: memref<16x16xbf16, #tpu.memory_space<vmem>>, %arg26: memref<16x16xbf16, #tpu.memory_space<vmem>>, %arg27: memref<16x16xbf16, #tpu.memory_space<vmem>>, %arg28: memref<16x16xbf16, #tpu.memory_space<vmem>>, %arg29: memref<16x16xbf16, #tpu.memory_space<vmem>>, %arg30: memref<16x16xbf16, #tpu.memory_space<vmem>>, %arg31: memref<16x16xbf16, #tpu.memory_space<vmem>>, %arg32: memref<12x10xbf16, #tpu.memory_space<vmem>>, %arg33: memref<10x12xbf16, #tpu.memory_space<vmem>>, %arg34: memref<8x12xbf16, #tpu.memory_space<vmem>>, %arg35: memref<12x8xbf16, #tpu.memory_space<vmem>>, %arg36: memref<12x6xbf16, #tpu.memory_space<vmem>>, %arg37: memref<6x12xbf16, #tpu.memory_space<vmem>>, %arg38: memref<12x1xf32, #tpu.memory_space<vmem>>, %arg39: memref<10x1xf32, #tpu.memory_space<vmem>>, %arg40: memref<8x1xf32, #tpu.memory_space<vmem>>, %arg41: memref<12x1xf32, #tpu.memory_space<vmem>>, %arg42: memref<12x1xf32, #tpu.memory_space<vmem>>, %arg43: memref<6x1xf32, #tpu.memory_space<vmem>>, %arg44: memref<4xf32, #tpu.memory_space<smem>>, %arg45: memref<12x128xbf16, #tpu.memory_space<vmem>>, %arg46: memref<10x128xbf16, #tpu.memory_space<vmem>>, %arg47: memref<8x128xbf16, #tpu.memory_space<vmem>>, %arg48: memref<6x128xbf16, #tpu.memory_space<vmem>>) attributes {dimension_semantics = [], scalar_prefetch = 0 : i64, scratch_operands = 0 : i64, tpu.core_type = #tpu.core_type<tc>} {
    %c0 = arith.constant 0 : index
    %c0_0 = arith.constant 0 : index
    %0 = vector.load %arg0[%c0, %c0_0] : memref<12x128xbf16, #tpu.memory_space<vmem>>, vector<12x128xbf16>
    %c0_1 = arith.constant 0 : index
    %c0_2 = arith.constant 0 : index
    %1 = vector.load %arg1[%c0_1, %c0_2] : memref<10x128xbf16, #tpu.memory_space<vmem>>, vector<10x128xbf16>
    %c0_3 = arith.constant 0 : index
    %c0_4 = arith.constant 0 : index
    %2 = vector.load %arg2[%c0_3, %c0_4] : memref<8x128xbf16, #tpu.memory_space<vmem>>, vector<8x128xbf16>
    %c0_5 = arith.constant 0 : index
    %c0_6 = arith.constant 0 : index
    %3 = vector.load %arg3[%c0_5, %c0_6] : memref<6x128xbf16, #tpu.memory_space<vmem>>, vector<6x128xbf16>
    %c0_7 = arith.constant 0 : index
    %c0_8 = arith.constant 0 : index
    %4 = vector.load %arg4[%c0_7, %c0_8] : memref<128x48xbf16, #tpu.memory_space<vmem>>, vector<128x48xbf16>
    %cst = arith.constant dense<0.000000e+00> : vector<12x48xf32>
    %5 = tpu.matmul %0, %4, %cst {dimension_numbers = #tpu.dot_dimension_numbers<[1], [0], [0], [1], [0, 0, 1, 1], [], []>} : vector<12x128xbf16>, vector<128x48xbf16>, vector<12x48xf32> -> vector<12x48xf32>
    %c0_9 = arith.constant 0 : index
    %c0_10 = arith.constant 0 : index
    %6 = vector.load %arg8[%c0_9, %c0_10] : memref<1x48xf32, #tpu.memory_space<vmem>>, vector<1x48xf32>
    %7 = vector.broadcast %6 : vector<1x48xf32> to vector<12x48xf32>
    %8 = arith.addf %5, %7 : vector<12x48xf32>
    %9 = arith.truncf %8 : vector<12x48xf32> to vector<12x48xbf16>
    %c0_11 = arith.constant 0 : index
    %c0_12 = arith.constant 0 : index
    %10 = vector.load %arg5[%c0_11, %c0_12] : memref<128x48xbf16, #tpu.memory_space<vmem>>, vector<128x48xbf16>
    %cst_13 = arith.constant dense<0.000000e+00> : vector<10x48xf32>
    %11 = tpu.matmul %1, %10, %cst_13 {dimension_numbers = #tpu.dot_dimension_numbers<[1], [0], [0], [1], [0, 0, 1, 1], [], []>} : vector<10x128xbf16>, vector<128x48xbf16>, vector<10x48xf32> -> vector<10x48xf32>
    %c0_14 = arith.constant 0 : index
    %c0_15 = arith.constant 0 : index
    %12 = vector.load %arg9[%c0_14, %c0_15] : memref<1x48xf32, #tpu.memory_space<vmem>>, vector<1x48xf32>
    %13 = vector.broadcast %12 : vector<1x48xf32> to vector<10x48xf32>
    %14 = arith.addf %11, %13 : vector<10x48xf32>
    %15 = arith.truncf %14 : vector<10x48xf32> to vector<10x48xbf16>
    %c0_16 = arith.constant 0 : index
    %c0_17 = arith.constant 0 : index
    %16 = vector.load %arg6[%c0_16, %c0_17] : memref<128x48xbf16, #tpu.memory_space<vmem>>, vector<128x48xbf16>
    %cst_18 = arith.constant dense<0.000000e+00> : vector<8x48xf32>
    %17 = tpu.matmul %2, %16, %cst_18 {dimension_numbers = #tpu.dot_dimension_numbers<[1], [0], [0], [1], [0, 0, 1, 1], [], []>} : vector<8x128xbf16>, vector<128x48xbf16>, vector<8x48xf32> -> vector<8x48xf32>
    %c0_19 = arith.constant 0 : index
    %c0_20 = arith.constant 0 : index
    %18 = vector.load %arg10[%c0_19, %c0_20] : memref<1x48xf32, #tpu.memory_space<vmem>>, vector<1x48xf32>
    %19 = vector.broadcast %18 : vector<1x48xf32> to vector<8x48xf32>
    %20 = arith.addf %17, %19 : vector<8x48xf32>
    %21 = arith.truncf %20 : vector<8x48xf32> to vector<8x48xbf16>
    %c0_21 = arith.constant 0 : index
    %c0_22 = arith.constant 0 : index
    %22 = vector.load %arg7[%c0_21, %c0_22] : memref<128x48xbf16, #tpu.memory_space<vmem>>, vector<128x48xbf16>
    %cst_23 = arith.constant dense<0.000000e+00> : vector<6x48xf32>
    %23 = tpu.matmul %3, %22, %cst_23 {dimension_numbers = #tpu.dot_dimension_numbers<[1], [0], [0], [1], [0, 0, 1, 1], [], []>} : vector<6x128xbf16>, vector<128x48xbf16>, vector<6x48xf32> -> vector<6x48xf32>
    %c0_24 = arith.constant 0 : index
    %c0_25 = arith.constant 0 : index
    %24 = vector.load %arg11[%c0_24, %c0_25] : memref<1x48xf32, #tpu.memory_space<vmem>>, vector<1x48xf32>
    %25 = vector.broadcast %24 : vector<1x48xf32> to vector<6x48xf32>
    %26 = arith.addf %23, %25 : vector<6x48xf32>
    %27 = arith.truncf %26 : vector<6x48xf32> to vector<6x48xbf16>
    %28 = vector.extract_strided_slice %9 {offsets = [0, 16], sizes = [12, 16], strides = [1, 1]} : vector<12x48xbf16> to vector<12x16xbf16>
    %29 = vector.extract_strided_slice %15 {offsets = [0, 0], sizes = [10, 16], strides = [1, 1]} : vector<10x48xbf16> to vector<10x16xbf16>
    %c0_26 = arith.constant 0 : index
    %c0_27 = arith.constant 0 : index
    %30 = vector.load %arg20[%c0_26, %c0_27] : memref<16x16xbf16, #tpu.memory_space<vmem>>, vector<16x16xbf16>
    %cst_28 = arith.constant dense<0.000000e+00> : vector<10x16xf32>
    %31 = tpu.matmul %29, %30, %cst_28 {dimension_numbers = #tpu.dot_dimension_numbers<[1], [0], [0], [1], [0, 0, 1, 1], [], []>} : vector<10x16xbf16>, vector<16x16xbf16>, vector<10x16xf32> -> vector<10x16xf32>
    %32 = arith.truncf %31 : vector<10x16xf32> to vector<10x16xbf16>
    %33 = vector.extract_strided_slice %15 {offsets = [0, 32], sizes = [10, 16], strides = [1, 1]} : vector<10x48xbf16> to vector<10x16xbf16>
    %c0_29 = arith.constant 0 : index
    %c0_30 = arith.constant 0 : index
    %34 = vector.load %arg26[%c0_29, %c0_30] : memref<16x16xbf16, #tpu.memory_space<vmem>>, vector<16x16xbf16>
    %cst_31 = arith.constant dense<0.000000e+00> : vector<10x16xf32>
    %35 = tpu.matmul %33, %34, %cst_31 {dimension_numbers = #tpu.dot_dimension_numbers<[1], [0], [0], [1], [0, 0, 1, 1], [], []>} : vector<10x16xbf16>, vector<16x16xbf16>, vector<10x16xf32> -> vector<10x16xf32>
    %36 = arith.truncf %35 : vector<10x16xf32> to vector<10x16xbf16>
    %c0_32 = arith.constant 0 : index
    %c0_33 = arith.constant 0 : index
    %37 = vector.load %arg32[%c0_32, %c0_33] : memref<12x10xbf16, #tpu.memory_space<vmem>>, vector<12x10xbf16>
    %38 = arith.extf %37 : vector<12x10xbf16> to vector<12x10xf32>
    %c0_34 = arith.constant 0 : index
    %c0_35 = arith.constant 0 : index
    %39 = vector.load %arg38[%c0_34, %c0_35] : memref<12x1xf32, #tpu.memory_space<vmem>>, vector<12x1xf32>
    %40 = vector.extract_strided_slice %28 {offsets = [0, 0], sizes = [12, 8], strides = [1, 1]} : vector<12x16xbf16> to vector<12x8xbf16>
    %41 = vector.extract_strided_slice %32 {offsets = [0, 0], sizes = [10, 8], strides = [1, 1]} : vector<10x16xbf16> to vector<10x8xbf16>
    %cst_36 = arith.constant dense<0.000000e+00> : vector<12x10xf32>
    %42 = tpu.matmul %40, %41, %cst_36 {dimension_numbers = #tpu.dot_dimension_numbers<[1], [1], [0], [0], [0, 0, 1, 0], [], []>} : vector<12x8xbf16>, vector<10x8xbf16>, vector<12x10xf32> -> vector<12x10xf32>
    %43 = arith.addf %42, %38 : vector<12x10xf32>
    %cst_37 = arith.constant dense<0xFF800000> : vector<12xf32>
    %44 = vector.multi_reduction <maximumf>, %43, %cst_37 [1] : vector<12x10xf32> to vector<12xf32>
    %45 = vector.shape_cast %44 : vector<12xf32> to vector<12x1xf32>
    %46 = vector.broadcast %45 : vector<12x1xf32> to vector<12x10xf32>
    %47 = arith.subf %43, %46 : vector<12x10xf32>
    %48 = math.exp %47 : vector<12x10xf32>
    %cst_38 = arith.constant dense<0.000000e+00> : vector<12xf32>
    %49 = vector.multi_reduction <add>, %48, %cst_38 [1] : vector<12x10xf32> to vector<12xf32>
    %50 = vector.shape_cast %49 : vector<12xf32> to vector<12x1xf32>
    %51 = tpu.reciprocal %50 {approx = true} : vector<12x1xf32> -> vector<12x1xf32>
    %52 = vector.broadcast %51 : vector<12x1xf32> to vector<12x10xf32>
    %53 = arith.mulf %48, %52 : vector<12x10xf32>
    %54 = arith.truncf %53 : vector<12x10xf32> to vector<12x10xbf16>
    %55 = vector.extract_strided_slice %36 {offsets = [0, 0], sizes = [10, 8], strides = [1, 1]} : vector<10x16xbf16> to vector<10x8xbf16>
    %cst_39 = arith.constant dense<0.000000e+00> : vector<12x8xf32>
    %56 = tpu.matmul %54, %55, %cst_39 {dimension_numbers = #tpu.dot_dimension_numbers<[1], [0], [0], [1], [0, 0, 1, 1], [], []>} : vector<12x10xbf16>, vector<10x8xbf16>, vector<12x8xf32> -> vector<12x8xf32>
    %57 = vector.broadcast %39 : vector<12x1xf32> to vector<12x8xf32>
    %58 = arith.mulf %57, %56 : vector<12x8xf32>
    %59 = vector.extract_strided_slice %28 {offsets = [0, 8], sizes = [12, 8], strides = [1, 1]} : vector<12x16xbf16> to vector<12x8xbf16>
    %60 = vector.extract_strided_slice %32 {offsets = [0, 8], sizes = [10, 8], strides = [1, 1]} : vector<10x16xbf16> to vector<10x8xbf16>
    %cst_40 = arith.constant dense<0.000000e+00> : vector<12x10xf32>
    %61 = tpu.matmul %59, %60, %cst_40 {dimension_numbers = #tpu.dot_dimension_numbers<[1], [1], [0], [0], [0, 0, 1, 0], [], []>} : vector<12x8xbf16>, vector<10x8xbf16>, vector<12x10xf32> -> vector<12x10xf32>
    %62 = arith.addf %61, %38 : vector<12x10xf32>
    %cst_41 = arith.constant dense<0xFF800000> : vector<12xf32>
    %63 = vector.multi_reduction <maximumf>, %62, %cst_41 [1] : vector<12x10xf32> to vector<12xf32>
    %64 = vector.shape_cast %63 : vector<12xf32> to vector<12x1xf32>
    %65 = vector.broadcast %64 : vector<12x1xf32> to vector<12x10xf32>
    %66 = arith.subf %62, %65 : vector<12x10xf32>
    %67 = math.exp %66 : vector<12x10xf32>
    %cst_42 = arith.constant dense<0.000000e+00> : vector<12xf32>
    %68 = vector.multi_reduction <add>, %67, %cst_42 [1] : vector<12x10xf32> to vector<12xf32>
    %69 = vector.shape_cast %68 : vector<12xf32> to vector<12x1xf32>
    %70 = tpu.reciprocal %69 {approx = true} : vector<12x1xf32> -> vector<12x1xf32>
    %71 = vector.broadcast %70 : vector<12x1xf32> to vector<12x10xf32>
    %72 = arith.mulf %67, %71 : vector<12x10xf32>
    %73 = arith.truncf %72 : vector<12x10xf32> to vector<12x10xbf16>
    %74 = vector.extract_strided_slice %36 {offsets = [0, 8], sizes = [10, 8], strides = [1, 1]} : vector<10x16xbf16> to vector<10x8xbf16>
    %cst_43 = arith.constant dense<0.000000e+00> : vector<12x8xf32>
    %75 = tpu.matmul %73, %74, %cst_43 {dimension_numbers = #tpu.dot_dimension_numbers<[1], [0], [0], [1], [0, 0, 1, 1], [], []>} : vector<12x10xbf16>, vector<10x8xbf16>, vector<12x8xf32> -> vector<12x8xf32>
    %76 = vector.broadcast %39 : vector<12x1xf32> to vector<12x8xf32>
    %77 = arith.mulf %76, %75 : vector<12x8xf32>
    %78 = vector.extract_strided_slice %21 {offsets = [0, 0], sizes = [8, 16], strides = [1, 1]} : vector<8x48xbf16> to vector<8x16xbf16>
    %c0_44 = arith.constant 0 : index
    %c0_45 = arith.constant 0 : index
    %79 = vector.load %arg23[%c0_44, %c0_45] : memref<16x16xbf16, #tpu.memory_space<vmem>>, vector<16x16xbf16>
    %cst_46 = arith.constant dense<0.000000e+00> : vector<8x16xf32>
    %80 = tpu.matmul %78, %79, %cst_46 {dimension_numbers = #tpu.dot_dimension_numbers<[1], [0], [0], [1], [0, 0, 1, 1], [], []>} : vector<8x16xbf16>, vector<16x16xbf16>, vector<8x16xf32> -> vector<8x16xf32>
    %81 = arith.truncf %80 : vector<8x16xf32> to vector<8x16xbf16>
    %82 = vector.extract_strided_slice %21 {offsets = [0, 32], sizes = [8, 16], strides = [1, 1]} : vector<8x48xbf16> to vector<8x16xbf16>
    %c0_47 = arith.constant 0 : index
    %c0_48 = arith.constant 0 : index
    %83 = vector.load %arg29[%c0_47, %c0_48] : memref<16x16xbf16, #tpu.memory_space<vmem>>, vector<16x16xbf16>
    %cst_49 = arith.constant dense<0.000000e+00> : vector<8x16xf32>
    %84 = tpu.matmul %82, %83, %cst_49 {dimension_numbers = #tpu.dot_dimension_numbers<[1], [0], [0], [1], [0, 0, 1, 1], [], []>} : vector<8x16xbf16>, vector<16x16xbf16>, vector<8x16xf32> -> vector<8x16xf32>
    %85 = arith.truncf %84 : vector<8x16xf32> to vector<8x16xbf16>
    %c0_50 = arith.constant 0 : index
    %c0_51 = arith.constant 0 : index
    %86 = vector.load %arg35[%c0_50, %c0_51] : memref<12x8xbf16, #tpu.memory_space<vmem>>, vector<12x8xbf16>
    %87 = arith.extf %86 : vector<12x8xbf16> to vector<12x8xf32>
    %c0_52 = arith.constant 0 : index
    %c0_53 = arith.constant 0 : index
    %88 = vector.load %arg41[%c0_52, %c0_53] : memref<12x1xf32, #tpu.memory_space<vmem>>, vector<12x1xf32>
    %89 = vector.extract_strided_slice %28 {offsets = [0, 0], sizes = [12, 8], strides = [1, 1]} : vector<12x16xbf16> to vector<12x8xbf16>
    %90 = vector.extract_strided_slice %81 {offsets = [0, 0], sizes = [8, 8], strides = [1, 1]} : vector<8x16xbf16> to vector<8x8xbf16>
    %cst_54 = arith.constant dense<0.000000e+00> : vector<12x8xf32>
    %91 = tpu.matmul %89, %90, %cst_54 {dimension_numbers = #tpu.dot_dimension_numbers<[1], [1], [0], [0], [0, 0, 1, 0], [], []>} : vector<12x8xbf16>, vector<8x8xbf16>, vector<12x8xf32> -> vector<12x8xf32>
    %92 = arith.addf %91, %87 : vector<12x8xf32>
    %cst_55 = arith.constant dense<0xFF800000> : vector<12xf32>
    %93 = vector.multi_reduction <maximumf>, %92, %cst_55 [1] : vector<12x8xf32> to vector<12xf32>
    %94 = vector.shape_cast %93 : vector<12xf32> to vector<12x1xf32>
    %95 = vector.broadcast %94 : vector<12x1xf32> to vector<12x8xf32>
    %96 = arith.subf %92, %95 : vector<12x8xf32>
    %97 = math.exp %96 : vector<12x8xf32>
    %cst_56 = arith.constant dense<0.000000e+00> : vector<12xf32>
    %98 = vector.multi_reduction <add>, %97, %cst_56 [1] : vector<12x8xf32> to vector<12xf32>
    %99 = vector.shape_cast %98 : vector<12xf32> to vector<12x1xf32>
    %100 = tpu.reciprocal %99 {approx = true} : vector<12x1xf32> -> vector<12x1xf32>
    %101 = vector.broadcast %100 : vector<12x1xf32> to vector<12x8xf32>
    %102 = arith.mulf %97, %101 : vector<12x8xf32>
    %103 = arith.truncf %102 : vector<12x8xf32> to vector<12x8xbf16>
    %104 = vector.extract_strided_slice %85 {offsets = [0, 0], sizes = [8, 8], strides = [1, 1]} : vector<8x16xbf16> to vector<8x8xbf16>
    %cst_57 = arith.constant dense<0.000000e+00> : vector<12x8xf32>
    %105 = tpu.matmul %103, %104, %cst_57 {dimension_numbers = #tpu.dot_dimension_numbers<[1], [0], [0], [1], [0, 0, 1, 1], [], []>} : vector<12x8xbf16>, vector<8x8xbf16>, vector<12x8xf32> -> vector<12x8xf32>
    %106 = vector.broadcast %88 : vector<12x1xf32> to vector<12x8xf32>
    %107 = arith.mulf %106, %105 : vector<12x8xf32>
    %108 = arith.addf %58, %107 : vector<12x8xf32>
    %109 = vector.extract_strided_slice %28 {offsets = [0, 8], sizes = [12, 8], strides = [1, 1]} : vector<12x16xbf16> to vector<12x8xbf16>
    %110 = vector.extract_strided_slice %81 {offsets = [0, 8], sizes = [8, 8], strides = [1, 1]} : vector<8x16xbf16> to vector<8x8xbf16>
    %cst_58 = arith.constant dense<0.000000e+00> : vector<12x8xf32>
    %111 = tpu.matmul %109, %110, %cst_58 {dimension_numbers = #tpu.dot_dimension_numbers<[1], [1], [0], [0], [0, 0, 1, 0], [], []>} : vector<12x8xbf16>, vector<8x8xbf16>, vector<12x8xf32> -> vector<12x8xf32>
    %112 = arith.addf %111, %87 : vector<12x8xf32>
    %cst_59 = arith.constant dense<0xFF800000> : vector<12xf32>
    %113 = vector.multi_reduction <maximumf>, %112, %cst_59 [1] : vector<12x8xf32> to vector<12xf32>
    %114 = vector.shape_cast %113 : vector<12xf32> to vector<12x1xf32>
    %115 = vector.broadcast %114 : vector<12x1xf32> to vector<12x8xf32>
    %116 = arith.subf %112, %115 : vector<12x8xf32>
    %117 = math.exp %116 : vector<12x8xf32>
    %cst_60 = arith.constant dense<0.000000e+00> : vector<12xf32>
    %118 = vector.multi_reduction <add>, %117, %cst_60 [1] : vector<12x8xf32> to vector<12xf32>
    %119 = vector.shape_cast %118 : vector<12xf32> to vector<12x1xf32>
    %120 = tpu.reciprocal %119 {approx = true} : vector<12x1xf32> -> vector<12x1xf32>
    %121 = vector.broadcast %120 : vector<12x1xf32> to vector<12x8xf32>
    %122 = arith.mulf %117, %121 : vector<12x8xf32>
    %123 = arith.truncf %122 : vector<12x8xf32> to vector<12x8xbf16>
    %124 = vector.extract_strided_slice %85 {offsets = [0, 8], sizes = [8, 8], strides = [1, 1]} : vector<8x16xbf16> to vector<8x8xbf16>
    %cst_61 = arith.constant dense<0.000000e+00> : vector<12x8xf32>
    %125 = tpu.matmul %123, %124, %cst_61 {dimension_numbers = #tpu.dot_dimension_numbers<[1], [0], [0], [1], [0, 0, 1, 1], [], []>} : vector<12x8xbf16>, vector<8x8xbf16>, vector<12x8xf32> -> vector<12x8xf32>
    %126 = vector.broadcast %88 : vector<12x1xf32> to vector<12x8xf32>
    %127 = arith.mulf %126, %125 : vector<12x8xf32>
    %128 = arith.addf %77, %127 : vector<12x8xf32>
    %129 = vector.extract_strided_slice %27 {offsets = [0, 0], sizes = [6, 16], strides = [1, 1]} : vector<6x48xbf16> to vector<6x16xbf16>
    %c0_62 = arith.constant 0 : index
    %c0_63 = arith.constant 0 : index
    %130 = vector.load %arg24[%c0_62, %c0_63] : memref<16x16xbf16, #tpu.memory_space<vmem>>, vector<16x16xbf16>
    %cst_64 = arith.constant dense<0.000000e+00> : vector<6x16xf32>
    %131 = tpu.matmul %129, %130, %cst_64 {dimension_numbers = #tpu.dot_dimension_numbers<[1], [0], [0], [1], [0, 0, 1, 1], [], []>} : vector<6x16xbf16>, vector<16x16xbf16>, vector<6x16xf32> -> vector<6x16xf32>
    %132 = arith.truncf %131 : vector<6x16xf32> to vector<6x16xbf16>
    %133 = vector.extract_strided_slice %27 {offsets = [0, 32], sizes = [6, 16], strides = [1, 1]} : vector<6x48xbf16> to vector<6x16xbf16>
    %c0_65 = arith.constant 0 : index
    %c0_66 = arith.constant 0 : index
    %134 = vector.load %arg30[%c0_65, %c0_66] : memref<16x16xbf16, #tpu.memory_space<vmem>>, vector<16x16xbf16>
    %cst_67 = arith.constant dense<0.000000e+00> : vector<6x16xf32>
    %135 = tpu.matmul %133, %134, %cst_67 {dimension_numbers = #tpu.dot_dimension_numbers<[1], [0], [0], [1], [0, 0, 1, 1], [], []>} : vector<6x16xbf16>, vector<16x16xbf16>, vector<6x16xf32> -> vector<6x16xf32>
    %136 = arith.truncf %135 : vector<6x16xf32> to vector<6x16xbf16>
    %c0_68 = arith.constant 0 : index
    %c0_69 = arith.constant 0 : index
    %137 = vector.load %arg36[%c0_68, %c0_69] : memref<12x6xbf16, #tpu.memory_space<vmem>>, vector<12x6xbf16>
    %138 = arith.extf %137 : vector<12x6xbf16> to vector<12x6xf32>
    %c0_70 = arith.constant 0 : index
    %c0_71 = arith.constant 0 : index
    %139 = vector.load %arg42[%c0_70, %c0_71] : memref<12x1xf32, #tpu.memory_space<vmem>>, vector<12x1xf32>
    %140 = vector.extract_strided_slice %28 {offsets = [0, 0], sizes = [12, 8], strides = [1, 1]} : vector<12x16xbf16> to vector<12x8xbf16>
    %141 = vector.extract_strided_slice %132 {offsets = [0, 0], sizes = [6, 8], strides = [1, 1]} : vector<6x16xbf16> to vector<6x8xbf16>
    %cst_72 = arith.constant dense<0.000000e+00> : vector<12x6xf32>
    %142 = tpu.matmul %140, %141, %cst_72 {dimension_numbers = #tpu.dot_dimension_numbers<[1], [1], [0], [0], [0, 0, 1, 0], [], []>} : vector<12x8xbf16>, vector<6x8xbf16>, vector<12x6xf32> -> vector<12x6xf32>
    %143 = arith.addf %142, %138 : vector<12x6xf32>
    %cst_73 = arith.constant dense<0xFF800000> : vector<12xf32>
    %144 = vector.multi_reduction <maximumf>, %143, %cst_73 [1] : vector<12x6xf32> to vector<12xf32>
    %145 = vector.shape_cast %144 : vector<12xf32> to vector<12x1xf32>
    %146 = vector.broadcast %145 : vector<12x1xf32> to vector<12x6xf32>
    %147 = arith.subf %143, %146 : vector<12x6xf32>
    %148 = math.exp %147 : vector<12x6xf32>
    %cst_74 = arith.constant dense<0.000000e+00> : vector<12xf32>
    %149 = vector.multi_reduction <add>, %148, %cst_74 [1] : vector<12x6xf32> to vector<12xf32>
    %150 = vector.shape_cast %149 : vector<12xf32> to vector<12x1xf32>
    %151 = tpu.reciprocal %150 {approx = true} : vector<12x1xf32> -> vector<12x1xf32>
    %152 = vector.broadcast %151 : vector<12x1xf32> to vector<12x6xf32>
    %153 = arith.mulf %148, %152 : vector<12x6xf32>
    %154 = arith.truncf %153 : vector<12x6xf32> to vector<12x6xbf16>
    %155 = vector.extract_strided_slice %136 {offsets = [0, 0], sizes = [6, 8], strides = [1, 1]} : vector<6x16xbf16> to vector<6x8xbf16>
    %cst_75 = arith.constant dense<0.000000e+00> : vector<12x8xf32>
    %156 = tpu.matmul %154, %155, %cst_75 {dimension_numbers = #tpu.dot_dimension_numbers<[1], [0], [0], [1], [0, 0, 1, 1], [], []>} : vector<12x6xbf16>, vector<6x8xbf16>, vector<12x8xf32> -> vector<12x8xf32>
    %157 = vector.broadcast %139 : vector<12x1xf32> to vector<12x8xf32>
    %158 = arith.mulf %157, %156 : vector<12x8xf32>
    %159 = arith.addf %108, %158 : vector<12x8xf32>
    %160 = vector.extract_strided_slice %28 {offsets = [0, 8], sizes = [12, 8], strides = [1, 1]} : vector<12x16xbf16> to vector<12x8xbf16>
    %161 = vector.extract_strided_slice %132 {offsets = [0, 8], sizes = [6, 8], strides = [1, 1]} : vector<6x16xbf16> to vector<6x8xbf16>
    %cst_76 = arith.constant dense<0.000000e+00> : vector<12x6xf32>
    %162 = tpu.matmul %160, %161, %cst_76 {dimension_numbers = #tpu.dot_dimension_numbers<[1], [1], [0], [0], [0, 0, 1, 0], [], []>} : vector<12x8xbf16>, vector<6x8xbf16>, vector<12x6xf32> -> vector<12x6xf32>
    %163 = arith.addf %162, %138 : vector<12x6xf32>
    %cst_77 = arith.constant dense<0xFF800000> : vector<12xf32>
    %164 = vector.multi_reduction <maximumf>, %163, %cst_77 [1] : vector<12x6xf32> to vector<12xf32>
    %165 = vector.shape_cast %164 : vector<12xf32> to vector<12x1xf32>
    %166 = vector.broadcast %165 : vector<12x1xf32> to vector<12x6xf32>
    %167 = arith.subf %163, %166 : vector<12x6xf32>
    %168 = math.exp %167 : vector<12x6xf32>
    %cst_78 = arith.constant dense<0.000000e+00> : vector<12xf32>
    %169 = vector.multi_reduction <add>, %168, %cst_78 [1] : vector<12x6xf32> to vector<12xf32>
    %170 = vector.shape_cast %169 : vector<12xf32> to vector<12x1xf32>
    %171 = tpu.reciprocal %170 {approx = true} : vector<12x1xf32> -> vector<12x1xf32>
    %172 = vector.broadcast %171 : vector<12x1xf32> to vector<12x6xf32>
    %173 = arith.mulf %168, %172 : vector<12x6xf32>
    %174 = arith.truncf %173 : vector<12x6xf32> to vector<12x6xbf16>
    %175 = vector.extract_strided_slice %136 {offsets = [0, 8], sizes = [6, 8], strides = [1, 1]} : vector<6x16xbf16> to vector<6x8xbf16>
    %cst_79 = arith.constant dense<0.000000e+00> : vector<12x8xf32>
    %176 = tpu.matmul %174, %175, %cst_79 {dimension_numbers = #tpu.dot_dimension_numbers<[1], [0], [0], [1], [0, 0, 1, 1], [], []>} : vector<12x6xbf16>, vector<6x8xbf16>, vector<12x8xf32> -> vector<12x8xf32>
    %177 = vector.broadcast %139 : vector<12x1xf32> to vector<12x8xf32>
    %178 = arith.mulf %177, %176 : vector<12x8xf32>
    %179 = arith.addf %128, %178 : vector<12x8xf32>
    %180 = tpu.concatenate %159, %179 in 1 : vector<12x8xf32>, vector<12x8xf32> -> vector<12x16xf32>
    %cst_80 = arith.constant 5.000000e-01 : f32
    %181 = vector.broadcast %cst_80 : f32 to vector<12x16xf32>
    %182 = arith.mulf %181, %180 : vector<12x16xf32>
    %cst_81 = arith.constant 0.707106769 : f32
    %183 = vector.broadcast %cst_81 : f32 to vector<12x16xf32>
    %184 = arith.mulf %180, %183 : vector<12x16xf32>
    %185 = math.absf %184 : vector<12x16xf32>
    %cst_82 = arith.constant 0.327591091 : f32
    %186 = vector.broadcast %cst_82 : f32 to vector<12x16xf32>
    %187 = arith.mulf %186, %185 : vector<12x16xf32>
    %cst_83 = arith.constant 1.000000e+00 : f32
    %188 = vector.broadcast %cst_83 : f32 to vector<12x16xf32>
    %189 = arith.addf %188, %187 : vector<12x16xf32>
    %190 = tpu.reciprocal %189 {approx = true} : vector<12x16xf32> -> vector<12x16xf32>
    %cst_84 = arith.constant 1.06140542 : f32
    %191 = vector.broadcast %cst_84 : f32 to vector<12x16xf32>
    %192 = arith.mulf %191, %190 : vector<12x16xf32>
    %cst_85 = arith.constant -1.45315206 : f32
    %193 = vector.broadcast %cst_85 : f32 to vector<12x16xf32>
    %194 = arith.addf %192, %193 : vector<12x16xf32>
    %195 = arith.mulf %194, %190 : vector<12x16xf32>
    %cst_86 = arith.constant 1.42141378 : f32
    %196 = vector.broadcast %cst_86 : f32 to vector<12x16xf32>
    %197 = arith.addf %195, %196 : vector<12x16xf32>
    %198 = arith.mulf %197, %190 : vector<12x16xf32>
    %cst_87 = arith.constant -0.284496725 : f32
    %199 = vector.broadcast %cst_87 : f32 to vector<12x16xf32>
    %200 = arith.addf %198, %199 : vector<12x16xf32>
    %201 = arith.mulf %200, %190 : vector<12x16xf32>
    %cst_88 = arith.constant 0.254829586 : f32
    %202 = vector.broadcast %cst_88 : f32 to vector<12x16xf32>
    %203 = arith.addf %201, %202 : vector<12x16xf32>
    %204 = arith.mulf %203, %190 : vector<12x16xf32>
    %cst_89 = arith.constant 0.000000e+00 : f32
    %205 = vector.broadcast %cst_89 : f32 to vector<12x16xf32>
    %206 = arith.subf %205, %185 : vector<12x16xf32>
    %207 = arith.mulf %206, %185 : vector<12x16xf32>
    %208 = math.exp %207 : vector<12x16xf32>
    %209 = arith.mulf %204, %208 : vector<12x16xf32>
    %cst_90 = arith.constant 1.000000e+00 : f32
    %210 = vector.broadcast %cst_90 : f32 to vector<12x16xf32>
    %211 = arith.subf %210, %209 : vector<12x16xf32>
    %cst_91 = arith.constant 0.000000e+00 : f32
    %212 = vector.broadcast %cst_91 : f32 to vector<12x16xf32>
    %213 = arith.cmpf oge, %184, %212 : vector<12x16xf32>
    %cst_92 = arith.constant 0.000000e+00 : f32
    %214 = vector.broadcast %cst_92 : f32 to vector<12x16xf32>
    %215 = arith.subf %214, %211 : vector<12x16xf32>
    %216 = arith.select %213, %211, %215 : vector<12x16xi1>, vector<12x16xf32>
    %cst_93 = arith.constant 1.000000e+00 : f32
    %217 = vector.broadcast %cst_93 : f32 to vector<12x16xf32>
    %218 = arith.addf %217, %216 : vector<12x16xf32>
    %219 = arith.mulf %182, %218 : vector<12x16xf32>
    %220 = arith.truncf %219 : vector<12x16xf32> to vector<12x16xbf16>
    %c0_94 = arith.constant 0 : index
    %c0_95 = arith.constant 0 : index
    %221 = vector.load %arg12[%c0_94, %c0_95] : memref<16x128xbf16, #tpu.memory_space<vmem>>, vector<16x128xbf16>
    %cst_96 = arith.constant dense<0.000000e+00> : vector<12x128xf32>
    %222 = tpu.matmul %220, %221, %cst_96 {dimension_numbers = #tpu.dot_dimension_numbers<[1], [0], [0], [1], [0, 0, 1, 1], [], []>} : vector<12x16xbf16>, vector<16x128xbf16>, vector<12x128xf32> -> vector<12x128xf32>
    %c0_97 = arith.constant 0 : index
    %c0_98 = arith.constant 0 : index
    %223 = vector.load %arg16[%c0_97, %c0_98] : memref<1x128xf32, #tpu.memory_space<vmem>>, vector<1x128xf32>
    %224 = vector.broadcast %223 : vector<1x128xf32> to vector<12x128xf32>
    %225 = arith.addf %222, %224 : vector<12x128xf32>
    %c0_99 = arith.constant 0 : index
    %226 = memref.load %arg44[%c0_99] : memref<4xf32, #tpu.memory_space<smem>>
    %227 = vector.broadcast %226 : f32 to vector<12x128xf32>
    %228 = arith.mulf %227, %225 : vector<12x128xf32>
    %cst_100 = arith.constant 1.000000e+00 : f32
    %229 = arith.subf %cst_100, %226 : f32
    %230 = arith.extf %0 : vector<12x128xbf16> to vector<12x128xf32>
    %231 = vector.broadcast %229 : f32 to vector<12x128xf32>
    %232 = arith.mulf %231, %230 : vector<12x128xf32>
    %233 = arith.addf %228, %232 : vector<12x128xf32>
    %234 = arith.truncf %233 : vector<12x128xf32> to vector<12x128xbf16>
    %c0_101 = arith.constant 0 : index
    %c0_102 = arith.constant 0 : index
    %235 = vector.load %arg45[%c0_101, %c0_102] : memref<12x128xbf16, #tpu.memory_space<vmem>>, vector<12x128xbf16>
    tpu.vector_store %arg45[%c0_101, %c0_102], %234 {strides = array<i32>} : memref<12x128xbf16, #tpu.memory_space<vmem>>, vector<12x128xbf16>,
    %236 = vector.extract_strided_slice %15 {offsets = [0, 16], sizes = [10, 16], strides = [1, 1]} : vector<10x48xbf16> to vector<10x16xbf16>
    %237 = vector.extract_strided_slice %9 {offsets = [0, 0], sizes = [12, 16], strides = [1, 1]} : vector<12x48xbf16> to vector<12x16xbf16>
    %c0_103 = arith.constant 0 : index
    %c0_104 = arith.constant 0 : index
    %238 = vector.load %arg21[%c0_103, %c0_104] : memref<16x16xbf16, #tpu.memory_space<vmem>>, vector<16x16xbf16>
    %cst_105 = arith.constant dense<0.000000e+00> : vector<12x16xf32>
    %239 = tpu.matmul %237, %238, %cst_105 {dimension_numbers = #tpu.dot_dimension_numbers<[1], [0], [0], [1], [0, 0, 1, 1], [], []>} : vector<12x16xbf16>, vector<16x16xbf16>, vector<12x16xf32> -> vector<12x16xf32>
    %240 = arith.truncf %239 : vector<12x16xf32> to vector<12x16xbf16>
    %241 = vector.extract_strided_slice %9 {offsets = [0, 32], sizes = [12, 16], strides = [1, 1]} : vector<12x48xbf16> to vector<12x16xbf16>
    %c0_106 = arith.constant 0 : index
    %c0_107 = arith.constant 0 : index
    %242 = vector.load %arg27[%c0_106, %c0_107] : memref<16x16xbf16, #tpu.memory_space<vmem>>, vector<16x16xbf16>
    %cst_108 = arith.constant dense<0.000000e+00> : vector<12x16xf32>
    %243 = tpu.matmul %241, %242, %cst_108 {dimension_numbers = #tpu.dot_dimension_numbers<[1], [0], [0], [1], [0, 0, 1, 1], [], []>} : vector<12x16xbf16>, vector<16x16xbf16>, vector<12x16xf32> -> vector<12x16xf32>
    %244 = arith.truncf %243 : vector<12x16xf32> to vector<12x16xbf16>
    %c0_109 = arith.constant 0 : index
    %c0_110 = arith.constant 0 : index
    %245 = vector.load %arg33[%c0_109, %c0_110] : memref<10x12xbf16, #tpu.memory_space<vmem>>, vector<10x12xbf16>
    %246 = arith.extf %245 : vector<10x12xbf16> to vector<10x12xf32>
    %c0_111 = arith.constant 0 : index
    %c0_112 = arith.constant 0 : index
    %247 = vector.load %arg39[%c0_111, %c0_112] : memref<10x1xf32, #tpu.memory_space<vmem>>, vector<10x1xf32>
    %248 = vector.extract_strided_slice %236 {offsets = [0, 0], sizes = [10, 8], strides = [1, 1]} : vector<10x16xbf16> to vector<10x8xbf16>
    %249 = vector.extract_strided_slice %240 {offsets = [0, 0], sizes = [12, 8], strides = [1, 1]} : vector<12x16xbf16> to vector<12x8xbf16>
    %cst_113 = arith.constant dense<0.000000e+00> : vector<10x12xf32>
    %250 = tpu.matmul %248, %249, %cst_113 {dimension_numbers = #tpu.dot_dimension_numbers<[1], [1], [0], [0], [0, 0, 1, 0], [], []>} : vector<10x8xbf16>, vector<12x8xbf16>, vector<10x12xf32> -> vector<10x12xf32>
    %251 = arith.addf %250, %246 : vector<10x12xf32>
    %cst_114 = arith.constant dense<0xFF800000> : vector<10xf32>
    %252 = vector.multi_reduction <maximumf>, %251, %cst_114 [1] : vector<10x12xf32> to vector<10xf32>
    %253 = vector.shape_cast %252 : vector<10xf32> to vector<10x1xf32>
    %254 = vector.broadcast %253 : vector<10x1xf32> to vector<10x12xf32>
    %255 = arith.subf %251, %254 : vector<10x12xf32>
    %256 = math.exp %255 : vector<10x12xf32>
    %cst_115 = arith.constant dense<0.000000e+00> : vector<10xf32>
    %257 = vector.multi_reduction <add>, %256, %cst_115 [1] : vector<10x12xf32> to vector<10xf32>
    %258 = vector.shape_cast %257 : vector<10xf32> to vector<10x1xf32>
    %259 = tpu.reciprocal %258 {approx = true} : vector<10x1xf32> -> vector<10x1xf32>
    %260 = vector.broadcast %259 : vector<10x1xf32> to vector<10x12xf32>
    %261 = arith.mulf %256, %260 : vector<10x12xf32>
    %262 = arith.truncf %261 : vector<10x12xf32> to vector<10x12xbf16>
    %263 = vector.extract_strided_slice %244 {offsets = [0, 0], sizes = [12, 8], strides = [1, 1]} : vector<12x16xbf16> to vector<12x8xbf16>
    %cst_116 = arith.constant dense<0.000000e+00> : vector<10x8xf32>
    %264 = tpu.matmul %262, %263, %cst_116 {dimension_numbers = #tpu.dot_dimension_numbers<[1], [0], [0], [1], [0, 0, 1, 1], [], []>} : vector<10x12xbf16>, vector<12x8xbf16>, vector<10x8xf32> -> vector<10x8xf32>
    %265 = vector.broadcast %247 : vector<10x1xf32> to vector<10x8xf32>
    %266 = arith.mulf %265, %264 : vector<10x8xf32>
    %267 = vector.extract_strided_slice %236 {offsets = [0, 8], sizes = [10, 8], strides = [1, 1]} : vector<10x16xbf16> to vector<10x8xbf16>
    %268 = vector.extract_strided_slice %240 {offsets = [0, 8], sizes = [12, 8], strides = [1, 1]} : vector<12x16xbf16> to vector<12x8xbf16>
    %cst_117 = arith.constant dense<0.000000e+00> : vector<10x12xf32>
    %269 = tpu.matmul %267, %268, %cst_117 {dimension_numbers = #tpu.dot_dimension_numbers<[1], [1], [0], [0], [0, 0, 1, 0], [], []>} : vector<10x8xbf16>, vector<12x8xbf16>, vector<10x12xf32> -> vector<10x12xf32>
    %270 = arith.addf %269, %246 : vector<10x12xf32>
    %cst_118 = arith.constant dense<0xFF800000> : vector<10xf32>
    %271 = vector.multi_reduction <maximumf>, %270, %cst_118 [1] : vector<10x12xf32> to vector<10xf32>
    %272 = vector.shape_cast %271 : vector<10xf32> to vector<10x1xf32>
    %273 = vector.broadcast %272 : vector<10x1xf32> to vector<10x12xf32>
    %274 = arith.subf %270, %273 : vector<10x12xf32>
    %275 = math.exp %274 : vector<10x12xf32>
    %cst_119 = arith.constant dense<0.000000e+00> : vector<10xf32>
    %276 = vector.multi_reduction <add>, %275, %cst_119 [1] : vector<10x12xf32> to vector<10xf32>
    %277 = vector.shape_cast %276 : vector<10xf32> to vector<10x1xf32>
    %278 = tpu.reciprocal %277 {approx = true} : vector<10x1xf32> -> vector<10x1xf32>
    %279 = vector.broadcast %278 : vector<10x1xf32> to vector<10x12xf32>
    %280 = arith.mulf %275, %279 : vector<10x12xf32>
    %281 = arith.truncf %280 : vector<10x12xf32> to vector<10x12xbf16>
    %282 = vector.extract_strided_slice %244 {offsets = [0, 8], sizes = [12, 8], strides = [1, 1]} : vector<12x16xbf16> to vector<12x8xbf16>
    %cst_120 = arith.constant dense<0.000000e+00> : vector<10x8xf32>
    %283 = tpu.matmul %281, %282, %cst_120 {dimension_numbers = #tpu.dot_dimension_numbers<[1], [0], [0], [1], [0, 0, 1, 1], [], []>} : vector<10x12xbf16>, vector<12x8xbf16>, vector<10x8xf32> -> vector<10x8xf32>
    %284 = vector.broadcast %247 : vector<10x1xf32> to vector<10x8xf32>
    %285 = arith.mulf %284, %283 : vector<10x8xf32>
    %286 = tpu.concatenate %266, %285 in 1 : vector<10x8xf32>, vector<10x8xf32> -> vector<10x16xf32>
    %cst_121 = arith.constant 5.000000e-01 : f32
    %287 = vector.broadcast %cst_121 : f32 to vector<10x16xf32>
    %288 = arith.mulf %287, %286 : vector<10x16xf32>
    %cst_122 = arith.constant 0.707106769 : f32
    %289 = vector.broadcast %cst_122 : f32 to vector<10x16xf32>
    %290 = arith.mulf %286, %289 : vector<10x16xf32>
    %291 = math.absf %290 : vector<10x16xf32>
    %cst_123 = arith.constant 0.327591091 : f32
    %292 = vector.broadcast %cst_123 : f32 to vector<10x16xf32>
    %293 = arith.mulf %292, %291 : vector<10x16xf32>
    %cst_124 = arith.constant 1.000000e+00 : f32
    %294 = vector.broadcast %cst_124 : f32 to vector<10x16xf32>
    %295 = arith.addf %294, %293 : vector<10x16xf32>
    %296 = tpu.reciprocal %295 {approx = true} : vector<10x16xf32> -> vector<10x16xf32>
    %cst_125 = arith.constant 1.06140542 : f32
    %297 = vector.broadcast %cst_125 : f32 to vector<10x16xf32>
    %298 = arith.mulf %297, %296 : vector<10x16xf32>
    %cst_126 = arith.constant -1.45315206 : f32
    %299 = vector.broadcast %cst_126 : f32 to vector<10x16xf32>
    %300 = arith.addf %298, %299 : vector<10x16xf32>
    %301 = arith.mulf %300, %296 : vector<10x16xf32>
    %cst_127 = arith.constant 1.42141378 : f32
    %302 = vector.broadcast %cst_127 : f32 to vector<10x16xf32>
    %303 = arith.addf %301, %302 : vector<10x16xf32>
    %304 = arith.mulf %303, %296 : vector<10x16xf32>
    %cst_128 = arith.constant -0.284496725 : f32
    %305 = vector.broadcast %cst_128 : f32 to vector<10x16xf32>
    %306 = arith.addf %304, %305 : vector<10x16xf32>
    %307 = arith.mulf %306, %296 : vector<10x16xf32>
    %cst_129 = arith.constant 0.254829586 : f32
    %308 = vector.broadcast %cst_129 : f32 to vector<10x16xf32>
    %309 = arith.addf %307, %308 : vector<10x16xf32>
    %310 = arith.mulf %309, %296 : vector<10x16xf32>
    %cst_130 = arith.constant 0.000000e+00 : f32
    %311 = vector.broadcast %cst_130 : f32 to vector<10x16xf32>
    %312 = arith.subf %311, %291 : vector<10x16xf32>
    %313 = arith.mulf %312, %291 : vector<10x16xf32>
    %314 = math.exp %313 : vector<10x16xf32>
    %315 = arith.mulf %310, %314 : vector<10x16xf32>
    %cst_131 = arith.constant 1.000000e+00 : f32
    %316 = vector.broadcast %cst_131 : f32 to vector<10x16xf32>
    %317 = arith.subf %316, %315 : vector<10x16xf32>
    %cst_132 = arith.constant 0.000000e+00 : f32
    %318 = vector.broadcast %cst_132 : f32 to vector<10x16xf32>
    %319 = arith.cmpf oge, %290, %318 : vector<10x16xf32>
    %cst_133 = arith.constant 0.000000e+00 : f32
    %320 = vector.broadcast %cst_133 : f32 to vector<10x16xf32>
    %321 = arith.subf %320, %317 : vector<10x16xf32>
    %322 = arith.select %319, %317, %321 : vector<10x16xi1>, vector<10x16xf32>
    %cst_134 = arith.constant 1.000000e+00 : f32
    %323 = vector.broadcast %cst_134 : f32 to vector<10x16xf32>
    %324 = arith.addf %323, %322 : vector<10x16xf32>
    %325 = arith.mulf %288, %324 : vector<10x16xf32>
    %326 = arith.truncf %325 : vector<10x16xf32> to vector<10x16xbf16>
    %c0_135 = arith.constant 0 : index
    %c0_136 = arith.constant 0 : index
    %327 = vector.load %arg13[%c0_135, %c0_136] : memref<16x128xbf16, #tpu.memory_space<vmem>>, vector<16x128xbf16>
    %cst_137 = arith.constant dense<0.000000e+00> : vector<10x128xf32>
    %328 = tpu.matmul %326, %327, %cst_137 {dimension_numbers = #tpu.dot_dimension_numbers<[1], [0], [0], [1], [0, 0, 1, 1], [], []>} : vector<10x16xbf16>, vector<16x128xbf16>, vector<10x128xf32> -> vector<10x128xf32>
    %c0_138 = arith.constant 0 : index
    %c0_139 = arith.constant 0 : index
    %329 = vector.load %arg17[%c0_138, %c0_139] : memref<1x128xf32, #tpu.memory_space<vmem>>, vector<1x128xf32>
    %330 = vector.broadcast %329 : vector<1x128xf32> to vector<10x128xf32>
    %331 = arith.addf %328, %330 : vector<10x128xf32>
    %c1 = arith.constant 1 : index
    %332 = memref.load %arg44[%c1] : memref<4xf32, #tpu.memory_space<smem>>
    %333 = vector.broadcast %332 : f32 to vector<10x128xf32>
    %334 = arith.mulf %333, %331 : vector<10x128xf32>
    %cst_140 = arith.constant 1.000000e+00 : f32
    %335 = arith.subf %cst_140, %332 : f32
    %336 = arith.extf %1 : vector<10x128xbf16> to vector<10x128xf32>
    %337 = vector.broadcast %335 : f32 to vector<10x128xf32>
    %338 = arith.mulf %337, %336 : vector<10x128xf32>
    %339 = arith.addf %334, %338 : vector<10x128xf32>
    %340 = arith.truncf %339 : vector<10x128xf32> to vector<10x128xbf16>
    %c0_141 = arith.constant 0 : index
    %c0_142 = arith.constant 0 : index
    %341 = vector.load %arg46[%c0_141, %c0_142] : memref<10x128xbf16, #tpu.memory_space<vmem>>, vector<10x128xbf16>
    tpu.vector_store %arg46[%c0_141, %c0_142], %340 {strides = array<i32>} : memref<10x128xbf16, #tpu.memory_space<vmem>>, vector<10x128xbf16>,
    %342 = vector.extract_strided_slice %21 {offsets = [0, 16], sizes = [8, 16], strides = [1, 1]} : vector<8x48xbf16> to vector<8x16xbf16>
    %343 = vector.extract_strided_slice %9 {offsets = [0, 0], sizes = [12, 16], strides = [1, 1]} : vector<12x48xbf16> to vector<12x16xbf16>
    %c0_143 = arith.constant 0 : index
    %c0_144 = arith.constant 0 : index
    %344 = vector.load %arg22[%c0_143, %c0_144] : memref<16x16xbf16, #tpu.memory_space<vmem>>, vector<16x16xbf16>
    %cst_145 = arith.constant dense<0.000000e+00> : vector<12x16xf32>
    %345 = tpu.matmul %343, %344, %cst_145 {dimension_numbers = #tpu.dot_dimension_numbers<[1], [0], [0], [1], [0, 0, 1, 1], [], []>} : vector<12x16xbf16>, vector<16x16xbf16>, vector<12x16xf32> -> vector<12x16xf32>
    %346 = arith.truncf %345 : vector<12x16xf32> to vector<12x16xbf16>
    %347 = vector.extract_strided_slice %9 {offsets = [0, 32], sizes = [12, 16], strides = [1, 1]} : vector<12x48xbf16> to vector<12x16xbf16>
    %c0_146 = arith.constant 0 : index
    %c0_147 = arith.constant 0 : index
    %348 = vector.load %arg28[%c0_146, %c0_147] : memref<16x16xbf16, #tpu.memory_space<vmem>>, vector<16x16xbf16>
    %cst_148 = arith.constant dense<0.000000e+00> : vector<12x16xf32>
    %349 = tpu.matmul %347, %348, %cst_148 {dimension_numbers = #tpu.dot_dimension_numbers<[1], [0], [0], [1], [0, 0, 1, 1], [], []>} : vector<12x16xbf16>, vector<16x16xbf16>, vector<12x16xf32> -> vector<12x16xf32>
    %350 = arith.truncf %349 : vector<12x16xf32> to vector<12x16xbf16>
    %c0_149 = arith.constant 0 : index
    %c0_150 = arith.constant 0 : index
    %351 = vector.load %arg34[%c0_149, %c0_150] : memref<8x12xbf16, #tpu.memory_space<vmem>>, vector<8x12xbf16>
    %352 = arith.extf %351 : vector<8x12xbf16> to vector<8x12xf32>
    %c0_151 = arith.constant 0 : index
    %c0_152 = arith.constant 0 : index
    %353 = vector.load %arg40[%c0_151, %c0_152] : memref<8x1xf32, #tpu.memory_space<vmem>>, vector<8x1xf32>
    %354 = vector.extract_strided_slice %342 {offsets = [0, 0], sizes = [8, 8], strides = [1, 1]} : vector<8x16xbf16> to vector<8x8xbf16>
    %355 = vector.extract_strided_slice %346 {offsets = [0, 0], sizes = [12, 8], strides = [1, 1]} : vector<12x16xbf16> to vector<12x8xbf16>
    %cst_153 = arith.constant dense<0.000000e+00> : vector<8x12xf32>
    %356 = tpu.matmul %354, %355, %cst_153 {dimension_numbers = #tpu.dot_dimension_numbers<[1], [1], [0], [0], [0, 0, 1, 0], [], []>} : vector<8x8xbf16>, vector<12x8xbf16>, vector<8x12xf32> -> vector<8x12xf32>
    %357 = arith.addf %356, %352 : vector<8x12xf32>
    %cst_154 = arith.constant dense<0xFF800000> : vector<8xf32>
    %358 = vector.multi_reduction <maximumf>, %357, %cst_154 [1] : vector<8x12xf32> to vector<8xf32>
    %359 = vector.shape_cast %358 : vector<8xf32> to vector<8x1xf32>
    %360 = vector.broadcast %359 : vector<8x1xf32> to vector<8x12xf32>
    %361 = arith.subf %357, %360 : vector<8x12xf32>
    %362 = math.exp %361 : vector<8x12xf32>
    %cst_155 = arith.constant dense<0.000000e+00> : vector<8xf32>
    %363 = vector.multi_reduction <add>, %362, %cst_155 [1] : vector<8x12xf32> to vector<8xf32>
    %364 = vector.shape_cast %363 : vector<8xf32> to vector<8x1xf32>
    %365 = tpu.reciprocal %364 {approx = true} : vector<8x1xf32> -> vector<8x1xf32>
    %366 = vector.broadcast %365 : vector<8x1xf32> to vector<8x12xf32>
    %367 = arith.mulf %362, %366 : vector<8x12xf32>
    %368 = arith.truncf %367 : vector<8x12xf32> to vector<8x12xbf16>
    %369 = vector.extract_strided_slice %350 {offsets = [0, 0], sizes = [12, 8], strides = [1, 1]} : vector<12x16xbf16> to vector<12x8xbf16>
    %cst_156 = arith.constant dense<0.000000e+00> : vector<8x8xf32>
    %370 = tpu.matmul %368, %369, %cst_156 {dimension_numbers = #tpu.dot_dimension_numbers<[1], [0], [0], [1], [0, 0, 1, 1], [], []>} : vector<8x12xbf16>, vector<12x8xbf16>, vector<8x8xf32> -> vector<8x8xf32>
    %371 = vector.broadcast %353 : vector<8x1xf32> to vector<8x8xf32>
    %372 = arith.mulf %371, %370 : vector<8x8xf32>
    %373 = vector.extract_strided_slice %342 {offsets = [0, 8], sizes = [8, 8], strides = [1, 1]} : vector<8x16xbf16> to vector<8x8xbf16>
    %374 = vector.extract_strided_slice %346 {offsets = [0, 8], sizes = [12, 8], strides = [1, 1]} : vector<12x16xbf16> to vector<12x8xbf16>
    %cst_157 = arith.constant dense<0.000000e+00> : vector<8x12xf32>
    %375 = tpu.matmul %373, %374, %cst_157 {dimension_numbers = #tpu.dot_dimension_numbers<[1], [1], [0], [0], [0, 0, 1, 0], [], []>} : vector<8x8xbf16>, vector<12x8xbf16>, vector<8x12xf32> -> vector<8x12xf32>
    %376 = arith.addf %375, %352 : vector<8x12xf32>
    %cst_158 = arith.constant dense<0xFF800000> : vector<8xf32>
    %377 = vector.multi_reduction <maximumf>, %376, %cst_158 [1] : vector<8x12xf32> to vector<8xf32>
    %378 = vector.shape_cast %377 : vector<8xf32> to vector<8x1xf32>
    %379 = vector.broadcast %378 : vector<8x1xf32> to vector<8x12xf32>
    %380 = arith.subf %376, %379 : vector<8x12xf32>
    %381 = math.exp %380 : vector<8x12xf32>
    %cst_159 = arith.constant dense<0.000000e+00> : vector<8xf32>
    %382 = vector.multi_reduction <add>, %381, %cst_159 [1] : vector<8x12xf32> to vector<8xf32>
    %383 = vector.shape_cast %382 : vector<8xf32> to vector<8x1xf32>
    %384 = tpu.reciprocal %383 {approx = true} : vector<8x1xf32> -> vector<8x1xf32>
    %385 = vector.broadcast %384 : vector<8x1xf32> to vector<8x12xf32>
    %386 = arith.mulf %381, %385 : vector<8x12xf32>
    %387 = arith.truncf %386 : vector<8x12xf32> to vector<8x12xbf16>
    %388 = vector.extract_strided_slice %350 {offsets = [0, 8], sizes = [12, 8], strides = [1, 1]} : vector<12x16xbf16> to vector<12x8xbf16>
    %cst_160 = arith.constant dense<0.000000e+00> : vector<8x8xf32>
    %389 = tpu.matmul %387, %388, %cst_160 {dimension_numbers = #tpu.dot_dimension_numbers<[1], [0], [0], [1], [0, 0, 1, 1], [], []>} : vector<8x12xbf16>, vector<12x8xbf16>, vector<8x8xf32> -> vector<8x8xf32>
    %390 = vector.broadcast %353 : vector<8x1xf32> to vector<8x8xf32>
    %391 = arith.mulf %390, %389 : vector<8x8xf32>
    %392 = tpu.concatenate %372, %391 in 1 : vector<8x8xf32>, vector<8x8xf32> -> vector<8x16xf32>
    %cst_161 = arith.constant 5.000000e-01 : f32
    %393 = vector.broadcast %cst_161 : f32 to vector<8x16xf32>
    %394 = arith.mulf %393, %392 : vector<8x16xf32>
    %cst_162 = arith.constant 0.707106769 : f32
    %395 = vector.broadcast %cst_162 : f32 to vector<8x16xf32>
    %396 = arith.mulf %392, %395 : vector<8x16xf32>
    %397 = math.absf %396 : vector<8x16xf32>
    %cst_163 = arith.constant 0.327591091 : f32
    %398 = vector.broadcast %cst_163 : f32 to vector<8x16xf32>
    %399 = arith.mulf %398, %397 : vector<8x16xf32>
    %cst_164 = arith.constant 1.000000e+00 : f32
    %400 = vector.broadcast %cst_164 : f32 to vector<8x16xf32>
    %401 = arith.addf %400, %399 : vector<8x16xf32>
    %402 = tpu.reciprocal %401 {approx = true} : vector<8x16xf32> -> vector<8x16xf32>
    %cst_165 = arith.constant 1.06140542 : f32
    %403 = vector.broadcast %cst_165 : f32 to vector<8x16xf32>
    %404 = arith.mulf %403, %402 : vector<8x16xf32>
    %cst_166 = arith.constant -1.45315206 : f32
    %405 = vector.broadcast %cst_166 : f32 to vector<8x16xf32>
    %406 = arith.addf %404, %405 : vector<8x16xf32>
    %407 = arith.mulf %406, %402 : vector<8x16xf32>
    %cst_167 = arith.constant 1.42141378 : f32
    %408 = vector.broadcast %cst_167 : f32 to vector<8x16xf32>
    %409 = arith.addf %407, %408 : vector<8x16xf32>
    %410 = arith.mulf %409, %402 : vector<8x16xf32>
    %cst_168 = arith.constant -0.284496725 : f32
    %411 = vector.broadcast %cst_168 : f32 to vector<8x16xf32>
    %412 = arith.addf %410, %411 : vector<8x16xf32>
    %413 = arith.mulf %412, %402 : vector<8x16xf32>
    %cst_169 = arith.constant 0.254829586 : f32
    %414 = vector.broadcast %cst_169 : f32 to vector<8x16xf32>
    %415 = arith.addf %413, %414 : vector<8x16xf32>
    %416 = arith.mulf %415, %402 : vector<8x16xf32>
    %cst_170 = arith.constant 0.000000e+00 : f32
    %417 = vector.broadcast %cst_170 : f32 to vector<8x16xf32>
    %418 = arith.subf %417, %397 : vector<8x16xf32>
    %419 = arith.mulf %418, %397 : vector<8x16xf32>
    %420 = math.exp %419 : vector<8x16xf32>
    %421 = arith.mulf %416, %420 : vector<8x16xf32>
    %cst_171 = arith.constant 1.000000e+00 : f32
    %422 = vector.broadcast %cst_171 : f32 to vector<8x16xf32>
    %423 = arith.subf %422, %421 : vector<8x16xf32>
    %cst_172 = arith.constant 0.000000e+00 : f32
    %424 = vector.broadcast %cst_172 : f32 to vector<8x16xf32>
    %425 = arith.cmpf oge, %396, %424 : vector<8x16xf32>
    %cst_173 = arith.constant 0.000000e+00 : f32
    %426 = vector.broadcast %cst_173 : f32 to vector<8x16xf32>
    %427 = arith.subf %426, %423 : vector<8x16xf32>
    %428 = arith.select %425, %423, %427 : vector<8x16xi1>, vector<8x16xf32>
    %cst_174 = arith.constant 1.000000e+00 : f32
    %429 = vector.broadcast %cst_174 : f32 to vector<8x16xf32>
    %430 = arith.addf %429, %428 : vector<8x16xf32>
    %431 = arith.mulf %394, %430 : vector<8x16xf32>
    %432 = arith.truncf %431 : vector<8x16xf32> to vector<8x16xbf16>
    %c0_175 = arith.constant 0 : index
    %c0_176 = arith.constant 0 : index
    %433 = vector.load %arg14[%c0_175, %c0_176] : memref<16x128xbf16, #tpu.memory_space<vmem>>, vector<16x128xbf16>
    %cst_177 = arith.constant dense<0.000000e+00> : vector<8x128xf32>
    %434 = tpu.matmul %432, %433, %cst_177 {dimension_numbers = #tpu.dot_dimension_numbers<[1], [0], [0], [1], [0, 0, 1, 1], [], []>} : vector<8x16xbf16>, vector<16x128xbf16>, vector<8x128xf32> -> vector<8x128xf32>
    %c0_178 = arith.constant 0 : index
    %c0_179 = arith.constant 0 : index
    %435 = vector.load %arg18[%c0_178, %c0_179] : memref<1x128xf32, #tpu.memory_space<vmem>>, vector<1x128xf32>
    %436 = vector.broadcast %435 : vector<1x128xf32> to vector<8x128xf32>
    %437 = arith.addf %434, %436 : vector<8x128xf32>
    %c2 = arith.constant 2 : index
    %438 = memref.load %arg44[%c2] : memref<4xf32, #tpu.memory_space<smem>>
    %439 = vector.broadcast %438 : f32 to vector<8x128xf32>
    %440 = arith.mulf %439, %437 : vector<8x128xf32>
    %cst_180 = arith.constant 1.000000e+00 : f32
    %441 = arith.subf %cst_180, %438 : f32
    %442 = arith.extf %2 : vector<8x128xbf16> to vector<8x128xf32>
    %443 = vector.broadcast %441 : f32 to vector<8x128xf32>
    %444 = arith.mulf %443, %442 : vector<8x128xf32>
    %445 = arith.addf %440, %444 : vector<8x128xf32>
    %446 = arith.truncf %445 : vector<8x128xf32> to vector<8x128xbf16>
    %c0_181 = arith.constant 0 : index
    %c0_182 = arith.constant 0 : index
    %447 = vector.load %arg47[%c0_181, %c0_182] : memref<8x128xbf16, #tpu.memory_space<vmem>>, vector<8x128xbf16>
    tpu.vector_store %arg47[%c0_181, %c0_182], %446 {strides = array<i32>} : memref<8x128xbf16, #tpu.memory_space<vmem>>, vector<8x128xbf16>,
    %448 = vector.extract_strided_slice %27 {offsets = [0, 16], sizes = [6, 16], strides = [1, 1]} : vector<6x48xbf16> to vector<6x16xbf16>
    %449 = vector.extract_strided_slice %9 {offsets = [0, 0], sizes = [12, 16], strides = [1, 1]} : vector<12x48xbf16> to vector<12x16xbf16>
    %c0_183 = arith.constant 0 : index
    %c0_184 = arith.constant 0 : index
    %450 = vector.load %arg25[%c0_183, %c0_184] : memref<16x16xbf16, #tpu.memory_space<vmem>>, vector<16x16xbf16>
    %cst_185 = arith.constant dense<0.000000e+00> : vector<12x16xf32>
    %451 = tpu.matmul %449, %450, %cst_185 {dimension_numbers = #tpu.dot_dimension_numbers<[1], [0], [0], [1], [0, 0, 1, 1], [], []>} : vector<12x16xbf16>, vector<16x16xbf16>, vector<12x16xf32> -> vector<12x16xf32>
    %452 = arith.truncf %451 : vector<12x16xf32> to vector<12x16xbf16>
    %453 = vector.extract_strided_slice %9 {offsets = [0, 32], sizes = [12, 16], strides = [1, 1]} : vector<12x48xbf16> to vector<12x16xbf16>
    %c0_186 = arith.constant 0 : index
    %c0_187 = arith.constant 0 : index
    %454 = vector.load %arg31[%c0_186, %c0_187] : memref<16x16xbf16, #tpu.memory_space<vmem>>, vector<16x16xbf16>
    %cst_188 = arith.constant dense<0.000000e+00> : vector<12x16xf32>
    %455 = tpu.matmul %453, %454, %cst_188 {dimension_numbers = #tpu.dot_dimension_numbers<[1], [0], [0], [1], [0, 0, 1, 1], [], []>} : vector<12x16xbf16>, vector<16x16xbf16>, vector<12x16xf32> -> vector<12x16xf32>
    %456 = arith.truncf %455 : vector<12x16xf32> to vector<12x16xbf16>
    %c0_189 = arith.constant 0 : index
    %c0_190 = arith.constant 0 : index
    %457 = vector.load %arg37[%c0_189, %c0_190] : memref<6x12xbf16, #tpu.memory_space<vmem>>, vector<6x12xbf16>
    %458 = arith.extf %457 : vector<6x12xbf16> to vector<6x12xf32>
    %c0_191 = arith.constant 0 : index
    %c0_192 = arith.constant 0 : index
    %459 = vector.load %arg43[%c0_191, %c0_192] : memref<6x1xf32, #tpu.memory_space<vmem>>, vector<6x1xf32>
    %460 = vector.extract_strided_slice %448 {offsets = [0, 0], sizes = [6, 8], strides = [1, 1]} : vector<6x16xbf16> to vector<6x8xbf16>
    %461 = vector.extract_strided_slice %452 {offsets = [0, 0], sizes = [12, 8], strides = [1, 1]} : vector<12x16xbf16> to vector<12x8xbf16>
    %cst_193 = arith.constant dense<0.000000e+00> : vector<6x12xf32>
    %462 = tpu.matmul %460, %461, %cst_193 {dimension_numbers = #tpu.dot_dimension_numbers<[1], [1], [0], [0], [0, 0, 1, 0], [], []>} : vector<6x8xbf16>, vector<12x8xbf16>, vector<6x12xf32> -> vector<6x12xf32>
    %463 = arith.addf %462, %458 : vector<6x12xf32>
    %cst_194 = arith.constant dense<0xFF800000> : vector<6xf32>
    %464 = vector.multi_reduction <maximumf>, %463, %cst_194 [1] : vector<6x12xf32> to vector<6xf32>
    %465 = vector.shape_cast %464 : vector<6xf32> to vector<6x1xf32>
    %466 = vector.broadcast %465 : vector<6x1xf32> to vector<6x12xf32>
    %467 = arith.subf %463, %466 : vector<6x12xf32>
    %468 = math.exp %467 : vector<6x12xf32>
    %cst_195 = arith.constant dense<0.000000e+00> : vector<6xf32>
    %469 = vector.multi_reduction <add>, %468, %cst_195 [1] : vector<6x12xf32> to vector<6xf32>
    %470 = vector.shape_cast %469 : vector<6xf32> to vector<6x1xf32>
    %471 = tpu.reciprocal %470 {approx = true} : vector<6x1xf32> -> vector<6x1xf32>
    %472 = vector.broadcast %471 : vector<6x1xf32> to vector<6x12xf32>
    %473 = arith.mulf %468, %472 : vector<6x12xf32>
    %474 = arith.truncf %473 : vector<6x12xf32> to vector<6x12xbf16>
    %475 = vector.extract_strided_slice %456 {offsets = [0, 0], sizes = [12, 8], strides = [1, 1]} : vector<12x16xbf16> to vector<12x8xbf16>
    %cst_196 = arith.constant dense<0.000000e+00> : vector<6x8xf32>
    %476 = tpu.matmul %474, %475, %cst_196 {dimension_numbers = #tpu.dot_dimension_numbers<[1], [0], [0], [1], [0, 0, 1, 1], [], []>} : vector<6x12xbf16>, vector<12x8xbf16>, vector<6x8xf32> -> vector<6x8xf32>
    %477 = vector.broadcast %459 : vector<6x1xf32> to vector<6x8xf32>
    %478 = arith.mulf %477, %476 : vector<6x8xf32>
    %479 = vector.extract_strided_slice %448 {offsets = [0, 8], sizes = [6, 8], strides = [1, 1]} : vector<6x16xbf16> to vector<6x8xbf16>
    %480 = vector.extract_strided_slice %452 {offsets = [0, 8], sizes = [12, 8], strides = [1, 1]} : vector<12x16xbf16> to vector<12x8xbf16>
    %cst_197 = arith.constant dense<0.000000e+00> : vector<6x12xf32>
    %481 = tpu.matmul %479, %480, %cst_197 {dimension_numbers = #tpu.dot_dimension_numbers<[1], [1], [0], [0], [0, 0, 1, 0], [], []>} : vector<6x8xbf16>, vector<12x8xbf16>, vector<6x12xf32> -> vector<6x12xf32>
    %482 = arith.addf %481, %458 : vector<6x12xf32>
    %cst_198 = arith.constant dense<0xFF800000> : vector<6xf32>
    %483 = vector.multi_reduction <maximumf>, %482, %cst_198 [1] : vector<6x12xf32> to vector<6xf32>
    %484 = vector.shape_cast %483 : vector<6xf32> to vector<6x1xf32>
    %485 = vector.broadcast %484 : vector<6x1xf32> to vector<6x12xf32>
    %486 = arith.subf %482, %485 : vector<6x12xf32>
    %487 = math.exp %486 : vector<6x12xf32>
    %cst_199 = arith.constant dense<0.000000e+00> : vector<6xf32>
    %488 = vector.multi_reduction <add>, %487, %cst_199 [1] : vector<6x12xf32> to vector<6xf32>
    %489 = vector.shape_cast %488 : vector<6xf32> to vector<6x1xf32>
    %490 = tpu.reciprocal %489 {approx = true} : vector<6x1xf32> -> vector<6x1xf32>
    %491 = vector.broadcast %490 : vector<6x1xf32> to vector<6x12xf32>
    %492 = arith.mulf %487, %491 : vector<6x12xf32>
    %493 = arith.truncf %492 : vector<6x12xf32> to vector<6x12xbf16>
    %494 = vector.extract_strided_slice %456 {offsets = [0, 8], sizes = [12, 8], strides = [1, 1]} : vector<12x16xbf16> to vector<12x8xbf16>
    %cst_200 = arith.constant dense<0.000000e+00> : vector<6x8xf32>
    %495 = tpu.matmul %493, %494, %cst_200 {dimension_numbers = #tpu.dot_dimension_numbers<[1], [0], [0], [1], [0, 0, 1, 1], [], []>} : vector<6x12xbf16>, vector<12x8xbf16>, vector<6x8xf32> -> vector<6x8xf32>
    %496 = vector.broadcast %459 : vector<6x1xf32> to vector<6x8xf32>
    %497 = arith.mulf %496, %495 : vector<6x8xf32>
    %498 = tpu.concatenate %478, %497 in 1 : vector<6x8xf32>, vector<6x8xf32> -> vector<6x16xf32>
    %cst_201 = arith.constant 5.000000e-01 : f32
    %499 = vector.broadcast %cst_201 : f32 to vector<6x16xf32>
    %500 = arith.mulf %499, %498 : vector<6x16xf32>
    %cst_202 = arith.constant 0.707106769 : f32
    %501 = vector.broadcast %cst_202 : f32 to vector<6x16xf32>
    %502 = arith.mulf %498, %501 : vector<6x16xf32>
    %503 = math.absf %502 : vector<6x16xf32>
    %cst_203 = arith.constant 0.327591091 : f32
    %504 = vector.broadcast %cst_203 : f32 to vector<6x16xf32>
    %505 = arith.mulf %504, %503 : vector<6x16xf32>
    %cst_204 = arith.constant 1.000000e+00 : f32
    %506 = vector.broadcast %cst_204 : f32 to vector<6x16xf32>
    %507 = arith.addf %506, %505 : vector<6x16xf32>
    %508 = tpu.reciprocal %507 {approx = true} : vector<6x16xf32> -> vector<6x16xf32>
    %cst_205 = arith.constant 1.06140542 : f32
    %509 = vector.broadcast %cst_205 : f32 to vector<6x16xf32>
    %510 = arith.mulf %509, %508 : vector<6x16xf32>
    %cst_206 = arith.constant -1.45315206 : f32
    %511 = vector.broadcast %cst_206 : f32 to vector<6x16xf32>
    %512 = arith.addf %510, %511 : vector<6x16xf32>
    %513 = arith.mulf %512, %508 : vector<6x16xf32>
    %cst_207 = arith.constant 1.42141378 : f32
    %514 = vector.broadcast %cst_207 : f32 to vector<6x16xf32>
    %515 = arith.addf %513, %514 : vector<6x16xf32>
    %516 = arith.mulf %515, %508 : vector<6x16xf32>
    %cst_208 = arith.constant -0.284496725 : f32
    %517 = vector.broadcast %cst_208 : f32 to vector<6x16xf32>
    %518 = arith.addf %516, %517 : vector<6x16xf32>
    %519 = arith.mulf %518, %508 : vector<6x16xf32>
    %cst_209 = arith.constant 0.254829586 : f32
    %520 = vector.broadcast %cst_209 : f32 to vector<6x16xf32>
    %521 = arith.addf %519, %520 : vector<6x16xf32>
    %522 = arith.mulf %521, %508 : vector<6x16xf32>
    %cst_210 = arith.constant 0.000000e+00 : f32
    %523 = vector.broadcast %cst_210 : f32 to vector<6x16xf32>
    %524 = arith.subf %523, %503 : vector<6x16xf32>
    %525 = arith.mulf %524, %503 : vector<6x16xf32>
    %526 = math.exp %525 : vector<6x16xf32>
    %527 = arith.mulf %522, %526 : vector<6x16xf32>
    %cst_211 = arith.constant 1.000000e+00 : f32
    %528 = vector.broadcast %cst_211 : f32 to vector<6x16xf32>
    %529 = arith.subf %528, %527 : vector<6x16xf32>
    %cst_212 = arith.constant 0.000000e+00 : f32
    %530 = vector.broadcast %cst_212 : f32 to vector<6x16xf32>
    %531 = arith.cmpf oge, %502, %530 : vector<6x16xf32>
    %cst_213 = arith.constant 0.000000e+00 : f32
    %532 = vector.broadcast %cst_213 : f32 to vector<6x16xf32>
    %533 = arith.subf %532, %529 : vector<6x16xf32>
    %534 = arith.select %531, %529, %533 : vector<6x16xi1>, vector<6x16xf32>
    %cst_214 = arith.constant 1.000000e+00 : f32
    %535 = vector.broadcast %cst_214 : f32 to vector<6x16xf32>
    %536 = arith.addf %535, %534 : vector<6x16xf32>
    %537 = arith.mulf %500, %536 : vector<6x16xf32>
    %538 = arith.truncf %537 : vector<6x16xf32> to vector<6x16xbf16>
    %c0_215 = arith.constant 0 : index
    %c0_216 = arith.constant 0 : index
    %539 = vector.load %arg15[%c0_215, %c0_216] : memref<16x128xbf16, #tpu.memory_space<vmem>>, vector<16x128xbf16>
    %cst_217 = arith.constant dense<0.000000e+00> : vector<6x128xf32>
    %540 = tpu.matmul %538, %539, %cst_217 {dimension_numbers = #tpu.dot_dimension_numbers<[1], [0], [0], [1], [0, 0, 1, 1], [], []>} : vector<6x16xbf16>, vector<16x128xbf16>, vector<6x128xf32> -> vector<6x128xf32>
    %c0_218 = arith.constant 0 : index
    %c0_219 = arith.constant 0 : index
    %541 = vector.load %arg19[%c0_218, %c0_219] : memref<1x128xf32, #tpu.memory_space<vmem>>, vector<1x128xf32>
    %542 = vector.broadcast %541 : vector<1x128xf32> to vector<6x128xf32>
    %543 = arith.addf %540, %542 : vector<6x128xf32>
    %c3 = arith.constant 3 : index
    %544 = memref.load %arg44[%c3] : memref<4xf32, #tpu.memory_space<smem>>
    %545 = vector.broadcast %544 : f32 to vector<6x128xf32>
    %546 = arith.mulf %545, %543 : vector<6x128xf32>
    %cst_220 = arith.constant 1.000000e+00 : f32
    %547 = arith.subf %cst_220, %544 : f32
    %548 = arith.extf %3 : vector<6x128xbf16> to vector<6x128xf32>
    %549 = vector.broadcast %547 : f32 to vector<6x128xf32>
    %550 = arith.mulf %549, %548 : vector<6x128xf32>
    %551 = arith.addf %546, %550 : vector<6x128xf32>
    %552 = arith.truncf %551 : vector<6x128xf32> to vector<6x128xbf16>
    %c0_221 = arith.constant 0 : index
    %c0_222 = arith.constant 0 : index
    %553 = vector.load %arg48[%c0_221, %c0_222] : memref<6x128xbf16, #tpu.memory_space<vmem>>, vector<6x128xbf16>
    tpu.vector_store %arg48[%c0_221, %c0_222], %552 {strides = array<i32>} : memref<6x128xbf16, #tpu.memory_space<vmem>>, vector<6x128xbf16>,
    return
  }
}

module attributes {stable_mosaic.version = 11 : i64} {
  func.func @kernel(%arg0: memref<12x12xbf16, #tpu.memory_space<vmem>>, %arg1: memref<10x12xbf16, #tpu.memory_space<vmem>>, %arg2: memref<8x12xbf16, #tpu.memory_space<vmem>>, %arg3: memref<6x12xbf16, #tpu.memory_space<vmem>>, %arg4: memref<12x48xbf16, #tpu.memory_space<vmem>>, %arg5: memref<12x48xbf16, #tpu.memory_space<vmem>>, %arg6: memref<12x48xbf16, #tpu.memory_space<vmem>>, %arg7: memref<12x48xbf16, #tpu.memory_space<vmem>>, %arg8: memref<1x48xf32, #tpu.memory_space<vmem>>, %arg9: memref<1x48xf32, #tpu.memory_space<vmem>>, %arg10: memref<1x48xf32, #tpu.memory_space<vmem>>, %arg11: memref<1x48xf32, #tpu.memory_space<vmem>>, %arg12: memref<16x128xbf16, #tpu.memory_space<vmem>>, %arg13: memref<16x128xbf16, #tpu.memory_space<vmem>>, %arg14: memref<16x128xbf16, #tpu.memory_space<vmem>>, %arg15: memref<16x128xbf16, #tpu.memory_space<vmem>>, %arg16: memref<1x128xf32, #tpu.memory_space<vmem>>, %arg17: memref<1x128xf32, #tpu.memory_space<vmem>>, %arg18: memref<1x128xf32, #tpu.memory_space<vmem>>, %arg19: memref<1x128xf32, #tpu.memory_space<vmem>>, %arg20: memref<16x16xbf16, #tpu.memory_space<vmem>>, %arg21: memref<16x16xbf16, #tpu.memory_space<vmem>>, %arg22: memref<16x16xbf16, #tpu.memory_space<vmem>>, %arg23: memref<16x16xbf16, #tpu.memory_space<vmem>>, %arg24: memref<16x16xbf16, #tpu.memory_space<vmem>>, %arg25: memref<16x16xbf16, #tpu.memory_space<vmem>>, %arg26: memref<16x16xbf16, #tpu.memory_space<vmem>>, %arg27: memref<16x16xbf16, #tpu.memory_space<vmem>>, %arg28: memref<16x16xbf16, #tpu.memory_space<vmem>>, %arg29: memref<16x16xbf16, #tpu.memory_space<vmem>>, %arg30: memref<16x16xbf16, #tpu.memory_space<vmem>>, %arg31: memref<16x16xbf16, #tpu.memory_space<vmem>>, %arg32: memref<12x10xbf16, #tpu.memory_space<vmem>>, %arg33: memref<10x12xbf16, #tpu.memory_space<vmem>>, %arg34: memref<8x12xbf16, #tpu.memory_space<vmem>>, %arg35: memref<12x8xbf16, #tpu.memory_space<vmem>>, %arg36: memref<12x6xbf16, #tpu.memory_space<vmem>>, %arg37: memref<6x12xbf16, #tpu.memory_space<vmem>>, %arg38: memref<12x1xf32, #tpu.memory_space<vmem>>, %arg39: memref<10x1xf32, #tpu.memory_space<vmem>>, %arg40: memref<8x1xf32, #tpu.memory_space<vmem>>, %arg41: memref<12x1xf32, #tpu.memory_space<vmem>>, %arg42: memref<12x1xf32, #tpu.memory_space<vmem>>, %arg43: memref<6x1xf32, #tpu.memory_space<vmem>>, %arg44: memref<12x128xbf16, #tpu.memory_space<vmem>>, %arg45: memref<10x128xbf16, #tpu.memory_space<vmem>>, %arg46: memref<8x128xbf16, #tpu.memory_space<vmem>>, %arg47: memref<6x128xbf16, #tpu.memory_space<vmem>>) attributes {dimension_semantics = [], scalar_prefetch = 0 : i64, scratch_operands = 0 : i64, tpu.core_type = #tpu.core_type<tc>} {
    %c0 = arith.constant 0 : index
    %c0_0 = arith.constant 0 : index
    %0 = vector.load %arg0[%c0, %c0_0] : memref<12x12xbf16, #tpu.memory_space<vmem>>, vector<12x12xbf16>
    %c0_1 = arith.constant 0 : index
    %c0_2 = arith.constant 0 : index
    %1 = vector.load %arg1[%c0_1, %c0_2] : memref<10x12xbf16, #tpu.memory_space<vmem>>, vector<10x12xbf16>
    %c0_3 = arith.constant 0 : index
    %c0_4 = arith.constant 0 : index
    %2 = vector.load %arg2[%c0_3, %c0_4] : memref<8x12xbf16, #tpu.memory_space<vmem>>, vector<8x12xbf16>
    %c0_5 = arith.constant 0 : index
    %c0_6 = arith.constant 0 : index
    %3 = vector.load %arg3[%c0_5, %c0_6] : memref<6x12xbf16, #tpu.memory_space<vmem>>, vector<6x12xbf16>
    %c0_7 = arith.constant 0 : index
    %c0_8 = arith.constant 0 : index
    %4 = vector.load %arg4[%c0_7, %c0_8] : memref<12x48xbf16, #tpu.memory_space<vmem>>, vector<12x48xbf16>
    %cst = arith.constant dense<0.000000e+00> : vector<12x48xf32>
    %5 = tpu.matmul %0, %4, %cst {dimension_numbers = #tpu.dot_dimension_numbers<[1], [0], [0], [1], [0, 0, 1, 1], [], []>} : vector<12x12xbf16>, vector<12x48xbf16>, vector<12x48xf32> -> vector<12x48xf32>
    %c0_9 = arith.constant 0 : index
    %c0_10 = arith.constant 0 : index
    %6 = vector.load %arg8[%c0_9, %c0_10] : memref<1x48xf32, #tpu.memory_space<vmem>>, vector<1x48xf32>
    %7 = vector.broadcast %6 : vector<1x48xf32> to vector<12x48xf32>
    %8 = arith.addf %5, %7 : vector<12x48xf32>
    %9 = arith.truncf %8 : vector<12x48xf32> to vector<12x48xbf16>
    %c0_11 = arith.constant 0 : index
    %c0_12 = arith.constant 0 : index
    %10 = vector.load %arg5[%c0_11, %c0_12] : memref<12x48xbf16, #tpu.memory_space<vmem>>, vector<12x48xbf16>
    %cst_13 = arith.constant dense<0.000000e+00> : vector<10x48xf32>
    %11 = tpu.matmul %1, %10, %cst_13 {dimension_numbers = #tpu.dot_dimension_numbers<[1], [0], [0], [1], [0, 0, 1, 1], [], []>} : vector<10x12xbf16>, vector<12x48xbf16>, vector<10x48xf32> -> vector<10x48xf32>
    %c0_14 = arith.constant 0 : index
    %c0_15 = arith.constant 0 : index
    %12 = vector.load %arg9[%c0_14, %c0_15] : memref<1x48xf32, #tpu.memory_space<vmem>>, vector<1x48xf32>
    %13 = vector.broadcast %12 : vector<1x48xf32> to vector<10x48xf32>
    %14 = arith.addf %11, %13 : vector<10x48xf32>
    %15 = arith.truncf %14 : vector<10x48xf32> to vector<10x48xbf16>
    %c0_16 = arith.constant 0 : index
    %c0_17 = arith.constant 0 : index
    %16 = vector.load %arg6[%c0_16, %c0_17] : memref<12x48xbf16, #tpu.memory_space<vmem>>, vector<12x48xbf16>
    %cst_18 = arith.constant dense<0.000000e+00> : vector<8x48xf32>
    %17 = tpu.matmul %2, %16, %cst_18 {dimension_numbers = #tpu.dot_dimension_numbers<[1], [0], [0], [1], [0, 0, 1, 1], [], []>} : vector<8x12xbf16>, vector<12x48xbf16>, vector<8x48xf32> -> vector<8x48xf32>
    %c0_19 = arith.constant 0 : index
    %c0_20 = arith.constant 0 : index
    %18 = vector.load %arg10[%c0_19, %c0_20] : memref<1x48xf32, #tpu.memory_space<vmem>>, vector<1x48xf32>
    %19 = vector.broadcast %18 : vector<1x48xf32> to vector<8x48xf32>
    %20 = arith.addf %17, %19 : vector<8x48xf32>
    %21 = arith.truncf %20 : vector<8x48xf32> to vector<8x48xbf16>
    %c0_21 = arith.constant 0 : index
    %c0_22 = arith.constant 0 : index
    %22 = vector.load %arg7[%c0_21, %c0_22] : memref<12x48xbf16, #tpu.memory_space<vmem>>, vector<12x48xbf16>
    %cst_23 = arith.constant dense<0.000000e+00> : vector<6x48xf32>
    %23 = tpu.matmul %3, %22, %cst_23 {dimension_numbers = #tpu.dot_dimension_numbers<[1], [0], [0], [1], [0, 0, 1, 1], [], []>} : vector<6x12xbf16>, vector<12x48xbf16>, vector<6x48xf32> -> vector<6x48xf32>
    %c0_24 = arith.constant 0 : index
    %c0_25 = arith.constant 0 : index
    %24 = vector.load %arg11[%c0_24, %c0_25] : memref<1x48xf32, #tpu.memory_space<vmem>>, vector<1x48xf32>
    %25 = vector.broadcast %24 : vector<1x48xf32> to vector<6x48xf32>
    %26 = arith.addf %23, %25 : vector<6x48xf32>
    %27 = arith.truncf %26 : vector<6x48xf32> to vector<6x48xbf16>
    %28 = vector.extract_strided_slice %9 {offsets = [0, 16], sizes = [12, 16], strides = [1, 1]} : vector<12x48xbf16> to vector<12x16xbf16>
    %29 = vector.extract_strided_slice %15 {offsets = [0, 0], sizes = [10, 16], strides = [1, 1]} : vector<10x48xbf16> to vector<10x16xbf16>
    %c0_26 = arith.constant 0 : index
    %c0_27 = arith.constant 0 : index
    %30 = vector.load %arg20[%c0_26, %c0_27] : memref<16x16xbf16, #tpu.memory_space<vmem>>, vector<16x16xbf16>
    %cst_28 = arith.constant dense<0.000000e+00> : vector<10x16xf32>
    %31 = tpu.matmul %29, %30, %cst_28 {dimension_numbers = #tpu.dot_dimension_numbers<[1], [0], [0], [1], [0, 0, 1, 1], [], []>} : vector<10x16xbf16>, vector<16x16xbf16>, vector<10x16xf32> -> vector<10x16xf32>
    %32 = arith.truncf %31 : vector<10x16xf32> to vector<10x16xbf16>
    %33 = vector.extract_strided_slice %15 {offsets = [0, 32], sizes = [10, 16], strides = [1, 1]} : vector<10x48xbf16> to vector<10x16xbf16>
    %c0_29 = arith.constant 0 : index
    %c0_30 = arith.constant 0 : index
    %34 = vector.load %arg26[%c0_29, %c0_30] : memref<16x16xbf16, #tpu.memory_space<vmem>>, vector<16x16xbf16>
    %cst_31 = arith.constant dense<0.000000e+00> : vector<10x16xf32>
    %35 = tpu.matmul %33, %34, %cst_31 {dimension_numbers = #tpu.dot_dimension_numbers<[1], [0], [0], [1], [0, 0, 1, 1], [], []>} : vector<10x16xbf16>, vector<16x16xbf16>, vector<10x16xf32> -> vector<10x16xf32>
    %36 = arith.truncf %35 : vector<10x16xf32> to vector<10x16xbf16>
    %c0_32 = arith.constant 0 : index
    %c0_33 = arith.constant 0 : index
    %37 = vector.load %arg32[%c0_32, %c0_33] : memref<12x10xbf16, #tpu.memory_space<vmem>>, vector<12x10xbf16>
    %38 = arith.extf %37 : vector<12x10xbf16> to vector<12x10xf32>
    %c0_34 = arith.constant 0 : index
    %c0_35 = arith.constant 0 : index
    %39 = vector.load %arg38[%c0_34, %c0_35] : memref<12x1xf32, #tpu.memory_space<vmem>>, vector<12x1xf32>
    %40 = vector.extract_strided_slice %28 {offsets = [0, 0], sizes = [12, 8], strides = [1, 1]} : vector<12x16xbf16> to vector<12x8xbf16>
    %41 = vector.extract_strided_slice %32 {offsets = [0, 0], sizes = [10, 8], strides = [1, 1]} : vector<10x16xbf16> to vector<10x8xbf16>
    %cst_36 = arith.constant dense<0.000000e+00> : vector<12x10xf32>
    %42 = tpu.matmul %40, %41, %cst_36 {dimension_numbers = #tpu.dot_dimension_numbers<[1], [1], [0], [0], [0, 0, 1, 0], [], []>} : vector<12x8xbf16>, vector<10x8xbf16>, vector<12x10xf32> -> vector<12x10xf32>
    %43 = arith.addf %42, %38 : vector<12x10xf32>
    %cst_37 = arith.constant dense<0xFF800000> : vector<12xf32>
    %44 = vector.multi_reduction <maximumf>, %43, %cst_37 [1] : vector<12x10xf32> to vector<12xf32>
    %45 = vector.shape_cast %44 : vector<12xf32> to vector<12x1xf32>
    %46 = vector.broadcast %45 : vector<12x1xf32> to vector<12x10xf32>
    %47 = arith.subf %43, %46 : vector<12x10xf32>
    %48 = math.exp %47 : vector<12x10xf32>
    %cst_38 = arith.constant dense<0.000000e+00> : vector<12xf32>
    %49 = vector.multi_reduction <add>, %48, %cst_38 [1] : vector<12x10xf32> to vector<12xf32>
    %50 = vector.shape_cast %49 : vector<12xf32> to vector<12x1xf32>
    %51 = tpu.reciprocal %50 {approx = true} : vector<12x1xf32> -> vector<12x1xf32>
    %52 = vector.broadcast %51 : vector<12x1xf32> to vector<12x10xf32>
    %53 = arith.mulf %48, %52 : vector<12x10xf32>
    %54 = arith.truncf %53 : vector<12x10xf32> to vector<12x10xbf16>
    %55 = vector.extract_strided_slice %36 {offsets = [0, 0], sizes = [10, 8], strides = [1, 1]} : vector<10x16xbf16> to vector<10x8xbf16>
    %cst_39 = arith.constant dense<0.000000e+00> : vector<12x8xf32>
    %56 = tpu.matmul %54, %55, %cst_39 {dimension_numbers = #tpu.dot_dimension_numbers<[1], [0], [0], [1], [0, 0, 1, 1], [], []>} : vector<12x10xbf16>, vector<10x8xbf16>, vector<12x8xf32> -> vector<12x8xf32>
    %57 = vector.broadcast %39 : vector<12x1xf32> to vector<12x8xf32>
    %58 = arith.mulf %57, %56 : vector<12x8xf32>
    %59 = vector.extract_strided_slice %28 {offsets = [0, 8], sizes = [12, 8], strides = [1, 1]} : vector<12x16xbf16> to vector<12x8xbf16>
    %60 = vector.extract_strided_slice %32 {offsets = [0, 8], sizes = [10, 8], strides = [1, 1]} : vector<10x16xbf16> to vector<10x8xbf16>
    %cst_40 = arith.constant dense<0.000000e+00> : vector<12x10xf32>
    %61 = tpu.matmul %59, %60, %cst_40 {dimension_numbers = #tpu.dot_dimension_numbers<[1], [1], [0], [0], [0, 0, 1, 0], [], []>} : vector<12x8xbf16>, vector<10x8xbf16>, vector<12x10xf32> -> vector<12x10xf32>
    %62 = arith.addf %61, %38 : vector<12x10xf32>
    %cst_41 = arith.constant dense<0xFF800000> : vector<12xf32>
    %63 = vector.multi_reduction <maximumf>, %62, %cst_41 [1] : vector<12x10xf32> to vector<12xf32>
    %64 = vector.shape_cast %63 : vector<12xf32> to vector<12x1xf32>
    %65 = vector.broadcast %64 : vector<12x1xf32> to vector<12x10xf32>
    %66 = arith.subf %62, %65 : vector<12x10xf32>
    %67 = math.exp %66 : vector<12x10xf32>
    %cst_42 = arith.constant dense<0.000000e+00> : vector<12xf32>
    %68 = vector.multi_reduction <add>, %67, %cst_42 [1] : vector<12x10xf32> to vector<12xf32>
    %69 = vector.shape_cast %68 : vector<12xf32> to vector<12x1xf32>
    %70 = tpu.reciprocal %69 {approx = true} : vector<12x1xf32> -> vector<12x1xf32>
    %71 = vector.broadcast %70 : vector<12x1xf32> to vector<12x10xf32>
    %72 = arith.mulf %67, %71 : vector<12x10xf32>
    %73 = arith.truncf %72 : vector<12x10xf32> to vector<12x10xbf16>
    %74 = vector.extract_strided_slice %36 {offsets = [0, 8], sizes = [10, 8], strides = [1, 1]} : vector<10x16xbf16> to vector<10x8xbf16>
    %cst_43 = arith.constant dense<0.000000e+00> : vector<12x8xf32>
    %75 = tpu.matmul %73, %74, %cst_43 {dimension_numbers = #tpu.dot_dimension_numbers<[1], [0], [0], [1], [0, 0, 1, 1], [], []>} : vector<12x10xbf16>, vector<10x8xbf16>, vector<12x8xf32> -> vector<12x8xf32>
    %76 = vector.broadcast %39 : vector<12x1xf32> to vector<12x8xf32>
    %77 = arith.mulf %76, %75 : vector<12x8xf32>
    %78 = vector.extract_strided_slice %21 {offsets = [0, 0], sizes = [8, 16], strides = [1, 1]} : vector<8x48xbf16> to vector<8x16xbf16>
    %c0_44 = arith.constant 0 : index
    %c0_45 = arith.constant 0 : index
    %79 = vector.load %arg23[%c0_44, %c0_45] : memref<16x16xbf16, #tpu.memory_space<vmem>>, vector<16x16xbf16>
    %cst_46 = arith.constant dense<0.000000e+00> : vector<8x16xf32>
    %80 = tpu.matmul %78, %79, %cst_46 {dimension_numbers = #tpu.dot_dimension_numbers<[1], [0], [0], [1], [0, 0, 1, 1], [], []>} : vector<8x16xbf16>, vector<16x16xbf16>, vector<8x16xf32> -> vector<8x16xf32>
    %81 = arith.truncf %80 : vector<8x16xf32> to vector<8x16xbf16>
    %82 = vector.extract_strided_slice %21 {offsets = [0, 32], sizes = [8, 16], strides = [1, 1]} : vector<8x48xbf16> to vector<8x16xbf16>
    %c0_47 = arith.constant 0 : index
    %c0_48 = arith.constant 0 : index
    %83 = vector.load %arg29[%c0_47, %c0_48] : memref<16x16xbf16, #tpu.memory_space<vmem>>, vector<16x16xbf16>
    %cst_49 = arith.constant dense<0.000000e+00> : vector<8x16xf32>
    %84 = tpu.matmul %82, %83, %cst_49 {dimension_numbers = #tpu.dot_dimension_numbers<[1], [0], [0], [1], [0, 0, 1, 1], [], []>} : vector<8x16xbf16>, vector<16x16xbf16>, vector<8x16xf32> -> vector<8x16xf32>
    %85 = arith.truncf %84 : vector<8x16xf32> to vector<8x16xbf16>
    %c0_50 = arith.constant 0 : index
    %c0_51 = arith.constant 0 : index
    %86 = vector.load %arg35[%c0_50, %c0_51] : memref<12x8xbf16, #tpu.memory_space<vmem>>, vector<12x8xbf16>
    %87 = arith.extf %86 : vector<12x8xbf16> to vector<12x8xf32>
    %c0_52 = arith.constant 0 : index
    %c0_53 = arith.constant 0 : index
    %88 = vector.load %arg41[%c0_52, %c0_53] : memref<12x1xf32, #tpu.memory_space<vmem>>, vector<12x1xf32>
    %89 = vector.extract_strided_slice %28 {offsets = [0, 0], sizes = [12, 8], strides = [1, 1]} : vector<12x16xbf16> to vector<12x8xbf16>
    %90 = vector.extract_strided_slice %81 {offsets = [0, 0], sizes = [8, 8], strides = [1, 1]} : vector<8x16xbf16> to vector<8x8xbf16>
    %cst_54 = arith.constant dense<0.000000e+00> : vector<12x8xf32>
    %91 = tpu.matmul %89, %90, %cst_54 {dimension_numbers = #tpu.dot_dimension_numbers<[1], [1], [0], [0], [0, 0, 1, 0], [], []>} : vector<12x8xbf16>, vector<8x8xbf16>, vector<12x8xf32> -> vector<12x8xf32>
    %92 = arith.addf %91, %87 : vector<12x8xf32>
    %cst_55 = arith.constant dense<0xFF800000> : vector<12xf32>
    %93 = vector.multi_reduction <maximumf>, %92, %cst_55 [1] : vector<12x8xf32> to vector<12xf32>
    %94 = vector.shape_cast %93 : vector<12xf32> to vector<12x1xf32>
    %95 = vector.broadcast %94 : vector<12x1xf32> to vector<12x8xf32>
    %96 = arith.subf %92, %95 : vector<12x8xf32>
    %97 = math.exp %96 : vector<12x8xf32>
    %cst_56 = arith.constant dense<0.000000e+00> : vector<12xf32>
    %98 = vector.multi_reduction <add>, %97, %cst_56 [1] : vector<12x8xf32> to vector<12xf32>
    %99 = vector.shape_cast %98 : vector<12xf32> to vector<12x1xf32>
    %100 = tpu.reciprocal %99 {approx = true} : vector<12x1xf32> -> vector<12x1xf32>
    %101 = vector.broadcast %100 : vector<12x1xf32> to vector<12x8xf32>
    %102 = arith.mulf %97, %101 : vector<12x8xf32>
    %103 = arith.truncf %102 : vector<12x8xf32> to vector<12x8xbf16>
    %104 = vector.extract_strided_slice %85 {offsets = [0, 0], sizes = [8, 8], strides = [1, 1]} : vector<8x16xbf16> to vector<8x8xbf16>
    %cst_57 = arith.constant dense<0.000000e+00> : vector<12x8xf32>
    %105 = tpu.matmul %103, %104, %cst_57 {dimension_numbers = #tpu.dot_dimension_numbers<[1], [0], [0], [1], [0, 0, 1, 1], [], []>} : vector<12x8xbf16>, vector<8x8xbf16>, vector<12x8xf32> -> vector<12x8xf32>
    %106 = vector.broadcast %88 : vector<12x1xf32> to vector<12x8xf32>
    %107 = arith.mulf %106, %105 : vector<12x8xf32>
    %108 = arith.addf %58, %107 : vector<12x8xf32>
    %109 = vector.extract_strided_slice %28 {offsets = [0, 8], sizes = [12, 8], strides = [1, 1]} : vector<12x16xbf16> to vector<12x8xbf16>
    %110 = vector.extract_strided_slice %81 {offsets = [0, 8], sizes = [8, 8], strides = [1, 1]} : vector<8x16xbf16> to vector<8x8xbf16>
    %cst_58 = arith.constant dense<0.000000e+00> : vector<12x8xf32>
    %111 = tpu.matmul %109, %110, %cst_58 {dimension_numbers = #tpu.dot_dimension_numbers<[1], [1], [0], [0], [0, 0, 1, 0], [], []>} : vector<12x8xbf16>, vector<8x8xbf16>, vector<12x8xf32> -> vector<12x8xf32>
    %112 = arith.addf %111, %87 : vector<12x8xf32>
    %cst_59 = arith.constant dense<0xFF800000> : vector<12xf32>
    %113 = vector.multi_reduction <maximumf>, %112, %cst_59 [1] : vector<12x8xf32> to vector<12xf32>
    %114 = vector.shape_cast %113 : vector<12xf32> to vector<12x1xf32>
    %115 = vector.broadcast %114 : vector<12x1xf32> to vector<12x8xf32>
    %116 = arith.subf %112, %115 : vector<12x8xf32>
    %117 = math.exp %116 : vector<12x8xf32>
    %cst_60 = arith.constant dense<0.000000e+00> : vector<12xf32>
    %118 = vector.multi_reduction <add>, %117, %cst_60 [1] : vector<12x8xf32> to vector<12xf32>
    %119 = vector.shape_cast %118 : vector<12xf32> to vector<12x1xf32>
    %120 = tpu.reciprocal %119 {approx = true} : vector<12x1xf32> -> vector<12x1xf32>
    %121 = vector.broadcast %120 : vector<12x1xf32> to vector<12x8xf32>
    %122 = arith.mulf %117, %121 : vector<12x8xf32>
    %123 = arith.truncf %122 : vector<12x8xf32> to vector<12x8xbf16>
    %124 = vector.extract_strided_slice %85 {offsets = [0, 8], sizes = [8, 8], strides = [1, 1]} : vector<8x16xbf16> to vector<8x8xbf16>
    %cst_61 = arith.constant dense<0.000000e+00> : vector<12x8xf32>
    %125 = tpu.matmul %123, %124, %cst_61 {dimension_numbers = #tpu.dot_dimension_numbers<[1], [0], [0], [1], [0, 0, 1, 1], [], []>} : vector<12x8xbf16>, vector<8x8xbf16>, vector<12x8xf32> -> vector<12x8xf32>
    %126 = vector.broadcast %88 : vector<12x1xf32> to vector<12x8xf32>
    %127 = arith.mulf %126, %125 : vector<12x8xf32>
    %128 = arith.addf %77, %127 : vector<12x8xf32>
    %129 = vector.extract_strided_slice %27 {offsets = [0, 0], sizes = [6, 16], strides = [1, 1]} : vector<6x48xbf16> to vector<6x16xbf16>
    %c0_62 = arith.constant 0 : index
    %c0_63 = arith.constant 0 : index
    %130 = vector.load %arg24[%c0_62, %c0_63] : memref<16x16xbf16, #tpu.memory_space<vmem>>, vector<16x16xbf16>
    %cst_64 = arith.constant dense<0.000000e+00> : vector<6x16xf32>
    %131 = tpu.matmul %129, %130, %cst_64 {dimension_numbers = #tpu.dot_dimension_numbers<[1], [0], [0], [1], [0, 0, 1, 1], [], []>} : vector<6x16xbf16>, vector<16x16xbf16>, vector<6x16xf32> -> vector<6x16xf32>
    %132 = arith.truncf %131 : vector<6x16xf32> to vector<6x16xbf16>
    %133 = vector.extract_strided_slice %27 {offsets = [0, 32], sizes = [6, 16], strides = [1, 1]} : vector<6x48xbf16> to vector<6x16xbf16>
    %c0_65 = arith.constant 0 : index
    %c0_66 = arith.constant 0 : index
    %134 = vector.load %arg30[%c0_65, %c0_66] : memref<16x16xbf16, #tpu.memory_space<vmem>>, vector<16x16xbf16>
    %cst_67 = arith.constant dense<0.000000e+00> : vector<6x16xf32>
    %135 = tpu.matmul %133, %134, %cst_67 {dimension_numbers = #tpu.dot_dimension_numbers<[1], [0], [0], [1], [0, 0, 1, 1], [], []>} : vector<6x16xbf16>, vector<16x16xbf16>, vector<6x16xf32> -> vector<6x16xf32>
    %136 = arith.truncf %135 : vector<6x16xf32> to vector<6x16xbf16>
    %c0_68 = arith.constant 0 : index
    %c0_69 = arith.constant 0 : index
    %137 = vector.load %arg36[%c0_68, %c0_69] : memref<12x6xbf16, #tpu.memory_space<vmem>>, vector<12x6xbf16>
    %138 = arith.extf %137 : vector<12x6xbf16> to vector<12x6xf32>
    %c0_70 = arith.constant 0 : index
    %c0_71 = arith.constant 0 : index
    %139 = vector.load %arg42[%c0_70, %c0_71] : memref<12x1xf32, #tpu.memory_space<vmem>>, vector<12x1xf32>
    %140 = vector.extract_strided_slice %28 {offsets = [0, 0], sizes = [12, 8], strides = [1, 1]} : vector<12x16xbf16> to vector<12x8xbf16>
    %141 = vector.extract_strided_slice %132 {offsets = [0, 0], sizes = [6, 8], strides = [1, 1]} : vector<6x16xbf16> to vector<6x8xbf16>
    %cst_72 = arith.constant dense<0.000000e+00> : vector<12x6xf32>
    %142 = tpu.matmul %140, %141, %cst_72 {dimension_numbers = #tpu.dot_dimension_numbers<[1], [1], [0], [0], [0, 0, 1, 0], [], []>} : vector<12x8xbf16>, vector<6x8xbf16>, vector<12x6xf32> -> vector<12x6xf32>
    %143 = arith.addf %142, %138 : vector<12x6xf32>
    %cst_73 = arith.constant dense<0xFF800000> : vector<12xf32>
    %144 = vector.multi_reduction <maximumf>, %143, %cst_73 [1] : vector<12x6xf32> to vector<12xf32>
    %145 = vector.shape_cast %144 : vector<12xf32> to vector<12x1xf32>
    %146 = vector.broadcast %145 : vector<12x1xf32> to vector<12x6xf32>
    %147 = arith.subf %143, %146 : vector<12x6xf32>
    %148 = math.exp %147 : vector<12x6xf32>
    %cst_74 = arith.constant dense<0.000000e+00> : vector<12xf32>
    %149 = vector.multi_reduction <add>, %148, %cst_74 [1] : vector<12x6xf32> to vector<12xf32>
    %150 = vector.shape_cast %149 : vector<12xf32> to vector<12x1xf32>
    %151 = tpu.reciprocal %150 {approx = true} : vector<12x1xf32> -> vector<12x1xf32>
    %152 = vector.broadcast %151 : vector<12x1xf32> to vector<12x6xf32>
    %153 = arith.mulf %148, %152 : vector<12x6xf32>
    %154 = arith.truncf %153 : vector<12x6xf32> to vector<12x6xbf16>
    %155 = vector.extract_strided_slice %136 {offsets = [0, 0], sizes = [6, 8], strides = [1, 1]} : vector<6x16xbf16> to vector<6x8xbf16>
    %cst_75 = arith.constant dense<0.000000e+00> : vector<12x8xf32>
    %156 = tpu.matmul %154, %155, %cst_75 {dimension_numbers = #tpu.dot_dimension_numbers<[1], [0], [0], [1], [0, 0, 1, 1], [], []>} : vector<12x6xbf16>, vector<6x8xbf16>, vector<12x8xf32> -> vector<12x8xf32>
    %157 = vector.broadcast %139 : vector<12x1xf32> to vector<12x8xf32>
    %158 = arith.mulf %157, %156 : vector<12x8xf32>
    %159 = arith.addf %108, %158 : vector<12x8xf32>
    %160 = vector.extract_strided_slice %28 {offsets = [0, 8], sizes = [12, 8], strides = [1, 1]} : vector<12x16xbf16> to vector<12x8xbf16>
    %161 = vector.extract_strided_slice %132 {offsets = [0, 8], sizes = [6, 8], strides = [1, 1]} : vector<6x16xbf16> to vector<6x8xbf16>
    %cst_76 = arith.constant dense<0.000000e+00> : vector<12x6xf32>
    %162 = tpu.matmul %160, %161, %cst_76 {dimension_numbers = #tpu.dot_dimension_numbers<[1], [1], [0], [0], [0, 0, 1, 0], [], []>} : vector<12x8xbf16>, vector<6x8xbf16>, vector<12x6xf32> -> vector<12x6xf32>
    %163 = arith.addf %162, %138 : vector<12x6xf32>
    %cst_77 = arith.constant dense<0xFF800000> : vector<12xf32>
    %164 = vector.multi_reduction <maximumf>, %163, %cst_77 [1] : vector<12x6xf32> to vector<12xf32>
    %165 = vector.shape_cast %164 : vector<12xf32> to vector<12x1xf32>
    %166 = vector.broadcast %165 : vector<12x1xf32> to vector<12x6xf32>
    %167 = arith.subf %163, %166 : vector<12x6xf32>
    %168 = math.exp %167 : vector<12x6xf32>
    %cst_78 = arith.constant dense<0.000000e+00> : vector<12xf32>
    %169 = vector.multi_reduction <add>, %168, %cst_78 [1] : vector<12x6xf32> to vector<12xf32>
    %170 = vector.shape_cast %169 : vector<12xf32> to vector<12x1xf32>
    %171 = tpu.reciprocal %170 {approx = true} : vector<12x1xf32> -> vector<12x1xf32>
    %172 = vector.broadcast %171 : vector<12x1xf32> to vector<12x6xf32>
    %173 = arith.mulf %168, %172 : vector<12x6xf32>
    %174 = arith.truncf %173 : vector<12x6xf32> to vector<12x6xbf16>
    %175 = vector.extract_strided_slice %136 {offsets = [0, 8], sizes = [6, 8], strides = [1, 1]} : vector<6x16xbf16> to vector<6x8xbf16>
    %cst_79 = arith.constant dense<0.000000e+00> : vector<12x8xf32>
    %176 = tpu.matmul %174, %175, %cst_79 {dimension_numbers = #tpu.dot_dimension_numbers<[1], [0], [0], [1], [0, 0, 1, 1], [], []>} : vector<12x6xbf16>, vector<6x8xbf16>, vector<12x8xf32> -> vector<12x8xf32>
    %177 = vector.broadcast %139 : vector<12x1xf32> to vector<12x8xf32>
    %178 = arith.mulf %177, %176 : vector<12x8xf32>
    %179 = arith.addf %128, %178 : vector<12x8xf32>
    %180 = tpu.concatenate %159, %179 in 1 : vector<12x8xf32>, vector<12x8xf32> -> vector<12x16xf32>
    %cst_80 = arith.constant 5.000000e-01 : f32
    %181 = vector.broadcast %cst_80 : f32 to vector<12x16xf32>
    %182 = arith.mulf %181, %180 : vector<12x16xf32>
    %cst_81 = arith.constant 0.707106769 : f32
    %183 = vector.broadcast %cst_81 : f32 to vector<12x16xf32>
    %184 = arith.mulf %180, %183 : vector<12x16xf32>
    %185 = math.absf %184 : vector<12x16xf32>
    %cst_82 = arith.constant 0.327591091 : f32
    %186 = vector.broadcast %cst_82 : f32 to vector<12x16xf32>
    %187 = arith.mulf %186, %185 : vector<12x16xf32>
    %cst_83 = arith.constant 1.000000e+00 : f32
    %188 = vector.broadcast %cst_83 : f32 to vector<12x16xf32>
    %189 = arith.addf %188, %187 : vector<12x16xf32>
    %190 = tpu.reciprocal %189 {approx = true} : vector<12x16xf32> -> vector<12x16xf32>
    %cst_84 = arith.constant 1.06140542 : f32
    %191 = vector.broadcast %cst_84 : f32 to vector<12x16xf32>
    %192 = arith.mulf %191, %190 : vector<12x16xf32>
    %cst_85 = arith.constant -1.45315206 : f32
    %193 = vector.broadcast %cst_85 : f32 to vector<12x16xf32>
    %194 = arith.addf %192, %193 : vector<12x16xf32>
    %195 = arith.mulf %194, %190 : vector<12x16xf32>
    %cst_86 = arith.constant 1.42141378 : f32
    %196 = vector.broadcast %cst_86 : f32 to vector<12x16xf32>
    %197 = arith.addf %195, %196 : vector<12x16xf32>
    %198 = arith.mulf %197, %190 : vector<12x16xf32>
    %cst_87 = arith.constant -0.284496725 : f32
    %199 = vector.broadcast %cst_87 : f32 to vector<12x16xf32>
    %200 = arith.addf %198, %199 : vector<12x16xf32>
    %201 = arith.mulf %200, %190 : vector<12x16xf32>
    %cst_88 = arith.constant 0.254829586 : f32
    %202 = vector.broadcast %cst_88 : f32 to vector<12x16xf32>
    %203 = arith.addf %201, %202 : vector<12x16xf32>
    %204 = arith.mulf %203, %190 : vector<12x16xf32>
    %cst_89 = arith.constant 0.000000e+00 : f32
    %205 = vector.broadcast %cst_89 : f32 to vector<12x16xf32>
    %206 = arith.subf %205, %185 : vector<12x16xf32>
    %207 = arith.mulf %206, %185 : vector<12x16xf32>
    %208 = math.exp %207 : vector<12x16xf32>
    %209 = arith.mulf %204, %208 : vector<12x16xf32>
    %cst_90 = arith.constant 1.000000e+00 : f32
    %210 = vector.broadcast %cst_90 : f32 to vector<12x16xf32>
    %211 = arith.subf %210, %209 : vector<12x16xf32>
    %cst_91 = arith.constant 0.000000e+00 : f32
    %212 = vector.broadcast %cst_91 : f32 to vector<12x16xf32>
    %213 = arith.cmpf oge, %184, %212 : vector<12x16xf32>
    %cst_92 = arith.constant 0.000000e+00 : f32
    %214 = vector.broadcast %cst_92 : f32 to vector<12x16xf32>
    %215 = arith.subf %214, %211 : vector<12x16xf32>
    %216 = arith.select %213, %211, %215 : vector<12x16xi1>, vector<12x16xf32>
    %cst_93 = arith.constant 1.000000e+00 : f32
    %217 = vector.broadcast %cst_93 : f32 to vector<12x16xf32>
    %218 = arith.addf %217, %216 : vector<12x16xf32>
    %219 = arith.mulf %182, %218 : vector<12x16xf32>
    %220 = arith.truncf %219 : vector<12x16xf32> to vector<12x16xbf16>
    %c0_94 = arith.constant 0 : index
    %c0_95 = arith.constant 0 : index
    %221 = vector.load %arg12[%c0_94, %c0_95] : memref<16x128xbf16, #tpu.memory_space<vmem>>, vector<16x128xbf16>
    %cst_96 = arith.constant dense<0.000000e+00> : vector<12x128xf32>
    %222 = tpu.matmul %220, %221, %cst_96 {dimension_numbers = #tpu.dot_dimension_numbers<[1], [0], [0], [1], [0, 0, 1, 1], [], []>} : vector<12x16xbf16>, vector<16x128xbf16>, vector<12x128xf32> -> vector<12x128xf32>
    %c0_97 = arith.constant 0 : index
    %c0_98 = arith.constant 0 : index
    %223 = vector.load %arg16[%c0_97, %c0_98] : memref<1x128xf32, #tpu.memory_space<vmem>>, vector<1x128xf32>
    %224 = vector.broadcast %223 : vector<1x128xf32> to vector<12x128xf32>
    %225 = arith.addf %222, %224 : vector<12x128xf32>
    %226 = arith.truncf %225 : vector<12x128xf32> to vector<12x128xbf16>
    %c0_99 = arith.constant 0 : index
    %c0_100 = arith.constant 0 : index
    %227 = vector.load %arg44[%c0_99, %c0_100] : memref<12x128xbf16, #tpu.memory_space<vmem>>, vector<12x128xbf16>
    tpu.vector_store %arg44[%c0_99, %c0_100], %226 {strides = array<i32>} : memref<12x128xbf16, #tpu.memory_space<vmem>>, vector<12x128xbf16>,
    %228 = vector.extract_strided_slice %15 {offsets = [0, 16], sizes = [10, 16], strides = [1, 1]} : vector<10x48xbf16> to vector<10x16xbf16>
    %229 = vector.extract_strided_slice %9 {offsets = [0, 0], sizes = [12, 16], strides = [1, 1]} : vector<12x48xbf16> to vector<12x16xbf16>
    %c0_101 = arith.constant 0 : index
    %c0_102 = arith.constant 0 : index
    %230 = vector.load %arg21[%c0_101, %c0_102] : memref<16x16xbf16, #tpu.memory_space<vmem>>, vector<16x16xbf16>
    %cst_103 = arith.constant dense<0.000000e+00> : vector<12x16xf32>
    %231 = tpu.matmul %229, %230, %cst_103 {dimension_numbers = #tpu.dot_dimension_numbers<[1], [0], [0], [1], [0, 0, 1, 1], [], []>} : vector<12x16xbf16>, vector<16x16xbf16>, vector<12x16xf32> -> vector<12x16xf32>
    %232 = arith.truncf %231 : vector<12x16xf32> to vector<12x16xbf16>
    %233 = vector.extract_strided_slice %9 {offsets = [0, 32], sizes = [12, 16], strides = [1, 1]} : vector<12x48xbf16> to vector<12x16xbf16>
    %c0_104 = arith.constant 0 : index
    %c0_105 = arith.constant 0 : index
    %234 = vector.load %arg27[%c0_104, %c0_105] : memref<16x16xbf16, #tpu.memory_space<vmem>>, vector<16x16xbf16>
    %cst_106 = arith.constant dense<0.000000e+00> : vector<12x16xf32>
    %235 = tpu.matmul %233, %234, %cst_106 {dimension_numbers = #tpu.dot_dimension_numbers<[1], [0], [0], [1], [0, 0, 1, 1], [], []>} : vector<12x16xbf16>, vector<16x16xbf16>, vector<12x16xf32> -> vector<12x16xf32>
    %236 = arith.truncf %235 : vector<12x16xf32> to vector<12x16xbf16>
    %c0_107 = arith.constant 0 : index
    %c0_108 = arith.constant 0 : index
    %237 = vector.load %arg33[%c0_107, %c0_108] : memref<10x12xbf16, #tpu.memory_space<vmem>>, vector<10x12xbf16>
    %238 = arith.extf %237 : vector<10x12xbf16> to vector<10x12xf32>
    %c0_109 = arith.constant 0 : index
    %c0_110 = arith.constant 0 : index
    %239 = vector.load %arg39[%c0_109, %c0_110] : memref<10x1xf32, #tpu.memory_space<vmem>>, vector<10x1xf32>
    %240 = vector.extract_strided_slice %228 {offsets = [0, 0], sizes = [10, 8], strides = [1, 1]} : vector<10x16xbf16> to vector<10x8xbf16>
    %241 = vector.extract_strided_slice %232 {offsets = [0, 0], sizes = [12, 8], strides = [1, 1]} : vector<12x16xbf16> to vector<12x8xbf16>
    %cst_111 = arith.constant dense<0.000000e+00> : vector<10x12xf32>
    %242 = tpu.matmul %240, %241, %cst_111 {dimension_numbers = #tpu.dot_dimension_numbers<[1], [1], [0], [0], [0, 0, 1, 0], [], []>} : vector<10x8xbf16>, vector<12x8xbf16>, vector<10x12xf32> -> vector<10x12xf32>
    %243 = arith.addf %242, %238 : vector<10x12xf32>
    %cst_112 = arith.constant dense<0xFF800000> : vector<10xf32>
    %244 = vector.multi_reduction <maximumf>, %243, %cst_112 [1] : vector<10x12xf32> to vector<10xf32>
    %245 = vector.shape_cast %244 : vector<10xf32> to vector<10x1xf32>
    %246 = vector.broadcast %245 : vector<10x1xf32> to vector<10x12xf32>
    %247 = arith.subf %243, %246 : vector<10x12xf32>
    %248 = math.exp %247 : vector<10x12xf32>
    %cst_113 = arith.constant dense<0.000000e+00> : vector<10xf32>
    %249 = vector.multi_reduction <add>, %248, %cst_113 [1] : vector<10x12xf32> to vector<10xf32>
    %250 = vector.shape_cast %249 : vector<10xf32> to vector<10x1xf32>
    %251 = tpu.reciprocal %250 {approx = true} : vector<10x1xf32> -> vector<10x1xf32>
    %252 = vector.broadcast %251 : vector<10x1xf32> to vector<10x12xf32>
    %253 = arith.mulf %248, %252 : vector<10x12xf32>
    %254 = arith.truncf %253 : vector<10x12xf32> to vector<10x12xbf16>
    %255 = vector.extract_strided_slice %236 {offsets = [0, 0], sizes = [12, 8], strides = [1, 1]} : vector<12x16xbf16> to vector<12x8xbf16>
    %cst_114 = arith.constant dense<0.000000e+00> : vector<10x8xf32>
    %256 = tpu.matmul %254, %255, %cst_114 {dimension_numbers = #tpu.dot_dimension_numbers<[1], [0], [0], [1], [0, 0, 1, 1], [], []>} : vector<10x12xbf16>, vector<12x8xbf16>, vector<10x8xf32> -> vector<10x8xf32>
    %257 = vector.broadcast %239 : vector<10x1xf32> to vector<10x8xf32>
    %258 = arith.mulf %257, %256 : vector<10x8xf32>
    %259 = vector.extract_strided_slice %228 {offsets = [0, 8], sizes = [10, 8], strides = [1, 1]} : vector<10x16xbf16> to vector<10x8xbf16>
    %260 = vector.extract_strided_slice %232 {offsets = [0, 8], sizes = [12, 8], strides = [1, 1]} : vector<12x16xbf16> to vector<12x8xbf16>
    %cst_115 = arith.constant dense<0.000000e+00> : vector<10x12xf32>
    %261 = tpu.matmul %259, %260, %cst_115 {dimension_numbers = #tpu.dot_dimension_numbers<[1], [1], [0], [0], [0, 0, 1, 0], [], []>} : vector<10x8xbf16>, vector<12x8xbf16>, vector<10x12xf32> -> vector<10x12xf32>
    %262 = arith.addf %261, %238 : vector<10x12xf32>
    %cst_116 = arith.constant dense<0xFF800000> : vector<10xf32>
    %263 = vector.multi_reduction <maximumf>, %262, %cst_116 [1] : vector<10x12xf32> to vector<10xf32>
    %264 = vector.shape_cast %263 : vector<10xf32> to vector<10x1xf32>
    %265 = vector.broadcast %264 : vector<10x1xf32> to vector<10x12xf32>
    %266 = arith.subf %262, %265 : vector<10x12xf32>
    %267 = math.exp %266 : vector<10x12xf32>
    %cst_117 = arith.constant dense<0.000000e+00> : vector<10xf32>
    %268 = vector.multi_reduction <add>, %267, %cst_117 [1] : vector<10x12xf32> to vector<10xf32>
    %269 = vector.shape_cast %268 : vector<10xf32> to vector<10x1xf32>
    %270 = tpu.reciprocal %269 {approx = true} : vector<10x1xf32> -> vector<10x1xf32>
    %271 = vector.broadcast %270 : vector<10x1xf32> to vector<10x12xf32>
    %272 = arith.mulf %267, %271 : vector<10x12xf32>
    %273 = arith.truncf %272 : vector<10x12xf32> to vector<10x12xbf16>
    %274 = vector.extract_strided_slice %236 {offsets = [0, 8], sizes = [12, 8], strides = [1, 1]} : vector<12x16xbf16> to vector<12x8xbf16>
    %cst_118 = arith.constant dense<0.000000e+00> : vector<10x8xf32>
    %275 = tpu.matmul %273, %274, %cst_118 {dimension_numbers = #tpu.dot_dimension_numbers<[1], [0], [0], [1], [0, 0, 1, 1], [], []>} : vector<10x12xbf16>, vector<12x8xbf16>, vector<10x8xf32> -> vector<10x8xf32>
    %276 = vector.broadcast %239 : vector<10x1xf32> to vector<10x8xf32>
    %277 = arith.mulf %276, %275 : vector<10x8xf32>
    %278 = tpu.concatenate %258, %277 in 1 : vector<10x8xf32>, vector<10x8xf32> -> vector<10x16xf32>
    %cst_119 = arith.constant 5.000000e-01 : f32
    %279 = vector.broadcast %cst_119 : f32 to vector<10x16xf32>
    %280 = arith.mulf %279, %278 : vector<10x16xf32>
    %cst_120 = arith.constant 0.707106769 : f32
    %281 = vector.broadcast %cst_120 : f32 to vector<10x16xf32>
    %282 = arith.mulf %278, %281 : vector<10x16xf32>
    %283 = math.absf %282 : vector<10x16xf32>
    %cst_121 = arith.constant 0.327591091 : f32
    %284 = vector.broadcast %cst_121 : f32 to vector<10x16xf32>
    %285 = arith.mulf %284, %283 : vector<10x16xf32>
    %cst_122 = arith.constant 1.000000e+00 : f32
    %286 = vector.broadcast %cst_122 : f32 to vector<10x16xf32>
    %287 = arith.addf %286, %285 : vector<10x16xf32>
    %288 = tpu.reciprocal %287 {approx = true} : vector<10x16xf32> -> vector<10x16xf32>
    %cst_123 = arith.constant 1.06140542 : f32
    %289 = vector.broadcast %cst_123 : f32 to vector<10x16xf32>
    %290 = arith.mulf %289, %288 : vector<10x16xf32>
    %cst_124 = arith.constant -1.45315206 : f32
    %291 = vector.broadcast %cst_124 : f32 to vector<10x16xf32>
    %292 = arith.addf %290, %291 : vector<10x16xf32>
    %293 = arith.mulf %292, %288 : vector<10x16xf32>
    %cst_125 = arith.constant 1.42141378 : f32
    %294 = vector.broadcast %cst_125 : f32 to vector<10x16xf32>
    %295 = arith.addf %293, %294 : vector<10x16xf32>
    %296 = arith.mulf %295, %288 : vector<10x16xf32>
    %cst_126 = arith.constant -0.284496725 : f32
    %297 = vector.broadcast %cst_126 : f32 to vector<10x16xf32>
    %298 = arith.addf %296, %297 : vector<10x16xf32>
    %299 = arith.mulf %298, %288 : vector<10x16xf32>
    %cst_127 = arith.constant 0.254829586 : f32
    %300 = vector.broadcast %cst_127 : f32 to vector<10x16xf32>
    %301 = arith.addf %299, %300 : vector<10x16xf32>
    %302 = arith.mulf %301, %288 : vector<10x16xf32>
    %cst_128 = arith.constant 0.000000e+00 : f32
    %303 = vector.broadcast %cst_128 : f32 to vector<10x16xf32>
    %304 = arith.subf %303, %283 : vector<10x16xf32>
    %305 = arith.mulf %304, %283 : vector<10x16xf32>
    %306 = math.exp %305 : vector<10x16xf32>
    %307 = arith.mulf %302, %306 : vector<10x16xf32>
    %cst_129 = arith.constant 1.000000e+00 : f32
    %308 = vector.broadcast %cst_129 : f32 to vector<10x16xf32>
    %309 = arith.subf %308, %307 : vector<10x16xf32>
    %cst_130 = arith.constant 0.000000e+00 : f32
    %310 = vector.broadcast %cst_130 : f32 to vector<10x16xf32>
    %311 = arith.cmpf oge, %282, %310 : vector<10x16xf32>
    %cst_131 = arith.constant 0.000000e+00 : f32
    %312 = vector.broadcast %cst_131 : f32 to vector<10x16xf32>
    %313 = arith.subf %312, %309 : vector<10x16xf32>
    %314 = arith.select %311, %309, %313 : vector<10x16xi1>, vector<10x16xf32>
    %cst_132 = arith.constant 1.000000e+00 : f32
    %315 = vector.broadcast %cst_132 : f32 to vector<10x16xf32>
    %316 = arith.addf %315, %314 : vector<10x16xf32>
    %317 = arith.mulf %280, %316 : vector<10x16xf32>
    %318 = arith.truncf %317 : vector<10x16xf32> to vector<10x16xbf16>
    %c0_133 = arith.constant 0 : index
    %c0_134 = arith.constant 0 : index
    %319 = vector.load %arg13[%c0_133, %c0_134] : memref<16x128xbf16, #tpu.memory_space<vmem>>, vector<16x128xbf16>
    %cst_135 = arith.constant dense<0.000000e+00> : vector<10x128xf32>
    %320 = tpu.matmul %318, %319, %cst_135 {dimension_numbers = #tpu.dot_dimension_numbers<[1], [0], [0], [1], [0, 0, 1, 1], [], []>} : vector<10x16xbf16>, vector<16x128xbf16>, vector<10x128xf32> -> vector<10x128xf32>
    %c0_136 = arith.constant 0 : index
    %c0_137 = arith.constant 0 : index
    %321 = vector.load %arg17[%c0_136, %c0_137] : memref<1x128xf32, #tpu.memory_space<vmem>>, vector<1x128xf32>
    %322 = vector.broadcast %321 : vector<1x128xf32> to vector<10x128xf32>
    %323 = arith.addf %320, %322 : vector<10x128xf32>
    %324 = arith.truncf %323 : vector<10x128xf32> to vector<10x128xbf16>
    %c0_138 = arith.constant 0 : index
    %c0_139 = arith.constant 0 : index
    %325 = vector.load %arg45[%c0_138, %c0_139] : memref<10x128xbf16, #tpu.memory_space<vmem>>, vector<10x128xbf16>
    tpu.vector_store %arg45[%c0_138, %c0_139], %324 {strides = array<i32>} : memref<10x128xbf16, #tpu.memory_space<vmem>>, vector<10x128xbf16>,
    %326 = vector.extract_strided_slice %21 {offsets = [0, 16], sizes = [8, 16], strides = [1, 1]} : vector<8x48xbf16> to vector<8x16xbf16>
    %327 = vector.extract_strided_slice %9 {offsets = [0, 0], sizes = [12, 16], strides = [1, 1]} : vector<12x48xbf16> to vector<12x16xbf16>
    %c0_140 = arith.constant 0 : index
    %c0_141 = arith.constant 0 : index
    %328 = vector.load %arg22[%c0_140, %c0_141] : memref<16x16xbf16, #tpu.memory_space<vmem>>, vector<16x16xbf16>
    %cst_142 = arith.constant dense<0.000000e+00> : vector<12x16xf32>
    %329 = tpu.matmul %327, %328, %cst_142 {dimension_numbers = #tpu.dot_dimension_numbers<[1], [0], [0], [1], [0, 0, 1, 1], [], []>} : vector<12x16xbf16>, vector<16x16xbf16>, vector<12x16xf32> -> vector<12x16xf32>
    %330 = arith.truncf %329 : vector<12x16xf32> to vector<12x16xbf16>
    %331 = vector.extract_strided_slice %9 {offsets = [0, 32], sizes = [12, 16], strides = [1, 1]} : vector<12x48xbf16> to vector<12x16xbf16>
    %c0_143 = arith.constant 0 : index
    %c0_144 = arith.constant 0 : index
    %332 = vector.load %arg28[%c0_143, %c0_144] : memref<16x16xbf16, #tpu.memory_space<vmem>>, vector<16x16xbf16>
    %cst_145 = arith.constant dense<0.000000e+00> : vector<12x16xf32>
    %333 = tpu.matmul %331, %332, %cst_145 {dimension_numbers = #tpu.dot_dimension_numbers<[1], [0], [0], [1], [0, 0, 1, 1], [], []>} : vector<12x16xbf16>, vector<16x16xbf16>, vector<12x16xf32> -> vector<12x16xf32>
    %334 = arith.truncf %333 : vector<12x16xf32> to vector<12x16xbf16>
    %c0_146 = arith.constant 0 : index
    %c0_147 = arith.constant 0 : index
    %335 = vector.load %arg34[%c0_146, %c0_147] : memref<8x12xbf16, #tpu.memory_space<vmem>>, vector<8x12xbf16>
    %336 = arith.extf %335 : vector<8x12xbf16> to vector<8x12xf32>
    %c0_148 = arith.constant 0 : index
    %c0_149 = arith.constant 0 : index
    %337 = vector.load %arg40[%c0_148, %c0_149] : memref<8x1xf32, #tpu.memory_space<vmem>>, vector<8x1xf32>
    %338 = vector.extract_strided_slice %326 {offsets = [0, 0], sizes = [8, 8], strides = [1, 1]} : vector<8x16xbf16> to vector<8x8xbf16>
    %339 = vector.extract_strided_slice %330 {offsets = [0, 0], sizes = [12, 8], strides = [1, 1]} : vector<12x16xbf16> to vector<12x8xbf16>
    %cst_150 = arith.constant dense<0.000000e+00> : vector<8x12xf32>
    %340 = tpu.matmul %338, %339, %cst_150 {dimension_numbers = #tpu.dot_dimension_numbers<[1], [1], [0], [0], [0, 0, 1, 0], [], []>} : vector<8x8xbf16>, vector<12x8xbf16>, vector<8x12xf32> -> vector<8x12xf32>
    %341 = arith.addf %340, %336 : vector<8x12xf32>
    %cst_151 = arith.constant dense<0xFF800000> : vector<8xf32>
    %342 = vector.multi_reduction <maximumf>, %341, %cst_151 [1] : vector<8x12xf32> to vector<8xf32>
    %343 = vector.shape_cast %342 : vector<8xf32> to vector<8x1xf32>
    %344 = vector.broadcast %343 : vector<8x1xf32> to vector<8x12xf32>
    %345 = arith.subf %341, %344 : vector<8x12xf32>
    %346 = math.exp %345 : vector<8x12xf32>
    %cst_152 = arith.constant dense<0.000000e+00> : vector<8xf32>
    %347 = vector.multi_reduction <add>, %346, %cst_152 [1] : vector<8x12xf32> to vector<8xf32>
    %348 = vector.shape_cast %347 : vector<8xf32> to vector<8x1xf32>
    %349 = tpu.reciprocal %348 {approx = true} : vector<8x1xf32> -> vector<8x1xf32>
    %350 = vector.broadcast %349 : vector<8x1xf32> to vector<8x12xf32>
    %351 = arith.mulf %346, %350 : vector<8x12xf32>
    %352 = arith.truncf %351 : vector<8x12xf32> to vector<8x12xbf16>
    %353 = vector.extract_strided_slice %334 {offsets = [0, 0], sizes = [12, 8], strides = [1, 1]} : vector<12x16xbf16> to vector<12x8xbf16>
    %cst_153 = arith.constant dense<0.000000e+00> : vector<8x8xf32>
    %354 = tpu.matmul %352, %353, %cst_153 {dimension_numbers = #tpu.dot_dimension_numbers<[1], [0], [0], [1], [0, 0, 1, 1], [], []>} : vector<8x12xbf16>, vector<12x8xbf16>, vector<8x8xf32> -> vector<8x8xf32>
    %355 = vector.broadcast %337 : vector<8x1xf32> to vector<8x8xf32>
    %356 = arith.mulf %355, %354 : vector<8x8xf32>
    %357 = vector.extract_strided_slice %326 {offsets = [0, 8], sizes = [8, 8], strides = [1, 1]} : vector<8x16xbf16> to vector<8x8xbf16>
    %358 = vector.extract_strided_slice %330 {offsets = [0, 8], sizes = [12, 8], strides = [1, 1]} : vector<12x16xbf16> to vector<12x8xbf16>
    %cst_154 = arith.constant dense<0.000000e+00> : vector<8x12xf32>
    %359 = tpu.matmul %357, %358, %cst_154 {dimension_numbers = #tpu.dot_dimension_numbers<[1], [1], [0], [0], [0, 0, 1, 0], [], []>} : vector<8x8xbf16>, vector<12x8xbf16>, vector<8x12xf32> -> vector<8x12xf32>
    %360 = arith.addf %359, %336 : vector<8x12xf32>
    %cst_155 = arith.constant dense<0xFF800000> : vector<8xf32>
    %361 = vector.multi_reduction <maximumf>, %360, %cst_155 [1] : vector<8x12xf32> to vector<8xf32>
    %362 = vector.shape_cast %361 : vector<8xf32> to vector<8x1xf32>
    %363 = vector.broadcast %362 : vector<8x1xf32> to vector<8x12xf32>
    %364 = arith.subf %360, %363 : vector<8x12xf32>
    %365 = math.exp %364 : vector<8x12xf32>
    %cst_156 = arith.constant dense<0.000000e+00> : vector<8xf32>
    %366 = vector.multi_reduction <add>, %365, %cst_156 [1] : vector<8x12xf32> to vector<8xf32>
    %367 = vector.shape_cast %366 : vector<8xf32> to vector<8x1xf32>
    %368 = tpu.reciprocal %367 {approx = true} : vector<8x1xf32> -> vector<8x1xf32>
    %369 = vector.broadcast %368 : vector<8x1xf32> to vector<8x12xf32>
    %370 = arith.mulf %365, %369 : vector<8x12xf32>
    %371 = arith.truncf %370 : vector<8x12xf32> to vector<8x12xbf16>
    %372 = vector.extract_strided_slice %334 {offsets = [0, 8], sizes = [12, 8], strides = [1, 1]} : vector<12x16xbf16> to vector<12x8xbf16>
    %cst_157 = arith.constant dense<0.000000e+00> : vector<8x8xf32>
    %373 = tpu.matmul %371, %372, %cst_157 {dimension_numbers = #tpu.dot_dimension_numbers<[1], [0], [0], [1], [0, 0, 1, 1], [], []>} : vector<8x12xbf16>, vector<12x8xbf16>, vector<8x8xf32> -> vector<8x8xf32>
    %374 = vector.broadcast %337 : vector<8x1xf32> to vector<8x8xf32>
    %375 = arith.mulf %374, %373 : vector<8x8xf32>
    %376 = tpu.concatenate %356, %375 in 1 : vector<8x8xf32>, vector<8x8xf32> -> vector<8x16xf32>
    %cst_158 = arith.constant 5.000000e-01 : f32
    %377 = vector.broadcast %cst_158 : f32 to vector<8x16xf32>
    %378 = arith.mulf %377, %376 : vector<8x16xf32>
    %cst_159 = arith.constant 0.707106769 : f32
    %379 = vector.broadcast %cst_159 : f32 to vector<8x16xf32>
    %380 = arith.mulf %376, %379 : vector<8x16xf32>
    %381 = math.absf %380 : vector<8x16xf32>
    %cst_160 = arith.constant 0.327591091 : f32
    %382 = vector.broadcast %cst_160 : f32 to vector<8x16xf32>
    %383 = arith.mulf %382, %381 : vector<8x16xf32>
    %cst_161 = arith.constant 1.000000e+00 : f32
    %384 = vector.broadcast %cst_161 : f32 to vector<8x16xf32>
    %385 = arith.addf %384, %383 : vector<8x16xf32>
    %386 = tpu.reciprocal %385 {approx = true} : vector<8x16xf32> -> vector<8x16xf32>
    %cst_162 = arith.constant 1.06140542 : f32
    %387 = vector.broadcast %cst_162 : f32 to vector<8x16xf32>
    %388 = arith.mulf %387, %386 : vector<8x16xf32>
    %cst_163 = arith.constant -1.45315206 : f32
    %389 = vector.broadcast %cst_163 : f32 to vector<8x16xf32>
    %390 = arith.addf %388, %389 : vector<8x16xf32>
    %391 = arith.mulf %390, %386 : vector<8x16xf32>
    %cst_164 = arith.constant 1.42141378 : f32
    %392 = vector.broadcast %cst_164 : f32 to vector<8x16xf32>
    %393 = arith.addf %391, %392 : vector<8x16xf32>
    %394 = arith.mulf %393, %386 : vector<8x16xf32>
    %cst_165 = arith.constant -0.284496725 : f32
    %395 = vector.broadcast %cst_165 : f32 to vector<8x16xf32>
    %396 = arith.addf %394, %395 : vector<8x16xf32>
    %397 = arith.mulf %396, %386 : vector<8x16xf32>
    %cst_166 = arith.constant 0.254829586 : f32
    %398 = vector.broadcast %cst_166 : f32 to vector<8x16xf32>
    %399 = arith.addf %397, %398 : vector<8x16xf32>
    %400 = arith.mulf %399, %386 : vector<8x16xf32>
    %cst_167 = arith.constant 0.000000e+00 : f32
    %401 = vector.broadcast %cst_167 : f32 to vector<8x16xf32>
    %402 = arith.subf %401, %381 : vector<8x16xf32>
    %403 = arith.mulf %402, %381 : vector<8x16xf32>
    %404 = math.exp %403 : vector<8x16xf32>
    %405 = arith.mulf %400, %404 : vector<8x16xf32>
    %cst_168 = arith.constant 1.000000e+00 : f32
    %406 = vector.broadcast %cst_168 : f32 to vector<8x16xf32>
    %407 = arith.subf %406, %405 : vector<8x16xf32>
    %cst_169 = arith.constant 0.000000e+00 : f32
    %408 = vector.broadcast %cst_169 : f32 to vector<8x16xf32>
    %409 = arith.cmpf oge, %380, %408 : vector<8x16xf32>
    %cst_170 = arith.constant 0.000000e+00 : f32
    %410 = vector.broadcast %cst_170 : f32 to vector<8x16xf32>
    %411 = arith.subf %410, %407 : vector<8x16xf32>
    %412 = arith.select %409, %407, %411 : vector<8x16xi1>, vector<8x16xf32>
    %cst_171 = arith.constant 1.000000e+00 : f32
    %413 = vector.broadcast %cst_171 : f32 to vector<8x16xf32>
    %414 = arith.addf %413, %412 : vector<8x16xf32>
    %415 = arith.mulf %378, %414 : vector<8x16xf32>
    %416 = arith.truncf %415 : vector<8x16xf32> to vector<8x16xbf16>
    %c0_172 = arith.constant 0 : index
    %c0_173 = arith.constant 0 : index
    %417 = vector.load %arg14[%c0_172, %c0_173] : memref<16x128xbf16, #tpu.memory_space<vmem>>, vector<16x128xbf16>
    %cst_174 = arith.constant dense<0.000000e+00> : vector<8x128xf32>
    %418 = tpu.matmul %416, %417, %cst_174 {dimension_numbers = #tpu.dot_dimension_numbers<[1], [0], [0], [1], [0, 0, 1, 1], [], []>} : vector<8x16xbf16>, vector<16x128xbf16>, vector<8x128xf32> -> vector<8x128xf32>
    %c0_175 = arith.constant 0 : index
    %c0_176 = arith.constant 0 : index
    %419 = vector.load %arg18[%c0_175, %c0_176] : memref<1x128xf32, #tpu.memory_space<vmem>>, vector<1x128xf32>
    %420 = vector.broadcast %419 : vector<1x128xf32> to vector<8x128xf32>
    %421 = arith.addf %418, %420 : vector<8x128xf32>
    %422 = arith.truncf %421 : vector<8x128xf32> to vector<8x128xbf16>
    %c0_177 = arith.constant 0 : index
    %c0_178 = arith.constant 0 : index
    %423 = vector.load %arg46[%c0_177, %c0_178] : memref<8x128xbf16, #tpu.memory_space<vmem>>, vector<8x128xbf16>
    tpu.vector_store %arg46[%c0_177, %c0_178], %422 {strides = array<i32>} : memref<8x128xbf16, #tpu.memory_space<vmem>>, vector<8x128xbf16>,
    %424 = vector.extract_strided_slice %27 {offsets = [0, 16], sizes = [6, 16], strides = [1, 1]} : vector<6x48xbf16> to vector<6x16xbf16>
    %425 = vector.extract_strided_slice %9 {offsets = [0, 0], sizes = [12, 16], strides = [1, 1]} : vector<12x48xbf16> to vector<12x16xbf16>
    %c0_179 = arith.constant 0 : index
    %c0_180 = arith.constant 0 : index
    %426 = vector.load %arg25[%c0_179, %c0_180] : memref<16x16xbf16, #tpu.memory_space<vmem>>, vector<16x16xbf16>
    %cst_181 = arith.constant dense<0.000000e+00> : vector<12x16xf32>
    %427 = tpu.matmul %425, %426, %cst_181 {dimension_numbers = #tpu.dot_dimension_numbers<[1], [0], [0], [1], [0, 0, 1, 1], [], []>} : vector<12x16xbf16>, vector<16x16xbf16>, vector<12x16xf32> -> vector<12x16xf32>
    %428 = arith.truncf %427 : vector<12x16xf32> to vector<12x16xbf16>
    %429 = vector.extract_strided_slice %9 {offsets = [0, 32], sizes = [12, 16], strides = [1, 1]} : vector<12x48xbf16> to vector<12x16xbf16>
    %c0_182 = arith.constant 0 : index
    %c0_183 = arith.constant 0 : index
    %430 = vector.load %arg31[%c0_182, %c0_183] : memref<16x16xbf16, #tpu.memory_space<vmem>>, vector<16x16xbf16>
    %cst_184 = arith.constant dense<0.000000e+00> : vector<12x16xf32>
    %431 = tpu.matmul %429, %430, %cst_184 {dimension_numbers = #tpu.dot_dimension_numbers<[1], [0], [0], [1], [0, 0, 1, 1], [], []>} : vector<12x16xbf16>, vector<16x16xbf16>, vector<12x16xf32> -> vector<12x16xf32>
    %432 = arith.truncf %431 : vector<12x16xf32> to vector<12x16xbf16>
    %c0_185 = arith.constant 0 : index
    %c0_186 = arith.constant 0 : index
    %433 = vector.load %arg37[%c0_185, %c0_186] : memref<6x12xbf16, #tpu.memory_space<vmem>>, vector<6x12xbf16>
    %434 = arith.extf %433 : vector<6x12xbf16> to vector<6x12xf32>
    %c0_187 = arith.constant 0 : index
    %c0_188 = arith.constant 0 : index
    %435 = vector.load %arg43[%c0_187, %c0_188] : memref<6x1xf32, #tpu.memory_space<vmem>>, vector<6x1xf32>
    %436 = vector.extract_strided_slice %424 {offsets = [0, 0], sizes = [6, 8], strides = [1, 1]} : vector<6x16xbf16> to vector<6x8xbf16>
    %437 = vector.extract_strided_slice %428 {offsets = [0, 0], sizes = [12, 8], strides = [1, 1]} : vector<12x16xbf16> to vector<12x8xbf16>
    %cst_189 = arith.constant dense<0.000000e+00> : vector<6x12xf32>
    %438 = tpu.matmul %436, %437, %cst_189 {dimension_numbers = #tpu.dot_dimension_numbers<[1], [1], [0], [0], [0, 0, 1, 0], [], []>} : vector<6x8xbf16>, vector<12x8xbf16>, vector<6x12xf32> -> vector<6x12xf32>
    %439 = arith.addf %438, %434 : vector<6x12xf32>
    %cst_190 = arith.constant dense<0xFF800000> : vector<6xf32>
    %440 = vector.multi_reduction <maximumf>, %439, %cst_190 [1] : vector<6x12xf32> to vector<6xf32>
    %441 = vector.shape_cast %440 : vector<6xf32> to vector<6x1xf32>
    %442 = vector.broadcast %441 : vector<6x1xf32> to vector<6x12xf32>
    %443 = arith.subf %439, %442 : vector<6x12xf32>
    %444 = math.exp %443 : vector<6x12xf32>
    %cst_191 = arith.constant dense<0.000000e+00> : vector<6xf32>
    %445 = vector.multi_reduction <add>, %444, %cst_191 [1] : vector<6x12xf32> to vector<6xf32>
    %446 = vector.shape_cast %445 : vector<6xf32> to vector<6x1xf32>
    %447 = tpu.reciprocal %446 {approx = true} : vector<6x1xf32> -> vector<6x1xf32>
    %448 = vector.broadcast %447 : vector<6x1xf32> to vector<6x12xf32>
    %449 = arith.mulf %444, %448 : vector<6x12xf32>
    %450 = arith.truncf %449 : vector<6x12xf32> to vector<6x12xbf16>
    %451 = vector.extract_strided_slice %432 {offsets = [0, 0], sizes = [12, 8], strides = [1, 1]} : vector<12x16xbf16> to vector<12x8xbf16>
    %cst_192 = arith.constant dense<0.000000e+00> : vector<6x8xf32>
    %452 = tpu.matmul %450, %451, %cst_192 {dimension_numbers = #tpu.dot_dimension_numbers<[1], [0], [0], [1], [0, 0, 1, 1], [], []>} : vector<6x12xbf16>, vector<12x8xbf16>, vector<6x8xf32> -> vector<6x8xf32>
    %453 = vector.broadcast %435 : vector<6x1xf32> to vector<6x8xf32>
    %454 = arith.mulf %453, %452 : vector<6x8xf32>
    %455 = vector.extract_strided_slice %424 {offsets = [0, 8], sizes = [6, 8], strides = [1, 1]} : vector<6x16xbf16> to vector<6x8xbf16>
    %456 = vector.extract_strided_slice %428 {offsets = [0, 8], sizes = [12, 8], strides = [1, 1]} : vector<12x16xbf16> to vector<12x8xbf16>
    %cst_193 = arith.constant dense<0.000000e+00> : vector<6x12xf32>
    %457 = tpu.matmul %455, %456, %cst_193 {dimension_numbers = #tpu.dot_dimension_numbers<[1], [1], [0], [0], [0, 0, 1, 0], [], []>} : vector<6x8xbf16>, vector<12x8xbf16>, vector<6x12xf32> -> vector<6x12xf32>
    %458 = arith.addf %457, %434 : vector<6x12xf32>
    %cst_194 = arith.constant dense<0xFF800000> : vector<6xf32>
    %459 = vector.multi_reduction <maximumf>, %458, %cst_194 [1] : vector<6x12xf32> to vector<6xf32>
    %460 = vector.shape_cast %459 : vector<6xf32> to vector<6x1xf32>
    %461 = vector.broadcast %460 : vector<6x1xf32> to vector<6x12xf32>
    %462 = arith.subf %458, %461 : vector<6x12xf32>
    %463 = math.exp %462 : vector<6x12xf32>
    %cst_195 = arith.constant dense<0.000000e+00> : vector<6xf32>
    %464 = vector.multi_reduction <add>, %463, %cst_195 [1] : vector<6x12xf32> to vector<6xf32>
    %465 = vector.shape_cast %464 : vector<6xf32> to vector<6x1xf32>
    %466 = tpu.reciprocal %465 {approx = true} : vector<6x1xf32> -> vector<6x1xf32>
    %467 = vector.broadcast %466 : vector<6x1xf32> to vector<6x12xf32>
    %468 = arith.mulf %463, %467 : vector<6x12xf32>
    %469 = arith.truncf %468 : vector<6x12xf32> to vector<6x12xbf16>
    %470 = vector.extract_strided_slice %432 {offsets = [0, 8], sizes = [12, 8], strides = [1, 1]} : vector<12x16xbf16> to vector<12x8xbf16>
    %cst_196 = arith.constant dense<0.000000e+00> : vector<6x8xf32>
    %471 = tpu.matmul %469, %470, %cst_196 {dimension_numbers = #tpu.dot_dimension_numbers<[1], [0], [0], [1], [0, 0, 1, 1], [], []>} : vector<6x12xbf16>, vector<12x8xbf16>, vector<6x8xf32> -> vector<6x8xf32>
    %472 = vector.broadcast %435 : vector<6x1xf32> to vector<6x8xf32>
    %473 = arith.mulf %472, %471 : vector<6x8xf32>
    %474 = tpu.concatenate %454, %473 in 1 : vector<6x8xf32>, vector<6x8xf32> -> vector<6x16xf32>
    %cst_197 = arith.constant 5.000000e-01 : f32
    %475 = vector.broadcast %cst_197 : f32 to vector<6x16xf32>
    %476 = arith.mulf %475, %474 : vector<6x16xf32>
    %cst_198 = arith.constant 0.707106769 : f32
    %477 = vector.broadcast %cst_198 : f32 to vector<6x16xf32>
    %478 = arith.mulf %474, %477 : vector<6x16xf32>
    %479 = math.absf %478 : vector<6x16xf32>
    %cst_199 = arith.constant 0.327591091 : f32
    %480 = vector.broadcast %cst_199 : f32 to vector<6x16xf32>
    %481 = arith.mulf %480, %479 : vector<6x16xf32>
    %cst_200 = arith.constant 1.000000e+00 : f32
    %482 = vector.broadcast %cst_200 : f32 to vector<6x16xf32>
    %483 = arith.addf %482, %481 : vector<6x16xf32>
    %484 = tpu.reciprocal %483 {approx = true} : vector<6x16xf32> -> vector<6x16xf32>
    %cst_201 = arith.constant 1.06140542 : f32
    %485 = vector.broadcast %cst_201 : f32 to vector<6x16xf32>
    %486 = arith.mulf %485, %484 : vector<6x16xf32>
    %cst_202 = arith.constant -1.45315206 : f32
    %487 = vector.broadcast %cst_202 : f32 to vector<6x16xf32>
    %488 = arith.addf %486, %487 : vector<6x16xf32>
    %489 = arith.mulf %488, %484 : vector<6x16xf32>
    %cst_203 = arith.constant 1.42141378 : f32
    %490 = vector.broadcast %cst_203 : f32 to vector<6x16xf32>
    %491 = arith.addf %489, %490 : vector<6x16xf32>
    %492 = arith.mulf %491, %484 : vector<6x16xf32>
    %cst_204 = arith.constant -0.284496725 : f32
    %493 = vector.broadcast %cst_204 : f32 to vector<6x16xf32>
    %494 = arith.addf %492, %493 : vector<6x16xf32>
    %495 = arith.mulf %494, %484 : vector<6x16xf32>
    %cst_205 = arith.constant 0.254829586 : f32
    %496 = vector.broadcast %cst_205 : f32 to vector<6x16xf32>
    %497 = arith.addf %495, %496 : vector<6x16xf32>
    %498 = arith.mulf %497, %484 : vector<6x16xf32>
    %cst_206 = arith.constant 0.000000e+00 : f32
    %499 = vector.broadcast %cst_206 : f32 to vector<6x16xf32>
    %500 = arith.subf %499, %479 : vector<6x16xf32>
    %501 = arith.mulf %500, %479 : vector<6x16xf32>
    %502 = math.exp %501 : vector<6x16xf32>
    %503 = arith.mulf %498, %502 : vector<6x16xf32>
    %cst_207 = arith.constant 1.000000e+00 : f32
    %504 = vector.broadcast %cst_207 : f32 to vector<6x16xf32>
    %505 = arith.subf %504, %503 : vector<6x16xf32>
    %cst_208 = arith.constant 0.000000e+00 : f32
    %506 = vector.broadcast %cst_208 : f32 to vector<6x16xf32>
    %507 = arith.cmpf oge, %478, %506 : vector<6x16xf32>
    %cst_209 = arith.constant 0.000000e+00 : f32
    %508 = vector.broadcast %cst_209 : f32 to vector<6x16xf32>
    %509 = arith.subf %508, %505 : vector<6x16xf32>
    %510 = arith.select %507, %505, %509 : vector<6x16xi1>, vector<6x16xf32>
    %cst_210 = arith.constant 1.000000e+00 : f32
    %511 = vector.broadcast %cst_210 : f32 to vector<6x16xf32>
    %512 = arith.addf %511, %510 : vector<6x16xf32>
    %513 = arith.mulf %476, %512 : vector<6x16xf32>
    %514 = arith.truncf %513 : vector<6x16xf32> to vector<6x16xbf16>
    %c0_211 = arith.constant 0 : index
    %c0_212 = arith.constant 0 : index
    %515 = vector.load %arg15[%c0_211, %c0_212] : memref<16x128xbf16, #tpu.memory_space<vmem>>, vector<16x128xbf16>
    %cst_213 = arith.constant dense<0.000000e+00> : vector<6x128xf32>
    %516 = tpu.matmul %514, %515, %cst_213 {dimension_numbers = #tpu.dot_dimension_numbers<[1], [0], [0], [1], [0, 0, 1, 1], [], []>} : vector<6x16xbf16>, vector<16x128xbf16>, vector<6x128xf32> -> vector<6x128xf32>
    %c0_214 = arith.constant 0 : index
    %c0_215 = arith.constant 0 : index
    %517 = vector.load %arg19[%c0_214, %c0_215] : memref<1x128xf32, #tpu.memory_space<vmem>>, vector<1x128xf32>
    %518 = vector.broadcast %517 : vector<1x128xf32> to vector<6x128xf32>
    %519 = arith.addf %516, %518 : vector<6x128xf32>
    %520 = arith.truncf %519 : vector<6x128xf32> to vector<6x128xbf16>
    %c0_216 = arith.constant 0 : index
    %c0_217 = arith.constant 0 : index
    %521 = vector.load %arg47[%c0_216, %c0_217] : memref<6x128xbf16, #tpu.memory_space<vmem>>, vector<6x128xbf16>
    tpu.vector_store %arg47[%c0_216, %c0_217], %520 {strides = array<i32>} : memref<6x128xbf16, #tpu.memory_space<vmem>>, vector<6x128xbf16>,
    return
  }
}

</mosaic_0001>

<bundles_post_ra>
// kernel: hgt_apply.2
= control target key start
LH: loop header
LB: loop body
LE: loop exit
PB: predicated region body
PF: predicated region fallthrough
CT: control target
= control target key end

     0   :  { %v3725_v0 = vmov 0.0   ;;  %s3726_s3 = smov 4   ;;  %s3727_s7 = smov 5   ;;  %vm3728_vm0 = vmmov 0   ;;  %vm219_vm1 = vcmask 1045504   ;;  %vm215_vm2 = vcmask 97280   ;;  %s4317_s0 = inlined_call_operand.smem [shape: u32[48], index: -1, kind: input, shape index: {}] }
   0x1   :  { %3279 = vmatprep.subr.bf16.mxu0 %v3725_v0  ;;  %3285 = vmatprep.subr.bf16.mxu1 %v3725_v0  ;;  %s3065_s6 = sld [smem:[%s4317_s0 + %s3726_s3]]   ;;  %s3729_s14 = smov 1   ;;  %vm462_vm3 = vcmask 130048   ;;  %vm573_vm4 = vcmask 64512   ;;  %vm649_vm5 = vcmask 1044480   ;;  %vm621_vm6 = vcmask 80896  }
   0x2   :  { %s3066_s10 = sld [smem:[%s4317_s0 + %s3727_s7]]   ;;  %3281 = vmatprep.mubr.msk.bf16.mxu0 %vm3728_vm0, %v3725_v0  ;;  %3287 = vmatprep.mubr.msk.bf16.mxu1 %vm3728_vm0, %v3725_v0  ;;  %s3730_s18 = smov 6   ;;  %vm625_vm7 = vcmask 76800   ;;  %vm993_vm8 = vcmask 60416   ;;  %vm1017_vm9 = vcmask 1043456   ;;  %vm1361_vm10 = vcmask 44032  }
   0x3   :  { %s1_s13 = sld [smem:[%s4317_s0]]   ;;  %s3731_s22 = smov 2   ;;  %vm1357_vm11 = vcmask 48128   ;;  %vm1385_vm12 = vcmask 1042432   ;;  %vm1866_vm15 = vcmask 91136  }
   0x4   :  { %s3062_s17 = sld [smem:[%s4317_s0 + %s3729_s14]]   ;;  %s3732_s26 = smov 20  }
   0x5   :  { %s3067_s21 = sld [smem:[%s4317_s0 + %s3730_s18]]   ;;  %s3733_s30 = smov 7  }
   0x6   :  { %s3063_s25 = sld [smem:[%s4317_s0 + %s3731_s22]]   ;;  %s3734_s4 = smov 3  }
   0x7   :  { %v3599_v1 = vld [vmem:[%s3065_s6] sm:$0x3f]   ;;  %s3081_s29 = sld [smem:[%s4317_s0 + %s3732_s26]]   ;;  %s3735_s8 = smov 26  }
   0x8   :  { %v3600_v2 = vld [vmem:[%s3066_s10] sm:$0x3f]   ;;  %v221_v3 = vsel %vm219_vm1, %v3599_v1, 0  ;;  %s3068_s3 = sld [smem:[%s4317_s0 + %s3733_s30]]   ;;  %s3736_s12 = smov 8  }
   0x9   :  { %3280 = vmatpush3.bf16.msra.mxu0 %v221_v3  ;;  %v288_v4 = vsel %vm219_vm1, %v3600_v2, 0  ;;  %v3601_v5 = vld [vmem:[%s1_s13] sm:$0x3f]   ;;  %s3064_s7 = sld [smem:[%s4317_s0 + %s3734_s4]]   ;;  %s3737_s16 = smov 9  }
   0xa   :  { %3286 = vmatpush3.bf16.msra.mxu1 %v288_v4  ;;  %v3602_v6 = vld [vmem:[%s3062_s17] sm:$0x1f]   ;;  %3291 = vmatprep.subr.bf16.mxu0 %v3725_v0  ;;  %s3087_s11 = sld [smem:[%s4317_s0 + %s3735_s8]]   ;;  %s3738_s20 = smov 104  }
   0xb   :  { %v3603_v7 = vld [vmem:[%s3067_s21] sm:$0x3f]   ;;  %3297 = vmatprep.subr.bf16.mxu1 %v3725_v0  ;;  %s3069_s15 = sld [smem:[%s4317_s0 + %s3736_s12]]   ;;  %s3739_s21 = smov 112  }
   0xc   :  { %3282 = vmatmul.mubr.msk.bf16.vlgmr.msra.gmra.mxu0 %vm215_vm2, %v3601_v5  ;;  %v350_v8 = vsel %vm219_vm1, %v3603_v7, 0  ;;  %v194_v9 = vld [vmem:[%s3063_s25] sm:$0xf]  ;;  %s3070_s19 = sld [smem:[%s4317_s0 + %s3737_s16]]   ;;  %s3740_s22 = smov 96  }
   0xd   :  { %3288 = vmatmul.mubr.msk.bf16.vlgmr.msra.gmra.mxu1 %vm215_vm2, %v3602_v6  ;;  %3293 = vmatprep.mubr.msk.bf16.mxu0 %vm3728_vm0, %v3725_v0  ;;  %v3604_v10 = vld [vmem:[%s3081_s29] sm:$0xff]   ;;  %s3741_s23 = smov 23   ;;  %s3742_s27 = smov 120  }
   0xe   :  { %3292 = vmatpush3.bf16.msra.mxu0 %v350_v8  ;;  %3299 = vmatprep.mubr.msk.bf16.mxu1 %vm3728_vm0, %v3725_v0  ;;  %v3605_v11 = vld [vmem:[%s3068_s3] sm:$0x3f]   ;;  %s3084_s26 = sld [smem:[%s4317_s0 + %s3741_s23]]   ;;  %s3743_s28 = smov 10  }
   0xf   :  { %3303 = vmatprep.subr.bf16.mxu0 %v3725_v0  ;;  %v411_v12 = vsel %vm219_vm1, %v3605_v11, 0  ;;  %v195_v13 = vld [vmem:[%s3064_s7] sm:$0x7]  ;;  %s3071_s1 = sld [smem:[%s4317_s0 + %s3743_s28]]   ;;  %s3744_s2 = smov 32  }
  0x10   :  { %3298 = vmatpush3.bf16.msra.mxu1 %v411_v12  ;;  %v3606_v14 = vld [vmem:[%s3087_s11] sm:$0xff]   ;;  %s3093_s5 = sld [smem:[%s4317_s0 + %s3744_s2]]   ;;  %s3745_s6 = smov 24  }
  0x11   :  { %3309 = vmatprep.subr.bf16.mxu1 %v3725_v0  ;;  %v3109_v15 = vld [vmem:[%s3069_s15] ss:$0 sm:$0xff]  ;;  %s3912_s9 = sld [smem:[%s4317_s0 + %s3745_s6]]   ;;  %s3746_s10 = smov 11  }
  0x12   :  { %v3113_v20 = vld [vmem:[%s3070_s19] ss:$0 sm:$0xff]  ;;  %s3072_s14 = sld [smem:[%s4317_s0 + %s3746_s10]]   ;;  %s3747_s15 = smov 29  }
  0x13   :  { %s3951_s18 = sld [smem:[%s4317_s0 + %s3747_s15]]   ;;  %s3748_s19 = smov 35  }
  0x14   :  { %3294 = vmatmul.mubr.msk.bf16.vlgmr.msra.gmra.mxu0 %vm215_vm2, %v194_v9  ;;  %v3607_v56 = vld [vmem:[%s3084_s26] sm:$0xff]   ;;  %s3096_s25 = sld [smem:[%s4317_s0 + %s3748_s19]]   ;;  %s3749_s26 = smov 36  }
  0x15   :  { %3305 = vmatprep.mubr.msk.bf16.mxu0 %vm3728_vm0, %v3725_v0  ;;  %3304 = vmatpush3.bf16.msra.mxu0 %v3604_v10  ;;  %v3117_v57 = vld [vmem:[%s3071_s1] ss:$0 sm:$0xff]  ;;  %s3097_s30 = sld [smem:[%s4317_s0 + %s3749_s26]]   ;;  %s3750_s1 = smov 30  }
  0x16   :  { %3315 = vmatprep.subr.bf16.mxu0 %v3725_v0  ;;  %3300 = vmatmul.mubr.msk.bf16.vlgmr.msra.gmra.mxu1 %vm215_vm2, %v195_v13  ;;  %v564_v60 = vld [vmem:[%s3093_s5] sm:$0xf]  ;;  %v565_v62 = vld [vmem:[%s3093_s5 + $0x4] sm:$0x3]  ;;  %s4016_s4 = sld [smem:[%s4317_s0 + %s3750_s1]]   ;;  %s3752_s5 = smov 38  }
  0x17   :  { %3311 = vmatprep.mubr.msk.bf16.mxu1 %vm3728_vm0, %v3725_v0  ;;  %3310 = vmatpush3.bf16.msra.mxu1 %v3606_v14  ;;  %v566_v61 = vunpack.c.l.bf16 %v564_v60  ;;  %v567_v2 = vunpack.c.l.bf16 %v565_v62  ;;  %s3099_s8 = sld [smem:[%s4317_s0 + %s3752_s5]]   ;;  %s3759_s7 = smov 16  }
  0x18   :  { %3321 = vmatprep.subr.bf16.mxu1 %v3725_v0  ;;  %s3077_s10 = sld [smem:[%s4317_s0 + %s3759_s7]]   ;;  %s3760_s11 = smov 44  }
  0x19   :  { %s3105_s15 = sld [smem:[%s4317_s0 + %s3760_s11]]   ;;  %s3761_s16 = smov 39  }
  0x1a   :  { %s3100_s19 = sld [smem:[%s4317_s0 + %s3761_s16]]   ;;  %s3762_s23 = smov 22  }
  0x1b   :  { %s3083_s26 = sld [smem:[%s4317_s0 + %s3762_s23]]   ;;  %s3763_s28 = smov 13  }
  0x1c   :  { %s3074_s1 = sld [smem:[%s4317_s0 + %s3763_s28]]   ;;  %s3764_s2 = smov 28  }
  0x1d   :  { %s3765_s5 = smov 34  }
  0xcc   :  { %v257_v16 = vpop.f32.mrf.mxu0 }
  0xcd   :  { %v324_v17 = vpop.f32.mrf.mxu1  ;;  %v258_v19 = vadd.f32 %v3109_v15, %v257_v16 }
  0xce   :  { %v3283_v18 = vpop.f32.mrf.mxu0  ;;  %v325_v25 = vadd.f32 %v3113_v20, %v324_v17 }
  0xcf   :  { %v3289_v21 = vpop.f32.mrf.mxu1 }
  0xd0   :  { %v260_v22 = vpop.f32.mrf.mxu0 }
  0xd1   :  { %v261_v23 = vadd.f32 %v3109_v15, %v260_v22  ;;  %v327_v24 = vpop.f32.mrf.mxu1 }
  0xd2   :  { %v328_v26 = vadd.f32 %v3113_v20, %v327_v24  ;;  %v3284_v27 = vpop.f32.mrf.mxu0 }
  0xd3   :  { %v3849_v28 = vpack.c.bf16 %v261_v23, %v258_v19  ;;  %v3290_v29 = vpop.f32.mrf.mxu1 }
  0xd4   :  { %v3851_v30 = vpack.c.bf16 %v328_v26, %v325_v25  ;;  %v386_v31 = vpop.f32.mrf.mxu0 }
  0xd5   :  { %706 = vrot.lane.b32.xlu1 %v3849_v28, %s3738_s20  ;;  %571 = vrot.lane.b32.xlu0 %v3849_v28, %s3739_s21  ;;  %v387_v58 = vadd.f32 %v3117_v57, %v386_v31 }
  0xd6   :  { %3306 = vmatmul.mubr.msk.bf16.vlgmr.msra.gmra.mxu0 %vm462_vm3, %v3851_v30  ;;  %v3295_v32 = vpop.f32.mrf.mxu0  ;;  %v3863_v35 = vpop.f32.mrf.mxu1 }
  0xd7   :  { %3317 = vmatprep.mubr.msk.bf16.mxu0 %vm3728_vm0, %v3725_v0  ;;  %v3897_v59 = vpack.c.bf16 %v387_v58, %v387_v58 }
  0xd8   :  { %v389_v33 = vpop.f32.mrf.mxu0  ;;  %v3301_v36 = vpop.f32.mrf.mxu1 }
  0xd9   :  { %511 = vrot.lane.b32.xlu1 %v3851_v30, %s3740_s22 }
  0xda   :  { %v3296_v34 = vpop.f32.mrf.mxu0  ;;  %v450_v37 = vpop.f32.mrf.mxu1 }
  0xdc   :  { %v3302_v38 = vpop.f32.mrf.mxu1 }
  0xdd   :  { %v3120_v38 = vld [vmem:[%s3072_s14] ss:$0 sm:$0xff]  ;;  %s3754_s14 = smov 42  }
  0xde   :  { %s3103_s17 = sld [smem:[%s4317_s0 + %s3754_s14]]   ;;  %s3767_s14 = smov 17  }
 0x147   :  { %v3865_v39 = vpop.permute.xlu1 %706  ;;  %v3876_v47 = vpop.permute.xlu0 %571 }
 0x14b   :  { %v512_v40 = vpop.permute.xlu1 %511 }
 0x14c   :  { %3312 = vmatmul.mubr.msk.bf16.vlgmr.msra.gmra.mxu1 %vm462_vm3, %v512_v40  ;;  %v3608_v40 = vld [vmem:[%s3912_s9] sm:$0xff]   ;;  %s3753_s9 = smov 41  }
 0x14d   :  { %3323 = vmatprep.mubr.msk.bf16.mxu1 %vm3728_vm0, %v3725_v0  ;;  %s4051_s13 = sld [smem:[%s4317_s0 + %s3753_s9]]   ;;  %s3766_s9 = smov 40  }
 0x196   :  { %v500_v41 = vpop.f32.mrf.mxu0 }
 0x198   :  { %v3307_v42 = vpop.f32.mrf.mxu0 }
 0x19a   :  { %v503_v43 = vpop.f32.mrf.mxu0 }
 0x19b   :  { %v507_v44 = vpack.c.bf16 %v503_v43, %v500_v41  ;;  %v448_v41 = vadd.f32 %v3120_v38, %v3863_v35 }
 0x19c   :  { %v3308_v45 = vpop.f32.mrf.mxu0 }
 0x19d   :  { %v578_v46 = vsel %vm573_vm4, %v507_v44, 0  ;;  %709 = vrot.lane.b32.xlu0 %v507_v44, %s3742_s27  ;;  %v3936_v42 = vpack.c.bf16 %v448_v41, %v448_v41 }
 0x19e   :  { %3316 = vmatpush3.bf16.xpose.msra.mxu0 %v578_v46 }
 0x19f   :  { %3327 = vmatprep.subr.bf16.mxu0 %v3725_v0 }
 0x1a5   :  { %3318 = vmatmul.mubr.msk.bf16.vlgmr.msra.gmra.mxu0 %vm573_vm4, %v3876_v47 }
 0x1a6   :  { %3329 = vmatprep.mubr.msk.bf16.mxu0 %vm3728_vm0, %v3725_v0 }
 0x20c   :  { %v556_v48 = vpop.f32.mrf.mxu1 }
 0x20e   :  { %v3313_v49 = vpop.f32.mrf.mxu1 }
 0x20f   :  { %v710_v50 = vpop.permute.xlu0 %709 }
 0x210   :  { %v715_v51 = vsel %vm573_vm4, %v710_v50, 0  ;;  %v559_v52 = vpop.f32.mrf.mxu1 }
 0x211   :  { %v3886_v53 = vpack.c.bf16 %v559_v52, %v556_v48  ;;  %3328 = vmatpush3.bf16.xpose.msra.mxu0 %v715_v51 }
 0x212   :  { %v3314_v54 = vpop.f32.mrf.mxu1  ;;  %3339 = vmatprep.subr.bf16.mxu0 %v3725_v0 }
 0x213   :  { %v651_v55 = vsel %vm649_vm5, %v3886_v53, 0 }
 0x214   :  { %3322 = vmatpush3.bf16.msra.mxu1 %v651_v55 }
 0x215   :  { %3333 = vmatprep.subr.bf16.mxu1 %v3725_v0 }
 0x218   :  { %3330 = vmatmul.mubr.msk.bf16.vlgmr.msra.gmra.mxu0 %vm573_vm4, %v3865_v39 }
 0x219   :  { %3340 = vmatpush3.bf16.msra.mxu0 %v3607_v56  ;;  %3341 = vmatprep.mubr.msk.bf16.mxu0 %vm3728_vm0, %v3725_v0 }
 0x21a   :  { %3351 = vmatprep.subr.bf16.mxu0 %v3725_v0 }
 0x220   :  { %3342 = vmatmul.mubr.msk.bf16.vlgmr.msra.gmra.mxu0 %vm462_vm3, %v3897_v59 }
 0x221   :  { %3353 = vmatprep.mubr.msk.bf16.mxu0 %vm3728_vm0, %v3725_v0 }
 0x265   :  { %v614_v63 = vpop.f32.mrf.mxu0 }
 0x266   :  { %v615_v1 = vadd.f32 %v614_v63, %v566_v61  ;;  %v941_v63 = vld [vmem:[%s3096_s25 + $0x4] sm:$0x3] }
 0x267   :  { %v3319_v3 = vpop.f32.mrf.mxu0 }
 0x268   :  { %v622_v4 = vsel %vm621_vm6, %v615_v1, -inf }
 0x269   :  { %623 = vmax.xlane.f32.xlu0 %v622_v4  ;;  %v617_v5 = vpop.f32.mrf.mxu0 }
 0x26a   :  { %v618_v6 = vadd.f32 %v617_v5, %v567_v2 }
 0x26b   :  { %v3320_v7 = vpop.f32.mrf.mxu0 }
 0x26c   :  { %v626_v8 = vsel %vm625_vm7, %v618_v6, -inf }
 0x26d   :  { %627 = vmax.xlane.f32.xlu1 %v626_v8 }
 0x2d8   :  { %v751_v9 = vpop.f32.mrf.mxu0 }
 0x2d9   :  { %v752_v10 = vadd.f32 %v751_v9, %v566_v61  ;;  %v3957_v61 = vld [vmem:[%s3096_s25] sm:$0xf]  ;;  %s3756_s25 = smov 12  }
 0x2da   :  { %v3331_v11 = vpop.f32.mrf.mxu0  ;;  %v942_v62 = vunpack.c.l.bf16 %v3957_v61  ;;  %s3073_s29 = sld [smem:[%s4317_s0 + %s3756_s25]]  }
 0x2db   :  { %v758_v12 = vsel %vm621_vm6, %v752_v10, -inf }
 0x2dc   :  { %759 = vmax.xlane.f32.xlu1 %v758_v12  ;;  %v754_v13 = vpop.f32.mrf.mxu0 }
 0x2dd   :  { %v755_v14 = vadd.f32 %v754_v13, %v567_v2  ;;  %v943_v2 = vunpack.c.l.bf16 %v941_v63 }
 0x2de   :  { %v3332_v15 = vpop.f32.mrf.mxu0 }
 0x2df   :  { %v761_v16 = vsel %vm625_vm7, %v755_v14, -inf }
 0x2e0   :  { %762 = vmax.xlane.f32.xlu1 %v761_v16  ;;  %v878_v17 = vpop.f32.mrf.mxu0 }
 0x2e1   :  { %v884_v18 = vpack.c.bf16 %v878_v17, %v878_v17 }
 0x2e2   :  { %v3343_v19 = vpop.f32.mrf.mxu0 }
 0x2e3   :  { %v947_v20 = vsel %vm573_vm4, %v884_v18, 0  ;;  %1077 = vrot.lane.b32.xlu0 %v884_v18, %s3742_s27  ;;  %v3609_v18 = vld [vmem:[%s3951_s18] sm:$0xff]   ;;  %s3755_s18 = smov 21  }
 0x2e4   :  { %v881_v21 = vpop.f32.mrf.mxu0  ;;  %3352 = vmatpush3.bf16.xpose.msra.mxu0 %v947_v20  ;;  %s4060_s24 = sld [smem:[%s4317_s0 + %s3755_s18]]   ;;  %s3768_s18 = smov 45  }
 0x2e5   :  { %3363 = vmatprep.subr.bf16.mxu0 %v3725_v0 }
 0x2e6   :  { %v3344_v22 = vpop.f32.mrf.mxu0 }
 0x2eb   :  { %3354 = vmatmul.mubr.msk.bf16.vlgmr.msra.gmra.mxu0 %vm573_vm4, %v3876_v47 }
 0x2ec   :  { %3365 = vmatprep.mubr.msk.bf16.mxu0 %vm3728_vm0, %v3725_v0 }
 0x2f2   :  { %v624_v23 = vpop.xlane.xlu0 %623 }
 0x2f3   :  { %v629_v24 = vsub.f32 %v615_v1, %v624_v23 }
 0x2f5   :  { %v631_v25 = vmul.f32 1.442695, %v629_v24 }
 0x2f6   :  { %v628_v26 = vpop.xlane.xlu1 %627 }
 0x2f7   :  { %3621 = vpow2.f32 %v631_v25  ;;  %v630_v27 = vsub.f32 %v618_v6, %v628_v26 }
 0x2f9   :  { %v633_v29 = vmul.f32 1.442695, %v630_v27 }
 0x2fb   :  { %3623 = vpow2.f32 %v633_v29 }
 0x304   :  { %v3622_v31 = vpop.eup %3621 }
 0x305   :  { %v635_v32 = vsel %vm621_vm6, %v3622_v31, 0.0 }
 0x306   :  { %636 = vadd.xlane.f32.xlu1 %v635_v32 }
 0x308   :  { %v3624_v33 = vpop.eup %3623 }
 0x309   :  { %v638_v34 = vsel %vm625_vm7, %v3624_v33, 0.0 }
 0x30a   :  { %639 = vadd.xlane.f32.xlu1 %v638_v34 }
 0x355   :  { %v1078_v36 = vpop.permute.xlu0 %1077 }
 0x356   :  { %v1080_v37 = vsel %vm573_vm4, %v1078_v36, 0 }
 0x357   :  { %3364 = vmatpush3.bf16.xpose.msra.mxu0 %v1080_v37 }
 0x358   :  { %3375 = vmatprep.subr.bf16.mxu0 %v3725_v0 }
 0x35e   :  { %3366 = vmatmul.mubr.msk.bf16.vlgmr.msra.gmra.mxu0 %vm573_vm4, %v3865_v39 }
 0x35f   :  { %3376 = vmatpush3.bf16.msra.mxu0 %v3608_v40  ;;  %3377 = vmatprep.mubr.msk.bf16.mxu0 %vm3728_vm0, %v3725_v0 }
 0x360   :  { %3387 = vmatprep.subr.bf16.mxu0 %v3725_v0 }
 0x365   :  { %v760_v43 = vpop.xlane.xlu1 %759 }
 0x366   :  { %v764_v44 = vsub.f32 %v752_v10, %v760_v43  ;;  %3378 = vmatmul.mubr.msk.bf16.vlgmr.msra.gmra.mxu0 %vm462_vm3, %v3936_v42 }
 0x367   :  { %3389 = vmatprep.mubr.msk.bf16.mxu0 %vm3728_vm0, %v3725_v0 }
 0x368   :  { %v766_v35 = vmul.f32 1.442695, %v764_v44 }
 0x369   :  { %v763_v45 = vpop.xlane.xlu1 %762 }
 0x36a   :  { %3625 = vpow2.f32 %v766_v35  ;;  %v765_v46 = vsub.f32 %v755_v14, %v763_v45 }
 0x36c   :  { %v768_v48 = vmul.f32 1.442695, %v765_v46 }
 0x36e   :  { %3627 = vpow2.f32 %v768_v48 }
 0x377   :  { %v3626_v49 = vpop.eup %3625 }
 0x378   :  { %v770_v50 = vsel %vm621_vm6, %v3626_v49, 0.0 }
 0x379   :  { %771 = vadd.xlane.f32.xlu1 %v770_v50 }
 0x37b   :  { %v3628_v51 = vpop.eup %3627 }
 0x37c   :  { %v773_v52 = vsel %vm625_vm7, %v3628_v51, 0.0 }
 0x37d   :  { %774 = vadd.xlane.f32.xlu0 %v773_v52 }
 0x38a   :  { %782 = vrot.lane.b32.xlu1 %v3886_v53, %s3742_s27 }
 0x38e   :  { %888 = vrot.lane.b32.xlu1 %v3897_v59, %s3740_s22 }
 0x38f   :  { %v637_v54 = vpop.xlane.xlu1 %636 }
 0x390   :  { %3629 = vrcp.f32 %v637_v54 }
 0x393   :  { %v640_v55 = vpop.xlane.xlu1 %639 }
 0x394   :  { %3631 = vrcp.f32 %v640_v55 }
 0x39d   :  { %v3630_v56 = vpop.eup %3629 }
 0x39e   :  { %v643_v57 = vmul.f32 %v3630_v56, %v3622_v31 }
 0x3a1   :  { %v3632_v53 = vpop.eup %3631 }
 0x3a2   :  { %v644_v58 = vmul.f32 %v3632_v53, %v3624_v33 }
 0x3a4   :  { %v645_v60 = vpack.c.bf16 %v644_v58, %v643_v57 }
 0x3a6   :  { %3324 = vmatmul.mubr.msk.bf16.vlgmr.msra.gmra.mxu1 %vm621_vm6, %v645_v60 }
 0x3a7   :  { %3335 = vmatprep.mubr.msk.bf16.mxu1 %vm3728_vm0, %v3725_v0 }
 0x3ab   :  { %v983_v1 = vpop.f32.mrf.mxu0 }
 0x3ac   :  { %v984_v3 = vadd.f32 %v983_v1, %v942_v62 }
 0x3ad   :  { %v3355_v4 = vpop.f32.mrf.mxu0 }
 0x3ae   :  { %v990_v8 = vsel %vm573_vm4, %v984_v3, -inf }
 0x3af   :  { %v986_v5 = vpop.f32.mrf.mxu0 }
 0x3b0   :  { %v987_v6 = vadd.f32 %v986_v5, %v943_v2 }
 0x3b1   :  { %v3356_v7 = vpop.f32.mrf.mxu0 }
 0x3b2   :  { %991 = vmax.xlane.f32.xlu1 %v990_v8  ;;  %v994_v9 = vsel %vm993_vm8, %v987_v6, -inf }
 0x3b3   :  { %995 = vmax.xlane.f32.xlu0 %v994_v9 }
 0x402   :  { %v772_v10 = vpop.xlane.xlu1 %771 }
 0x403   :  { %3633 = vrcp.f32 %v772_v10 }
 0x406   :  { %v783_v11 = vpop.permute.xlu1 %782  ;;  %v775_v12 = vpop.xlane.xlu0 %774 }
 0x407   :  { %v788_v13 = vsel %vm649_vm5, %v783_v11, 0  ;;  %3635 = vrcp.f32 %v775_v12 }
 0x408   :  { %3334 = vmatpush3.bf16.msra.mxu1 %v788_v13 }
 0x409   :  { %3345 = vmatprep.subr.bf16.mxu1 %v3725_v0 }
 0x40a   :  { %v889_v21 = vpop.permute.xlu1 %888 }
 0x410   :  { %v3634_v14 = vpop.eup %3633 }
 0x411   :  { %v778_v16 = vmul.f32 %v3634_v14, %v3626_v49 }
 0x414   :  { %v3636_v15 = vpop.eup %3635 }
 0x415   :  { %v779_v17 = vmul.f32 %v3636_v15, %v3628_v51 }
 0x417   :  { %v780_v19 = vpack.c.bf16 %v779_v17, %v778_v16 }
 0x419   :  { %3336 = vmatmul.mubr.msk.bf16.vlgmr.msra.gmra.mxu1 %vm621_vm6, %v780_v19  ;;  %v1308_v19 = vld [vmem:[%s3097_s30 + $0x4] sm:$0x3] }
 0x41a   :  { %3346 = vmatpush3.bf16.msra.mxu1 %v3609_v18  ;;  %3347 = vmatprep.mubr.msk.bf16.mxu1 %vm3728_vm0, %v3725_v0 }
 0x41b   :  { %3357 = vmatprep.subr.bf16.mxu1 %v3725_v0 }
 0x41e   :  { %v1116_v20 = vpop.f32.mrf.mxu0 }
 0x41f   :  { %v1117_v44 = vadd.f32 %v1116_v20, %v942_v62 }
 0x420   :  { %v3367_v22 = vpop.f32.mrf.mxu0 }
 0x421   :  { %3348 = vmatmul.mubr.msk.bf16.vlgmr.msra.gmra.mxu1 %vm462_vm3, %v889_v21  ;;  %v1123_v35 = vsel %vm573_vm4, %v1117_v44, -inf  ;;  %v1310_v21 = vunpack.c.l.bf16 %v1308_v19 }
 0x422   :  { %v1119_v23 = vpop.f32.mrf.mxu0  ;;  %3359 = vmatprep.mubr.msk.bf16.mxu1 %vm3728_vm0, %v3725_v0 }
 0x423   :  { %v1120_v24 = vadd.f32 %v1119_v23, %v943_v2 }
 0x424   :  { %v3368_v25 = vpop.f32.mrf.mxu0 }
 0x425   :  { %v1126_v26 = vsel %vm993_vm8, %v1120_v24, -inf }
 0x426   :  { %1127 = vmax.xlane.f32.xlu1 %v1126_v26  ;;  %v1245_v27 = vpop.f32.mrf.mxu0 }
 0x427   :  { %v1251_v29 = vpack.c.bf16 %v1245_v27, %v1245_v27  ;;  %v1307_v27 = vld [vmem:[%s3097_s30] sm:$0xf]  ;;  %s3757_s30 = smov 27  }
 0x428   :  { %v3379_v31 = vpop.f32.mrf.mxu0  ;;  %s4114_s3 = sld [smem:[%s4317_s0 + %s3757_s30]]   ;;  %s3778_s30 = smov 47  }
 0x429   :  { %v1314_v32 = vsel %vm573_vm4, %v1251_v29, 0  ;;  %1445 = vrot.lane.b32.xlu0 %v1251_v29, %s3742_s27  ;;  %v1309_v29 = vunpack.c.l.bf16 %v1307_v27 }
 0x42a   :  { %v1248_v33 = vpop.f32.mrf.mxu0  ;;  %3388 = vmatpush3.bf16.xpose.msra.mxu0 %v1314_v32 }
 0x42b   :  { %3399 = vmatprep.subr.bf16.mxu0 %v3725_v0 }
 0x42c   :  { %v3380_v34 = vpop.f32.mrf.mxu0 }
 0x431   :  { %3390 = vmatmul.mubr.msk.bf16.vlgmr.msra.gmra.mxu0 %vm573_vm4, %v3876_v47 }
 0x432   :  { %3401 = vmatprep.mubr.msk.bf16.mxu0 %vm3728_vm0, %v3725_v0 }
 0x43b   :  { %v992_v36 = vpop.xlane.xlu1 %991 }
 0x43c   :  { %v997_v37 = vsub.f32 %v984_v3, %v992_v36  ;;  %v996_v38 = vpop.xlane.xlu0 %995 }
 0x43d   :  { %v998_v40 = vsub.f32 %v987_v6, %v996_v38 }
 0x43e   :  { %v999_v41 = vmul.f32 1.442695, %v997_v37 }
 0x43f   :  { %v1001_v43 = vmul.f32 1.442695, %v998_v40 }
 0x440   :  { %3637 = vpow2.f32 %v999_v41 }
 0x441   :  { %3639 = vpow2.f32 %v1001_v43 }
 0x448   :  { %1124 = vmax.xlane.f32.xlu0 %v1123_v35 }
 0x44d   :  { %v3638_v45 = vpop.eup %3637 }
 0x44e   :  { %v1003_v46 = vsel %vm573_vm4, %v3638_v45, 0.0  ;;  %v3640_v48 = vpop.eup %3639 }
 0x44f   :  { %1004 = vadd.xlane.f32.xlu1 %v1003_v46  ;;  %v1006_v47 = vsel %vm993_vm8, %v3640_v48, 0.0 }
 0x453   :  { %1007 = vadd.xlane.f32.xlu1 %v1006_v47 }
 0x45e   :  { %1255 = vrot.lane.b32.xlu0 %v3936_v42, %s3740_s22 }
 0x466   :  { %v3987_v49 = vpop.f32.mrf.mxu1 }
 0x468   :  { %v3325_v50 = vpop.f32.mrf.mxu1 }
 0x46a   :  { %v3989_v51 = vpop.f32.mrf.mxu1 }
 0x46c   :  { %v3326_v52 = vpop.f32.mrf.mxu1 }
 0x49b   :  { %v1446_v54 = vpop.permute.xlu0 %1445 }
 0x49c   :  { %v1448_v55 = vsel %vm573_vm4, %v1446_v54, 0 }
 0x49d   :  { %3400 = vmatpush3.bf16.xpose.msra.mxu0 %v1448_v55 }
 0x49e   :  { %3411 = vmatprep.subr.bf16.mxu0 %v3725_v0 }
 0x4a4   :  { %3402 = vmatmul.mubr.msk.bf16.vlgmr.msra.gmra.mxu0 %vm573_vm4, %v3865_v39 }
 0x4a5   :  { %3413 = vmatprep.mubr.msk.bf16.mxu0 %vm3728_vm0, %v3725_v0 }
 0x4af   :  { %v1128_v56 = vpop.xlane.xlu1 %1127 }
 0x4b0   :  { %v1130_v53 = vsub.f32 %v1120_v24, %v1128_v56  ;;  %v3610_v56 = vld [vmem:[%s4016_s4] sm:$0xff]   ;;  %s4192_s4 = sld [smem:[%s4317_s0 + %s3764_s2]]   ;;  %s3771_s2 = smov 31  }
 0x4b2   :  { %v1133_v60 = vmul.f32 1.442695, %v1130_v53 }
 0x4d1   :  { %v1125_v57 = vpop.xlane.xlu0 %1124 }
 0x4d2   :  { %v1129_v58 = vsub.f32 %v1117_v44, %v1125_v57 }
 0x4d4   :  { %v1131_v61 = vmul.f32 1.442695, %v1129_v58 }
 0x4d5   :  { %v1256_v47 = vpop.permute.xlu0 %1255 }
 0x4d6   :  { %3641 = vpow2.f32 %v1131_v61 }
 0x4d7   :  { %3643 = vpow2.f32 %v1133_v60  ;;  %v3751_v60 = vmov 0  }
 0x4d8   :  { %v1005_v62 = vpop.xlane.xlu1 %1004  ;;  %3597 = vset.pattern.permute.xlu1 %v3751_v60  ;;  %3598 = vset.pattern.permute.xlu0 %v3751_v60 }
 0x4d9   :  { %v3997_v63 = vpop.f32.mrf.mxu1  ;;  %3645 = vrcp.f32 %v1005_v62 }
 0x4db   :  { %v3337_v1 = vpop.f32.mrf.mxu1 }
 0x4dc   :  { %v1008_v2 = vpop.xlane.xlu1 %1007 }
 0x4dd   :  { %3647 = vrcp.f32 %v1008_v2  ;;  %v3999_v3 = vpop.f32.mrf.mxu1 }
 0x4df   :  { %v3338_v39 = vpop.f32.mrf.mxu1 }
 0x4e1   :  { %v933_v4 = vpop.f32.mrf.mxu1 }
 0x4e2   :  { %v939_v5 = vpack.c.bf16 %v933_v4, %v933_v4 }
 0x4e3   :  { %v3642_v6 = vpop.eup %3641  ;;  %v3349_v7 = vpop.f32.mrf.mxu1 }
 0x4e4   :  { %v1019_v8 = vsel %vm1017_vm9, %v939_v5, 0  ;;  %v1135_v9 = vsel %vm573_vm4, %v3642_v6, 0.0  ;;  %v3644_v10 = vpop.eup %3643 }
 0x4e5   :  { %v936_v11 = vpop.f32.mrf.mxu1  ;;  %3358 = vmatpush3.bf16.msra.mxu1 %v1019_v8  ;;  %1136 = vadd.xlane.f32.xlu1 %v1135_v9  ;;  %v1138_v14 = vsel %vm993_vm8, %v3644_v10, 0.0  ;;  %vm2776_vm8 = vcmask 95232  }
 0x4e6   :  { %3369 = vmatprep.subr.bf16.mxu1 %v3725_v0  ;;  %v3646_v13 = vpop.eup %3645 }
 0x4e7   :  { %v3350_v12 = vpop.f32.mrf.mxu1  ;;  %v1011_v16 = vmul.f32 %v3646_v13, %v3638_v45 }
 0x4e9   :  { %1139 = vadd.xlane.f32.xlu1 %v1138_v14 }
 0x4ea   :  { %v3648_v15 = vpop.eup %3647 }
 0x4eb   :  { %v1012_v17 = vmul.f32 %v3648_v15, %v3640_v48 }
 0x4ed   :  { %v1013_v18 = vpack.c.bf16 %v1012_v17, %v1011_v16 }
 0x4ef   :  { %3360 = vmatmul.mubr.msk.bf16.vlgmr.msra.gmra.mxu1 %vm573_vm4, %v1013_v18 }
 0x4f0   :  { %3371 = vmatprep.mubr.msk.bf16.mxu1 %vm3728_vm0, %v3725_v0 }
 0x4f1   :  { %v1350_v20 = vpop.f32.mrf.mxu0 }
 0x4f2   :  { %v1351_v31 = vadd.f32 %v1350_v20, %v1309_v29  ;;  %v568_v20 = vld [vmem:[%s3099_s8] sm:$0xff] }
 0x4f3   :  { %v3391_v22 = vpop.f32.mrf.mxu0 }
 0x4f4   :  { %v1358_v32 = vsel %vm1357_vm11, %v1351_v31, -inf  ;;  %v944_v22 = vld [vmem:[%s4051_s13] sm:$0xff] }
 0x4f5   :  { %v1353_v23 = vpop.f32.mrf.mxu0 }
 0x4f6   :  { %v1354_v24 = vadd.f32 %v1353_v23, %v1310_v21  ;;  %v1311_v23 = vld [vmem:[%s3103_s17] sm:$0xff] }
 0x4f7   :  { %v3392_v25 = vpop.f32.mrf.mxu0 }
 0x4f8   :  { %v1362_v26 = vsel %vm1361_vm10, %v1354_v24, -inf }
 0x4f9   :  { %1363 = vmax.xlane.f32.xlu0 %v1362_v26 }
 0x4fa   :  { %1147 = vrot.lane.b32.xlu1 %v939_v5, %s3742_s27 }
 0x51e   :  { %1359 = vmax.xlane.f32.xlu1 %v1358_v32 }
 0x564   :  { %v1484_v33 = vpop.f32.mrf.mxu0 }
 0x565   :  { %v1485_v34 = vadd.f32 %v1484_v33, %v1309_v29 }
 0x566   :  { %v3403_v36 = vpop.f32.mrf.mxu0 }
 0x567   :  { %v1491_v37 = vsel %vm1357_vm11, %v1485_v34, -inf }
 0x568   :  { %1492 = vmax.xlane.f32.xlu1 %v1491_v37  ;;  %v1487_v38 = vpop.f32.mrf.mxu0 }
 0x569   :  { %v1488_v40 = vadd.f32 %v1487_v38, %v1310_v21  ;;  %v569_v21 = vld [vmem:[%s3099_s8 + $0x8] sm:$0xf]  ;;  %s3095_s8 = sld [smem:[%s4317_s0 + %s3765_s5]]   ;;  %s3772_s5 = smov 37  }
 0x56a   :  { %v3404_v41 = vpop.f32.mrf.mxu0 }
 0x56b   :  { %v1494_v43 = vsel %vm1361_vm10, %v1488_v40, -inf  ;;  %v945_v41 = vld [vmem:[%s4051_s13 + $0x8] sm:$0xf]  ;;  %s3101_s13 = sld [smem:[%s4317_s0 + %s3766_s9]]   ;;  %s3773_s9 = smov 43  }
 0x56c   :  { %1495 = vmax.xlane.f32.xlu1 %v1494_v43 }
 0x56e   :  { %v1137_v44 = vpop.xlane.xlu1 %1136 }
 0x56f   :  { %3649 = vrcp.f32 %v1137_v44 }
 0x572   :  { %v1140_v35 = vpop.xlane.xlu1 %1139 }
 0x573   :  { %3651 = vrcp.f32 %v1140_v35 }
 0x576   :  { %v1148_v45 = vpop.permute.xlu1 %1147 }
 0x577   :  { %v1153_v46 = vsel %vm1017_vm9, %v1148_v45, 0 }
 0x578   :  { %3370 = vmatpush3.bf16.msra.mxu1 %v1153_v46 }
 0x579   :  { %3381 = vmatprep.subr.bf16.mxu1 %v3725_v0 }
 0x57c   :  { %v3650_v48 = vpop.eup %3649 }
 0x57d   :  { %v1143_v52 = vmul.f32 %v3650_v48, %v3642_v6 }
 0x580   :  { %v3652_v50 = vpop.eup %3651 }
 0x581   :  { %v1144_v54 = vmul.f32 %v3652_v50, %v3644_v10 }
 0x582   :  { %v1364_v55 = vpop.xlane.xlu0 %1363 }
 0x583   :  { %v1366_v53 = vsub.f32 %v1354_v24, %v1364_v55  ;;  %v1145_v57 = vpack.c.bf16 %v1144_v54, %v1143_v52  ;;  %v1312_v24 = vld [vmem:[%s3103_s17 + $0x8] sm:$0xf]  ;;  %s3078_s17 = sld [smem:[%s4317_s0 + %s3767_s14]]   ;;  %s3774_s14 = smov 18  }
 0x585   :  { %v1369_v58 = vmul.f32 1.442695, %v1366_v53  ;;  %3372 = vmatmul.mubr.msk.bf16.vlgmr.msra.gmra.mxu1 %vm573_vm4, %v1145_v57 }
 0x586   :  { %3382 = vmatpush3.bf16.msra.mxu1 %v3610_v56  ;;  %3383 = vmatprep.mubr.msk.bf16.mxu1 %vm3728_vm0, %v3725_v0 }
 0x587   :  { %3653 = vpow2.f32 %v1369_v58  ;;  %3393 = vmatprep.subr.bf16.mxu1 %v3725_v0 }
 0x58d   :  { %3384 = vmatmul.mubr.msk.bf16.vlgmr.msra.gmra.mxu1 %vm462_vm3, %v1256_v47 }
 0x58e   :  { %3395 = vmatprep.mubr.msk.bf16.mxu1 %vm3728_vm0, %v3725_v0 }
 0x594   :  { %v4031_v61 = vpop.eup %3653 }
 0x595   :  { %v1374_v62 = vsel %vm1361_vm10, %v4031_v61, 0.0 }
 0x596   :  { %1375 = vadd.xlane.f32.xlu1 %v1374_v62 }
 0x5a7   :  { %v1360_v1 = vpop.xlane.xlu1 %1359 }
 0x5a8   :  { %v1365_v2 = vsub.f32 %v1351_v31, %v1360_v1  ;;  %v3611_v1 = vld [vmem:[%s4060_s24] sm:$0xff]   ;;  %s3106_s24 = sld [smem:[%s4317_s0 + %s3768_s18]]   ;;  %s3775_s18 = smov 46  }
 0x5aa   :  { %v1367_v39 = vmul.f32 1.442695, %v1365_v2 }
 0x5ac   :  { %3655 = vpow2.f32 %v1367_v39 }
 0x5af   :  { %v4035_v4 = vpop.f32.mrf.mxu1 }
 0x5b1   :  { %v3361_v5 = vpop.f32.mrf.mxu1 }
 0x5b3   :  { %v4037_v6 = vpop.f32.mrf.mxu1 }
 0x5b5   :  { %v3362_v7 = vpop.f32.mrf.mxu1 }
 0x5b9   :  { %v3656_v8 = vpop.eup %3655 }
 0x5ba   :  { %v1371_v9 = vsel %vm1357_vm11, %v3656_v8, 0.0 }
 0x5bb   :  { %1372 = vadd.xlane.f32.xlu0 %v1371_v9 }
 0x5f1   :  { %v1493_v10 = vpop.xlane.xlu1 %1492 }
 0x5f2   :  { %v1497_v11 = vsub.f32 %v1485_v34, %v1493_v10 }
 0x5f4   :  { %v1499_v12 = vmul.f32 1.442695, %v1497_v11 }
 0x5f5   :  { %v1496_v13 = vpop.xlane.xlu1 %1495 }
 0x5f6   :  { %3657 = vpow2.f32 %v1499_v12  ;;  %v1498_v14 = vsub.f32 %v1488_v40, %v1496_v13 }
 0x5f8   :  { %v1501_v15 = vmul.f32 1.442695, %v1498_v14 }
 0x5fa   :  { %3659 = vpow2.f32 %v1501_v15 }
 0x603   :  { %v4040_v16 = vpop.eup %3657 }
 0x604   :  { %v1503_v17 = vsel %vm1357_vm11, %v4040_v16, 0.0 }
 0x605   :  { %1504 = vadd.xlane.f32.xlu0 %v1503_v17 }
 0x607   :  { %v3660_v18 = vpop.eup %3659 }
 0x608   :  { %v1506_v19 = vsel %vm1361_vm10, %v3660_v18, 0.0 }
 0x609   :  { %1507 = vadd.xlane.f32.xlu1 %v1506_v19 }
 0x61a   :  { %696 = vperm.xlu1 %3597, %v568_v20  }
 0x61e   :  { %701 = vperm.xlu1 %3597, %v569_v21  }
 0x61f   :  { %v1376_v25 = vpop.xlane.xlu1 %1375 }
 0x620   :  { %3661 = vrcp.f32 %v1376_v25 }
 0x622   :  { %1064 = vperm.xlu1 %3597, %v944_v22  }
 0x626   :  { %1432 = vperm.xlu1 %3597, %v1311_v23  }
 0x62a   :  { %1437 = vperm.xlu1 %3597, %v1312_v24  }
 0x62d   :  { %v3662_v37 = vpop.eup %3661 }
 0x62e   :  { %v1380_v45 = vmul.f32 %v3662_v37, %v4031_v61 }
 0x644   :  { %v1373_v26 = vpop.xlane.xlu0 %1372 }
 0x645   :  { %3663 = vrcp.f32 %v1373_v26  ;;  %v4062_v27 = vpop.f32.mrf.mxu1 }
 0x647   :  { %v3373_v29 = vpop.f32.mrf.mxu1 }
 0x649   :  { %v4064_v31 = vpop.f32.mrf.mxu1 }
 0x64b   :  { %v3374_v32 = vpop.f32.mrf.mxu1 }
 0x64d   :  { %v1300_v33 = vpop.f32.mrf.mxu1 }
 0x64e   :  { %v1306_v34 = vpack.c.bf16 %v1300_v33, %v1300_v33 }
 0x64f   :  { %v3385_v36 = vpop.f32.mrf.mxu1 }
 0x650   :  { %v1387_v38 = vsel %vm1385_vm12, %v1306_v34, 0  ;;  %1515 = vrot.lane.b32.xlu0 %v1306_v34, %s3742_s27 }
 0x651   :  { %v1303_v40 = vpop.f32.mrf.mxu1  ;;  %3394 = vmatpush3.bf16.msra.mxu1 %v1387_v38 }
 0x652   :  { %v3664_v43 = vpop.eup %3663  ;;  %3405 = vmatprep.subr.bf16.mxu1 %v3725_v0 }
 0x653   :  { %v3386_v44 = vpop.f32.mrf.mxu1  ;;  %v1379_v35 = vmul.f32 %v3664_v43, %v3656_v8 }
 0x654   :  { %1069 = vperm.xlu0 %3598, %v945_v41  }
 0x655   :  { %v1381_v46 = vpack.c.bf16 %v1380_v45, %v1379_v35 }
 0x657   :  { %3396 = vmatmul.mubr.msk.bf16.vlgmr.msra.gmra.mxu1 %vm1357_vm11, %v1381_v46 }
 0x658   :  { %1814 = vrot.lane.b32.xlu0 %v3851_v30, %s3739_s21  ;;  %3407 = vmatprep.mubr.msk.bf16.mxu1 %vm3728_vm0, %v3725_v0 }
 0x65c   :  { %1946 = vrot.lane.b32.xlu0 %v3851_v30, %s3738_s20 }
 0x68e   :  { %v1505_v53 = vpop.xlane.xlu0 %1504 }
 0x692   :  { %v1508_v48 = vpop.xlane.xlu1 %1507 }
 0x693   :  { %3665 = vrcp.f32 %v1508_v48 }
 0x694   :  { %3667 = vrcp.f32 %v1505_v53 }
 0x696   :  { %v697_v47 = vpop.permute.xlu1 %696 }
 0x697   :  { %v704_v54 = vmul.f32 %v697_v47, %v3987_v49  ;;  %v831_v32 = vmul.f32 %v3997_v63, %v697_v47  ;;  %v3612_v63 = vld [vmem:[%s3073_s29] sm:$0xff]  }
 0x698   :  { %3412 = vmatpush3.bf16.msra.mxu0 %v3612_v63 }
 0x699   :  { %3423 = vmatprep.subr.bf16.mxu0 %v3725_v0 }
 0x69a   :  { %v702_v50 = vpop.permute.xlu1 %701 }
 0x69b   :  { %v705_v39 = vmul.f32 %v702_v50, %v3989_v51 }
 0x69e   :  { %v1065_v52 = vpop.permute.xlu1 %1064 }
 0x69f   :  { %v1072_v55 = vmul.f32 %v1065_v52, %v4035_v4  ;;  %v1196_v26 = vmul.f32 %v4062_v27, %v1065_v52 }
 0x6a0   :  { %v3666_v57 = vpop.eup %3665 }
 0x6a1   :  { %v1074_v56 = vadd.f32 %v1072_v55, %v704_v54  ;;  %v3668_v58 = vpop.eup %3667  ;;  %v1512_v60 = vmul.f32 %v3666_v57, %v3660_v18  ;;  %v1198_v36 = vadd.f32 %v1196_v26, %v831_v32 }
 0x6a2   :  { %v1511_v30 = vmul.f32 %v3668_v58, %v4040_v16  ;;  %v1433_v7 = vpop.permute.xlu1 %1432 }
 0x6a4   :  { %v1513_v2 = vpack.c.bf16 %v1512_v60, %v1511_v30 }
 0x6a6   :  { %v1438_v11 = vpop.permute.xlu1 %1437 }
 0x6c2   :  { %v1516_v61 = vpop.permute.xlu0 %1515 }
 0x6c3   :  { %v1521_v62 = vsel %vm1385_vm12, %v1516_v61, 0 }
 0x6c4   :  { %3406 = vmatpush3.bf16.msra.mxu1 %v1521_v62 }
 0x6c5   :  { %3417 = vmatprep.subr.bf16.mxu1 %v3725_v0 }
 0x6c7   :  { %3408 = vmatmul.mubr.msk.bf16.vlgmr.msra.gmra.mxu1 %vm1357_vm11, %v1513_v2 }
 0x6c8   :  { %3418 = vmatpush3.bf16.msra.mxu1 %v3611_v1  ;;  %3419 = vmatprep.mubr.msk.bf16.mxu1 %vm3728_vm0, %v3725_v0 }
 0x6c9   :  { %3429 = vmatprep.subr.bf16.mxu1 %v3725_v0 }
 0x6cf   :  { %v1070_v49 = vpop.permute.xlu0 %1069  ;;  %3420 = vmatmul.mubr.msk.bf16.vlgmr.msra.gmra.mxu1 %vm462_vm3, %v3849_v28 }
 0x6d0   :  { %v1073_v4 = vmul.f32 %v1070_v49, %v4037_v6  ;;  %3431 = vmatprep.mubr.msk.bf16.mxu1 %vm3728_vm0, %v3725_v0  ;;  %v1197_v18 = vmul.f32 %v4064_v31, %v1070_v49  ;;  %v832_v6 = vmul.f32 %v3999_v3, %v702_v50 }
 0x6d2   :  { %v1075_v5 = vadd.f32 %v1073_v4, %v705_v39  ;;  %v1199_v20 = vadd.f32 %v1197_v18, %v832_v6 }
 0x6d3   :  { %v1815_v38 = vpop.permute.xlu0 %1814 }
 0x6d7   :  { %v1947_v27 = vpop.permute.xlu0 %1946 }
 0x717   :  { %v1423_v8 = vpop.f32.mrf.mxu1 }
 0x718   :  { %v1440_v9 = vmul.f32 %v1433_v7, %v1423_v8 }
 0x719   :  { %v3397_v10 = vpop.f32.mrf.mxu1 }
 0x71a   :  { %v1442_v12 = vadd.f32 %v1440_v9, %v1074_v56 }
 0x71b   :  { %v1426_v13 = vpop.f32.mrf.mxu1 }
 0x71c   :  { %v1441_v14 = vmul.f32 %v1438_v11, %v1426_v13 }
 0x71d   :  { %v3398_v15 = vpop.f32.mrf.mxu1 }
 0x71e   :  { %v1443_v16 = vadd.f32 %v1441_v14, %v1075_v5 }
 0x787   :  { %v1557_v17 = vpop.f32.mrf.mxu1 }
 0x788   :  { %v1564_v33 = vmul.f32 %v1557_v17, %v1433_v7 }
 0x789   :  { %v3409_v51 = vpop.f32.mrf.mxu1 }
 0x78a   :  { %v1566_v37 = vadd.f32 %v1564_v33, %v1198_v36 }
 0x78b   :  { %v1560_v19 = vpop.f32.mrf.mxu1 }
 0x78c   :  { %v1565_v21 = vmul.f32 %v1560_v19, %v1438_v11 }
 0x78d   :  { %v3410_v22 = vpop.f32.mrf.mxu1 }
 0x78e   :  { %v1567_v23 = vadd.f32 %v1565_v21, %v1199_v20 }
 0x78f   :  { %v1745_v24 = vpop.f32.mrf.mxu1 }
 0x790   :  { %1572 = vrot.lane.b32.xlu0 %v1567_v23, %s3736_s12 }
 0x791   :  { %v3421_v25 = vpop.f32.mrf.mxu1 }
 0x793   :  { %v1748_v29 = vpop.f32.mrf.mxu1 }
 0x794   :  { %v1752_v34 = vpack.c.bf16 %v1748_v29, %v1745_v24 }
 0x795   :  { %v3422_v31 = vpop.f32.mrf.mxu1 }
 0x796   :  { %v1820_v3 = vsel %vm573_vm4, %v1752_v34, 0  ;;  %1949 = vrot.lane.b32.xlu1 %v1752_v34, %s3742_s27 }
 0x797   :  { %3430 = vmatpush3.bf16.xpose.msra.mxu1 %v1820_v3 }
 0x798   :  { %3441 = vmatprep.subr.bf16.mxu1 %v3725_v0 }
 0x79a   :  { %1570 = vrot.lane.b32.xlu1 %v1566_v37, %s3736_s12  ;;  %v3613_v37 = vld [vmem:[%s4114_s3] sm:$0xff]   ;;  %s3108_s3 = sld [smem:[%s4317_s0 + %s3778_s30]]  }
 0x79e   :  { %3432 = vmatmul.mubr.msk.bf16.vlgmr.msra.gmra.mxu1 %vm573_vm4, %v1815_v38  ;;  %1755 = vrot.lane.b32.xlu1 %v3849_v28, %s3740_s22  ;;  %s3758_s22 = smov 33  }
 0x79f   :  { %3443 = vmatprep.mubr.msk.bf16.mxu1 %vm3728_vm0, %v3725_v0  ;;  %s3094_s6 = sld [smem:[%s4317_s0 + %s3758_s22]]  }
 0x802   :  { %v1573_v40 = vpop.permute.xlu0 %1572 }
 0x803   :  { %v1577_v41 = vsel %vm573_vm4, %v1443_v16, %v1573_v40 }
 0x804   :  { %v1581_v43 = vmul.f32 0.70710677, %v1577_v41  ;;  %v1579_v33 = vmul.f32 0.5, %v1577_v41  ;;  %v1809_v41 = vld [vmem:[%s3094_s6 + $0x4] sm:$0x1] }
 0x806   :  { %v1583_v44 = vand.u32 2147483647, %v1581_v43  ;;  %vm1621_vm13 = vcmp.ge.f32.partialorder %v1581_v43, 0.0 }
 0x808   :  { %v1585_v35 = vmul.f32 0.3275911, %v1583_v44  ;;  %v1950_v45 = vpop.permute.xlu1 %1949  ;;  %v1609_v55 = vsub.f32 0.0, %v1583_v44 }
 0x809   :  { %v1955_v46 = vsel %vm573_vm4, %v1950_v45, 0 }
 0x80a   :  { %v1587_v48 = vadd.f32 1.0, %v1585_v35  ;;  %3442 = vmatpush3.bf16.xpose.msra.mxu1 %v1955_v46  ;;  %v1611_v57 = vmul.f32 %v1609_v55, %v1583_v44  ;;  %v1811_v35 = vunpack.c.l.bf16 %v1809_v41 }
 0x80b   :  { %3453 = vmatprep.subr.bf16.mxu1 %v3725_v0 }
 0x80c   :  { %3669 = vrcp.f32 %v1587_v48  ;;  %v1571_v47 = vpop.permute.xlu1 %1570  ;;  %v1614_v61 = vmul.f32 1.442695, %v1611_v57 }
 0x80d   :  { %v1576_v50 = vsel %vm573_vm4, %v1442_v12, %v1571_v47 }
 0x80e   :  { %v1580_v52 = vmul.f32 0.70710677, %v1576_v50  ;;  %v1578_v34 = vmul.f32 0.5, %v1576_v50 }
 0x810   :  { %v1582_v54 = vand.u32 2147483647, %v1580_v52  ;;  %vm1620_vm14 = vcmp.ge.f32.partialorder %v1580_v52, 0.0  ;;  %v4129_v63 = vpop.permute.xlu1 %1755 }
 0x811   :  { %3444 = vmatmul.mubr.msk.bf16.vlgmr.msra.gmra.mxu1 %vm573_vm4, %v1947_v27  ;;  %v1808_v27 = vld [vmem:[%s3094_s6] sm:$0xf] }
 0x812   :  { %v1584_v56 = vmul.f32 0.3275911, %v1582_v54  ;;  %3455 = vmatprep.mubr.msk.bf16.mxu1 %vm3728_vm0, %v3725_v0  ;;  %v1608_v30 = vsub.f32 0.0, %v1582_v54  ;;  %v1810_v40 = vunpack.c.l.bf16 %v1808_v27 }
 0x814   :  { %v1586_v53 = vadd.f32 1.0, %v1584_v56  ;;  %v1610_v49 = vmul.f32 %v1608_v30, %v1582_v54 }
 0x816   :  { %3671 = vrcp.f32 %v1586_v53  ;;  %v1612_v8 = vmul.f32 1.442695, %v1610_v49 }
 0x817   :  { %3673 = vpow2.f32 %v1614_v61 }
 0x818   :  { %3675 = vpow2.f32 %v1612_v8  ;;  %v3147_v8 = vld [vmem:[%s3077_s10] ss:$0 sm:$0xff] }
 0x819   :  { %v3670_v58 = vpop.eup %3669 }
 0x81a   :  { %v1591_v60 = vmul.f32 1.0614054, %v3670_v58 }
 0x81c   :  { %v1593_v62 = vadd.f32 -1.4531521, %v1591_v60 }
 0x81e   :  { %v1595_v1 = vmul.f32 %v3670_v58, %v1593_v62 }
 0x820   :  { %v1597_v2 = vadd.f32 1.4214138, %v1595_v1 }
 0x822   :  { %v1599_v39 = vmul.f32 %v3670_v58, %v1597_v2 }
 0x823   :  { %v3672_v4 = vpop.eup %3671 }
 0x824   :  { %v1601_v5 = vadd.f32 -0.28449672, %v1599_v39  ;;  %v1590_v7 = vmul.f32 1.0614054, %v3672_v4  ;;  %v3674_v15 = vpop.eup %3673 }
 0x825   :  { %v3676_v22 = vpop.eup %3675 }
 0x826   :  { %v1603_v9 = vmul.f32 %v3670_v58, %v1601_v5  ;;  %v1592_v10 = vadd.f32 -1.4531521, %v1590_v7 }
 0x828   :  { %v1605_v11 = vadd.f32 0.2548296, %v1603_v9  ;;  %v1594_v12 = vmul.f32 %v3672_v4, %v1592_v10 }
 0x82a   :  { %v1607_v13 = vmul.f32 %v3670_v58, %v1605_v11  ;;  %v1596_v14 = vadd.f32 1.4214138, %v1594_v12 }
 0x82c   :  { %v1617_v16 = vmul.f32 %v3674_v15, %v1607_v13  ;;  %v1598_v17 = vmul.f32 %v3672_v4, %v1596_v14 }
 0x82e   :  { %v1600_v18 = vadd.f32 -0.28449672, %v1598_v17  ;;  %v1619_v51 = vsub.f32 1.0, %v1617_v16 }
 0x830   :  { %v1602_v6 = vmul.f32 %v3672_v4, %v1600_v18  ;;  %v1623_v20 = vsub.f32 0.0, %v1619_v51 }
 0x832   :  { %v1604_v19 = vadd.f32 0.2548296, %v1602_v6  ;;  %v1625_v24 = vsel %vm1621_vm13, %v1619_v51, %v1623_v20 }
 0x833   :  { %v1627_v29 = vadd.f32 1.0, %v1625_v24 }
 0x834   :  { %v1606_v21 = vmul.f32 %v3672_v4, %v1604_v19 }
 0x835   :  { %v1629_v36 = vmul.f32 %v1627_v29, %v1579_v33 }
 0x836   :  { %v1616_v23 = vmul.f32 %v3676_v22, %v1606_v21 }
 0x838   :  { %v1618_v25 = vsub.f32 1.0, %v1616_v23 }
 0x83a   :  { %v1622_v26 = vsub.f32 0.0, %v1618_v25 }
 0x83c   :  { %v1624_v32 = vsel %vm1620_vm14, %v1618_v25, %v1622_v26 }
 0x83d   :  { %v1626_v31 = vadd.f32 1.0, %v1624_v32 }
 0x83f   :  { %v1628_v3 = vmul.f32 %v1626_v31, %v1578_v34 }
 0x841   :  { %v1630_v38 = vpack.c.bf16 %v1629_v36, %v1628_v3  ;;  %v1812_v36 = vld [vmem:[%s3100_s19] sm:$0xff] }
 0x843   :  { %3414 = vmatmul.mubr.msk.bf16.vlgmr.msra.gmra.mxu0 %vm462_vm3, %v1630_v38 }
 0x844   :  { %3424 = vmatpush3.bf16.msra.mxu0 %v3613_v37  ;;  %3425 = vmatprep.mubr.msk.bf16.mxu0 %vm3728_vm0, %v3725_v0  ;;  %v1813_v37 = vld [vmem:[%s3100_s19 + $0x8] sm:$0x3] }
 0x845   :  { %3435 = vmatprep.subr.bf16.mxu0 %v3725_v0 }
 0x84b   :  { %3426 = vmatmul.mubr.msk.bf16.vlgmr.msra.gmra.mxu0 %vm462_vm3, %v4129_v63 }
 0x84c   :  { %3437 = vmatprep.mubr.msk.bf16.mxu0 %vm3728_vm0, %v3725_v0 }
 0x85e   :  { %v1856_v43 = vpop.f32.mrf.mxu1 }
 0x85f   :  { %v1857_v44 = vadd.f32 %v1856_v43, %v1810_v40 }
 0x860   :  { %v3433_v45 = vpop.f32.mrf.mxu1 }
 0x861   :  { %v1863_v46 = vsel %vm215_vm2, %v1857_v44, -inf }
 0x862   :  { %v1859_v48 = vpop.f32.mrf.mxu1  ;;  %1864 = vmax.xlane.f32.xlu0 %v1863_v46 }
 0x863   :  { %v1860_v47 = vadd.f32 %v1859_v48, %v1811_v35 }
 0x864   :  { %v3434_v50 = vpop.f32.mrf.mxu1 }
 0x865   :  { %v1867_v52 = vsel %vm1866_vm15, %v1860_v47, -inf }
 0x866   :  { %1868 = vmax.xlane.f32.xlu1 %v1867_v52 }
 0x8d1   :  { %v1991_v54 = vpop.f32.mrf.mxu1 }
 0x8d2   :  { %v1992_v55 = vadd.f32 %v1991_v54, %v1810_v40  ;;  %v3614_v54 = vld [vmem:[%s3083_s26] sm:$0xff]  }
 0x8d3   :  { %v3445_v56 = vpop.f32.mrf.mxu1 }
 0x8d4   :  { %v1998_v53 = vsel %vm215_vm2, %v1992_v55, -inf }
 0x8d5   :  { %1999 = vmax.xlane.f32.xlu0 %v1998_v53  ;;  %v1994_v57 = vpop.f32.mrf.mxu1 }
 0x8d6   :  { %v1995_v58 = vadd.f32 %v1994_v57, %v1811_v35 }
 0x8d7   :  { %v3446_v60 = vpop.f32.mrf.mxu1 }
 0x8d8   :  { %v2001_v61 = vsel %vm1866_vm15, %v1995_v58, -inf }
 0x8d9   :  { %2002 = vmax.xlane.f32.xlu0 %v2001_v61 }
 0x8eb   :  { %v1865_v62 = vpop.xlane.xlu0 %1864 }
 0x8ec   :  { %v1870_v30 = vsub.f32 %v1857_v44, %v1865_v62 }
 0x8ee   :  { %v1872_v1 = vmul.f32 1.442695, %v1870_v30 }
 0x8ef   :  { %v1869_v2 = vpop.xlane.xlu1 %1868 }
 0x8f0   :  { %3677 = vpow2.f32 %v1872_v1  ;;  %v1871_v49 = vsub.f32 %v1860_v47, %v1869_v2 }
 0x8f2   :  { %v1874_v39 = vmul.f32 1.442695, %v1871_v49 }
 0x8f4   :  { %3679 = vpow2.f32 %v1874_v39 }
 0x8fd   :  { %v3678_v4 = vpop.eup %3677 }
 0x8fe   :  { %v1876_v5 = vsel %vm215_vm2, %v3678_v4, 0.0 }
 0x8ff   :  { %1877 = vadd.xlane.f32.xlu0 %v1876_v5 }
 0x901   :  { %v3680_v7 = vpop.eup %3679 }
 0x902   :  { %v1879_v9 = vsel %vm1866_vm15, %v3680_v7, 0.0 }
 0x903   :  { %1880 = vadd.xlane.f32.xlu1 %v1879_v9  ;;  %v1683_v10 = vpop.f32.mrf.mxu0 }
 0x904   :  { %v1684_v11 = vadd.f32 %v3147_v8, %v1683_v10 }
 0x905   :  { %v3415_v12 = vpop.f32.mrf.mxu0 }
 0x906   :  { %v3187_v13 = vpack.c.bf16 %v1684_v11, %v1684_v11  ;;  %v3615_v12 = vld [vmem:[%s3074_s1] sm:$0xff]  }
 0x907   :  { %v1686_v14 = vpop.f32.mrf.mxu0  ;;  %3454 = vmatpush3.bf16.msra.mxu1 %v3615_v12  ;;  %v3616_v12 = vld [vmem:[%s4192_s4] sm:$0xff]   ;;  %s4263_s4 = sld [smem:[%s4317_s0 + %s3771_s2]]  }
 0x908   :  { %1698 = vst [vmem:[%s3105_s15] sm:$0xf] %v3187_v13  ;;  %v1687_v15 = vadd.f32 %v3147_v8, %v1686_v14  ;;  %3465 = vmatprep.subr.bf16.mxu1 %v3725_v0 }
 0x909   :  { %v3416_v16 = vpop.f32.mrf.mxu0 }
 0x90a   :  { %v3188_v17 = vpack.c.bf16 %v1687_v15, %v1687_v15 }
 0x90b   :  { %v1800_v18 = vpop.f32.mrf.mxu0 }
 0x90c   :  { %1699 = vst [vmem:[%s3105_s15 + $0x4] sm:$0x3] %v3188_v17 }
 0x90d   :  { %v3427_v51 = vpop.f32.mrf.mxu0 }
 0x90f   :  { %v1803_v6 = vpop.f32.mrf.mxu0 }
 0x910   :  { %v1807_v19 = vpack.c.bf16 %v1803_v6, %v1800_v18 }
 0x911   :  { %v3428_v20 = vpop.f32.mrf.mxu0 }
 0x912   :  { %v1891_v21 = vsel %vm219_vm1, %v1807_v19, 0 }
 0x913   :  { %3436 = vmatpush3.bf16.msra.mxu0 %v1891_v21 }
 0x914   :  { %3447 = vmatprep.subr.bf16.mxu0 %v3725_v0 }
 0x95e   :  { %v2000_v22 = vpop.xlane.xlu0 %1999 }
 0x95f   :  { %v2004_v23 = vsub.f32 %v1992_v55, %v2000_v22 }
 0x961   :  { %v2006_v24 = vmul.f32 1.442695, %v2004_v23 }
 0x962   :  { %v2003_v25 = vpop.xlane.xlu0 %2002 }
 0x963   :  { %3681 = vpow2.f32 %v2006_v24  ;;  %v2005_v26 = vsub.f32 %v1995_v58, %v2003_v25 }
 0x965   :  { %v2008_v29 = vmul.f32 1.442695, %v2005_v26 }
 0x967   :  { %3683 = vpow2.f32 %v2008_v29 }
 0x970   :  { %v3682_v32 = vpop.eup %3681 }
 0x971   :  { %v2010_v33 = vsel %vm215_vm2, %v3682_v32, 0.0 }
 0x972   :  { %2011 = vadd.xlane.f32.xlu0 %v2010_v33 }
 0x974   :  { %v3684_v34 = vpop.eup %3683 }
 0x975   :  { %v2013_v31 = vsel %vm1866_vm15, %v3684_v34, 0.0 }
 0x976   :  { %2014 = vadd.xlane.f32.xlu1 %v2013_v31 }
 0x987   :  { %1936 = vperm.xlu1 %3597, %v1812_v36  }
 0x988   :  { %v1878_v3 = vpop.xlane.xlu0 %1877  ;;  %2022 = vrot.lane.b32.xlu0 %v1807_v19, %s3742_s27 }
 0x989   :  { %3685 = vrcp.f32 %v1878_v3 }
 0x98b   :  { %1941 = vperm.xlu1 %3597, %v1813_v37  }
 0x98c   :  { %v1881_v38 = vpop.xlane.xlu1 %1880 }
 0x98d   :  { %3687 = vrcp.f32 %v1881_v38 }
 0x98f   :  { %2308 = vrot.lane.b32.xlu1 %v3897_v59, %s3739_s21 }
 0x993   :  { %2420 = vrot.lane.b32.xlu1 %v3897_v59, %s3738_s20 }
 0x996   :  { %v3686_v27 = vpop.eup %3685 }
 0x997   :  { %v1884_v41 = vmul.f32 %v3686_v27, %v3678_v4 }
 0x99a   :  { %v3688_v40 = vpop.eup %3687 }
 0x99b   :  { %v1885_v43 = vmul.f32 %v3688_v40, %v3680_v7 }
 0x99d   :  { %v1886_v44 = vpack.c.bf16 %v1885_v43, %v1884_v41 }
 0x99f   :  { %3438 = vmatmul.mubr.msk.bf16.vlgmr.msra.gmra.mxu0 %vm215_vm2, %v1886_v44 }
 0x9a0   :  { %3449 = vmatprep.mubr.msk.bf16.mxu0 %vm3728_vm0, %v3725_v0 }
 0x9fb   :  { %v2012_v35 = vpop.xlane.xlu0 %2011 }
 0x9fc   :  { %3689 = vrcp.f32 %v2012_v35 }
 0x9ff   :  { %v2015_v45 = vpop.xlane.xlu1 %2014  ;;  %v2023_v46 = vpop.permute.xlu0 %2022 }
 0xa00   :  { %3691 = vrcp.f32 %v2015_v45  ;;  %v2028_v48 = vsel %vm219_vm1, %v2023_v46, 0 }
 0xa01   :  { %3448 = vmatpush3.bf16.msra.mxu0 %v2028_v48 }
 0xa02   :  { %3459 = vmatprep.subr.bf16.mxu0 %v3725_v0 }
 0xa03   :  { %v1937_v60 = vpop.permute.xlu1 %1936 }
 0xa07   :  { %v1942_v30 = vpop.permute.xlu1 %1941 }
 0xa09   :  { %v3690_v59 = vpop.eup %3689 }
 0xa0a   :  { %v2018_v50 = vmul.f32 %v3690_v59, %v3682_v32 }
 0xa0b   :  { %v2309_v11 = vpop.permute.xlu1 %2308 }
 0xa0d   :  { %v3692_v47 = vpop.eup %3691 }
 0xa0e   :  { %v2019_v52 = vmul.f32 %v3692_v47, %v3684_v34 }
 0xa0f   :  { %v2421_v13 = vpop.permute.xlu1 %2420 }
 0xa10   :  { %v2020_v55 = vpack.c.bf16 %v2019_v52, %v2018_v50 }
 0xa12   :  { %3450 = vmatmul.mubr.msk.bf16.vlgmr.msra.gmra.mxu0 %vm215_vm2, %v2020_v55 }
 0xa13   :  { %3460 = vmatpush3.bf16.msra.mxu0 %v3614_v54  ;;  %3461 = vmatprep.mubr.msk.bf16.mxu0 %vm3728_vm0, %v3725_v0 }
 0xa14   :  { %3471 = vmatprep.subr.bf16.mxu0 %v3725_v0 }
 0xa1a   :  { %3462 = vmatmul.mubr.msk.bf16.vlgmr.msra.gmra.mxu0 %vm462_vm3, %v3849_v28 }
 0xa1b   :  { %3473 = vmatprep.mubr.msk.bf16.mxu0 %vm3728_vm0, %v3725_v0 }
 0xa5f   :  { %v1927_v56 = vpop.f32.mrf.mxu0 }
 0xa60   :  { %v1944_v21 = vmul.f32 %v1937_v60, %v1927_v56 }
 0xa61   :  { %v3439_v53 = vpop.f32.mrf.mxu0 }
 0xa63   :  { %v1930_v57 = vpop.f32.mrf.mxu0 }
 0xa64   :  { %v1945_v14 = vmul.f32 %v1942_v30, %v1930_v57 }
 0xa65   :  { %v3440_v58 = vpop.f32.mrf.mxu0 }
 0xad2   :  { %v2064_v61 = vpop.f32.mrf.mxu0 }
 0xad3   :  { %v2071_v10 = vmul.f32 %v2064_v61, %v1937_v60 }
 0xad4   :  { %v3451_v62 = vpop.f32.mrf.mxu0 }
 0xad6   :  { %v2067_v1 = vpop.f32.mrf.mxu0 }
 0xad7   :  { %v2072_v2 = vmul.f32 %v2067_v1, %v1942_v30 }
 0xad8   :  { %v3452_v49 = vpop.f32.mrf.mxu0 }
 0xad9   :  { %2077 = vrot.lane.b32.xlu1 %v2072_v2, %s3736_s12 }
 0xada   :  { %v2247_v39 = vpop.f32.mrf.mxu0 }
 0xadc   :  { %v3463_v4 = vpop.f32.mrf.mxu0 }
 0xade   :  { %v2250_v5 = vpop.f32.mrf.mxu0 }
 0xadf   :  { %v2254_v7 = vpack.c.bf16 %v2250_v5, %v2247_v39 }
 0xae0   :  { %v3464_v8 = vpop.f32.mrf.mxu0 }
 0xae1   :  { %v2314_v9 = vsel %vm573_vm4, %v2254_v7, 0  ;;  %2423 = vrot.lane.b32.xlu0 %v2254_v7, %s3742_s27 }
 0xae2   :  { %3472 = vmatpush3.bf16.xpose.msra.mxu0 %v2314_v9 }
 0xae3   :  { %3483 = vmatprep.subr.bf16.mxu0 %v3725_v0 }
 0xae5   :  { %2075 = vrot.lane.b32.xlu0 %v2071_v10, %s3736_s12 }
 0xae9   :  { %3474 = vmatmul.mubr.msk.bf16.vlgmr.msra.gmra.mxu0 %vm573_vm4, %v2309_v11 }
 0xaea   :  { %3485 = vmatprep.mubr.msk.bf16.mxu0 %vm3728_vm0, %v3725_v0 }
 0xb4b   :  { %v2078_v15 = vpop.permute.xlu1 %2077 }
 0xb4c   :  { %v2082_v16 = vsel %vm573_vm4, %v1945_v14, %v2078_v15  ;;  %v2305_v14 = vld [vmem:[%s3095_s8] sm:$0xf]  ;;  %s3098_s8 = sld [smem:[%s4317_s0 + %s3772_s5]]  }
 0xb4d   :  { %v2086_v17 = vmul.f32 0.70710677, %v2082_v16  ;;  %v2084_v7 = vmul.f32 0.5, %v2082_v16  ;;  %v2306_v15 = vunpack.c.l.bf16 %v2305_v14 }
 0xb4f   :  { %v2088_v18 = vand.u32 2147483647, %v2086_v17  ;;  %vm2126_vm5 = vcmp.ge.f32.partialorder %v2086_v17, 0.0 }
 0xb51   :  { %v2090_v51 = vmul.f32 0.3275911, %v2088_v18  ;;  %v2114_v26 = vsub.f32 0.0, %v2088_v18 }
 0xb53   :  { %v2092_v6 = vadd.f32 1.0, %v2090_v51  ;;  %v2424_v19 = vpop.permute.xlu0 %2423  ;;  %v2116_v33 = vmul.f32 %v2114_v26, %v2088_v18  ;;  %v2307_v26 = vld [vmem:[%s3101_s13] sm:$0xff]  ;;  %s3104_s13 = sld [smem:[%s4317_s0 + %s3773_s9]]  }
 0xb54   :  { %v2429_v20 = vsel %vm573_vm4, %v2424_v19, 0 }
 0xb55   :  { %3693 = vrcp.f32 %v2092_v6  ;;  %3484 = vmatpush3.bf16.xpose.msra.mxu0 %v2429_v20  ;;  %v2119_v3 = vmul.f32 1.442695, %v2116_v33 }
 0xb56   :  { %3495 = vmatprep.subr.bf16.mxu0 %v3725_v0 }
 0xb57   :  { %v2076_v22 = vpop.permute.xlu0 %2075 }
 0xb58   :  { %v2081_v23 = vsel %vm573_vm4, %v1944_v21, %v2076_v22 }
 0xb59   :  { %v2085_v24 = vmul.f32 0.70710677, %v2081_v23  ;;  %v2083_v8 = vmul.f32 0.5, %v2081_v23 }
 0xb5b   :  { %v2087_v25 = vand.u32 2147483647, %v2085_v24  ;;  %vm2125_vm6 = vcmp.ge.f32.partialorder %v2085_v24, 0.0 }
 0xb5c   :  { %3486 = vmatmul.mubr.msk.bf16.vlgmr.msra.gmra.mxu0 %vm573_vm4, %v2421_v13 }
 0xb5d   :  { %v2089_v29 = vmul.f32 0.3275911, %v2087_v25  ;;  %3497 = vmatprep.mubr.msk.bf16.mxu0 %vm3728_vm0, %v3725_v0  ;;  %v2113_v38 = vsub.f32 0.0, %v2087_v25 }
 0xb5f   :  { %v2091_v32 = vadd.f32 1.0, %v2089_v29  ;;  %v2115_v41 = vmul.f32 %v2113_v38, %v2087_v25 }
 0xb61   :  { %3695 = vrcp.f32 %v2091_v32  ;;  %v2117_v46 = vmul.f32 1.442695, %v2115_v41 }
 0xb62   :  { %v3694_v34 = vpop.eup %3693  ;;  %3697 = vpow2.f32 %v2119_v3 }
 0xb63   :  { %v2096_v31 = vmul.f32 1.0614054, %v3694_v34  ;;  %3699 = vpow2.f32 %v2117_v46 }
 0xb65   :  { %v2098_v36 = vadd.f32 -1.4531521, %v2096_v31 }
 0xb67   :  { %v2100_v37 = vmul.f32 %v3694_v34, %v2098_v36  ;;  %v3160_v36 = vld [vmem:[%s3078_s17] ss:$0 sm:$0xff]  ;;  %s3079_s17 = sld [smem:[%s4317_s0 + %s3774_s14]]  }
 0xb69   :  { %v2102_v27 = vadd.f32 1.4214138, %v2100_v37 }
 0xb6b   :  { %v2104_v40 = vmul.f32 %v3694_v34, %v2102_v27 }
 0xb6d   :  { %v2106_v43 = vadd.f32 -0.28449672, %v2104_v40 }
 0xb6e   :  { %v3696_v44 = vpop.eup %3695 }
 0xb6f   :  { %v2108_v35 = vmul.f32 %v3694_v34, %v2106_v43  ;;  %v2095_v45 = vmul.f32 1.0614054, %v3696_v44  ;;  %v3698_v54 = vpop.eup %3697 }
 0xb70   :  { %v3700_v30 = vpop.eup %3699 }
 0xb71   :  { %v2110_v48 = vadd.f32 0.2548296, %v2108_v35  ;;  %v2097_v59 = vadd.f32 -1.4531521, %v2095_v45 }
 0xb73   :  { %v2112_v47 = vmul.f32 %v3694_v34, %v2110_v48  ;;  %v2099_v50 = vmul.f32 %v3696_v44, %v2097_v59 }
 0xb75   :  { %v2101_v52 = vadd.f32 1.4214138, %v2099_v50  ;;  %v2122_v55 = vmul.f32 %v3698_v54, %v2112_v47 }
 0xb77   :  { %v2103_v56 = vmul.f32 %v3696_v44, %v2101_v52  ;;  %v2124_v57 = vsub.f32 1.0, %v2122_v55 }
 0xb79   :  { %v2105_v53 = vadd.f32 -0.28449672, %v2103_v56  ;;  %v2128_v61 = vsub.f32 0.0, %v2124_v57 }
 0xb7b   :  { %v2107_v58 = vmul.f32 %v3696_v44, %v2105_v53  ;;  %v2130_v2 = vsel %vm2126_vm5, %v2124_v57, %v2128_v61 }
 0xb7c   :  { %v2132_v4 = vadd.f32 1.0, %v2130_v2 }
 0xb7d   :  { %v2109_v60 = vadd.f32 0.2548296, %v2107_v58 }
 0xb7e   :  { %v2134_v10 = vmul.f32 %v2132_v4, %v2084_v7 }
 0xb7f   :  { %v2111_v62 = vmul.f32 %v3696_v44, %v2109_v60 }
 0xb81   :  { %v2121_v1 = vmul.f32 %v3700_v30, %v2111_v62 }
 0xb83   :  { %v2123_v49 = vsub.f32 1.0, %v2121_v1 }
 0xb85   :  { %v2127_v39 = vsub.f32 0.0, %v2123_v49 }
 0xb87   :  { %v2129_v5 = vsel %vm2125_vm6, %v2123_v49, %v2127_v39 }
 0xb88   :  { %v2131_v9 = vadd.f32 1.0, %v2129_v5 }
 0xb8a   :  { %v2133_v11 = vmul.f32 %v2131_v9, %v2083_v8 }
 0xb8c   :  { %v2135_v13 = vpack.c.bf16 %v2134_v10, %v2133_v11 }
 0xb8e   :  { %3456 = vmatmul.mubr.msk.bf16.vlgmr.msra.gmra.mxu1 %vm462_vm3, %v2135_v13 }
 0xb8f   :  { %3466 = vmatpush3.bf16.msra.mxu1 %v3616_v12  ;;  %3467 = vmatprep.mubr.msk.bf16.mxu1 %vm3728_vm0, %v3725_v0 }
 0xb90   :  { %3477 = vmatprep.subr.bf16.mxu1 %v3725_v0 }
 0xb96   :  { %3468 = vmatmul.mubr.msk.bf16.vlgmr.msra.gmra.mxu1 %vm462_vm3, %v4129_v63 }
 0xb97   :  { %3479 = vmatprep.mubr.msk.bf16.mxu1 %vm3728_vm0, %v3725_v0 }
 0xba9   :  { %v2350_v16 = vpop.f32.mrf.mxu0 }
 0xbaa   :  { %v2351_v17 = vadd.f32 %v2350_v16, %v2306_v15 }
 0xbab   :  { %v3475_v18 = vpop.f32.mrf.mxu0 }
 0xbac   :  { %v2356_v51 = vsel %vm215_vm2, %v2351_v17, -inf }
 0xbad   :  { %2357 = vmax.xlane.f32.xlu0 %v2356_v51  ;;  %v2353_v6 = vpop.f32.mrf.mxu0 }
 0xbaf   :  { %v3476_v19 = vpop.f32.mrf.mxu0 }
 0xc1c   :  { %v2465_v20 = vpop.f32.mrf.mxu0 }
 0xc1d   :  { %v2466_v21 = vadd.f32 %v2465_v20, %v2306_v15 }
 0xc1e   :  { %v3487_v22 = vpop.f32.mrf.mxu0 }
 0xc1f   :  { %v2471_v23 = vsel %vm215_vm2, %v2466_v21, -inf }
 0xc20   :  { %2472 = vmax.xlane.f32.xlu1 %v2471_v23  ;;  %v2468_v24 = vpop.f32.mrf.mxu0 }
 0xc22   :  { %v3488_v25 = vpop.f32.mrf.mxu0 }
 0xc31   :  { %2416 = vperm.xlu1 %3597, %v2307_v26  }
 0xc35   :  { %2728 = vrot.lane.b32.xlu1 %v3936_v42, %s3739_s21  ;;  %s3769_s21 = smov 25  }
 0xc36   :  { %v2358_v29 = vpop.xlane.xlu0 %2357  ;;  %s3086_s28 = sld [smem:[%s4317_s0 + %s3769_s21]]  }
 0xc37   :  { %v2359_v32 = vsub.f32 %v2351_v17, %v2358_v29 }
 0xc39   :  { %v2360_v33 = vmul.f32 1.442695, %v2359_v32 }
 0xc3b   :  { %3701 = vpow2.f32 %v2360_v33 }
 0xc3c   :  { %v3617_v49 = vld [vmem:[%s3086_s28] sm:$0xff]  }
 0xc48   :  { %v3702_v34 = vpop.eup %3701 }
 0xc49   :  { %v2362_v31 = vsel %vm215_vm2, %v3702_v34, 0.0 }
 0xc4a   :  { %2363 = vadd.xlane.f32.xlu0 %v2362_v31 }
 0xc4e   :  { %v2188_v3 = vpop.f32.mrf.mxu1 }
 0xc4f   :  { %v2189_v37 = vadd.f32 %v3160_v36, %v2188_v3 }
 0xc50   :  { %v3457_v38 = vpop.f32.mrf.mxu1 }
 0xc51   :  { %v3189_v27 = vpack.c.bf16 %v2189_v37, %v2189_v37 }
 0xc52   :  { %v2191_v40 = vpop.f32.mrf.mxu1 }
 0xc53   :  { %2203 = vst [vmem:[%s3106_s24] sm:$0xf] %v3189_v27  ;;  %v2192_v41 = vadd.f32 %v3160_v36, %v2191_v40 }
 0xc54   :  { %v3458_v43 = vpop.f32.mrf.mxu1 }
 0xc55   :  { %v3190_v44 = vpack.c.bf16 %v2192_v41, %v2192_v41 }
 0xc56   :  { %v2297_v35 = vpop.f32.mrf.mxu1 }
 0xc57   :  { %2204 = vst [vmem:[%s3106_s24 + $0x4] sm:$0x1] %v3190_v44  ;;  %s3107_s24 = sld [smem:[%s4317_s0 + %s3775_s18]]  }
 0xc58   :  { %v3469_v45 = vpop.f32.mrf.mxu1 }
 0xc5a   :  { %v2300_v46 = vpop.f32.mrf.mxu1 }
 0xc5b   :  { %v2304_v48 = vpack.c.bf16 %v2300_v46, %v2297_v35 }
 0xc5c   :  { %v3470_v59 = vpop.f32.mrf.mxu1 }
 0xc5d   :  { %v2372_v47 = vsel %vm219_vm1, %v2304_v48, 0 }
 0xc5e   :  { %3478 = vmatpush3.bf16.msra.mxu1 %v2372_v47 }
 0xc5f   :  { %3489 = vmatprep.subr.bf16.mxu1 %v3725_v0 }
 0xca9   :  { %v2473_v50 = vpop.xlane.xlu1 %2472 }
 0xcaa   :  { %v2474_v52 = vsub.f32 %v2466_v21, %v2473_v50 }
 0xcac   :  { %v2475_v54 = vmul.f32 1.442695, %v2474_v52 }
 0xcae   :  { %3703 = vpow2.f32 %v2475_v54 }
 0xcbb   :  { %v3704_v55 = vpop.eup %3703 }
 0xcbc   :  { %v2477_v56 = vsel %vm215_vm2, %v3704_v55, 0.0 }
 0xcbd   :  { %2478 = vadd.xlane.f32.xlu0 %v2477_v56 }
 0xcd3   :  { %v2364_v53 = vpop.xlane.xlu0 %2363  ;;  %2484 = vrot.lane.b32.xlu0 %v2304_v48, %s3742_s27 }
 0xcd4   :  { %3705 = vrcp.f32 %v2364_v53  ;;  %v2725_v53 = vld [vmem:[%s3098_s8] sm:$0x7] }
 0xcd7   :  { %2841 = vrot.lane.b32.xlu0 %v3936_v42, %s3738_s20  ;;  %s3770_s20 = smov 14  }
 0xcd8   :  { %s3075_s1 = sld [smem:[%s4317_s0 + %s3770_s20]]  }
 0xcde   :  { %v3618_v6 = vld [vmem:[%s3075_s1] sm:$0xff]  }
 0xcdf   :  { %3496 = vmatpush3.bf16.msra.mxu0 %v3618_v6 }
 0xce0   :  { %3507 = vmatprep.subr.bf16.mxu0 %v3725_v0 }
 0xce1   :  { %v3706_v57 = vpop.eup %3705 }
 0xce2   :  { %v2366_v58 = vmul.f32 %v3706_v57, %v3702_v34  ;;  %v2726_v57 = vunpack.c.l.bf16 %v2725_v53 }
 0xce4   :  { %v2367_v60 = vpack.c.bf16 %v2366_v58, %v2366_v58 }
 0xce6   :  { %3480 = vmatmul.mubr.msk.bf16.vlgmr.msra.gmra.mxu1 %vm215_vm2, %v2367_v60 }
 0xce7   :  { %3491 = vmatprep.mubr.msk.bf16.mxu1 %vm3728_vm0, %v3725_v0 }
 0xd46   :  { %v2479_v61 = vpop.xlane.xlu0 %2478 }
 0xd47   :  { %3707 = vrcp.f32 %v2479_v61 }
 0xd4a   :  { %v2485_v62 = vpop.permute.xlu0 %2484 }
 0xd4b   :  { %v2490_v30 = vsel %vm219_vm1, %v2485_v62, 0 }
 0xd4c   :  { %3490 = vmatpush3.bf16.msra.mxu1 %v2490_v30 }
 0xd4d   :  { %3501 = vmatprep.subr.bf16.mxu1 %v3725_v0 }
 0xd4e   :  { %v2842_v25 = vpop.permute.xlu0 %2841 }
 0xd54   :  { %v3708_v1 = vpop.eup %3707 }
 0xd55   :  { %v2481_v2 = vmul.f32 %v3708_v1, %v3704_v55  ;;  %v3619_v55 = vld [vmem:[%s4263_s4] sm:$0xff]  }
 0xd57   :  { %v2482_v42 = vpack.c.bf16 %v2481_v2, %v2481_v2 }
 0xd59   :  { %3492 = vmatmul.mubr.msk.bf16.vlgmr.msra.gmra.mxu1 %vm215_vm2, %v2482_v42 }
 0xd5a   :  { %3502 = vmatpush3.bf16.msra.mxu1 %v3617_v49  ;;  %3503 = vmatprep.mubr.msk.bf16.mxu1 %vm3728_vm0, %v3725_v0 }
 0xd5b   :  { %3513 = vmatprep.subr.bf16.mxu1 %v3725_v0 }
 0xd61   :  { %3504 = vmatmul.mubr.msk.bf16.vlgmr.msra.gmra.mxu1 %vm462_vm3, %v3849_v28  ;;  %v2417_v28 = vpop.permute.xlu1 %2416 }
 0xd62   :  { %3515 = vmatprep.mubr.msk.bf16.mxu1 %vm3728_vm0, %v3725_v0 }
 0xd65   :  { %v2729_v51 = vpop.permute.xlu1 %2728 }
 0xda6   :  { %v2408_v39 = vpop.f32.mrf.mxu1 }
 0xda7   :  { %v2419_v21 = vmul.f32 %v2417_v28, %v2408_v39 }
 0xda8   :  { %v3481_v4 = vpop.f32.mrf.mxu1 }
 0xdaa   :  { %v2411_v5 = vpop.f32.mrf.mxu1 }
 0xdab   :  { %v2727_v5 = vld [vmem:[%s3104_s13] sm:$0x3f] }
 0xdac   :  { %v3482_v7 = vpop.f32.mrf.mxu1 }
 0xe19   :  { %v2526_v8 = vpop.f32.mrf.mxu1 }
 0xe1a   :  { %v2532_v18 = vmul.f32 %v2526_v8, %v2417_v28 }
 0xe1b   :  { %v3493_v9 = vpop.f32.mrf.mxu1 }
 0xe1d   :  { %v2529_v10 = vpop.f32.mrf.mxu1 }
 0xe1f   :  { %v3494_v11 = vpop.f32.mrf.mxu1 }
 0xe21   :  { %v2667_v12 = vpop.f32.mrf.mxu1 }
 0xe23   :  { %v3505_v13 = vpop.f32.mrf.mxu1 }
 0xe25   :  { %v2670_v14 = vpop.f32.mrf.mxu1 }
 0xe26   :  { %v2674_v15 = vpack.c.bf16 %v2670_v14, %v2667_v12  ;;  %v3173_v12 = vld [vmem:[%s3079_s17] ss:$0 sm:$0xff] }
 0xe27   :  { %v3506_v16 = vpop.f32.mrf.mxu1 }
 0xe28   :  { %v2734_v17 = vsel %vm573_vm4, %v2674_v15, 0  ;;  %2844 = vrot.lane.b32.xlu1 %v2674_v15, %s3742_s27 }
 0xe29   :  { %3514 = vmatpush3.bf16.xpose.msra.mxu1 %v2734_v17 }
 0xe2a   :  { %3525 = vmatprep.subr.bf16.mxu1 %v3725_v0 }
 0xe2c   :  { %2534 = vrot.lane.b32.xlu1 %v2532_v18, %s3736_s12 }
 0xe30   :  { %3516 = vmatmul.mubr.msk.bf16.vlgmr.msra.gmra.mxu1 %vm573_vm4, %v2729_v51 }
 0xe31   :  { %3527 = vmatprep.mubr.msk.bf16.mxu1 %vm3728_vm0, %v3725_v0 }
 0xe9a   :  { %v2845_v19 = vpop.permute.xlu1 %2844 }
 0xe9b   :  { %v2850_v20 = vsel %vm573_vm4, %v2845_v19, 0 }
 0xe9c   :  { %3526 = vmatpush3.bf16.xpose.msra.mxu1 %v2850_v20 }
 0xe9d   :  { %3537 = vmatprep.subr.bf16.mxu1 %v3725_v0 }
 0xe9e   :  { %v2535_v22 = vpop.permute.xlu1 %2534 }
 0xe9f   :  { %v2537_v23 = vsel %vm573_vm4, %v2419_v21, %v2535_v22 }
 0xea0   :  { %v2539_v24 = vmul.f32 0.70710677, %v2537_v23  ;;  %v2538_v50 = vmul.f32 0.5, %v2537_v23 }
 0xea2   :  { %v2540_v26 = vand.u32 2147483647, %v2539_v24  ;;  %vm2559_vm7 = vcmp.ge.f32.partialorder %v2539_v24, 0.0 }
 0xea3   :  { %3528 = vmatmul.mubr.msk.bf16.vlgmr.msra.gmra.mxu1 %vm573_vm4, %v2842_v25 }
 0xea4   :  { %v2541_v29 = vmul.f32 0.3275911, %v2540_v26  ;;  %3539 = vmatprep.mubr.msk.bf16.mxu1 %vm3728_vm0, %v3725_v0  ;;  %v2553_v33 = vsub.f32 0.0, %v2540_v26 }
 0xea6   :  { %v2542_v32 = vadd.f32 1.0, %v2541_v29  ;;  %v2554_v34 = vmul.f32 %v2553_v33, %v2540_v26 }
 0xea8   :  { %3709 = vrcp.f32 %v2542_v32  ;;  %v2555_v3 = vmul.f32 1.442695, %v2554_v34 }
 0xeaa   :  { %3711 = vpow2.f32 %v2555_v3 }
 0xeb5   :  { %v3710_v31 = vpop.eup %3709 }
 0xeb6   :  { %v2544_v36 = vmul.f32 1.0614054, %v3710_v31 }
 0xeb7   :  { %v3712_v45 = vpop.eup %3711 }
 0xeb8   :  { %v2545_v37 = vadd.f32 -1.4531521, %v2544_v36 }
 0xeba   :  { %v2546_v38 = vmul.f32 %v3710_v31, %v2545_v37 }
 0xebc   :  { %v2547_v27 = vadd.f32 1.4214138, %v2546_v38 }
 0xebe   :  { %v2548_v40 = vmul.f32 %v3710_v31, %v2547_v27 }
 0xec0   :  { %v2549_v41 = vadd.f32 -0.28449672, %v2548_v40 }
 0xec2   :  { %v2550_v43 = vmul.f32 %v3710_v31, %v2549_v41 }
 0xec4   :  { %v2551_v44 = vadd.f32 0.2548296, %v2550_v43 }
 0xec6   :  { %v2552_v35 = vmul.f32 %v3710_v31, %v2551_v44 }
 0xec8   :  { %v2557_v46 = vmul.f32 %v3712_v45, %v2552_v35 }
 0xeca   :  { %v2558_v48 = vsub.f32 1.0, %v2557_v46 }
 0xecc   :  { %v2560_v59 = vsub.f32 0.0, %v2558_v48 }
 0xece   :  { %v2561_v47 = vsel %vm2559_vm7, %v2558_v48, %v2560_v59 }
 0xecf   :  { %v2562_v52 = vadd.f32 1.0, %v2561_v47 }
 0xed1   :  { %v2563_v54 = vmul.f32 %v2562_v52, %v2538_v50 }
 0xed3   :  { %v2564_v56 = vpack.c.bf16 %v2563_v54, %v2563_v54 }
 0xed5   :  { %3498 = vmatmul.mubr.msk.bf16.vlgmr.msra.gmra.mxu0 %vm462_vm3, %v2564_v56 }
 0xed6   :  { %3508 = vmatpush3.bf16.msra.mxu0 %v3619_v55  ;;  %3509 = vmatprep.mubr.msk.bf16.mxu0 %vm3728_vm0, %v3725_v0 }
 0xed7   :  { %3519 = vmatprep.subr.bf16.mxu0 %v3725_v0 }
 0xedd   :  { %3510 = vmatmul.mubr.msk.bf16.vlgmr.msra.gmra.mxu0 %vm462_vm3, %v4129_v63 }
 0xede   :  { %3521 = vmatprep.mubr.msk.bf16.mxu0 %vm3728_vm0, %v3725_v0 }
 0xef0   :  { %v2770_v58 = vpop.f32.mrf.mxu1 }
 0xef1   :  { %v2771_v60 = vadd.f32 %v2770_v58, %v2726_v57 }
 0xef2   :  { %v3517_v61 = vpop.f32.mrf.mxu1 }
 0xef3   :  { %v2777_v62 = vsel %vm2776_vm8, %v2771_v60, -inf }
 0xef4   :  { %2778 = vmax.xlane.f32.xlu0 %v2777_v62  ;;  %v2773_v30 = vpop.f32.mrf.mxu1 }
 0xef6   :  { %v3518_v1 = vpop.f32.mrf.mxu1 }
 0xf63   :  { %v2886_v63 = vpop.f32.mrf.mxu1 }
 0xf64   :  { %v2887_v2 = vadd.f32 %v2886_v63, %v2726_v57 }
 0xf65   :  { %v3529_v49 = vpop.f32.mrf.mxu1 }
 0xf66   :  { %v2892_v42 = vsel %vm2776_vm8, %v2887_v2, -inf }
 0xf67   :  { %2893 = vmax.xlane.f32.xlu1 %v2892_v42  ;;  %v2889_v39 = vpop.f32.mrf.mxu1 }
 0xf69   :  { %v3530_v4 = vpop.f32.mrf.mxu1 }
 0xf78   :  { %2837 = vperm.xlu1 %3597, %v2727_v5  }
 0xf7d   :  { %v2779_v7 = vpop.xlane.xlu0 %2778 }
 0xf7e   :  { %v2780_v8 = vsub.f32 %v2771_v60, %v2779_v7 }
 0xf80   :  { %v2781_v9 = vmul.f32 1.442695, %v2780_v8 }
 0xf82   :  { %3713 = vpow2.f32 %v2781_v9 }
 0xf8f   :  { %v3714_v10 = vpop.eup %3713 }
 0xf90   :  { %v2783_v11 = vsel %vm2776_vm8, %v3714_v10, 0.0 }
 0xf91   :  { %2784 = vadd.xlane.f32.xlu0 %v2783_v11 }
 0xf95   :  { %v2617_v13 = vpop.f32.mrf.mxu0 }
 0xf96   :  { %v2618_v14 = vadd.f32 %v3173_v12, %v2617_v13 }
 0xf97   :  { %v3499_v15 = vpop.f32.mrf.mxu0 }
 0xf98   :  { %v2623_v16 = vpack.c.bf16 %v2618_v14, %v2618_v14 }
 0xf99   :  { %v2620_v17 = vpop.f32.mrf.mxu0 }
 0xf9a   :  { %2624 = vst [vmem:[%s3107_s24] sm:$0xf] %v2623_v16 }
 0xf9b   :  { %v3500_v28 = vpop.f32.mrf.mxu0 }
 0xf9d   :  { %v2717_v18 = vpop.f32.mrf.mxu0 }
 0xf9f   :  { %v3511_v51 = vpop.f32.mrf.mxu0 }
 0xfa1   :  { %v2720_v6 = vpop.f32.mrf.mxu0 }
 0xfa2   :  { %v2724_v19 = vpack.c.bf16 %v2720_v6, %v2717_v18 }
 0xfa3   :  { %v3512_v20 = vpop.f32.mrf.mxu0 }
 0xfa4   :  { %v2793_v21 = vsel %vm219_vm1, %v2724_v19, 0 }
 0xfa5   :  { %3520 = vmatpush3.bf16.msra.mxu0 %v2793_v21 }
 0xfa6   :  { %3531 = vmatprep.subr.bf16.mxu0 %v3725_v0 }
 0xff0   :  { %v2894_v22 = vpop.xlane.xlu1 %2893 }
 0xff1   :  { %v2895_v23 = vsub.f32 %v2887_v2, %v2894_v22 }
 0xff3   :  { %v2896_v24 = vmul.f32 1.442695, %v2895_v23 }
 0xff4   :  { %v2838_v35 = vpop.permute.xlu1 %2837 }
 0xff5   :  { %3715 = vpow2.f32 %v2896_v24 }
0x1002   :  { %v3716_v25 = vpop.eup %3715 }
0x1003   :  { %v2898_v26 = vsel %vm2776_vm8, %v3716_v25, 0.0 }
0x1004   :  { %2899 = vadd.xlane.f32.xlu0 %v2898_v26 }
0x101a   :  { %v2785_v29 = vpop.xlane.xlu0 %2784  ;;  %2905 = vrot.lane.b32.xlu0 %v2724_v19, %s3742_s27  ;;  %s3776_s27 = smov 15  }
0x101b   :  { %3717 = vrcp.f32 %v2785_v29  ;;  %s3076_s26 = sld [smem:[%s4317_s0 + %s3776_s27]]  }
0x1021   :  { %v3620_v47 = vld [vmem:[%s3076_s26] sm:$0xff]  }
0x1022   :  { %3538 = vmatpush3.bf16.msra.mxu1 %v3620_v47 }
0x1028   :  { %v3718_v32 = vpop.eup %3717 }
0x1029   :  { %v2787_v33 = vmul.f32 %v3718_v32, %v3714_v10 }
0x102b   :  { %v2788_v34 = vpack.c.bf16 %v2787_v33, %v2787_v33 }
0x102d   :  { %3522 = vmatmul.mubr.msk.bf16.vlgmr.msra.gmra.mxu0 %vm215_vm2, %v2788_v34 }
0x102e   :  { %3533 = vmatprep.mubr.msk.bf16.mxu0 %vm3728_vm0, %v3725_v0 }
0x108d   :  { %v2900_v31 = vpop.xlane.xlu0 %2899 }
0x108e   :  { %3719 = vrcp.f32 %v2900_v31 }
0x1091   :  { %v2906_v36 = vpop.permute.xlu0 %2905 }
0x1092   :  { %v2911_v3 = vsel %vm219_vm1, %v2906_v36, 0 }
0x1093   :  { %3532 = vmatpush3.bf16.msra.mxu0 %v2911_v3 }
0x109b   :  { %v3720_v37 = vpop.eup %3719 }
0x109c   :  { %v2902_v38 = vmul.f32 %v3720_v37, %v3716_v25 }
0x109e   :  { %v2903_v27 = vpack.c.bf16 %v2902_v38, %v2902_v38 }
0x10a0   :  { %3534 = vmatmul.mubr.msk.bf16.vlgmr.msra.gmra.mxu0 %vm215_vm2, %v2903_v27 }
0x10ed   :  { %v2829_v40 = vpop.f32.mrf.mxu0 }
0x10ee   :  { %v2840_v50 = vmul.f32 %v2838_v35, %v2829_v40 }
0x10ef   :  { %v3523_v41 = vpop.f32.mrf.mxu0 }
0x10f1   :  { %v2832_v43 = vpop.f32.mrf.mxu0 }
0x10f3   :  { %v3524_v44 = vpop.f32.mrf.mxu0 }
0x1160   :  { %v2947_v45 = vpop.f32.mrf.mxu0 }
0x1161   :  { %v2953_v46 = vmul.f32 %v2947_v45, %v2838_v35 }
0x1162   :  { %v3535_v48 = vpop.f32.mrf.mxu0 }
0x1163   :  { %2955 = vrot.lane.b32.xlu1 %v2953_v46, %s3736_s12  ;;  %s3777_s12 = smov 19  }
0x1164   :  { %v2950_v0 = vpop.f32.mrf.mxu0  ;;  %s3080_s29 = sld [smem:[%s4317_s0 + %s3777_s12]]  }
0x1166   :  { %v3536_v59 = vpop.f32.mrf.mxu0 }
0x116a   :  { %v3184_v16 = vld [vmem:[%s3080_s29] ss:$0 sm:$0xff] }
0x11d5   :  { %v2956_v52 = vpop.permute.xlu1 %2955 }
0x11d6   :  { %v2958_v54 = vsel %vm573_vm4, %v2840_v50, %v2956_v52 }
0x11d7   :  { %v2960_v55 = vmul.f32 0.70710677, %v2958_v54  ;;  %v2959_v12 = vmul.f32 0.5, %v2958_v54 }
0x11d9   :  { %v2961_v56 = vand.u32 2147483647, %v2960_v55  ;;  %vm2980_vm0 = vcmp.ge.f32.partialorder %v2960_v55, 0.0 }
0x11db   :  { %v2962_v53 = vmul.f32 0.3275911, %v2961_v56  ;;  %v2974_v58 = vsub.f32 0.0, %v2961_v56 }
0x11dd   :  { %v2963_v57 = vadd.f32 1.0, %v2962_v53  ;;  %v2975_v60 = vmul.f32 %v2974_v58, %v2961_v56 }
0x11df   :  { %3721 = vrcp.f32 %v2963_v57  ;;  %v2976_v30 = vmul.f32 1.442695, %v2975_v60 }
0x11e1   :  { %3723 = vpow2.f32 %v2976_v30 }
0x11ec   :  { %v3722_v61 = vpop.eup %3721 }
0x11ed   :  { %v2965_v62 = vmul.f32 1.0614054, %v3722_v61 }
0x11ee   :  { %v3724_v7 = vpop.eup %3723 }
0x11ef   :  { %v2966_v1 = vadd.f32 -1.4531521, %v2965_v62 }
0x11f1   :  { %v2967_v63 = vmul.f32 %v3722_v61, %v2966_v1 }
0x11f3   :  { %v2968_v2 = vadd.f32 1.4214138, %v2967_v63 }
0x11f5   :  { %v2969_v49 = vmul.f32 %v3722_v61, %v2968_v2 }
0x11f7   :  { %v2970_v42 = vadd.f32 -0.28449672, %v2969_v49 }
0x11f9   :  { %v2971_v39 = vmul.f32 %v3722_v61, %v2970_v42 }
0x11fb   :  { %v2972_v4 = vadd.f32 0.2548296, %v2971_v39 }
0x11fd   :  { %v2973_v5 = vmul.f32 %v3722_v61, %v2972_v4 }
0x11ff   :  { %v2978_v8 = vmul.f32 %v3724_v7, %v2973_v5 }
0x1201   :  { %v2979_v9 = vsub.f32 1.0, %v2978_v8 }
0x1203   :  { %v2981_v10 = vsub.f32 0.0, %v2979_v9 }
0x1205   :  { %v2982_v11 = vsel %vm2980_vm0, %v2979_v9, %v2981_v10 }
0x1206   :  { %v2983_v13 = vadd.f32 1.0, %v2982_v11 }
0x1208   :  { %v2984_v14 = vmul.f32 %v2983_v13, %v2959_v12 }
0x120a   :  { %v2985_v15 = vpack.c.bf16 %v2984_v14, %v2984_v14 }
0x120c   :  { %3540 = vmatmul.mubr.msk.bf16.vlgmr.msra.gmra.mxu1 %vm462_vm3, %v2985_v15 }
0x12cc   :  { %v3038_v17 = vpop.f32.mrf.mxu1 }
0x12cd   :  { %v3039_v28 = vadd.f32 %v3184_v16, %v3038_v17 }
0x12ce   :  { %v3541_v18 = vpop.f32.mrf.mxu1 }
0x12cf   :  { %v3044_v51 = vpack.c.bf16 %v3039_v28, %v3039_v28 }
0x12d0   :  { %v3041_v6 = vpop.f32.mrf.mxu1 }
0x12d1   :  { %3045 = vst [vmem:[%s3108_s3] sm:$0x7] %v3044_v51 }
0x12d2   :  { %v3542_v19 = vpop.f32.mrf.mxu1 }

// kernel: hgt_apply.3
= control target key start
LH: loop header
LB: loop body
LE: loop exit
PB: predicated region body
PF: predicated region fallthrough
CT: control target
= control target key end

     0   :  { %s4254_s6 = smov 1   ;;  %s4255_s10 = smov 2   ;;  %s5036_s0 = inlined_call_operand.smem [shape: u32[49], index: -1, kind: input, shape index: {}] }
   0x1   :  { %s4324_s5 = sld [smem:[%s5036_s0]]   ;;  %s4256_s14 = smov 3  }
   0x2   :  { %s4329_s9 = sld [smem:[%s5036_s0 + %s4254_s6]]   ;;  %s4257_s18 = smov 4  }
   0x3   :  { %s4334_s13 = sld [smem:[%s5036_s0 + %s4255_s10]]   ;;  %s4258_s22 = smov 5  }
   0x4   :  { %s4339_s17 = sld [smem:[%s5036_s0 + %s4256_s14]]   ;;  %s4259_s26 = smov 6  }
   0x5   :  { %s4344_s21 = sld [smem:[%s5036_s0 + %s4257_s18]]   ;;  %s4260_s30 = smov 7  }
   0x6   :  { %s4349_s25 = sld [smem:[%s5036_s0 + %s4258_s22]]   ;;  %s4261_s4 = smov 8  }
   0x7   :  { %s4354_s29 = sld [smem:[%s5036_s0 + %s4259_s26]]   ;;  %s4262_s10 = smov 9  }
   0x8   :  { %s4359_s3 = sld [smem:[%s5036_s0 + %s4260_s30]]   ;;  %s4263_s15 = smov 10  }
   0x9   :  { %s4364_s8 = sld [smem:[%s5036_s0 + %s4261_s4]]   ;;  %s4264_s20 = smov 11  }
   0xa   :  { %s4369_s14 = sld [smem:[%s5036_s0 + %s4262_s10]]   ;;  %s4265_s26 = smov 12  }
   0xb   :  { %s4374_s19 = sld [smem:[%s5036_s0 + %s4263_s15]]   ;;  %s4266_s1 = smov 13  }
   0xc   :  { %s4379_s24 = sld [smem:[%s5036_s0 + %s4264_s20]]   ;;  %s4267_s7 = smov 14  }
   0xd   :  { %s4384_s30 = sld [smem:[%s5036_s0 + %s4265_s26]]   ;;  %s4268_s15 = smov 15  }
   0xe   :  { %s4389_s6 = sld [smem:[%s5036_s0 + %s4266_s1]]   ;;  %s4269_s22 = smov 16  }
   0xf   :  { %s4394_s12 = sld [smem:[%s5036_s0 + %s4267_s7]]   ;;  %s4270_s28 = smov 17  }
  0x10   :  { %s4399_s20 = sld [smem:[%s5036_s0 + %s4268_s15]]   ;;  %s4271_s7 = smov 18  }
  0x11   :  { %5045 = sst [smem:[#allocation12_spill]] %s4374_s19  ;;  %s4272_s15 = smov 19  }
  0x12   :  { %5046 = sst [smem:[#allocation13_spill]] %s4379_s24  ;;  %s4298_s1 = smov 45  }
  0x13   :  { %5047 = sst [smem:[#allocation14_spill]] %s4384_s30  ;;  %s4299_s10 = smov 46  }
  0x14   :  { %5048 = sst [smem:[#allocation15_spill]] %s4389_s6  ;;  %s4300_s16 = smov 47  }
  0x15   :  { %5049 = sst [smem:[#allocation16_spill]] %s4394_s12  ;;  %s4301_s23 = smov 48  }
  0x16   :  { %5050 = sst [smem:[#allocation17_spill]] %s4399_s20 }
  0x17   :  { %s4404_s27 = sld [smem:[%s5036_s0 + %s4269_s22]]   ;;  %s4273_s22 = smov 20  }
  0x18   :  { %s4409_s4 = sld [smem:[%s5036_s0 + %s4270_s28]]   ;;  %s4274_s28 = smov 21  }
  0x19   :  { %s4414_s12 = sld [smem:[%s5036_s0 + %s4271_s7]]   ;;  %s4275_s7 = smov 22  }
  0x1a   :  { %s4419_s20 = sld [smem:[%s5036_s0 + %s4272_s15]]   ;;  %s4276_s15 = smov 23  }
  0x1b   :  { %s4424_s6 = sld [smem:[%s5036_s0 + %s4273_s22]]   ;;  %s4277_s22 = smov 24  }
  0x1c   :  { %s4562_s19 = sld [smem:[%s5036_s0 + %s4301_s23]]  }
  0x1d   :  { %5051 = sst [smem:[#allocation18_spill]] %s4404_s27 }
  0x1e   :  { %5052 = sst [smem:[#allocation19_spill]] %s4409_s4 }
  0x1f   :  { %5053 = sst [smem:[#allocation20_spill]] %s4414_s12 }
  0x20   :  { %5054 = sst [smem:[#allocation21_spill]] %s4419_s20 }
  0x21   :  { %s4429_s4 = sld [smem:[%s5036_s0 + %s4274_s28]]   ;;  %s4278_s28 = smov 25  }
  0x22   :  { %s4434_s12 = sld [smem:[%s5036_s0 + %s4275_s7]]   ;;  %s4279_s7 = smov 26  }
  0x23   :  { %s4439_s20 = sld [smem:[%s5036_s0 + %s4276_s15]]   ;;  %s4280_s15 = smov 27  }
  0x24   :  { %s4444_s27 = sld [smem:[%s5036_s0 + %s4277_s22]]   ;;  %s4281_s22 = smov 28  }
  0x25   :  { %s4449_s30 = sld [smem:[%s5036_s0 + %s4278_s28]]   ;;  %s4282_s28 = smov 29  }
  0x27   :  { %5055 = sst [smem:[#allocation22_spill]] %s4429_s4 }
  0x28   :  { %5056 = sst [smem:[#allocation23_spill]] %s4434_s12 }
  0x29   :  { %s4454_s12 = sld [smem:[%s5036_s0 + %s4279_s7]]   ;;  %s4283_s7 = smov 30  }
  0x2a   :  { %5057 = sst [smem:[#allocation24_spill]] %s4444_s27 }
  0x2b   :  { %5058 = sst [smem:[#allocation25_spill]] %s4449_s30 }
  0x2c   :  { %s4459_s4 = sld [smem:[%s5036_s0 + %s4280_s15]]   ;;  %s4284_s15 = smov 31  }
  0x2d   :  { %s4464_s27 = sld [smem:[%s5036_s0 + %s4281_s22]]   ;;  %s4285_s22 = smov 32  }
  0x2e   :  { %s4469_s30 = sld [smem:[%s5036_s0 + %s4282_s28]]   ;;  %s4286_s28 = smov 33  }
  0x2f   :  { %s4474_s24 = sld [smem:[%s5036_s0 + %s4283_s7]]   ;;  %s4287_s7 = smov 34  }
  0x32   :  { %5059 = sst [smem:[#allocation26_spill]] %s4459_s4 }
  0x33   :  { %5060 = sst [smem:[#allocation27_spill]] %s4464_s27 }
  0x34   :  { %5061 = sst [smem:[#allocation28_spill]] %s4469_s30 }
  0x35   :  { %5062 = sst [smem:[#allocation29_spill]] %s4474_s24 }
  0x36   :  { %s4479_s4 = sld [smem:[%s5036_s0 + %s4284_s15]]   ;;  %s4288_s15 = smov 35  }
  0x37   :  { %s4484_s27 = sld [smem:[%s5036_s0 + %s4285_s22]]   ;;  %s4289_s22 = smov 36  }
  0x38   :  { %s4489_s30 = sld [smem:[%s5036_s0 + %s4286_s28]]   ;;  %s4290_s28 = smov 37  }
  0x39   :  { %s4494_s24 = sld [smem:[%s5036_s0 + %s4287_s7]]   ;;  %s4291_s7 = smov 38  }
  0x3c   :  { %5063 = sst [smem:[#allocation30_spill]] %s4479_s4 }
  0x3d   :  { %5064 = sst [smem:[#allocation31_spill]] %s4484_s27 }
  0x3e   :  { %5065 = sst [smem:[#allocation32_spill]] %s4489_s30 }
  0x3f   :  { %5066 = sst [smem:[#allocation33_spill]] %s4494_s24 }
  0x40   :  { %s4499_s4 = sld [smem:[%s5036_s0 + %s4288_s15]]   ;;  %s4292_s15 = smov 39  }
  0x41   :  { %s4504_s27 = sld [smem:[%s5036_s0 + %s4289_s22]]   ;;  %s4293_s22 = smov 40  }
  0x42   :  { %s4509_s30 = sld [smem:[%s5036_s0 + %s4290_s28]]   ;;  %s4294_s28 = smov 41  }
  0x43   :  { %s4514_s24 = sld [smem:[%s5036_s0 + %s4291_s7]]   ;;  %s4295_s7 = smov 42  }
  0x46   :  { %5067 = sst [smem:[#allocation34_spill]] %s4499_s4 }
  0x47   :  { %5068 = sst [smem:[#allocation35_spill]] %s4504_s27 }
  0x48   :  { %5069 = sst [smem:[#allocation36_spill]] %s4509_s30 }
  0x49   :  { %5070 = sst [smem:[#allocation37_spill]] %s4514_s24 }
  0x4a   :  { %s4519_s4 = sld [smem:[%s5036_s0 + %s4292_s15]]   ;;  %s4296_s15 = smov 43  }
  0x4b   :  { %s4524_s27 = sld [smem:[%s5036_s0 + %s4293_s22]]   ;;  %s4297_s22 = smov 44  }
  0x4c   :  { %s4529_s30 = sld [smem:[%s5036_s0 + %s4294_s28]]  }
  0x4d   :  { %s4534_s24 = sld [smem:[%s5036_s0 + %s4295_s7]]  }
  0x50   :  { %5071 = sst [smem:[#allocation38_spill]] %s4519_s4 }
  0x51   :  { %5072 = sst [smem:[#allocation39_spill]] %s4524_s27 }
  0x52   :  { %5073 = sst [smem:[#allocation40_spill]] %s4529_s30 }
  0x53   :  { %5074 = sst [smem:[#allocation41_spill]] %s4534_s24 }
  0x54   :  { %s4539_s4 = sld [smem:[%s5036_s0 + %s4296_s15]]  }
  0x55   :  { %s3402_s27 = sld [smem:[%s5036_s0 + %s4297_s22]]  }
  0x56   :  { %s4547_s30 = sld [smem:[%s5036_s0 + %s4298_s1]]  }
  0x57   :  { %s4552_s24 = sld [smem:[%s5036_s0 + %s4299_s10]]  }
  0x5a   :  { %5075 = sst [smem:[#allocation42_spill]] %s4539_s4 }
  0x5b   :  { %s4557_s4 = sld [smem:[%s5036_s0 + %s4300_s16]]  }
  0x5c   :  { %103 = vsyncpa [#allocation4], 0 }
  0x5d   :  { %104 = vsyncpa [#allocation3], 0 }
  0x5e   :  { %105 = vsyncpa [#allocation7], 0  ;;  %s200_s1 = sshll.u32 %s3402_s27, 4  ;;  %s201_s1 = int_to_ptr.vmem [resolvable:$true] %s200_s1 }
  0x5f   :  { %s4176_s28 = scalar_lea.vmem %s201_s1, 16  ;;  %p4181_p1 = scmp.lt.s32.totalorder %s201_s1, %s201_s1 }
  0x60   :  { %p4177_p0 = scmp.ne.s32.totalorder %s201_s1, %s4176_s28  ;;  %p4182_p2 = scmp.lt.s32.totalorder %s4176_s28, %s4176_s28 }
  0x62   :  { %p4183_p3 = por %p4182_p2, %p4181_p1 }
  0x64   :  { %p4184_p4 = pnand %p4183_p3, %p4177_p0 }
  0x66   :  { %4187 = shalt.err (!%p4184_p4)
}
  0x67   :  { %s4302_s2 = smov [#allocation2]  }
  0x68   :  { %203 = dma.vmem_to_smem %s201_s1, 16, %s4302_s2, [#allocation4]  }
  0x69   :  { %4248 = dma.done.wait [#allocation4], 16  }
  0x6a   :  { %4249 = vsyncadd [#allocation4], 4294967280 }
  0x6b   :  { %207 = sfence }
  0x6c   :  { %v4016_v0 = vld [vmem:[%s4344_s21 + $0x38] sm:$0xff]   ;;  %v4303_v1 = vmov 0.0   ;;  %v4018_v3 = vld [vmem:[%s4344_s21 + $0x30] sm:$0xff]   ;;  %vm4304_vm0 = vmmov 0   ;;  %v4020_v5 = vld [vmem:[%s4344_s21 + $0x28] sm:$0xff]   ;;  %vm685_vm1 = vcmask 130048  }
  0x6d   :  { %3632 = vmatprep.subr.bf16.mxu0 %v4303_v1  ;;  %3652 = vmatprep.subr.bf16.mxu1 %v4303_v1  ;;  %v4017_v2 = vld [vmem:[%s4349_s25 + $0x38] sm:$0xff]   ;;  %v4019_v4 = vld [vmem:[%s4349_s25 + $0x30] sm:$0xff]   ;;  %v4021_v6 = vld [vmem:[%s4349_s25 + $0x28] sm:$0xff]   ;;  %s4305_s0 = smov 104   ;;  %vm796_vm2 = vcmask 64512   ;;  %vm872_vm3 = vcmask 1044480  }
  0x6e   :  { %3633 = vmatpush3.bf16.msra.mxu0 %v4016_v0  ;;  %3648 = vmatprep.mubr.msk.bf16.mxu0 %vm4304_vm0, %v4303_v1  ;;  %v4022_v7 = vld [vmem:[%s4344_s21 + $0x20] sm:$0xff]   ;;  %v4024_v9 = vld [vmem:[%s4344_s21 + $0x18] sm:$0xff]   ;;  %v4026_v11 = vld [vmem:[%s4344_s21 + $0x10] sm:$0xff]   ;;  %vm844_vm4 = vcmask 80896   ;;  %vm848_vm5 = vcmask 76800   ;;  %vm1216_vm6 = vcmask 60416  }
  0x6f   :  { %3653 = vmatpush3.bf16.msra.mxu1 %v4017_v2  ;;  %3634 = vmatprep.subr.bf16.mxu0 %v4303_v1  ;;  %v4023_v8 = vld [vmem:[%s4349_s25 + $0x20] sm:$0xff]   ;;  %v4025_v10 = vld [vmem:[%s4349_s25 + $0x18] sm:$0xff]   ;;  %v4027_v12 = vld [vmem:[%s4349_s25 + $0x10] sm:$0xff]   ;;  %vm1240_vm7 = vcmask 1043456   ;;  %s5082_s27 = sld [smem:[#allocation35_spill]]  ;;  %vm1584_vm8 = vcmask 44032  }
  0x70   :  { %3654 = vmatprep.subr.bf16.mxu1 %v4303_v1  ;;  %3668 = vmatprep.mubr.msk.bf16.mxu1 %vm4304_vm0, %v4303_v1  ;;  %v4028_v13 = vld [vmem:[%s4344_s21 + $0x8] sm:$0xff]   ;;  %v4030_v15 = vld [vmem:[%s4344_s21] sm:$0xff]   ;;  %v4034_v21 = vld [vmem:[%s4354_s29 + $0x38] sm:$0xff]   ;;  %s4306_s21 = smov 112   ;;  %vm1580_vm9 = vcmask 48128   ;;  %s5083_s10 = sld [smem:[#allocation29_spill]] }
  0x71   :  { %v4029_v14 = vld [vmem:[%s4349_s25 + $0x8] sm:$0xff]   ;;  %v209_v16 = vld [vmem:[%s4324_s5] sm:$0xf]  ;;  %v210_v18 = vld [vmem:[%s4324_s5 + $0x4] sm:$0x3]  ;;  %s5084_s7 = sld [smem:[#allocation37_spill]] }
  0x72   :  { %3635 = vmatpush3.bf16.msra.mxu0 %v4018_v3  ;;  %v4031_v17 = vld [vmem:[%s4349_s25] sm:$0xff]   ;;  %v3408_v22 = vcombine.low %v209_v16, %v210_v18  ;;  %v4035_v24 = vld [vmem:[%s4354_s29 + $0x30] sm:$0xff]   ;;  %v4036_v25 = vld [vmem:[%s4354_s29 + $0x28] sm:$0xff]   ;;  %s4307_s25 = smov 96   ;;  %s5085_s11 = sld [smem:[#allocation40_spill]]  ;;  %vm1608_vm10 = vcmask 1042432  }
  0x73   :  { %3655 = vmatpush3.bf16.msra.mxu1 %v4019_v4  ;;  %3636 = vmatprep.subr.bf16.mxu0 %v4303_v1  ;;  %v211_v19 = vld [vmem:[%s4329_s9] sm:$0xf]  ;;  %v212_v20 = vld [vmem:[%s4329_s9 + $0x4] sm:$0x1]  ;;  %v4038_v27 = vld [vmem:[%s4354_s29 + $0x18] sm:$0xff]   ;;  %s5086_s16 = sld [smem:[#allocation41_spill]] }
  0x74   :  { %3656 = vmatprep.subr.bf16.mxu1 %v4303_v1  ;;  %v3418_v23 = vcombine.low %v211_v19, %v212_v20  ;;  %v4037_v26 = vld [vmem:[%s4354_s29 + $0x20] sm:$0xff]   ;;  %v4039_v28 = vld [vmem:[%s4354_s29 + $0x10] sm:$0xff]   ;;  %v4040_v29 = vld [vmem:[%s4354_s29 + $0x8] sm:$0xff]   ;;  %s5087_s15 = sld [smem:[#allocation22_spill]]  ;;  %s4310_s18 = smov 8   ;;  %vm2098_vm13 = vcmask 97280  }
  0x75   :  { %v4041_v30 = vld [vmem:[%s4354_s29] sm:$0xff]   ;;  %v4043_v33 = vld [vmem:[%s4359_s3 + $0x38] sm:$0xff]   ;;  %v4044_v34 = vld [vmem:[%s4359_s3 + $0x30] sm:$0xff]   ;;  %s4308_s29 = smov 120   ;;  %s5088_s23 = sld [smem:[#allocation14_spill]]  ;;  %vm2102_vm14 = vcmask 91136  }
  0x76   :  { %3637 = vmatpush3.bf16.msra.mxu0 %v4020_v5  ;;  %v213_v31 = vld [vmem:[%s4334_s13] sm:$0xf]  ;;  %v4045_v35 = vld [vmem:[%s4359_s3 + $0x28] sm:$0xff]   ;;  %v4047_v37 = vld [vmem:[%s4359_s3 + $0x18] sm:$0xff]   ;;  %s5089_s22 = sld [smem:[#allocation26_spill]]  ;;  %vm2126_vm15 = vcmask 1045504  }
  0x77   :  { %3657 = vmatpush3.bf16.msra.mxu1 %v4021_v6  ;;  %3638 = vmatprep.subr.bf16.mxu0 %v4303_v1  ;;  %v4042_v32 = vld [vmem:[%s4424_s6] sm:$0xff]   ;;  %v4048_v38 = vld [vmem:[%s4359_s3 + $0x10] sm:$0xff]   ;;  %v4049_v39 = vld [vmem:[%s4359_s3 + $0x8] sm:$0xff]   ;;  %s5079_s6 = sld [smem:[#allocation24_spill]] }
  0x78   :  { %3658 = vmatprep.subr.bf16.mxu1 %v4303_v1  ;;  %v4046_v36 = vld [vmem:[%s4359_s3 + $0x20] sm:$0xff]   ;;  %s5090_s26 = sld [smem:[#allocation32_spill]] }
  0x79   :  { %v4050_v40 = vld [vmem:[%s4359_s3] sm:$0xff]   ;;  %s5076_s3 = sld [smem:[#allocation12_spill]] }
  0x7a   :  { %3639 = vmatpush3.bf16.msra.mxu0 %v4022_v7  ;;  %v214_v41 = vld [vmem:[%s4339_s17] sm:$0x7]  ;;  %s5091_s1 = sld [smem:[#allocation18_spill]] }
  0x7b   :  { %3659 = vmatpush3.bf16.msra.mxu1 %v4023_v8  ;;  %3640 = vmatprep.subr.bf16.mxu0 %v4303_v1  ;;  %v4051_v42 = vld [vmem:[%s4454_s12] sm:$0xff]   ;;  %s5080_s12 = sld [smem:[#allocation34_spill]] }
  0x7c   :  { %3660 = vmatprep.subr.bf16.mxu1 %v4303_v1  ;;  %v3407_v43 = vld [vmem:[%s4364_s8] ss:$0 sm:$0xff]  ;;  %s5077_s8 = sld [smem:[#allocation31_spill]] }
  0x7d   :  { %v3417_v48 = vld [vmem:[%s4369_s14] ss:$0 sm:$0xff]  ;;  %s5078_s14 = sld [smem:[#allocation13_spill]] }
  0x7e   :  { %3641 = vmatpush3.bf16.msra.mxu0 %v4024_v9  ;;  %s1913_s28 = sld [smem:[#allocation2]] }
  0x7f   :  { %3661 = vmatpush3.bf16.msra.mxu1 %v4025_v10  ;;  %3642 = vmatprep.subr.bf16.mxu0 %v4303_v1 }
  0x80   :  { %3662 = vmatprep.subr.bf16.mxu1 %v4303_v1 }
  0x82   :  { %3643 = vmatpush3.bf16.msra.mxu0 %v4026_v11 }
  0x83   :  { %3663 = vmatpush3.bf16.msra.mxu1 %v4027_v12  ;;  %3644 = vmatprep.subr.bf16.mxu0 %v4303_v1 }
  0x84   :  { %3664 = vmatprep.subr.bf16.mxu1 %v4303_v1  ;;  %s1917_s2 = ssub.f32 1.0, %s1913_s28 }
  0x86   :  { %3645 = vmatpush3.bf16.msra.mxu0 %v4028_v13 }
  0x87   :  { %3665 = vmatpush3.bf16.msra.mxu1 %v4029_v14  ;;  %3646 = vmatprep.subr.bf16.mxu0 %v4303_v1 }
  0x88   :  { %3666 = vmatprep.subr.bf16.mxu1 %v4303_v1 }
  0x8a   :  { %3647 = vmatpush3.bf16.msra.mxu0 %v4030_v15 }
  0x8b   :  { %3667 = vmatpush3.bf16.msra.mxu1 %v4031_v17  ;;  %3672 = vmatprep.subr.bf16.mxu0 %v4303_v1 }
  0x8c   :  { %3692 = vmatprep.subr.bf16.mxu1 %v4303_v1 }
  0x8d   :  { %3649 = vmatmul.mubr.bf16.vlgmr.msra.gmra.mxu0 %v3408_v22  ;;  %v3427_v22 = vld [vmem:[%s5076_s3] ss:$0 sm:$0xff]  ;;  %s5094_s3 = sld [smem:[#allocation15_spill]] }
  0x8e   :  { %3669 = vmatmul.mubr.bf16.vlgmr.msra.gmra.mxu1 %v3418_v23  ;;  %3673 = vmatpush3.bf16.msra.mxu0 %v4034_v21  ;;  %v4052_v21 = vld [vmem:[%s4439_s20] sm:$0xff]   ;;  %s5081_s20 = sld [smem:[#allocation28_spill]] }
  0x8f   :  { %3674 = vmatprep.subr.bf16.mxu0 %v4303_v1  ;;  %3688 = vmatprep.mubr.msk.bf16.mxu0 %vm4304_vm0, %v4303_v1 }
  0x90   :  { %3708 = vmatprep.mubr.msk.bf16.mxu1 %vm4304_vm0, %v4303_v1  ;;  %3693 = vmatpush3.bf16.msra.mxu1 %v4043_v33 }
  0x91   :  { %3694 = vmatprep.subr.bf16.mxu1 %v4303_v1 }
  0x92   :  { %3675 = vmatpush3.bf16.msra.mxu0 %v4035_v24 }
  0x93   :  { %3676 = vmatprep.subr.bf16.mxu0 %v4303_v1 }
  0x94   :  { %3695 = vmatpush3.bf16.msra.mxu1 %v4044_v34 }
  0x95   :  { %3696 = vmatprep.subr.bf16.mxu1 %v4303_v1 }
  0x96   :  { %3677 = vmatpush3.bf16.msra.mxu0 %v4036_v25  ;;  %v787_v25 = vld [vmem:[%s5077_s8] sm:$0xf] }
  0x97   :  { %3678 = vmatprep.subr.bf16.mxu0 %v4303_v1 }
  0x98   :  { %3697 = vmatpush3.bf16.msra.mxu1 %v4045_v35 }
  0x99   :  { %3698 = vmatprep.subr.bf16.mxu1 %v4303_v1 }
  0x9a   :  { %3679 = vmatpush3.bf16.msra.mxu0 %v4037_v26  ;;  %v789_v26 = vunpack.c.l.bf16 %v787_v25 }
  0x9b   :  { %3680 = vmatprep.subr.bf16.mxu0 %v4303_v1 }
  0x9c   :  { %3699 = vmatpush3.bf16.msra.mxu1 %v4046_v36 }
  0x9d   :  { %3700 = vmatprep.subr.bf16.mxu1 %v4303_v1 }
  0x9e   :  { %3681 = vmatpush3.bf16.msra.mxu0 %v4038_v27  ;;  %v788_v27 = vld [vmem:[%s5077_s8 + $0x4] sm:$0x3]  ;;  %s5095_s8 = sld [smem:[#allocation27_spill]] }
  0x9f   :  { %3682 = vmatprep.subr.bf16.mxu0 %v4303_v1 }
  0xa0   :  { %3701 = vmatpush3.bf16.msra.mxu1 %v4047_v37 }
  0xa1   :  { %3702 = vmatprep.subr.bf16.mxu1 %v4303_v1 }
  0xa2   :  { %3683 = vmatpush3.bf16.msra.mxu0 %v4039_v28 }
  0xa3   :  { %3684 = vmatprep.subr.bf16.mxu0 %v4303_v1 }
  0xa4   :  { %3703 = vmatpush3.bf16.msra.mxu1 %v4048_v38 }
  0xa5   :  { %3704 = vmatprep.subr.bf16.mxu1 %v4303_v1 }
  0xa6   :  { %3685 = vmatpush3.bf16.msra.mxu0 %v4040_v29 }
  0xa7   :  { %3686 = vmatprep.subr.bf16.mxu0 %v4303_v1 }
  0xa8   :  { %3705 = vmatpush3.bf16.msra.mxu1 %v4049_v39 }
  0xa9   :  { %3706 = vmatprep.subr.bf16.mxu1 %v4303_v1 }
  0xaa   :  { %3687 = vmatpush3.bf16.msra.mxu0 %v4041_v30  ;;  %v790_v30 = vunpack.c.l.bf16 %v788_v27  ;;  %v4743_v27 = vld [vmem:[%s5080_s12] sm:$0xf] }
  0xab   :  { %3712 = vmatprep.subr.bf16.mxu0 %v4303_v1 }
  0xac   :  { %3707 = vmatpush3.bf16.msra.mxu1 %v4050_v40 }
  0xad   :  { %3689 = vmatmul.mubr.bf16.vlgmr.msra.gmra.mxu0 %v213_v31  ;;  %3718 = vmatprep.subr.bf16.mxu1 %v4303_v1 }
  0xae   :  { %3714 = vmatprep.mubr.msk.bf16.mxu0 %vm4304_vm0, %v4303_v1  ;;  %3713 = vmatpush3.bf16.msra.mxu0 %v4042_v32 }
  0xaf   :  { %3724 = vmatprep.subr.bf16.mxu0 %v4303_v1  ;;  %3709 = vmatmul.mubr.bf16.vlgmr.msra.gmra.mxu1 %v214_v41 }
  0xb0   :  { %3720 = vmatprep.mubr.msk.bf16.mxu1 %vm4304_vm0, %v4303_v1  ;;  %3719 = vmatpush3.bf16.msra.mxu1 %v4051_v42 }
  0xb1   :  { %3730 = vmatprep.subr.bf16.mxu1 %v4303_v1 }
 0x14d   :  { %v326_v44 = vpop.f32.mrf.mxu0 }
 0x14e   :  { %v445_v45 = vpop.f32.mrf.mxu1  ;;  %v327_v47 = vadd.f32 %v3407_v43, %v326_v44 }
 0x14f   :  { %v3650_v46 = vpop.f32.mrf.mxu0  ;;  %v446_v53 = vadd.f32 %v3417_v48, %v445_v45 }
 0x150   :  { %v3670_v49 = vpop.f32.mrf.mxu1 }
 0x151   :  { %v329_v50 = vpop.f32.mrf.mxu0 }
 0x152   :  { %v330_v51 = vadd.f32 %v3407_v43, %v329_v50  ;;  %v448_v52 = vpop.f32.mrf.mxu1 }
 0x153   :  { %v449_v54 = vadd.f32 %v3417_v48, %v448_v52  ;;  %v3651_v55 = vpop.f32.mrf.mxu0 }
 0x154   :  { %v4654_v56 = vpack.c.bf16 %v330_v51, %v327_v47  ;;  %v3671_v57 = vpop.f32.mrf.mxu1 }
 0x155   :  { %v4656_v58 = vpack.c.bf16 %v449_v54, %v446_v53 }
 0x156   :  { %929 = vrot.lane.b32.xlu1 %v4654_v56, %s4305_s0  ;;  %794 = vrot.lane.b32.xlu0 %v4654_v56, %s4306_s21 }
 0x157   :  { %3715 = vmatmul.mubr.msk.bf16.vlgmr.msra.gmra.mxu0 %vm685_vm1, %v4656_v58 }
 0x158   :  { %3726 = vmatprep.mubr.msk.bf16.mxu0 %vm4304_vm0, %v4303_v1 }
 0x15a   :  { %734 = vrot.lane.b32.xlu1 %v4656_v58, %s4307_s25 }
 0x16d   :  { %v558_v59 = vpop.f32.mrf.mxu0 }
 0x16e   :  { %v559_v23 = vadd.f32 %v3427_v22, %v558_v59 }
 0x16f   :  { %v3690_v60 = vpop.f32.mrf.mxu0  ;;  %v4668_v63 = vpop.f32.mrf.mxu1 }
 0x170   :  { %v4698_v24 = vpack.c.bf16 %v559_v23, %v559_v23 }
 0x171   :  { %v561_v61 = vpop.f32.mrf.mxu0  ;;  %v3710_v0 = vpop.f32.mrf.mxu1 }
 0x173   :  { %v3691_v62 = vpop.f32.mrf.mxu0  ;;  %v673_v2 = vpop.f32.mrf.mxu1 }
 0x175   :  { %v3711_v3 = vpop.f32.mrf.mxu1 }
 0x176   :  { %v3436_v3 = vld [vmem:[%s5078_s14] ss:$0 sm:$0xff]  ;;  %s5096_s14 = sld [smem:[#allocation33_spill]] }
 0x1c8   :  { %v4670_v4 = vpop.permute.xlu1 %929  ;;  %v4678_v12 = vpop.permute.xlu0 %794 }
 0x1cc   :  { %v735_v5 = vpop.permute.xlu1 %734 }
 0x1cd   :  { %3721 = vmatmul.mubr.msk.bf16.vlgmr.msra.gmra.mxu1 %vm685_vm1, %v735_v5  ;;  %v4053_v5 = vld [vmem:[%s5079_s6] sm:$0xff]   ;;  %s5097_s6 = sld [smem:[#allocation39_spill]] }
 0x1ce   :  { %3732 = vmatprep.mubr.msk.bf16.mxu1 %vm4304_vm0, %v4303_v1 }
 0x217   :  { %v723_v6 = vpop.f32.mrf.mxu0 }
 0x219   :  { %v3716_v7 = vpop.f32.mrf.mxu0 }
 0x21b   :  { %v726_v8 = vpop.f32.mrf.mxu0 }
 0x21c   :  { %v730_v9 = vpack.c.bf16 %v726_v8, %v723_v6  ;;  %v671_v6 = vadd.f32 %v3436_v3, %v4668_v63 }
 0x21d   :  { %v3717_v10 = vpop.f32.mrf.mxu0 }
 0x21e   :  { %v801_v11 = vsel %vm796_vm2, %v730_v9, 0  ;;  %932 = vrot.lane.b32.xlu0 %v730_v9, %s4308_s29  ;;  %v4729_v7 = vpack.c.bf16 %v671_v6, %v671_v6 }
 0x21f   :  { %3725 = vmatpush3.bf16.xpose.msra.mxu0 %v801_v11 }
 0x220   :  { %3736 = vmatprep.subr.bf16.mxu0 %v4303_v1 }
 0x226   :  { %3727 = vmatmul.mubr.msk.bf16.vlgmr.msra.gmra.mxu0 %vm796_vm2, %v4678_v12 }
 0x227   :  { %3738 = vmatprep.mubr.msk.bf16.mxu0 %vm4304_vm0, %v4303_v1 }
 0x28d   :  { %v779_v13 = vpop.f32.mrf.mxu1 }
 0x28f   :  { %v3722_v14 = vpop.f32.mrf.mxu1 }
 0x290   :  { %v933_v15 = vpop.permute.xlu0 %932 }
 0x291   :  { %v938_v16 = vsel %vm796_vm2, %v933_v15, 0  ;;  %v782_v17 = vpop.f32.mrf.mxu1 }
 0x292   :  { %v4685_v18 = vpack.c.bf16 %v782_v17, %v779_v13  ;;  %3737 = vmatpush3.bf16.xpose.msra.mxu0 %v938_v16 }
 0x293   :  { %v3723_v19 = vpop.f32.mrf.mxu1  ;;  %3748 = vmatprep.subr.bf16.mxu0 %v4303_v1 }
 0x294   :  { %v874_v20 = vsel %vm872_vm3, %v4685_v18, 0 }
 0x295   :  { %3731 = vmatpush3.bf16.msra.mxu1 %v874_v20 }
 0x296   :  { %3742 = vmatprep.subr.bf16.mxu1 %v4303_v1 }
 0x299   :  { %3739 = vmatmul.mubr.msk.bf16.vlgmr.msra.gmra.mxu0 %vm796_vm2, %v4670_v4 }
 0x29a   :  { %3749 = vmatpush3.bf16.msra.mxu0 %v4052_v21  ;;  %3750 = vmatprep.mubr.msk.bf16.mxu0 %vm4304_vm0, %v4303_v1 }
 0x29b   :  { %3760 = vmatprep.subr.bf16.mxu0 %v4303_v1 }
 0x2a1   :  { %3751 = vmatmul.mubr.msk.bf16.vlgmr.msra.gmra.mxu0 %vm685_vm1, %v4698_v24 }
 0x2a2   :  { %3762 = vmatprep.mubr.msk.bf16.mxu0 %vm4304_vm0, %v4303_v1 }
 0x2e6   :  { %v837_v28 = vpop.f32.mrf.mxu0 }
 0x2e7   :  { %v838_v29 = vadd.f32 %v837_v28, %v789_v26  ;;  %v1164_v28 = vld [vmem:[%s5080_s12 + $0x4] sm:$0x3]  ;;  %s5098_s12 = sld [smem:[#allocation19_spill]] }
 0x2e8   :  { %v3728_v31 = vpop.f32.mrf.mxu0 }
 0x2e9   :  { %v845_v32 = vsel %vm844_vm4, %v838_v29, -inf }
 0x2ea   :  { %846 = vmax.xlane.f32.xlu0 %v845_v32  ;;  %v840_v33 = vpop.f32.mrf.mxu0 }
 0x2eb   :  { %v841_v34 = vadd.f32 %v840_v33, %v790_v30 }
 0x2ec   :  { %v3729_v35 = vpop.f32.mrf.mxu0 }
 0x2ed   :  { %v849_v36 = vsel %vm848_vm5, %v841_v34, -inf }
 0x2ee   :  { %850 = vmax.xlane.f32.xlu1 %v849_v36 }
 0x359   :  { %v974_v37 = vpop.f32.mrf.mxu0 }
 0x35a   :  { %v975_v38 = vadd.f32 %v974_v37, %v789_v26 }
 0x35b   :  { %v3740_v39 = vpop.f32.mrf.mxu0 }
 0x35c   :  { %v981_v40 = vsel %vm844_vm4, %v975_v38, -inf }
 0x35d   :  { %982 = vmax.xlane.f32.xlu1 %v981_v40  ;;  %v977_v41 = vpop.f32.mrf.mxu0 }
 0x35e   :  { %v978_v42 = vadd.f32 %v977_v41, %v790_v30  ;;  %v1166_v30 = vunpack.c.l.bf16 %v1164_v28 }
 0x35f   :  { %v3741_v43 = vpop.f32.mrf.mxu0 }
 0x360   :  { %v984_v44 = vsel %vm848_vm5, %v978_v42, -inf }
 0x361   :  { %985 = vmax.xlane.f32.xlu1 %v984_v44  ;;  %v1101_v45 = vpop.f32.mrf.mxu0 }
 0x362   :  { %v1107_v46 = vpack.c.bf16 %v1101_v45, %v1101_v45 }
 0x363   :  { %v3752_v47 = vpop.f32.mrf.mxu0 }
 0x364   :  { %v1170_v48 = vsel %vm796_vm2, %v1107_v46, 0  ;;  %1300 = vrot.lane.b32.xlu0 %v1107_v46, %s4308_s29  ;;  %v4054_v46 = vld [vmem:[%s5081_s20] sm:$0xff]   ;;  %s3485_s20 = sld [smem:[#allocation2 + $0x1]] }
 0x365   :  { %v1104_v49 = vpop.f32.mrf.mxu0  ;;  %3761 = vmatpush3.bf16.xpose.msra.mxu0 %v1170_v48 }
 0x366   :  { %3772 = vmatprep.subr.bf16.mxu0 %v4303_v1 }
 0x367   :  { %v3753_v50 = vpop.f32.mrf.mxu0 }
 0x36c   :  { %3763 = vmatmul.mubr.msk.bf16.vlgmr.msra.gmra.mxu0 %vm796_vm2, %v4678_v12 }
 0x36d   :  { %3774 = vmatprep.mubr.msk.bf16.mxu0 %vm4304_vm0, %v4303_v1 }
 0x373   :  { %v847_v51 = vpop.xlane.xlu0 %846 }
 0x374   :  { %v852_v52 = vsub.f32 %v838_v29, %v847_v51 }
 0x376   :  { %v854_v53 = vmul.f32 1.442695, %v852_v52 }
 0x377   :  { %v851_v54 = vpop.xlane.xlu1 %850 }
 0x378   :  { %4066 = vpow2.f32 %v854_v53  ;;  %v853_v55 = vsub.f32 %v841_v34, %v851_v54 }
 0x37a   :  { %v856_v57 = vmul.f32 1.442695, %v853_v55 }
 0x37c   :  { %4068 = vpow2.f32 %v856_v57 }
 0x385   :  { %v4067_v59 = vpop.eup %4066 }
 0x386   :  { %v858_v60 = vsel %vm844_vm4, %v4067_v59, 0.0 }
 0x387   :  { %859 = vadd.xlane.f32.xlu1 %v858_v60 }
 0x389   :  { %v4069_v61 = vpop.eup %4068 }
 0x38a   :  { %v861_v62 = vsel %vm848_vm5, %v4069_v61, 0.0 }
 0x38b   :  { %862 = vadd.xlane.f32.xlu1 %v861_v62 }
 0x3d6   :  { %v1301_v0 = vpop.permute.xlu0 %1300 }
 0x3d7   :  { %v1303_v2 = vsel %vm796_vm2, %v1301_v0, 0 }
 0x3d8   :  { %3773 = vmatpush3.bf16.xpose.msra.mxu0 %v1303_v2 }
 0x3d9   :  { %3784 = vmatprep.subr.bf16.mxu0 %v4303_v1 }
 0x3df   :  { %3775 = vmatmul.mubr.msk.bf16.vlgmr.msra.gmra.mxu0 %vm796_vm2, %v4670_v4 }
 0x3e0   :  { %3785 = vmatpush3.bf16.msra.mxu0 %v4053_v5  ;;  %3786 = vmatprep.mubr.msk.bf16.mxu0 %vm4304_vm0, %v4303_v1 }
 0x3e1   :  { %3796 = vmatprep.subr.bf16.mxu0 %v4303_v1 }
 0x3e6   :  { %v983_v8 = vpop.xlane.xlu1 %982 }
 0x3e7   :  { %v987_v9 = vsub.f32 %v975_v38, %v983_v8  ;;  %3787 = vmatmul.mubr.msk.bf16.vlgmr.msra.gmra.mxu0 %vm685_vm1, %v4729_v7 }
 0x3e8   :  { %3798 = vmatprep.mubr.msk.bf16.mxu0 %vm4304_vm0, %v4303_v1 }
 0x3e9   :  { %v989_v63 = vmul.f32 1.442695, %v987_v9 }
 0x3ea   :  { %v986_v10 = vpop.xlane.xlu1 %985 }
 0x3eb   :  { %4070 = vpow2.f32 %v989_v63  ;;  %v988_v11 = vsub.f32 %v978_v42, %v986_v10 }
 0x3ed   :  { %v991_v13 = vmul.f32 1.442695, %v988_v11 }
 0x3ef   :  { %4072 = vpow2.f32 %v991_v13 }
 0x3f8   :  { %v4071_v14 = vpop.eup %4070 }
 0x3f9   :  { %v993_v15 = vsel %vm844_vm4, %v4071_v14, 0.0 }
 0x3fa   :  { %994 = vadd.xlane.f32.xlu1 %v993_v15 }
 0x3fc   :  { %v4073_v16 = vpop.eup %4072 }
 0x3fd   :  { %v996_v17 = vsel %vm848_vm5, %v4073_v16, 0.0 }
 0x3fe   :  { %997 = vadd.xlane.f32.xlu0 %v996_v17 }
 0x40b   :  { %1005 = vrot.lane.b32.xlu1 %v4685_v18, %s4308_s29  ;;  %v1165_v18 = vunpack.c.l.bf16 %v4743_v27 }
 0x40f   :  { %1111 = vrot.lane.b32.xlu1 %v4698_v24, %s4307_s25 }
 0x410   :  { %v860_v19 = vpop.xlane.xlu1 %859 }
 0x411   :  { %4074 = vrcp.f32 %v860_v19 }
 0x414   :  { %v863_v20 = vpop.xlane.xlu1 %862 }
 0x415   :  { %4076 = vrcp.f32 %v863_v20 }
 0x41e   :  { %v4075_v21 = vpop.eup %4074 }
 0x41f   :  { %v866_v23 = vmul.f32 %v4075_v21, %v4067_v59 }
 0x422   :  { %v4077_v22 = vpop.eup %4076 }
 0x423   :  { %v867_v25 = vmul.f32 %v4077_v22, %v4069_v61 }
 0x425   :  { %v868_v26 = vpack.c.bf16 %v867_v25, %v866_v23 }
 0x427   :  { %3733 = vmatmul.mubr.msk.bf16.vlgmr.msra.gmra.mxu1 %vm844_vm4, %v868_v26 }
 0x428   :  { %3744 = vmatprep.mubr.msk.bf16.mxu1 %vm4304_vm0, %v4303_v1 }
 0x42c   :  { %v1206_v29 = vpop.f32.mrf.mxu0 }
 0x42d   :  { %v1207_v31 = vadd.f32 %v1206_v29, %v1165_v18 }
 0x42e   :  { %v3764_v32 = vpop.f32.mrf.mxu0 }
 0x42f   :  { %v1213_v36 = vsel %vm796_vm2, %v1207_v31, -inf }
 0x430   :  { %v1209_v33 = vpop.f32.mrf.mxu0 }
 0x431   :  { %v1210_v34 = vadd.f32 %v1209_v33, %v1166_v30 }
 0x432   :  { %v3765_v35 = vpop.f32.mrf.mxu0 }
 0x433   :  { %1214 = vmax.xlane.f32.xlu1 %v1213_v36  ;;  %v1217_v37 = vsel %vm1216_vm6, %v1210_v34, -inf }
 0x434   :  { %1218 = vmax.xlane.f32.xlu0 %v1217_v37 }
 0x483   :  { %v995_v38 = vpop.xlane.xlu1 %994 }
 0x484   :  { %4078 = vrcp.f32 %v995_v38 }
 0x487   :  { %v1006_v39 = vpop.permute.xlu1 %1005  ;;  %v998_v40 = vpop.xlane.xlu0 %997 }
 0x488   :  { %v1011_v41 = vsel %vm872_vm3, %v1006_v39, 0  ;;  %4080 = vrcp.f32 %v998_v40 }
 0x489   :  { %3743 = vmatpush3.bf16.msra.mxu1 %v1011_v41 }
 0x48a   :  { %3754 = vmatprep.subr.bf16.mxu1 %v4303_v1 }
 0x48b   :  { %v1112_v49 = vpop.permute.xlu1 %1111 }
 0x491   :  { %v4079_v42 = vpop.eup %4078 }
 0x492   :  { %v1001_v44 = vmul.f32 %v4079_v42, %v4071_v14 }
 0x495   :  { %v4081_v43 = vpop.eup %4080 }
 0x496   :  { %v1002_v45 = vmul.f32 %v4081_v43, %v4073_v16 }
 0x498   :  { %v1003_v47 = vpack.c.bf16 %v1002_v45, %v1001_v44 }
 0x49a   :  { %3745 = vmatmul.mubr.msk.bf16.vlgmr.msra.gmra.mxu1 %vm844_vm4, %v1003_v47  ;;  %v1531_v47 = vld [vmem:[%s5082_s27 + $0x4] sm:$0x3] }
 0x49b   :  { %3755 = vmatpush3.bf16.msra.mxu1 %v4054_v46  ;;  %3756 = vmatprep.mubr.msk.bf16.mxu1 %vm4304_vm0, %v4303_v1 }
 0x49c   :  { %3766 = vmatprep.subr.bf16.mxu1 %v4303_v1 }
 0x49f   :  { %v1339_v48 = vpop.f32.mrf.mxu0 }
 0x4a0   :  { %v1340_v9 = vadd.f32 %v1339_v48, %v1165_v18 }
 0x4a1   :  { %v3776_v50 = vpop.f32.mrf.mxu0 }
 0x4a2   :  { %3757 = vmatmul.mubr.msk.bf16.vlgmr.msra.gmra.mxu1 %vm685_vm1, %v1112_v49  ;;  %v1346_v63 = vsel %vm796_vm2, %v1340_v9, -inf  ;;  %v1533_v49 = vunpack.c.l.bf16 %v1531_v47 }
 0x4a3   :  { %v1342_v51 = vpop.f32.mrf.mxu0  ;;  %3768 = vmatprep.mubr.msk.bf16.mxu1 %vm4304_vm0, %v4303_v1 }
 0x4a4   :  { %v1343_v52 = vadd.f32 %v1342_v51, %v1166_v30 }
 0x4a5   :  { %v3777_v53 = vpop.f32.mrf.mxu0 }
 0x4a6   :  { %v1349_v54 = vsel %vm1216_vm6, %v1343_v52, -inf }
 0x4a7   :  { %1350 = vmax.xlane.f32.xlu1 %v1349_v54  ;;  %v1468_v55 = vpop.f32.mrf.mxu0 }
 0x4a8   :  { %v1474_v57 = vpack.c.bf16 %v1468_v55, %v1468_v55  ;;  %v1530_v55 = vld [vmem:[%s5082_s27] sm:$0xf]  ;;  %s2436_s27 = ssub.f32 1.0, %s3485_s20 }
 0x4a9   :  { %v3788_v59 = vpop.f32.mrf.mxu0 }
 0x4aa   :  { %v1537_v60 = vsel %vm796_vm2, %v1474_v57, 0  ;;  %1668 = vrot.lane.b32.xlu0 %v1474_v57, %s4308_s29  ;;  %v1532_v57 = vunpack.c.l.bf16 %v1530_v55 }
 0x4ab   :  { %v1471_v61 = vpop.f32.mrf.mxu0  ;;  %3797 = vmatpush3.bf16.xpose.msra.mxu0 %v1537_v60 }
 0x4ac   :  { %3808 = vmatprep.subr.bf16.mxu0 %v4303_v1 }
 0x4ad   :  { %v3789_v62 = vpop.f32.mrf.mxu0 }
 0x4b2   :  { %3799 = vmatmul.mubr.msk.bf16.vlgmr.msra.gmra.mxu0 %vm796_vm2, %v4678_v12 }
 0x4b3   :  { %3810 = vmatprep.mubr.msk.bf16.mxu0 %vm4304_vm0, %v4303_v1 }
 0x4bc   :  { %v1215_v0 = vpop.xlane.xlu1 %1214 }
 0x4bd   :  { %v1220_v2 = vsub.f32 %v1207_v31, %v1215_v0  ;;  %v1219_v3 = vpop.xlane.xlu0 %1218 }
 0x4be   :  { %v1221_v5 = vsub.f32 %v1210_v34, %v1219_v3 }
 0x4bf   :  { %v1222_v6 = vmul.f32 1.442695, %v1220_v2 }
 0x4c0   :  { %v1224_v8 = vmul.f32 1.442695, %v1221_v5 }
 0x4c1   :  { %4082 = vpow2.f32 %v1222_v6 }
 0x4c2   :  { %4084 = vpow2.f32 %v1224_v8 }
 0x4c9   :  { %1347 = vmax.xlane.f32.xlu0 %v1346_v63 }
 0x4ce   :  { %v4083_v10 = vpop.eup %4082 }
 0x4cf   :  { %v1226_v11 = vsel %vm796_vm2, %v4083_v10, 0.0  ;;  %v4085_v13 = vpop.eup %4084 }
 0x4d0   :  { %1227 = vadd.xlane.f32.xlu1 %v1226_v11  ;;  %v1229_v12 = vsel %vm1216_vm6, %v4085_v13, 0.0 }
 0x4d4   :  { %1230 = vadd.xlane.f32.xlu1 %v1229_v12 }
 0x4df   :  { %1478 = vrot.lane.b32.xlu0 %v4729_v7, %s4307_s25 }
 0x4e7   :  { %v4774_v14 = vpop.f32.mrf.mxu1 }
 0x4e9   :  { %v3734_v15 = vpop.f32.mrf.mxu1 }
 0x4eb   :  { %v4776_v16 = vpop.f32.mrf.mxu1 }
 0x4ed   :  { %v3735_v17 = vpop.f32.mrf.mxu1 }
 0x51c   :  { %v1669_v19 = vpop.permute.xlu0 %1668 }
 0x51d   :  { %v1671_v20 = vsel %vm796_vm2, %v1669_v19, 0 }
 0x51e   :  { %3809 = vmatpush3.bf16.xpose.msra.mxu0 %v1671_v20 }
 0x51f   :  { %3820 = vmatprep.subr.bf16.mxu0 %v4303_v1 }
 0x525   :  { %3811 = vmatmul.mubr.msk.bf16.vlgmr.msra.gmra.mxu0 %vm796_vm2, %v4670_v4 }
 0x526   :  { %3822 = vmatprep.mubr.msk.bf16.mxu0 %vm4304_vm0, %v4303_v1 }
 0x530   :  { %v1351_v21 = vpop.xlane.xlu1 %1350 }
 0x531   :  { %v1353_v22 = vsub.f32 %v1343_v52, %v1351_v21  ;;  %v4055_v21 = vld [vmem:[%s5083_s10] sm:$0xff]   ;;  %s5103_s10 = sld [smem:[#allocation42_spill]] }
 0x533   :  { %v1356_v26 = vmul.f32 1.442695, %v1353_v22 }
 0x552   :  { %v1348_v23 = vpop.xlane.xlu0 %1347 }
 0x553   :  { %v1352_v25 = vsub.f32 %v1340_v9, %v1348_v23 }
 0x555   :  { %v1354_v27 = vmul.f32 1.442695, %v1352_v25 }
 0x556   :  { %v1479_v12 = vpop.permute.xlu0 %1478 }
 0x557   :  { %4086 = vpow2.f32 %v1354_v27 }
 0x558   :  { %4088 = vpow2.f32 %v1356_v26  ;;  %v4309_v26 = vmov 0  }
 0x559   :  { %v1228_v18 = vpop.xlane.xlu1 %1227  ;;  %4014 = vset.pattern.permute.xlu1 %v4309_v26  ;;  %4015 = vset.pattern.permute.xlu0 %v4309_v26 }
 0x55a   :  { %v4784_v28 = vpop.f32.mrf.mxu1  ;;  %4090 = vrcp.f32 %v1228_v18 }
 0x55c   :  { %v3746_v29 = vpop.f32.mrf.mxu1 }
 0x55d   :  { %v1231_v30 = vpop.xlane.xlu1 %1230 }
 0x55e   :  { %4092 = vrcp.f32 %v1231_v30  ;;  %v4786_v31 = vpop.f32.mrf.mxu1 }
 0x560   :  { %v3747_v4 = vpop.f32.mrf.mxu1 }
 0x562   :  { %v1156_v32 = vpop.f32.mrf.mxu1 }
 0x563   :  { %v1162_v33 = vpack.c.bf16 %v1156_v32, %v1156_v32 }
 0x564   :  { %v4087_v34 = vpop.eup %4086  ;;  %v3758_v35 = vpop.f32.mrf.mxu1 }
 0x565   :  { %v1242_v36 = vsel %vm1240_vm7, %v1162_v33, 0  ;;  %v1358_v37 = vsel %vm796_vm2, %v4087_v34, 0.0  ;;  %v4089_v38 = vpop.eup %4088 }
 0x566   :  { %v1159_v39 = vpop.f32.mrf.mxu1  ;;  %3767 = vmatpush3.bf16.msra.mxu1 %v1242_v36  ;;  %1359 = vadd.xlane.f32.xlu1 %v1358_v37  ;;  %v1361_v42 = vsel %vm1216_vm6, %v4089_v38, 0.0  ;;  %vm3033_vm6 = vcmask 95232  }
 0x567   :  { %3778 = vmatprep.subr.bf16.mxu1 %v4303_v1  ;;  %v4091_v41 = vpop.eup %4090 }
 0x568   :  { %v3759_v40 = vpop.f32.mrf.mxu1  ;;  %v1234_v44 = vmul.f32 %v4091_v41, %v4083_v10 }
 0x56a   :  { %1362 = vadd.xlane.f32.xlu1 %v1361_v42 }
 0x56b   :  { %v4093_v43 = vpop.eup %4092 }
 0x56c   :  { %v1235_v45 = vmul.f32 %v4093_v43, %v4085_v13 }
 0x56e   :  { %v1236_v46 = vpack.c.bf16 %v1235_v45, %v1234_v44 }
 0x570   :  { %3769 = vmatmul.mubr.msk.bf16.vlgmr.msra.gmra.mxu1 %vm796_vm2, %v1236_v46 }
 0x571   :  { %3780 = vmatprep.mubr.msk.bf16.mxu1 %vm4304_vm0, %v4303_v1 }
 0x572   :  { %v1573_v48 = vpop.f32.mrf.mxu0 }
 0x573   :  { %v1574_v59 = vadd.f32 %v1573_v48, %v1532_v57  ;;  %v791_v48 = vld [vmem:[%s5084_s7] sm:$0xff] }
 0x574   :  { %v3800_v50 = vpop.f32.mrf.mxu0 }
 0x575   :  { %v1581_v60 = vsel %vm1580_vm9, %v1574_v59, -inf  ;;  %v1167_v50 = vld [vmem:[%s5085_s11] sm:$0xff] }
 0x576   :  { %v1576_v51 = vpop.f32.mrf.mxu0 }
 0x577   :  { %v1577_v52 = vadd.f32 %v1576_v51, %v1533_v49  ;;  %v1534_v51 = vld [vmem:[%s5086_s16] sm:$0xff] }
 0x578   :  { %v3801_v53 = vpop.f32.mrf.mxu0 }
 0x579   :  { %v1585_v54 = vsel %vm1584_vm8, %v1577_v52, -inf }
 0x57a   :  { %1586 = vmax.xlane.f32.xlu0 %v1585_v54 }
 0x57b   :  { %1370 = vrot.lane.b32.xlu1 %v1162_v33, %s4308_s29 }
 0x59f   :  { %1582 = vmax.xlane.f32.xlu1 %v1581_v60 }
 0x5e5   :  { %v1707_v61 = vpop.f32.mrf.mxu0 }
 0x5e6   :  { %v1708_v62 = vadd.f32 %v1707_v61, %v1532_v57 }
 0x5e7   :  { %v3812_v0 = vpop.f32.mrf.mxu0 }
 0x5e8   :  { %v1714_v2 = vsel %vm1580_vm9, %v1708_v62, -inf }
 0x5e9   :  { %1715 = vmax.xlane.f32.xlu1 %v1714_v2  ;;  %v1710_v3 = vpop.f32.mrf.mxu0 }
 0x5ea   :  { %v1711_v5 = vadd.f32 %v1710_v3, %v1533_v49  ;;  %v792_v49 = vld [vmem:[%s5084_s7 + $0x8] sm:$0xf]  ;;  %s5104_s7 = sld [smem:[#allocation20_spill]] }
 0x5eb   :  { %v3813_v6 = vpop.f32.mrf.mxu0 }
 0x5ec   :  { %v1717_v8 = vsel %vm1584_vm8, %v1711_v5, -inf  ;;  %v1168_v6 = vld [vmem:[%s5085_s11 + $0x8] sm:$0xf]  ;;  %s3499_s11 = sld [smem:[#allocation2 + $0x2]] }
 0x5ed   :  { %1718 = vmax.xlane.f32.xlu1 %v1717_v8 }
 0x5ef   :  { %v1360_v9 = vpop.xlane.xlu1 %1359 }
 0x5f0   :  { %4094 = vrcp.f32 %v1360_v9 }
 0x5f3   :  { %v1363_v63 = vpop.xlane.xlu1 %1362 }
 0x5f4   :  { %4096 = vrcp.f32 %v1363_v63 }
 0x5f7   :  { %v1371_v10 = vpop.permute.xlu1 %1370 }
 0x5f8   :  { %v1376_v11 = vsel %vm1240_vm7, %v1371_v10, 0 }
 0x5f9   :  { %3779 = vmatpush3.bf16.msra.mxu1 %v1376_v11 }
 0x5fa   :  { %3790 = vmatprep.subr.bf16.mxu1 %v4303_v1 }
 0x5fd   :  { %v4095_v13 = vpop.eup %4094 }
 0x5fe   :  { %v1366_v17 = vmul.f32 %v4095_v13, %v4087_v34 }
 0x601   :  { %v4097_v15 = vpop.eup %4096 }
 0x602   :  { %v1367_v19 = vmul.f32 %v4097_v15, %v4089_v38 }
 0x603   :  { %v1587_v20 = vpop.xlane.xlu0 %1586 }
 0x604   :  { %v1589_v22 = vsub.f32 %v1577_v52, %v1587_v20  ;;  %v1368_v23 = vpack.c.bf16 %v1367_v19, %v1366_v17  ;;  %v1535_v52 = vld [vmem:[%s5086_s16 + $0x8] sm:$0xf]  ;;  %s2875_s16 = ssub.f32 1.0, %s3499_s11 }
 0x606   :  { %v1592_v25 = vmul.f32 1.442695, %v1589_v22  ;;  %3781 = vmatmul.mubr.msk.bf16.vlgmr.msra.gmra.mxu1 %vm796_vm2, %v1368_v23 }
 0x607   :  { %3791 = vmatpush3.bf16.msra.mxu1 %v4055_v21  ;;  %3792 = vmatprep.mubr.msk.bf16.mxu1 %vm4304_vm0, %v4303_v1 }
 0x608   :  { %4098 = vpow2.f32 %v1592_v25  ;;  %3802 = vmatprep.subr.bf16.mxu1 %v4303_v1 }
 0x60e   :  { %3793 = vmatmul.mubr.msk.bf16.vlgmr.msra.gmra.mxu1 %vm685_vm1, %v1479_v12 }
 0x60f   :  { %3804 = vmatprep.mubr.msk.bf16.mxu1 %vm4304_vm0, %v4303_v1 }
 0x615   :  { %v4099_v27 = vpop.eup %4098 }
 0x616   :  { %v1597_v18 = vsel %vm1584_vm8, %v4099_v27, 0.0 }
 0x617   :  { %1598 = vadd.xlane.f32.xlu1 %v1597_v18 }
 0x628   :  { %v1583_v29 = vpop.xlane.xlu1 %1582 }
 0x629   :  { %v1588_v30 = vsub.f32 %v1574_v59, %v1583_v29  ;;  %v4056_v29 = vld [vmem:[%s5087_s15] sm:$0xff]  }
 0x62b   :  { %v1590_v4 = vmul.f32 1.442695, %v1588_v30 }
 0x62d   :  { %4100 = vpow2.f32 %v1590_v4 }
 0x630   :  { %v4813_v32 = vpop.f32.mrf.mxu1 }
 0x632   :  { %v3770_v33 = vpop.f32.mrf.mxu1 }
 0x634   :  { %v4815_v34 = vpop.f32.mrf.mxu1 }
 0x636   :  { %v3771_v35 = vpop.f32.mrf.mxu1 }
 0x63a   :  { %v4101_v36 = vpop.eup %4100 }
 0x63b   :  { %v1594_v37 = vsel %vm1580_vm9, %v4101_v36, 0.0 }
 0x63c   :  { %1595 = vadd.xlane.f32.xlu0 %v1594_v37 }
 0x672   :  { %v1716_v38 = vpop.xlane.xlu1 %1715 }
 0x673   :  { %v1720_v39 = vsub.f32 %v1708_v62, %v1716_v38 }
 0x675   :  { %v1722_v40 = vmul.f32 1.442695, %v1720_v39 }
 0x676   :  { %v1719_v41 = vpop.xlane.xlu1 %1718 }
 0x677   :  { %4102 = vpow2.f32 %v1722_v40  ;;  %v1721_v42 = vsub.f32 %v1711_v5, %v1719_v41 }
 0x679   :  { %v1724_v43 = vmul.f32 1.442695, %v1721_v42 }
 0x67b   :  { %4104 = vpow2.f32 %v1724_v43 }
 0x684   :  { %v4103_v44 = vpop.eup %4102 }
 0x685   :  { %v1726_v45 = vsel %vm1580_vm9, %v4103_v44, 0.0 }
 0x686   :  { %1727 = vadd.xlane.f32.xlu0 %v1726_v45 }
 0x688   :  { %v4105_v46 = vpop.eup %4104 }
 0x689   :  { %v1729_v47 = vsel %vm1584_vm8, %v4105_v46, 0.0 }
 0x68a   :  { %1730 = vadd.xlane.f32.xlu1 %v1729_v47 }
 0x69b   :  { %919 = vperm.xlu1 %4014, %v791_v48  }
 0x69f   :  { %924 = vperm.xlu1 %4014, %v792_v49  }
 0x6a0   :  { %v1599_v53 = vpop.xlane.xlu1 %1598 }
 0x6a1   :  { %4106 = vrcp.f32 %v1599_v53 }
 0x6a3   :  { %1287 = vperm.xlu1 %4014, %v1167_v50  }
 0x6a7   :  { %1655 = vperm.xlu1 %4014, %v1534_v51  }
 0x6ab   :  { %1660 = vperm.xlu1 %4014, %v1535_v52  }
 0x6ae   :  { %v4107_v2 = vpop.eup %4106 }
 0x6af   :  { %v1603_v10 = vmul.f32 %v4107_v2, %v4099_v27 }
 0x6c5   :  { %v1596_v54 = vpop.xlane.xlu0 %1595 }
 0x6c6   :  { %4108 = vrcp.f32 %v1596_v54  ;;  %v4825_v55 = vpop.f32.mrf.mxu1 }
 0x6c8   :  { %v3782_v57 = vpop.f32.mrf.mxu1 }
 0x6ca   :  { %v4827_v59 = vpop.f32.mrf.mxu1 }
 0x6cc   :  { %v3783_v60 = vpop.f32.mrf.mxu1 }
 0x6ce   :  { %v1523_v61 = vpop.f32.mrf.mxu1 }
 0x6cf   :  { %v1529_v62 = vpack.c.bf16 %v1523_v61, %v1523_v61 }
 0x6d0   :  { %v3794_v0 = vpop.f32.mrf.mxu1 }
 0x6d1   :  { %v1610_v3 = vsel %vm1608_vm10, %v1529_v62, 0  ;;  %1738 = vrot.lane.b32.xlu0 %v1529_v62, %s4308_s29 }
 0x6d2   :  { %v1526_v5 = vpop.f32.mrf.mxu1  ;;  %3803 = vmatpush3.bf16.msra.mxu1 %v1610_v3 }
 0x6d3   :  { %v4109_v8 = vpop.eup %4108  ;;  %3814 = vmatprep.subr.bf16.mxu1 %v4303_v1 }
 0x6d4   :  { %v3795_v9 = vpop.f32.mrf.mxu1  ;;  %v1602_v63 = vmul.f32 %v4109_v8, %v4101_v36 }
 0x6d5   :  { %1292 = vperm.xlu0 %4015, %v1168_v6  }
 0x6d6   :  { %v1604_v11 = vpack.c.bf16 %v1603_v10, %v1602_v63 }
 0x6d8   :  { %3805 = vmatmul.mubr.msk.bf16.vlgmr.msra.gmra.mxu1 %vm1580_vm9, %v1604_v11 }
 0x6d9   :  { %2049 = vrot.lane.b32.xlu0 %v4656_v58, %s4306_s21  ;;  %3816 = vmatprep.mubr.msk.bf16.mxu1 %vm4304_vm0, %v4303_v1 }
 0x6dd   :  { %2183 = vrot.lane.b32.xlu0 %v4656_v58, %s4305_s0 }
 0x70f   :  { %v1728_v22 = vpop.xlane.xlu0 %1727 }
 0x713   :  { %v1731_v13 = vpop.xlane.xlu1 %1730 }
 0x714   :  { %4110 = vrcp.f32 %v1731_v13 }
 0x715   :  { %4112 = vrcp.f32 %v1728_v22 }
 0x717   :  { %v920_v12 = vpop.permute.xlu1 %919 }
 0x718   :  { %v927_v19 = vmul.f32 %v920_v12, %v4774_v14  ;;  %v1054_v60 = vmul.f32 %v4784_v28, %v920_v12  ;;  %v4057_v28 = vld [vmem:[%s5088_s23] sm:$0xff]  }
 0x719   :  { %3821 = vmatpush3.bf16.msra.mxu0 %v4057_v28 }
 0x71a   :  { %3832 = vmatprep.subr.bf16.mxu0 %v4303_v1 }
 0x71b   :  { %v925_v15 = vpop.permute.xlu1 %924 }
 0x71c   :  { %v928_v4 = vmul.f32 %v925_v15, %v4776_v16 }
 0x71f   :  { %v1288_v17 = vpop.permute.xlu1 %1287 }
 0x720   :  { %v1295_v20 = vmul.f32 %v1288_v17, %v4813_v32  ;;  %v1419_v54 = vmul.f32 %v4825_v55, %v1288_v17 }
 0x721   :  { %v4111_v23 = vpop.eup %4110 }
 0x722   :  { %v1297_v21 = vadd.f32 %v1295_v20, %v927_v19  ;;  %v4113_v25 = vpop.eup %4112  ;;  %v1735_v26 = vmul.f32 %v4111_v23, %v4105_v46 }
 0x723   :  { %v1734_v58 = vmul.f32 %v4113_v25, %v4103_v44  ;;  %v1656_v35 = vpop.permute.xlu1 %1655 }
 0x725   :  { %v1736_v30 = vpack.c.bf16 %v1735_v26, %v1734_v58 }
 0x727   :  { %v1661_v39 = vpop.permute.xlu1 %1660 }
 0x743   :  { %v1739_v27 = vpop.permute.xlu0 %1738 }
 0x744   :  { %v1744_v18 = vsel %vm1608_vm10, %v1739_v27, 0 }
 0x745   :  { %3815 = vmatpush3.bf16.msra.mxu1 %v1744_v18 }
 0x746   :  { %3826 = vmatprep.subr.bf16.mxu1 %v4303_v1 }
 0x748   :  { %3817 = vmatmul.mubr.msk.bf16.vlgmr.msra.gmra.mxu1 %vm1580_vm9, %v1736_v30 }
 0x749   :  { %3827 = vmatpush3.bf16.msra.mxu1 %v4056_v29  ;;  %3828 = vmatprep.mubr.msk.bf16.mxu1 %vm4304_vm0, %v4303_v1 }
 0x74a   :  { %3838 = vmatprep.subr.bf16.mxu1 %v4303_v1 }
 0x750   :  { %v1293_v14 = vpop.permute.xlu0 %1292  ;;  %3829 = vmatmul.mubr.msk.bf16.vlgmr.msra.gmra.mxu1 %vm685_vm1, %v4654_v56 }
 0x751   :  { %v1296_v32 = vmul.f32 %v1293_v14, %v4815_v34  ;;  %3840 = vmatprep.mubr.msk.bf16.mxu1 %vm4304_vm0, %v4303_v1  ;;  %v1420_v46 = vmul.f32 %v4827_v59, %v1293_v14  ;;  %v1055_v34 = vmul.f32 %v4786_v31, %v925_v15  ;;  %v1421_v31 = vadd.f32 %v1419_v54, %v1054_v60 }
 0x753   :  { %v1298_v33 = vadd.f32 %v1296_v32, %v928_v4  ;;  %v1422_v48 = vadd.f32 %v1420_v46, %v1055_v34 }
 0x754   :  { %v2050_v3 = vpop.permute.xlu0 %2049 }
 0x758   :  { %v2184_v55 = vpop.permute.xlu0 %2183 }
 0x798   :  { %v1646_v36 = vpop.f32.mrf.mxu1 }
 0x799   :  { %v1663_v37 = vmul.f32 %v1656_v35, %v1646_v36 }
 0x79a   :  { %v3806_v38 = vpop.f32.mrf.mxu1 }
 0x79b   :  { %v1665_v40 = vadd.f32 %v1663_v37, %v1297_v21 }
 0x79c   :  { %v1649_v41 = vpop.f32.mrf.mxu1 }
 0x79d   :  { %v1664_v42 = vmul.f32 %v1661_v39, %v1649_v41 }
 0x79e   :  { %v3807_v43 = vpop.f32.mrf.mxu1 }
 0x79f   :  { %v1666_v44 = vadd.f32 %v1664_v42, %v1298_v33 }
 0x808   :  { %v1780_v45 = vpop.f32.mrf.mxu1 }
 0x809   :  { %v1787_v59 = vmul.f32 %v1780_v45, %v1656_v35 }
 0x80a   :  { %v3818_v16 = vpop.f32.mrf.mxu1 }
 0x80b   :  { %v1789_v2 = vadd.f32 %v1787_v59, %v1421_v31 }
 0x80c   :  { %v1783_v47 = vpop.f32.mrf.mxu1 }
 0x80d   :  { %v1788_v49 = vmul.f32 %v1783_v47, %v1661_v39 }
 0x80e   :  { %v3819_v50 = vpop.f32.mrf.mxu1 }
 0x80f   :  { %v1790_v51 = vadd.f32 %v1788_v49, %v1422_v48 }
 0x810   :  { %v1980_v52 = vpop.f32.mrf.mxu1 }
 0x811   :  { %1795 = vrot.lane.b32.xlu0 %v1790_v51, %s4310_s18 }
 0x812   :  { %v3830_v53 = vpop.f32.mrf.mxu1 }
 0x814   :  { %v1983_v57 = vpop.f32.mrf.mxu1 }
 0x815   :  { %v1987_v61 = vpack.c.bf16 %v1983_v57, %v1980_v52 }
 0x816   :  { %v3831_v62 = vpop.f32.mrf.mxu1 }
 0x817   :  { %v2055_v0 = vsel %vm796_vm2, %v1987_v61, 0  ;;  %2186 = vrot.lane.b32.xlu1 %v1987_v61, %s4308_s29 }
 0x818   :  { %3839 = vmatpush3.bf16.xpose.msra.mxu1 %v2055_v0 }
 0x819   :  { %3850 = vmatprep.subr.bf16.mxu1 %v4303_v1 }
 0x81b   :  { %1793 = vrot.lane.b32.xlu1 %v1789_v2, %s4310_s18  ;;  %v4058_v2 = vld [vmem:[%s5089_s22] sm:$0xff]  }
 0x81f   :  { %3841 = vmatmul.mubr.msk.bf16.vlgmr.msra.gmra.mxu1 %vm796_vm2, %v2050_v3  ;;  %1990 = vrot.lane.b32.xlu1 %v4654_v56, %s4307_s25  ;;  %s5093_s25 = sld [smem:[#allocation23_spill]] }
 0x820   :  { %3852 = vmatprep.mubr.msk.bf16.mxu1 %vm4304_vm0, %v4303_v1 }
 0x883   :  { %v1796_v5 = vpop.permute.xlu0 %1795 }
 0x884   :  { %v1800_v6 = vsel %vm796_vm2, %v1666_v44, %v1796_v5 }
 0x885   :  { %v1804_v8 = vmul.f32 0.70710677, %v1800_v6  ;;  %v1802_v59 = vmul.f32 0.5, %v1800_v6  ;;  %v2044_v6 = vld [vmem:[%s5090_s26 + $0x4] sm:$0x1] }
 0x887   :  { %v1806_v9 = vand.u32 2147483647, %v1804_v8  ;;  %vm1844_vm11 = vcmp.ge.f32.partialorder %v1804_v8, 0.0 }
 0x889   :  { %v1808_v63 = vmul.f32 0.3275911, %v1806_v9  ;;  %v2187_v10 = vpop.permute.xlu1 %2186  ;;  %v1832_v20 = vsub.f32 0.0, %v1806_v9 }
 0x88a   :  { %v2192_v11 = vsel %vm796_vm2, %v2187_v10, 0 }
 0x88b   :  { %v1810_v13 = vadd.f32 1.0, %v1808_v63  ;;  %3851 = vmatpush3.bf16.xpose.msra.mxu1 %v2192_v11  ;;  %v1834_v23 = vmul.f32 %v1832_v20, %v1806_v9  ;;  %v2046_v63 = vunpack.c.l.bf16 %v2044_v6 }
 0x88c   :  { %3862 = vmatprep.subr.bf16.mxu1 %v4303_v1 }
 0x88d   :  { %4114 = vrcp.f32 %v1810_v13  ;;  %v1794_v12 = vpop.permute.xlu1 %1793  ;;  %v1837_v27 = vmul.f32 1.442695, %v1834_v23 }
 0x88e   :  { %v1799_v15 = vsel %vm796_vm2, %v1665_v40, %v1794_v12 }
 0x88f   :  { %v1803_v17 = vmul.f32 0.70710677, %v1799_v15  ;;  %v1801_v61 = vmul.f32 0.5, %v1799_v15 }
 0x891   :  { %v1805_v19 = vand.u32 2147483647, %v1803_v17  ;;  %vm1843_vm12 = vcmp.ge.f32.partialorder %v1803_v17, 0.0  ;;  %v4883_v28 = vpop.permute.xlu1 %1990 }
 0x892   :  { %3853 = vmatmul.mubr.msk.bf16.vlgmr.msra.gmra.mxu1 %vm796_vm2, %v2184_v55  ;;  %v2043_v55 = vld [vmem:[%s5090_s26] sm:$0xf] }
 0x893   :  { %v1807_v21 = vmul.f32 0.3275911, %v1805_v19  ;;  %3864 = vmatprep.mubr.msk.bf16.mxu1 %vm4304_vm0, %v4303_v1  ;;  %v1831_v58 = vsub.f32 0.0, %v1805_v19  ;;  %v2045_v5 = vunpack.c.l.bf16 %v2043_v55 }
 0x895   :  { %v1809_v22 = vadd.f32 1.0, %v1807_v21  ;;  %v1833_v14 = vmul.f32 %v1831_v58, %v1805_v19 }
 0x897   :  { %4116 = vrcp.f32 %v1809_v22  ;;  %v1835_v36 = vmul.f32 1.442695, %v1833_v14 }
 0x898   :  { %4118 = vpow2.f32 %v1837_v27 }
 0x899   :  { %4120 = vpow2.f32 %v1835_v36 }
 0x89a   :  { %v4115_v25 = vpop.eup %4114 }
 0x89b   :  { %v1814_v26 = vmul.f32 1.0614054, %v4115_v25 }
 0x89d   :  { %v1816_v18 = vadd.f32 -1.4531521, %v1814_v26 }
 0x89f   :  { %v1818_v29 = vmul.f32 %v4115_v25, %v1816_v18 }
 0x8a1   :  { %v1820_v30 = vadd.f32 1.4214138, %v1818_v29 }
 0x8a3   :  { %v1822_v4 = vmul.f32 %v4115_v25, %v1820_v30 }
 0x8a4   :  { %v4117_v32 = vpop.eup %4116 }
 0x8a5   :  { %v1824_v33 = vadd.f32 -0.28449672, %v1822_v4  ;;  %v1813_v35 = vmul.f32 1.0614054, %v4117_v32  ;;  %v4119_v43 = vpop.eup %4118 }
 0x8a6   :  { %v4121_v50 = vpop.eup %4120 }
 0x8a7   :  { %v1826_v37 = vmul.f32 %v4115_v25, %v1824_v33  ;;  %v1815_v38 = vadd.f32 -1.4531521, %v1813_v35  ;;  %v4170_v35 = vld [vmem:[%s4324_s5] sm:$0xf] }
 0x8a8   :  { %v1918_v36 = vunpack.c.l.bf16 %v4170_v35 }
 0x8a9   :  { %v1828_v39 = vadd.f32 0.2548296, %v1826_v37  ;;  %v1817_v40 = vmul.f32 %v4117_v32, %v1815_v38  ;;  %v3469_v38 = vld [vmem:[%s5091_s1] ss:$0 sm:$0xff] }
 0x8ab   :  { %v1830_v41 = vmul.f32 %v4115_v25, %v1828_v39  ;;  %v1819_v42 = vadd.f32 1.4214138, %v1817_v40  ;;  %v1920_v39 = vstv %s1917_s2 }
 0x8ad   :  { %v1840_v44 = vmul.f32 %v4119_v43, %v1830_v41  ;;  %v1821_v45 = vmul.f32 %v4117_v32, %v1819_v42  ;;  %v1914_v42 = vstv %s1913_s28  ;;  %v4171_v43 = vld [vmem:[%s4324_s5 + $0x4] sm:$0x3]  ;;  %s5092_s5 = sld [smem:[#allocation38_spill]] }
 0x8af   :  { %v1823_v46 = vadd.f32 -0.28449672, %v1821_v45  ;;  %v1842_v16 = vsub.f32 1.0, %v1840_v44  ;;  %v1919_v44 = vunpack.c.l.bf16 %v4171_v43 }
 0x8b1   :  { %v1825_v34 = vmul.f32 %v4117_v32, %v1823_v46  ;;  %v1846_v48 = vsub.f32 0.0, %v1842_v16  ;;  %v1921_v46 = vmul.f32 %v1920_v39, %v1918_v36 }
 0x8b3   :  { %v1827_v47 = vadd.f32 0.2548296, %v1825_v34  ;;  %v1848_v52 = vsel %vm1844_vm11, %v1842_v16, %v1846_v48 }
 0x8b4   :  { %v1850_v57 = vadd.f32 1.0, %v1848_v52 }
 0x8b5   :  { %v1829_v49 = vmul.f32 %v4117_v32, %v1827_v47 }
 0x8b6   :  { %v1852_v31 = vmul.f32 %v1850_v57, %v1802_v59 }
 0x8b7   :  { %v1839_v51 = vmul.f32 %v4121_v50, %v1829_v49  ;;  %v1922_v50 = vmul.f32 %v1920_v39, %v1919_v44 }
 0x8b9   :  { %v1841_v53 = vsub.f32 1.0, %v1839_v51 }
 0x8bb   :  { %v1845_v54 = vsub.f32 0.0, %v1841_v53 }
 0x8bd   :  { %v1847_v60 = vsel %vm1843_vm12, %v1841_v53, %v1845_v54 }
 0x8be   :  { %v1849_v62 = vadd.f32 1.0, %v1847_v60 }
 0x8c0   :  { %v1851_v0 = vmul.f32 %v1849_v62, %v1801_v61 }
 0x8c2   :  { %v1853_v3 = vpack.c.bf16 %v1852_v31, %v1851_v0 }
 0x8c4   :  { %3823 = vmatmul.mubr.msk.bf16.vlgmr.msra.gmra.mxu0 %vm685_vm1, %v1853_v3 }
 0x8c5   :  { %3833 = vmatpush3.bf16.msra.mxu0 %v4058_v2  ;;  %3834 = vmatprep.mubr.msk.bf16.mxu0 %vm4304_vm0, %v4303_v1 }
 0x8c6   :  { %3844 = vmatprep.subr.bf16.mxu0 %v4303_v1 }
 0x8cc   :  { %3835 = vmatmul.mubr.msk.bf16.vlgmr.msra.gmra.mxu0 %vm685_vm1, %v4883_v28 }
 0x8cd   :  { %3846 = vmatprep.mubr.msk.bf16.mxu0 %vm4304_vm0, %v4303_v1 }
 0x8df   :  { %v2091_v8 = vpop.f32.mrf.mxu1 }
 0x8e0   :  { %v2092_v9 = vadd.f32 %v2091_v8, %v2045_v5 }
 0x8e1   :  { %v3842_v10 = vpop.f32.mrf.mxu1 }
 0x8e2   :  { %v2099_v11 = vsel %vm2098_vm13, %v2092_v9, -inf }
 0x8e3   :  { %v2094_v13 = vpop.f32.mrf.mxu1  ;;  %2100 = vmax.xlane.f32.xlu0 %v2099_v11 }
 0x8e4   :  { %v2095_v12 = vadd.f32 %v2094_v13, %v2046_v63  ;;  %v2047_v13 = vld [vmem:[%s5092_s5] sm:$0xff] }
 0x8e5   :  { %v3843_v15 = vpop.f32.mrf.mxu1 }
 0x8e6   :  { %v2103_v17 = vsel %vm2102_vm14, %v2095_v12, -inf  ;;  %v2048_v15 = vld [vmem:[%s5092_s5 + $0x8] sm:$0x3] }
 0x8e7   :  { %2104 = vmax.xlane.f32.xlu1 %v2103_v17 }
 0x952   :  { %v2228_v19 = vpop.f32.mrf.mxu1 }
 0x953   :  { %v2229_v20 = vadd.f32 %v2228_v19, %v2045_v5 }
 0x954   :  { %v3854_v21 = vpop.f32.mrf.mxu1 }
 0x955   :  { %v2235_v22 = vsel %vm2098_vm13, %v2229_v20, -inf }
 0x956   :  { %2236 = vmax.xlane.f32.xlu0 %v2235_v22  ;;  %v2231_v23 = vpop.f32.mrf.mxu1 }
 0x957   :  { %v2232_v25 = vadd.f32 %v2231_v23, %v2046_v63 }
 0x958   :  { %v3855_v26 = vpop.f32.mrf.mxu1 }
 0x959   :  { %v2238_v27 = vsel %vm2102_vm14, %v2232_v25, -inf }
 0x95a   :  { %2239 = vmax.xlane.f32.xlu0 %v2238_v27 }
 0x96c   :  { %v2101_v18 = vpop.xlane.xlu0 %2100 }
 0x96d   :  { %v2106_v58 = vsub.f32 %v2092_v9, %v2101_v18 }
 0x96f   :  { %v2108_v29 = vmul.f32 1.442695, %v2106_v58 }
 0x970   :  { %v2105_v30 = vpop.xlane.xlu1 %2104 }
 0x971   :  { %4122 = vpow2.f32 %v2108_v29  ;;  %v2107_v14 = vsub.f32 %v2095_v12, %v2105_v30 }
 0x973   :  { %v2110_v4 = vmul.f32 1.442695, %v2107_v14  ;;  %v4059_v14 = vld [vmem:[%s5093_s25] sm:$0xff]  }
 0x975   :  { %4124 = vpow2.f32 %v2110_v4 }
 0x97e   :  { %v4895_v32 = vpop.eup %4122 }
 0x97f   :  { %v2112_v33 = vsel %vm2098_vm13, %v4895_v32, 0.0 }
 0x980   :  { %2113 = vadd.xlane.f32.xlu0 %v2112_v33 }
 0x982   :  { %v4125_v37 = vpop.eup %4124 }
 0x983   :  { %v2115_v40 = vsel %vm2102_vm14, %v4125_v37, 0.0 }
 0x984   :  { %2116 = vadd.xlane.f32.xlu1 %v2115_v40  ;;  %v1906_v41 = vpop.f32.mrf.mxu0 }
 0x985   :  { %v1907_v45 = vadd.f32 %v3469_v38, %v1906_v41 }
 0x986   :  { %v3824_v16 = vpop.f32.mrf.mxu0 }
 0x987   :  { %v1915_v34 = vmul.f32 %v1914_v42, %v1907_v45 }
 0x988   :  { %v1909_v47 = vpop.f32.mrf.mxu0 }
 0x989   :  { %v1923_v48 = vadd.f32 %v1921_v46, %v1915_v34  ;;  %v1910_v49 = vadd.f32 %v3469_v38, %v1909_v47 }
 0x98a   :  { %v3825_v51 = vpop.f32.mrf.mxu0 }
 0x98b   :  { %v3512_v52 = vpack.c.bf16 %v1923_v48, %v1923_v48  ;;  %v1916_v53 = vmul.f32 %v1914_v42, %v1910_v49 }
 0x98c   :  { %v2035_v54 = vpop.f32.mrf.mxu0 }
 0x98d   :  { %1933 = vst [vmem:[#allocation5] sm:$0xf] %v3512_v52  ;;  %v1924_v57 = vadd.f32 %v1922_v50, %v1916_v53  ;;  %v4060_v50 = vld [vmem:[%s5094_s3] sm:$0xff]  }
 0x98e   :  { %v3836_v60 = vpop.f32.mrf.mxu0  ;;  %3863 = vmatpush3.bf16.msra.mxu1 %v4060_v50  ;;  %v4061_v50 = vld [vmem:[%s5095_s8] sm:$0xff]  }
 0x98f   :  { %v3513_v59 = vpack.c.bf16 %v1924_v57, %v1924_v57  ;;  %3874 = vmatprep.subr.bf16.mxu1 %v4303_v1 }
 0x990   :  { %v2038_v61 = vpop.f32.mrf.mxu0 }
 0x991   :  { %1934 = vst [vmem:[#allocation5 + $0x4] sm:$0x3] %v3513_v59  ;;  %v2042_v62 = vpack.c.bf16 %v2038_v61, %v2035_v54 }
 0x992   :  { %v3837_v31 = vpop.f32.mrf.mxu0 }
 0x993   :  { %v2128_v0 = vsel %vm2126_vm15, %v2042_v62, 0 }
 0x994   :  { %3845 = vmatpush3.bf16.msra.mxu0 %v2128_v0 }
 0x995   :  { %3856 = vmatprep.subr.bf16.mxu0 %v4303_v1 }
 0x9df   :  { %v2237_v2 = vpop.xlane.xlu0 %2236 }
 0x9e0   :  { %v2241_v3 = vsub.f32 %v2229_v20, %v2237_v2 }
 0x9e2   :  { %v2243_v55 = vmul.f32 1.442695, %v2241_v3 }
 0x9e3   :  { %v2240_v5 = vpop.xlane.xlu0 %2239 }
 0x9e4   :  { %4126 = vpow2.f32 %v2243_v55  ;;  %v2242_v6 = vsub.f32 %v2232_v25, %v2240_v5 }
 0x9e6   :  { %v2245_v8 = vmul.f32 1.442695, %v2242_v6 }
 0x9e8   :  { %4128 = vpow2.f32 %v2245_v8 }
 0x9f1   :  { %v4127_v9 = vpop.eup %4126 }
 0x9f2   :  { %v2247_v63 = vsel %vm2098_vm13, %v4127_v9, 0.0 }
 0x9f3   :  { %2248 = vadd.xlane.f32.xlu0 %v2247_v63 }
 0x9f5   :  { %v4129_v10 = vpop.eup %4128 }
 0x9f6   :  { %v2250_v11 = vsel %vm2102_vm14, %v4129_v10, 0.0 }
 0x9f7   :  { %2251 = vadd.xlane.f32.xlu1 %v2250_v11 }
 0xa08   :  { %2173 = vperm.xlu1 %4014, %v2047_v13  }
 0xa09   :  { %v2114_v12 = vpop.xlane.xlu0 %2113  ;;  %2259 = vrot.lane.b32.xlu0 %v2042_v62, %s4308_s29 }
 0xa0a   :  { %4130 = vrcp.f32 %v2114_v12 }
 0xa0c   :  { %2178 = vperm.xlu1 %4014, %v2048_v15  }
 0xa0d   :  { %v2117_v17 = vpop.xlane.xlu1 %2116 }
 0xa0e   :  { %4132 = vrcp.f32 %v2117_v17 }
 0xa10   :  { %2557 = vrot.lane.b32.xlu1 %v4698_v24, %s4306_s21 }
 0xa14   :  { %2669 = vrot.lane.b32.xlu1 %v4698_v24, %s4305_s0 }
 0xa17   :  { %v4131_v19 = vpop.eup %4130 }
 0xa18   :  { %v2120_v21 = vmul.f32 %v4131_v19, %v4895_v32 }
 0xa1b   :  { %v4133_v20 = vpop.eup %4132 }
 0xa1c   :  { %v2121_v22 = vmul.f32 %v4133_v20, %v4125_v37 }
 0xa1e   :  { %v2122_v23 = vpack.c.bf16 %v2121_v22, %v2120_v21 }
 0xa20   :  { %3847 = vmatmul.mubr.msk.bf16.vlgmr.msra.gmra.mxu0 %vm2098_vm13, %v2122_v23 }
 0xa21   :  { %3858 = vmatprep.mubr.msk.bf16.mxu0 %vm4304_vm0, %v4303_v1 }
 0xa7c   :  { %v2249_v25 = vpop.xlane.xlu0 %2248 }
 0xa7d   :  { %4134 = vrcp.f32 %v2249_v25 }
 0xa80   :  { %v2252_v26 = vpop.xlane.xlu1 %2251  ;;  %v2260_v27 = vpop.permute.xlu0 %2259 }
 0xa81   :  { %4136 = vrcp.f32 %v2252_v26  ;;  %v2265_v18 = vsel %vm2126_vm15, %v2260_v27, 0 }
 0xa82   :  { %3857 = vmatpush3.bf16.msra.mxu0 %v2265_v18 }
 0xa83   :  { %3868 = vmatprep.subr.bf16.mxu0 %v4303_v1 }
 0xa84   :  { %v2174_v37 = vpop.permute.xlu1 %2173 }
 0xa88   :  { %v2179_v40 = vpop.permute.xlu1 %2178 }
 0xa8a   :  { %v4135_v24 = vpop.eup %4134 }
 0xa8b   :  { %v2255_v29 = vmul.f32 %v4135_v24, %v4127_v9 }
 0xa8c   :  { %v2558_v49 = vpop.permute.xlu1 %2557 }
 0xa8e   :  { %v4137_v58 = vpop.eup %4136 }
 0xa8f   :  { %v2256_v30 = vmul.f32 %v4137_v58, %v4129_v10 }
 0xa90   :  { %v2670_v51 = vpop.permute.xlu1 %2669 }
 0xa91   :  { %v2257_v4 = vpack.c.bf16 %v2256_v30, %v2255_v29 }
 0xa93   :  { %3859 = vmatmul.mubr.msk.bf16.vlgmr.msra.gmra.mxu0 %vm2098_vm13, %v2257_v4 }
 0xa94   :  { %3869 = vmatpush3.bf16.msra.mxu0 %v4059_v14  ;;  %3870 = vmatprep.mubr.msk.bf16.mxu0 %vm4304_vm0, %v4303_v1 }
 0xa95   :  { %3880 = vmatprep.subr.bf16.mxu0 %v4303_v1 }
 0xa9b   :  { %3871 = vmatmul.mubr.msk.bf16.vlgmr.msra.gmra.mxu0 %vm685_vm1, %v4654_v56 }
 0xa9c   :  { %3882 = vmatprep.mubr.msk.bf16.mxu0 %vm4304_vm0, %v4303_v1 }
 0xae0   :  { %v2164_v32 = vpop.f32.mrf.mxu0 }
 0xae1   :  { %v2181_v0 = vmul.f32 %v2174_v37, %v2164_v32 }
 0xae2   :  { %v3848_v33 = vpop.f32.mrf.mxu0 }
 0xae4   :  { %v2167_v35 = vpop.f32.mrf.mxu0 }
 0xae5   :  { %v2182_v52 = vmul.f32 %v2179_v40, %v2167_v35 }
 0xae6   :  { %v3849_v36 = vpop.f32.mrf.mxu0 }
 0xb53   :  { %v2301_v38 = vpop.f32.mrf.mxu0 }
 0xb54   :  { %v2308_v48 = vmul.f32 %v2301_v38, %v2174_v37 }
 0xb55   :  { %v3860_v39 = vpop.f32.mrf.mxu0 }
 0xb57   :  { %v2304_v41 = vpop.f32.mrf.mxu0 }
 0xb58   :  { %v2309_v42 = vmul.f32 %v2304_v41, %v2179_v40 }
 0xb59   :  { %v3861_v43 = vpop.f32.mrf.mxu0 }
 0xb5a   :  { %2314 = vrot.lane.b32.xlu1 %v2309_v42, %s4310_s18 }
 0xb5b   :  { %v2496_v44 = vpop.f32.mrf.mxu0 }
 0xb5d   :  { %v3872_v45 = vpop.f32.mrf.mxu0 }
 0xb5f   :  { %v2499_v46 = vpop.f32.mrf.mxu0 }
 0xb60   :  { %v2503_v16 = vpack.c.bf16 %v2499_v46, %v2496_v44 }
 0xb61   :  { %v3873_v34 = vpop.f32.mrf.mxu0 }
 0xb62   :  { %v2563_v47 = vsel %vm796_vm2, %v2503_v16, 0  ;;  %2672 = vrot.lane.b32.xlu0 %v2503_v16, %s4308_s29 }
 0xb63   :  { %3881 = vmatpush3.bf16.xpose.msra.mxu0 %v2563_v47 }
 0xb64   :  { %3892 = vmatprep.subr.bf16.mxu0 %v4303_v1 }
 0xb66   :  { %2312 = vrot.lane.b32.xlu0 %v2308_v48, %s4310_s18 }
 0xb6a   :  { %3883 = vmatmul.mubr.msk.bf16.vlgmr.msra.gmra.mxu0 %vm796_vm2, %v2558_v49 }
 0xb6b   :  { %3894 = vmatprep.mubr.msk.bf16.mxu0 %vm4304_vm0, %v4303_v1 }
 0xbcc   :  { %v2315_v53 = vpop.permute.xlu1 %2314 }
 0xbcd   :  { %v2319_v54 = vsel %vm796_vm2, %v2182_v52, %v2315_v53  ;;  %v2554_v52 = vld [vmem:[%s5096_s14] sm:$0xf] }
 0xbce   :  { %v2323_v57 = vmul.f32 0.70710677, %v2319_v54  ;;  %v2321_v16 = vmul.f32 0.5, %v2319_v54  ;;  %v2555_v53 = vunpack.c.l.bf16 %v2554_v52 }
 0xbd0   :  { %v2325_v60 = vand.u32 2147483647, %v2323_v57  ;;  %vm2363_vm3 = vcmp.ge.f32.partialorder %v2323_v57, 0.0 }
 0xbd2   :  { %v2327_v59 = vmul.f32 0.3275911, %v2325_v60  ;;  %v2351_v6 = vsub.f32 0.0, %v2325_v60 }
 0xbd4   :  { %v2329_v61 = vadd.f32 1.0, %v2327_v59  ;;  %v2673_v62 = vpop.permute.xlu0 %2672  ;;  %v2353_v63 = vmul.f32 %v2351_v6, %v2325_v60  ;;  %v2556_v6 = vld [vmem:[%s5097_s6] sm:$0xff] }
 0xbd5   :  { %v2678_v31 = vsel %vm796_vm2, %v2673_v62, 0 }
 0xbd6   :  { %4138 = vrcp.f32 %v2329_v61  ;;  %3893 = vmatpush3.bf16.xpose.msra.mxu0 %v2678_v31  ;;  %v2356_v12 = vmul.f32 1.442695, %v2353_v63 }
 0xbd7   :  { %3904 = vmatprep.subr.bf16.mxu0 %v4303_v1 }
 0xbd8   :  { %v2313_v2 = vpop.permute.xlu0 %2312 }
 0xbd9   :  { %v2318_v3 = vsel %vm796_vm2, %v2181_v0, %v2313_v2 }
 0xbda   :  { %v2322_v55 = vmul.f32 0.70710677, %v2318_v3  ;;  %v2320_v34 = vmul.f32 0.5, %v2318_v3 }
 0xbdc   :  { %v2324_v5 = vand.u32 2147483647, %v2322_v55  ;;  %vm2362_vm4 = vcmp.ge.f32.partialorder %v2322_v55, 0.0 }
 0xbdd   :  { %3895 = vmatmul.mubr.msk.bf16.vlgmr.msra.gmra.mxu0 %vm796_vm2, %v2670_v51 }
 0xbde   :  { %v2326_v8 = vmul.f32 0.3275911, %v2324_v5  ;;  %3906 = vmatprep.mubr.msk.bf16.mxu0 %vm4304_vm0, %v4303_v1  ;;  %v2350_v17 = vsub.f32 0.0, %v2324_v5 }
 0xbe0   :  { %v2328_v9 = vadd.f32 1.0, %v2326_v8  ;;  %v2352_v21 = vmul.f32 %v2350_v17, %v2324_v5  ;;  %v2439_v17 = vstv %s2436_s27 }
 0xbe2   :  { %4140 = vrcp.f32 %v2328_v9  ;;  %v2354_v27 = vmul.f32 1.442695, %v2352_v21  ;;  %v4173_v21 = vld [vmem:[%s4329_s9 + $0x4] sm:$0x1] }
 0xbe3   :  { %v4139_v10 = vpop.eup %4138  ;;  %4142 = vpow2.f32 %v2356_v12 }
 0xbe4   :  { %v2333_v11 = vmul.f32 1.0614054, %v4139_v10  ;;  %4144 = vpow2.f32 %v2354_v27 }
 0xbe6   :  { %v2335_v13 = vadd.f32 -1.4531521, %v2333_v11 }
 0xbe8   :  { %v2337_v15 = vmul.f32 %v4139_v10, %v2335_v13  ;;  %v4172_v13 = vld [vmem:[%s4329_s9] sm:$0xf]  ;;  %s5099_s9 = sld [smem:[#allocation25_spill]] }
 0xbe9   :  { %v2437_v12 = vunpack.c.l.bf16 %v4172_v13 }
 0xbea   :  { %v2339_v19 = vadd.f32 1.4214138, %v2337_v15  ;;  %v3482_v15 = vld [vmem:[%s5098_s12] ss:$0 sm:$0xff] }
 0xbec   :  { %v2341_v20 = vmul.f32 %v4139_v10, %v2339_v19 }
 0xbee   :  { %v2343_v22 = vadd.f32 -0.28449672, %v2341_v20  ;;  %v2433_v20 = vstv %s3485_s20 }
 0xbef   :  { %v4141_v23 = vpop.eup %4140 }
 0xbf0   :  { %v2345_v25 = vmul.f32 %v4139_v10, %v2343_v22  ;;  %v2332_v26 = vmul.f32 1.0614054, %v4141_v23  ;;  %v4143_v14 = vpop.eup %4142  ;;  %v2438_v22 = vunpack.c.l.bf16 %v4173_v21 }
 0xbf1   :  { %v4145_v40 = vpop.eup %4144 }
 0xbf2   :  { %v2347_v18 = vadd.f32 0.2548296, %v2345_v25  ;;  %v2334_v24 = vadd.f32 -1.4531521, %v2332_v26  ;;  %v2440_v25 = vmul.f32 %v2439_v17, %v2437_v12 }
 0xbf4   :  { %v2349_v58 = vmul.f32 %v4139_v10, %v2347_v18  ;;  %v2336_v29 = vmul.f32 %v4141_v23, %v2334_v24 }
 0xbf6   :  { %v2338_v30 = vadd.f32 1.4214138, %v2336_v29  ;;  %v2359_v4 = vmul.f32 %v4143_v14, %v2349_v58  ;;  %v2441_v29 = vmul.f32 %v2439_v17, %v2438_v22 }
 0xbf8   :  { %v2340_v32 = vmul.f32 %v4141_v23, %v2338_v30  ;;  %v2361_v35 = vsub.f32 1.0, %v2359_v4 }
 0xbfa   :  { %v2342_v33 = vadd.f32 -0.28449672, %v2340_v32  ;;  %v2365_v38 = vsub.f32 0.0, %v2361_v35 }
 0xbfc   :  { %v2344_v36 = vmul.f32 %v4141_v23, %v2342_v33  ;;  %v2367_v42 = vsel %vm2363_vm3, %v2361_v35, %v2365_v38 }
 0xbfd   :  { %v2369_v45 = vadd.f32 1.0, %v2367_v42 }
 0xbfe   :  { %v2346_v37 = vadd.f32 0.2548296, %v2344_v36 }
 0xbff   :  { %v2371_v48 = vmul.f32 %v2369_v45, %v2321_v16 }
 0xc00   :  { %v2348_v39 = vmul.f32 %v4141_v23, %v2346_v37 }
 0xc02   :  { %v2358_v41 = vmul.f32 %v4145_v40, %v2348_v39 }
 0xc04   :  { %v2360_v43 = vsub.f32 1.0, %v2358_v41 }
 0xc06   :  { %v2364_v44 = vsub.f32 0.0, %v2360_v43 }
 0xc08   :  { %v2366_v46 = vsel %vm2362_vm4, %v2360_v43, %v2364_v44 }
 0xc09   :  { %v2368_v47 = vadd.f32 1.0, %v2366_v46 }
 0xc0b   :  { %v2370_v49 = vmul.f32 %v2368_v47, %v2320_v34 }
 0xc0d   :  { %v2372_v51 = vpack.c.bf16 %v2371_v48, %v2370_v49 }
 0xc0f   :  { %3865 = vmatmul.mubr.msk.bf16.vlgmr.msra.gmra.mxu1 %vm685_vm1, %v2372_v51 }
 0xc10   :  { %3875 = vmatpush3.bf16.msra.mxu1 %v4061_v50  ;;  %3876 = vmatprep.mubr.msk.bf16.mxu1 %vm4304_vm0, %v4303_v1 }
 0xc11   :  { %3886 = vmatprep.subr.bf16.mxu1 %v4303_v1 }
 0xc17   :  { %3877 = vmatmul.mubr.msk.bf16.vlgmr.msra.gmra.mxu1 %vm685_vm1, %v4883_v28 }
 0xc18   :  { %3888 = vmatprep.mubr.msk.bf16.mxu1 %vm4304_vm0, %v4303_v1 }
 0xc2a   :  { %v2599_v54 = vpop.f32.mrf.mxu0 }
 0xc2b   :  { %v2600_v57 = vadd.f32 %v2599_v54, %v2555_v53 }
 0xc2c   :  { %v3884_v60 = vpop.f32.mrf.mxu0 }
 0xc2d   :  { %v2605_v59 = vsel %vm2098_vm13, %v2600_v57, -inf }
 0xc2e   :  { %2606 = vmax.xlane.f32.xlu0 %v2605_v59  ;;  %v2602_v61 = vpop.f32.mrf.mxu0 }
 0xc30   :  { %v3885_v62 = vpop.f32.mrf.mxu0 }
 0xc9d   :  { %v2714_v31 = vpop.f32.mrf.mxu0 }
 0xc9e   :  { %v2715_v0 = vadd.f32 %v2714_v31, %v2555_v53  ;;  %v4062_v53 = vld [vmem:[%s5099_s9] sm:$0xff]  }
 0xc9f   :  { %v3896_v2 = vpop.f32.mrf.mxu0 }
 0xca0   :  { %v2720_v3 = vsel %vm2098_vm13, %v2715_v0, -inf }
 0xca1   :  { %2721 = vmax.xlane.f32.xlu1 %v2720_v3  ;;  %v2717_v55 = vpop.f32.mrf.mxu0 }
 0xca3   :  { %v3897_v5 = vpop.f32.mrf.mxu0 }
 0xcb2   :  { %2665 = vperm.xlu1 %4014, %v2556_v6  }
 0xcb6   :  { %2985 = vrot.lane.b32.xlu1 %v4729_v7, %s4306_s21  ;;  %s5102_s21 = sld [smem:[#allocation36_spill]] }
 0xcb7   :  { %v2607_v8 = vpop.xlane.xlu0 %2606 }
 0xcb8   :  { %v2608_v9 = vsub.f32 %v2600_v57, %v2607_v8 }
 0xcba   :  { %v2609_v63 = vmul.f32 1.442695, %v2608_v9 }
 0xcbc   :  { %4146 = vpow2.f32 %v2609_v63 }
 0xcc9   :  { %v4147_v10 = vpop.eup %4146 }
 0xcca   :  { %v2611_v11 = vsel %vm2098_vm13, %v4147_v10, 0.0 }
 0xccb   :  { %2612 = vadd.xlane.f32.xlu0 %v2611_v11 }
 0xccf   :  { %v2425_v19 = vpop.f32.mrf.mxu1 }
 0xcd0   :  { %v2426_v23 = vadd.f32 %v3482_v15, %v2425_v19 }
 0xcd1   :  { %v3866_v26 = vpop.f32.mrf.mxu1 }
 0xcd2   :  { %v2434_v27 = vmul.f32 %v2433_v20, %v2426_v23 }
 0xcd3   :  { %v2428_v18 = vpop.f32.mrf.mxu1 }
 0xcd4   :  { %v2442_v24 = vadd.f32 %v2440_v25, %v2434_v27  ;;  %v2429_v58 = vadd.f32 %v3482_v15, %v2428_v18 }
 0xcd5   :  { %v3867_v30 = vpop.f32.mrf.mxu1 }
 0xcd6   :  { %v3514_v14 = vpack.c.bf16 %v2442_v24, %v2442_v24  ;;  %v2435_v4 = vmul.f32 %v2433_v20, %v2429_v58 }
 0xcd7   :  { %v2546_v32 = vpop.f32.mrf.mxu1 }
 0xcd8   :  { %2452 = vst [vmem:[%s4552_s24] sm:$0xf] %v3514_v14  ;;  %v2443_v33 = vadd.f32 %v2441_v29, %v2435_v4 }
 0xcd9   :  { %v3878_v35 = vpop.f32.mrf.mxu1 }
 0xcda   :  { %v3515_v36 = vpack.c.bf16 %v2443_v33, %v2443_v33 }
 0xcdb   :  { %v2549_v37 = vpop.f32.mrf.mxu1 }
 0xcdc   :  { %2453 = vst [vmem:[%s4552_s24 + $0x4] sm:$0x1] %v3515_v36  ;;  %v2553_v38 = vpack.c.bf16 %v2549_v37, %v2546_v32  ;;  %s5100_s24 = sld [smem:[#allocation16_spill]] }
 0xcdd   :  { %v3879_v39 = vpop.f32.mrf.mxu1 }
 0xcde   :  { %v2621_v40 = vsel %vm2126_vm15, %v2553_v38, 0 }
 0xcdf   :  { %3887 = vmatpush3.bf16.msra.mxu1 %v2621_v40 }
 0xce0   :  { %3898 = vmatprep.subr.bf16.mxu1 %v4303_v1 }
 0xd2a   :  { %v2722_v41 = vpop.xlane.xlu1 %2721 }
 0xd2b   :  { %v2723_v42 = vsub.f32 %v2715_v0, %v2722_v41 }
 0xd2d   :  { %v2724_v43 = vmul.f32 1.442695, %v2723_v42 }
 0xd2f   :  { %4148 = vpow2.f32 %v2724_v43 }
 0xd3c   :  { %v4149_v44 = vpop.eup %4148 }
 0xd3d   :  { %v2726_v45 = vsel %vm2098_vm13, %v4149_v44, 0.0 }
 0xd3e   :  { %2727 = vadd.xlane.f32.xlu0 %v2726_v45 }
 0xd54   :  { %v2613_v46 = vpop.xlane.xlu0 %2612  ;;  %2733 = vrot.lane.b32.xlu0 %v2553_v38, %s4308_s29 }
 0xd55   :  { %4150 = vrcp.f32 %v2613_v46  ;;  %v2982_v46 = vld [vmem:[%s5102_s21] sm:$0x7] }
 0xd58   :  { %3098 = vrot.lane.b32.xlu0 %v4729_v7, %s4305_s0  ;;  %s5101_s0 = sld [smem:[#allocation30_spill]] }
 0xd62   :  { %v4151_v16 = vpop.eup %4150 }
 0xd63   :  { %v2615_v34 = vmul.f32 %v4151_v16, %v4147_v10  ;;  %v4063_v10 = vld [vmem:[%s5100_s24] sm:$0xff]   ;;  %v2983_v16 = vunpack.c.l.bf16 %v2982_v46 }
 0xd64   :  { %3905 = vmatpush3.bf16.msra.mxu0 %v4063_v10 }
 0xd65   :  { %v2616_v47 = vpack.c.bf16 %v2615_v34, %v2615_v34  ;;  %3916 = vmatprep.subr.bf16.mxu0 %v4303_v1 }
 0xd67   :  { %3889 = vmatmul.mubr.msk.bf16.vlgmr.msra.gmra.mxu1 %vm2098_vm13, %v2616_v47 }
 0xd68   :  { %3900 = vmatprep.mubr.msk.bf16.mxu1 %vm4304_vm0, %v4303_v1 }
 0xdc7   :  { %v2728_v48 = vpop.xlane.xlu0 %2727 }
 0xdc8   :  { %4152 = vrcp.f32 %v2728_v48 }
 0xdcb   :  { %v2734_v49 = vpop.permute.xlu0 %2733 }
 0xdcc   :  { %v2739_v50 = vsel %vm2126_vm15, %v2734_v49, 0 }
 0xdcd   :  { %3899 = vmatpush3.bf16.msra.mxu1 %v2739_v50 }
 0xdce   :  { %3910 = vmatprep.subr.bf16.mxu1 %v4303_v1 }
 0xdcf   :  { %v3099_v20 = vpop.permute.xlu0 %3098 }
 0xdd5   :  { %v4153_v51 = vpop.eup %4152 }
 0xdd6   :  { %v2730_v52 = vmul.f32 %v4153_v51, %v4149_v44  ;;  %v4064_v44 = vld [vmem:[%s5101_s0] sm:$0xff]  }
 0xdd8   :  { %v2731_v7 = vpack.c.bf16 %v2730_v52, %v2730_v52 }
 0xdda   :  { %3901 = vmatmul.mubr.msk.bf16.vlgmr.msra.gmra.mxu1 %vm2098_vm13, %v2731_v7 }
 0xddb   :  { %3911 = vmatpush3.bf16.msra.mxu1 %v4062_v53  ;;  %3912 = vmatprep.mubr.msk.bf16.mxu1 %vm4304_vm0, %v4303_v1 }
 0xddc   :  { %3922 = vmatprep.subr.bf16.mxu1 %v4303_v1 }
 0xde2   :  { %3913 = vmatmul.mubr.msk.bf16.vlgmr.msra.gmra.mxu1 %vm685_vm1, %v4654_v56  ;;  %v2666_v56 = vpop.permute.xlu1 %2665 }
 0xde3   :  { %3924 = vmatprep.mubr.msk.bf16.mxu1 %vm4304_vm0, %v4303_v1 }
 0xde6   :  { %v2986_v63 = vpop.permute.xlu1 %2985 }
 0xe27   :  { %v2657_v54 = vpop.f32.mrf.mxu1 }
 0xe28   :  { %v2668_v12 = vmul.f32 %v2666_v56, %v2657_v54 }
 0xe29   :  { %v3890_v57 = vpop.f32.mrf.mxu1 }
 0xe2b   :  { %v2660_v60 = vpop.f32.mrf.mxu1 }
 0xe2c   :  { %v2984_v60 = vld [vmem:[%s5103_s10] sm:$0x3f] }
 0xe2d   :  { %v3891_v59 = vpop.f32.mrf.mxu1 }
 0xe9a   :  { %v2775_v61 = vpop.f32.mrf.mxu1 }
 0xe9b   :  { %v2781_v9 = vmul.f32 %v2775_v61, %v2666_v56 }
 0xe9c   :  { %v3902_v62 = vpop.f32.mrf.mxu1 }
 0xe9e   :  { %v2778_v31 = vpop.f32.mrf.mxu1 }
 0xea0   :  { %v3903_v0 = vpop.f32.mrf.mxu1 }
 0xea2   :  { %v2924_v2 = vpop.f32.mrf.mxu1 }
 0xea4   :  { %v3914_v3 = vpop.f32.mrf.mxu1 }
 0xea6   :  { %v2927_v55 = vpop.f32.mrf.mxu1 }
 0xea7   :  { %v2931_v5 = vpack.c.bf16 %v2927_v55, %v2924_v2  ;;  %v4174_v2 = vld [vmem:[%s4334_s13] sm:$0xf]  ;;  %s5105_s13 = sld [smem:[#allocation17_spill]] }
 0xea8   :  { %v3915_v6 = vpop.f32.mrf.mxu1  ;;  %v2876_v3 = vunpack.c.l.bf16 %v4174_v2  ;;  %v3496_v55 = vld [vmem:[%s5104_s7] ss:$0 sm:$0xff] }
 0xea9   :  { %v2991_v8 = vsel %vm796_vm2, %v2931_v5, 0  ;;  %3101 = vrot.lane.b32.xlu1 %v2931_v5, %s4308_s29  ;;  %v2877_v5 = vstv %s2875_s16 }
 0xeaa   :  { %3923 = vmatpush3.bf16.xpose.msra.mxu1 %v2991_v8  ;;  %v2873_v8 = vstv %s3499_s11 }
 0xeab   :  { %3934 = vmatprep.subr.bf16.mxu1 %v4303_v1 }
 0xead   :  { %2783 = vrot.lane.b32.xlu1 %v2781_v9, %s4310_s18  ;;  %v2878_v9 = vmul.f32 %v2877_v5, %v2876_v3 }
 0xeb1   :  { %3925 = vmatmul.mubr.msk.bf16.vlgmr.msra.gmra.mxu1 %vm796_vm2, %v2986_v63 }
 0xeb2   :  { %3936 = vmatprep.mubr.msk.bf16.mxu1 %vm4304_vm0, %v4303_v1 }
 0xf1b   :  { %v3102_v11 = vpop.permute.xlu1 %3101 }
 0xf1c   :  { %v3107_v13 = vsel %vm796_vm2, %v3102_v11, 0 }
 0xf1d   :  { %3935 = vmatpush3.bf16.xpose.msra.mxu1 %v3107_v13 }
 0xf1e   :  { %3946 = vmatprep.subr.bf16.mxu1 %v4303_v1 }
 0xf1f   :  { %v2784_v15 = vpop.permute.xlu1 %2783 }
 0xf20   :  { %v2786_v17 = vsel %vm796_vm2, %v2668_v12, %v2784_v15 }
 0xf21   :  { %v2788_v19 = vmul.f32 0.70710677, %v2786_v17  ;;  %v2787_v41 = vmul.f32 0.5, %v2786_v17 }
 0xf23   :  { %v2789_v21 = vand.u32 2147483647, %v2788_v19  ;;  %vm2808_vm5 = vcmp.ge.f32.partialorder %v2788_v19, 0.0 }
 0xf24   :  { %3937 = vmatmul.mubr.msk.bf16.vlgmr.msra.gmra.mxu1 %vm796_vm2, %v3099_v20 }
 0xf25   :  { %v2790_v22 = vmul.f32 0.3275911, %v2789_v21  ;;  %3948 = vmatprep.mubr.msk.bf16.mxu1 %vm4304_vm0, %v4303_v1  ;;  %v2802_v25 = vsub.f32 0.0, %v2789_v21 }
 0xf27   :  { %v2791_v23 = vadd.f32 1.0, %v2790_v22  ;;  %v2803_v26 = vmul.f32 %v2802_v25, %v2789_v21 }
 0xf29   :  { %4154 = vrcp.f32 %v2791_v23  ;;  %v2804_v24 = vmul.f32 1.442695, %v2803_v26 }
 0xf2b   :  { %4156 = vpow2.f32 %v2804_v24 }
 0xf36   :  { %v4155_v27 = vpop.eup %4154 }
 0xf37   :  { %v2793_v18 = vmul.f32 1.0614054, %v4155_v27 }
 0xf38   :  { %v4157_v36 = vpop.eup %4156 }
 0xf39   :  { %v2794_v58 = vadd.f32 -1.4531521, %v2793_v18 }
 0xf3b   :  { %v2795_v29 = vmul.f32 %v4155_v27, %v2794_v58 }
 0xf3d   :  { %v2796_v30 = vadd.f32 1.4214138, %v2795_v29 }
 0xf3f   :  { %v2797_v14 = vmul.f32 %v4155_v27, %v2796_v30 }
 0xf41   :  { %v2798_v4 = vadd.f32 -0.28449672, %v2797_v14 }
 0xf43   :  { %v2799_v32 = vmul.f32 %v4155_v27, %v2798_v4 }
 0xf45   :  { %v2800_v33 = vadd.f32 0.2548296, %v2799_v32 }
 0xf47   :  { %v2801_v35 = vmul.f32 %v4155_v27, %v2800_v33 }
 0xf49   :  { %v2806_v37 = vmul.f32 %v4157_v36, %v2801_v35 }
 0xf4b   :  { %v2807_v38 = vsub.f32 1.0, %v2806_v37 }
 0xf4d   :  { %v2809_v39 = vsub.f32 0.0, %v2807_v38 }
 0xf4f   :  { %v2810_v40 = vsel %vm2808_vm5, %v2807_v38, %v2809_v39 }
 0xf50   :  { %v2811_v42 = vadd.f32 1.0, %v2810_v40 }
 0xf52   :  { %v2812_v43 = vmul.f32 %v2811_v42, %v2787_v41 }
 0xf54   :  { %v2813_v45 = vpack.c.bf16 %v2812_v43, %v2812_v43 }
 0xf56   :  { %3907 = vmatmul.mubr.msk.bf16.vlgmr.msra.gmra.mxu0 %vm685_vm1, %v2813_v45 }
 0xf57   :  { %3917 = vmatpush3.bf16.msra.mxu0 %v4064_v44  ;;  %3918 = vmatprep.mubr.msk.bf16.mxu0 %vm4304_vm0, %v4303_v1 }
 0xf58   :  { %3928 = vmatprep.subr.bf16.mxu0 %v4303_v1 }
 0xf5e   :  { %3919 = vmatmul.mubr.msk.bf16.vlgmr.msra.gmra.mxu0 %vm685_vm1, %v4883_v28 }
 0xf5f   :  { %3930 = vmatprep.mubr.msk.bf16.mxu0 %vm4304_vm0, %v4303_v1 }
 0xf71   :  { %v3027_v34 = vpop.f32.mrf.mxu1 }
 0xf72   :  { %v3028_v47 = vadd.f32 %v3027_v34, %v2983_v16 }
 0xf73   :  { %v3926_v48 = vpop.f32.mrf.mxu1 }
 0xf74   :  { %v3034_v49 = vsel %vm3033_vm6, %v3028_v47, -inf }
 0xf75   :  { %3035 = vmax.xlane.f32.xlu0 %v3034_v49  ;;  %v3030_v50 = vpop.f32.mrf.mxu1 }
 0xf77   :  { %v3927_v51 = vpop.f32.mrf.mxu1 }
 0xfe4   :  { %v3143_v52 = vpop.f32.mrf.mxu1 }
 0xfe5   :  { %v3144_v53 = vadd.f32 %v3143_v52, %v2983_v16  ;;  %v4065_v16 = vld [vmem:[%s5105_s13] sm:$0xff]  }
 0xfe6   :  { %v3938_v7 = vpop.f32.mrf.mxu1  ;;  %3947 = vmatpush3.bf16.msra.mxu1 %v4065_v16 }
 0xfe7   :  { %v3149_v28 = vsel %vm3033_vm6, %v3144_v53, -inf }
 0xfe8   :  { %3150 = vmax.xlane.f32.xlu1 %v3149_v28  ;;  %v3146_v54 = vpop.f32.mrf.mxu1 }
 0xfea   :  { %v3939_v57 = vpop.f32.mrf.mxu1 }
 0xff9   :  { %3094 = vperm.xlu1 %4014, %v2984_v60  }
 0xffe   :  { %v3036_v59 = vpop.xlane.xlu0 %3035 }
 0xfff   :  { %v3037_v61 = vsub.f32 %v3028_v47, %v3036_v59 }
0x1001   :  { %v3038_v62 = vmul.f32 1.442695, %v3037_v61 }
0x1003   :  { %4158 = vpow2.f32 %v3038_v62 }
0x1010   :  { %v4159_v31 = vpop.eup %4158 }
0x1011   :  { %v3040_v0 = vsel %vm3033_vm6, %v4159_v31, 0.0 }
0x1012   :  { %3041 = vadd.xlane.f32.xlu0 %v3040_v0 }
0x1016   :  { %v2866_v6 = vpop.f32.mrf.mxu0 }
0x1017   :  { %v2867_v56 = vadd.f32 %v3496_v55, %v2866_v6 }
0x1018   :  { %v3908_v63 = vpop.f32.mrf.mxu0 }
0x1019   :  { %v2874_v10 = vmul.f32 %v2873_v8, %v2867_v56 }
0x101a   :  { %v2869_v11 = vpop.f32.mrf.mxu0 }
0x101b   :  { %v2879_v13 = vadd.f32 %v2878_v9, %v2874_v10 }
0x101c   :  { %v3909_v12 = vpop.f32.mrf.mxu0 }
0x101d   :  { %v2880_v15 = vpack.c.bf16 %v2879_v13, %v2879_v13 }
0x101e   :  { %v2974_v17 = vpop.f32.mrf.mxu0 }
0x101f   :  { %2881 = vst [vmem:[#allocation6] sm:$0xf] %v2880_v15 }
0x1020   :  { %v3920_v19 = vpop.f32.mrf.mxu0 }
0x1022   :  { %v2977_v20 = vpop.f32.mrf.mxu0 }
0x1023   :  { %v2981_v21 = vpack.c.bf16 %v2977_v20, %v2974_v17 }
0x1024   :  { %v3921_v22 = vpop.f32.mrf.mxu0 }
0x1025   :  { %v3050_v23 = vsel %vm2126_vm15, %v2981_v21, 0 }
0x1026   :  { %3929 = vmatpush3.bf16.msra.mxu0 %v3050_v23 }
0x1027   :  { %3940 = vmatprep.subr.bf16.mxu0 %v4303_v1 }
0x1071   :  { %v3151_v25 = vpop.xlane.xlu1 %3150 }
0x1072   :  { %v3152_v26 = vsub.f32 %v3144_v53, %v3151_v25 }
0x1074   :  { %v3153_v27 = vmul.f32 1.442695, %v3152_v26 }
0x1075   :  { %v3095_v42 = vpop.permute.xlu1 %3094 }
0x1076   :  { %4160 = vpow2.f32 %v3153_v27 }
0x1083   :  { %v4161_v18 = vpop.eup %4160 }
0x1084   :  { %v3155_v24 = vsel %vm3033_vm6, %v4161_v18, 0.0 }
0x1085   :  { %3156 = vadd.xlane.f32.xlu0 %v3155_v24 }
0x109b   :  { %v3042_v58 = vpop.xlane.xlu0 %3041  ;;  %3162 = vrot.lane.b32.xlu0 %v2981_v21, %s4308_s29  ;;  %s4311_s29 = smov [#allocation6]  }
0x109c   :  { %4162 = vrcp.f32 %v3042_v58  ;;  %s3331_s15 = sshll.u32 %s4311_s29, 4  ;;  %s3332_s15 = int_to_ptr.vmem [resolvable:$true] %s3331_s15 }
0x109d   :  { %s4188_s22 = scalar_lea.vmem %s3332_s15, 64  ;;  %p4193_p6 = scmp.lt.s32.totalorder %s3332_s15, %s3332_s15 }
0x109e   :  { %p4189_p5 = scmp.ne.s32.totalorder %s3332_s15, %s4188_s22  ;;  %p4194_p7 = scmp.lt.s32.totalorder %s4188_s22, %s4188_s22 }
0x10a0   :  { %p4195_p8 = por %p4194_p7, %p4193_p6 }
0x10a2   :  { %p4196_p9 = pnand %p4195_p8, %p4189_p5 }
0x10a9   :  { %v4163_v29 = vpop.eup %4162 }
0x10aa   :  { %v3044_v30 = vmul.f32 %v4163_v29, %v4159_v31 }
0x10ac   :  { %v3045_v14 = vpack.c.bf16 %v3044_v30, %v3044_v30 }
0x10ae   :  { %3931 = vmatmul.mubr.msk.bf16.vlgmr.msra.gmra.mxu0 %vm2098_vm13, %v3045_v14 }
0x10af   :  { %3942 = vmatprep.mubr.msk.bf16.mxu0 %vm4304_vm0, %v4303_v1 }
0x110e   :  { %v3157_v4 = vpop.xlane.xlu0 %3156 }
0x110f   :  { %4164 = vrcp.f32 %v3157_v4 }
0x1112   :  { %v3163_v32 = vpop.permute.xlu0 %3162 }
0x1113   :  { %v3168_v33 = vsel %vm2126_vm15, %v3163_v32, 0 }
0x1114   :  { %3941 = vmatpush3.bf16.msra.mxu0 %v3168_v33 }
0x111c   :  { %v4165_v35 = vpop.eup %4164 }
0x111d   :  { %v3159_v36 = vmul.f32 %v4165_v35, %v4161_v18 }
0x111f   :  { %v3160_v37 = vpack.c.bf16 %v3159_v36, %v3159_v36 }
0x1121   :  { %3943 = vmatmul.mubr.msk.bf16.vlgmr.msra.gmra.mxu0 %vm2098_vm13, %v3160_v37 }
0x116e   :  { %v3086_v38 = vpop.f32.mrf.mxu0 }
0x116f   :  { %v3097_v34 = vmul.f32 %v3095_v42, %v3086_v38 }
0x1170   :  { %v3932_v39 = vpop.f32.mrf.mxu0 }
0x1172   :  { %v3089_v40 = vpop.f32.mrf.mxu0 }
0x1174   :  { %v3933_v41 = vpop.f32.mrf.mxu0 }
0x11e1   :  { %v3204_v43 = vpop.f32.mrf.mxu0 }
0x11e2   :  { %v3210_v44 = vmul.f32 %v3204_v43, %v3095_v42 }
0x11e3   :  { %v3944_v1 = vpop.f32.mrf.mxu0 }
0x11e4   :  { %3212 = vrot.lane.b32.xlu1 %v3210_v44, %s4310_s18  ;;  %s4312_s18 = smov [#allocation5]  }
0x11e5   :  { %v3207_v45 = vpop.f32.mrf.mxu0  ;;  %s3316_s23 = sshll.u32 %s4312_s18, 4  ;;  %s3317_s23 = int_to_ptr.vmem [resolvable:$true] %s3316_s23 }
0x11e7   :  { %v3945_v46 = vpop.f32.mrf.mxu0 }
0x1256   :  { %v3213_v47 = vpop.permute.xlu1 %3212 }
0x1257   :  { %v3215_v48 = vsel %vm796_vm2, %v3097_v34, %v3213_v47 }
0x1258   :  { %v3217_v49 = vmul.f32 0.70710677, %v3215_v48  ;;  %v3216_v9 = vmul.f32 0.5, %v3215_v48 }
0x125a   :  { %v3218_v50 = vand.u32 2147483647, %v3217_v49  ;;  %vm3237_vm0 = vcmp.ge.f32.partialorder %v3217_v49, 0.0 }
0x125c   :  { %v3219_v51 = vmul.f32 0.3275911, %v3218_v50  ;;  %v3231_v53 = vsub.f32 0.0, %v3218_v50 }
0x125e   :  { %v3220_v52 = vadd.f32 1.0, %v3219_v51  ;;  %v3232_v7 = vmul.f32 %v3231_v53, %v3218_v50 }
0x1260   :  { %4166 = vrcp.f32 %v3220_v52  ;;  %v3233_v57 = vmul.f32 1.442695, %v3232_v7 }
0x1262   :  { %4168 = vpow2.f32 %v3233_v57 }
0x126d   :  { %v4167_v28 = vpop.eup %4166 }
0x126e   :  { %v3222_v54 = vmul.f32 1.0614054, %v4167_v28 }
0x126f   :  { %v4169_v55 = vpop.eup %4168 }
0x1270   :  { %v3223_v60 = vadd.f32 -1.4531521, %v3222_v54 }
0x1272   :  { %v3224_v59 = vmul.f32 %v4167_v28, %v3223_v60 }
0x1274   :  { %v3225_v61 = vadd.f32 1.4214138, %v3224_v59 }
0x1276   :  { %v3226_v62 = vmul.f32 %v4167_v28, %v3225_v61 }
0x1278   :  { %v3227_v31 = vadd.f32 -0.28449672, %v3226_v62 }
0x127a   :  { %v3228_v0 = vmul.f32 %v4167_v28, %v3227_v31 }
0x127c   :  { %v3229_v2 = vadd.f32 0.2548296, %v3228_v0 }
0x127e   :  { %v3230_v3 = vmul.f32 %v4167_v28, %v3229_v2 }
0x1280   :  { %v3235_v5 = vmul.f32 %v4169_v55, %v3230_v3 }
0x1282   :  { %v3236_v6 = vsub.f32 1.0, %v3235_v5 }
0x1284   :  { %v3238_v8 = vsub.f32 0.0, %v3236_v6 }
0x1286   :  { %v3239_v56 = vsel %vm3237_vm0, %v3236_v6, %v3238_v8 }
0x1287   :  { %v3240_v63 = vadd.f32 1.0, %v3239_v56 }
0x1289   :  { %v3241_v10 = vmul.f32 %v3240_v63, %v3216_v9 }
0x128b   :  { %v3242_v11 = vpack.c.bf16 %v3241_v10, %v3241_v10 }
0x128d   :  { %3949 = vmatmul.mubr.msk.bf16.vlgmr.msra.gmra.mxu1 %vm685_vm1, %v3242_v11 }
0x128e   :  { %4199 = shalt.err (!%p4196_p9)
}
0x128f   :  { %3334 = dma.vmem_to_hbm [thread:$0]  %s3332_s15, 64, %s4557_s4, [#allocation7]  }
0x1290   :  { %s4208_s26 = scalar_lea.vmem %s3317_s23, 128  ;;  %p4213_p11 = scmp.lt.s32.totalorder %s3317_s23, %s3317_s23 }
0x1291   :  { %p4209_p10 = scmp.ne.s32.totalorder %s3317_s23, %s4208_s26  ;;  %p4214_p12 = scmp.lt.s32.totalorder %s4208_s26, %s4208_s26 }
0x1293   :  { %p4215_p13 = por %p4214_p12, %p4213_p11 }
0x1295   :  { %p4216_p0 = pnand %p4215_p13, %p4209_p10 }
0x1297   :  { %4219 = shalt.err (!%p4216_p0)
}
0x1298   :  { %s4313_s1 = smov 64   ;;  %s5106_s28 = sld [smem:[#allocation21_spill]]  ;;  %v4175_v13 = vld [vmem:[%s4339_s17] sm:$0x7] }
0x1299   :  { %s4314_s2 = smov 4   ;;  %s3511_s5 = sld [smem:[#allocation2 + $0x3]]  ;;  %v3305_v12 = vunpack.c.l.bf16 %v4175_v13 }
0x129a   :  { %3322 = dma.vmem_to_hbm [thread:$0]  %s3317_s23, 128, %s4547_s30, [#allocation3], %s4313_s1, %s4313_s1, %s4314_s2  }
0x129b   :  { %s4315_s4 = smov [#allocation8]  }
0x129c   :  { %s3341_s3 = sshll.u32 %s4315_s4, 4  ;;  %s3342_s3 = int_to_ptr.vmem [resolvable:$true] %s3341_s3 }
0x129d   :  { %s4228_s30 = scalar_lea.vmem %s3342_s3, 64  ;;  %p4233_p2 = scmp.lt.s32.totalorder %s3342_s3, %s3342_s3 }
0x129e   :  { %v3508_v15 = vld [vmem:[%s5106_s28] ss:$0 sm:$0xff]  ;;  %p4229_p1 = scmp.ne.s32.totalorder %s3342_s3, %s4228_s30  ;;  %p4234_p3 = scmp.lt.s32.totalorder %s4228_s30, %s4228_s30 }
0x129f   :  { %s3304_s25 = ssub.f32 1.0, %s3511_s5  ;;  %v3302_v20 = vstv %s3511_s5 }
0x12a0   :  { %p4235_p4 = por %p4234_p3, %p4233_p2 }
0x12a1   :  { %v3306_v17 = vstv %s3304_s25 }
0x12a2   :  { %v3307_v22 = vmul.f32 %v3306_v17, %v3305_v12  ;;  %p4236_p5 = pnand %p4235_p4, %p4229_p1 }
0x134d   :  { %v3295_v19 = vpop.f32.mrf.mxu1 }
0x134e   :  { %v3296_v21 = vadd.f32 %v3508_v15, %v3295_v19 }
0x134f   :  { %v3950_v23 = vpop.f32.mrf.mxu1 }
0x1350   :  { %v3303_v25 = vmul.f32 %v3302_v20, %v3296_v21 }
0x1351   :  { %v3298_v26 = vpop.f32.mrf.mxu1 }
0x1352   :  { %v3308_v27 = vadd.f32 %v3307_v22, %v3303_v25 }
0x1353   :  { %v3951_v18 = vpop.f32.mrf.mxu1 }
0x1354   :  { %v3309_v24 = vpack.c.bf16 %v3308_v27, %v3308_v27 }
0x1356   :  { %3310 = vst [vmem:[#allocation8] sm:$0x7] %v3309_v24 }
0x1357   :  { %4239 = shalt.err (!%p4236_p5)
}
0x1358   :  { %3344 = dma.vmem_to_hbm [thread:$0]  %s3342_s3, 64, %s4562_s19, [#allocation7]  }
0x1359   :  { %4250 = dma.done.wait [#allocation3], 128  }
0x135a   :  { %4251 = vsyncadd [#allocation3], 4294967168 }
0x135b   :  { %4252 = dma.done.wait [#allocation7], 128  }
0x135c   :  { %4253 = vsyncadd [#allocation7], 4294967168 }
0x135d   :  { %3356 = vsyncpa [#allocation3], 1 }
0x135e   :  { %3357 = vsyncpa [#allocation7], 1 }
0x135f   :  { %3358 = vsyncpa [#allocation4], 1 }

</bundles_post_ra>
